<compile_context>
chip_gen: v6e
topology: v6e:2x2x1
jax: 0.10.0
libtpu: 0.0.40
codegen_flags: <defaults>
</compile_context>

<pallas_src>
import functools

import numpy as np

import jax
import jax.numpy as jnp
from jax.experimental import pallas as pl
from jax.experimental.pallas import tpu as pltpu


# ----------------------------- pallas helpers ------------------------------

def _full_spec(shape):
    nd = len(shape)
    return pl.BlockSpec(shape, lambda *_: (0,) * nd)


# ------------------------------- fused kernel -------------------------------

def _autoencoder_kernel(x_ref, t1_ref, b1_ref, t2_ref, b2_ref,
                        wfe_ref, bfe_ref, wfd_ref, bfd_ref,
                        u1_ref, bt1_ref, t3_ref, b3_ref,
                        out_ref,
                        xpad_ref, h1pad_ref, h2_ref, upad_ref, pool_ref,
                        *, n, img, half):
    f32 = jnp.float32
    wp = img + 2

    # ---- stage 0: NCHW input -> zero-padded channel-major slab (N, H+2, 3*(W+2))
    xpad_ref[...] = jnp.zeros(xpad_ref.shape, f32)
    for c in range(3):
        xpad_ref[:, 1:1 + img, c * wp + 1:c * wp + 1 + img] = x_ref[:, c, :, :]

    # ---- Conv2d(3,8,k3,p1) + ReLU : 3 lane-dense slab matmuls (K = 3*(W+2)) ----
    acc = jnp.dot(xpad_ref[:, 0:img, :].reshape(n * img, 3 * wp), t1_ref[0],
                  preferred_element_type=f32) + b1_ref[...]
    for kh in (1, 2):
        acc = acc + jnp.dot(xpad_ref[:, kh:kh + img, :].reshape(n * img, 3 * wp),
                            t1_ref[kh], preferred_element_type=f32)
    h1 = jnp.maximum(acc, 0.0)                           # (N*H, W*8), cols [w*8+o]

    # ---- pad conv1 output into slab (N, H+2, 8*(W+2)), cols [wi*8 + c] ----
    h1pad_ref[...] = jnp.zeros(h1pad_ref.shape, f32)
    h1pad_ref[:, 1:1 + img, 8:8 + img * 8] = h1.reshape(n, img, img * 8)

    # ---- Conv2d(8,16,k3,p1) + ReLU (K = 8*(W+2)) ----
    acc = jnp.dot(h1pad_ref[:, 0:img, :].reshape(n * img, 8 * wp), t2_ref[0],
                  preferred_element_type=f32) + b2_ref[...]
    for kh in (1, 2):
        acc = acc + jnp.dot(h1pad_ref[:, kh:kh + img, :].reshape(n * img, 8 * wp),
                            t2_ref[kh], preferred_element_type=f32)
    h2_ref[...] = jnp.maximum(acc, 0.0).reshape(n, img, img * 16)   # [n, h, w*16+c]

    # ---- MaxPool2d(2,2) fused in VMEM; result written directly as the flat FC
    #      input in slab order q = i*(half*16) + j*16 + c (the FC weight rows
    #      are pre-permuted to this order, matching PyTorch's NCHW flatten).
    for i in range(half):
        rmax = jnp.maximum(h2_ref[:, 2 * i, :], h2_ref[:, 2 * i + 1, :])  # (N, W*16)
        for j in range(half):
            blk = jnp.maximum(rmax[:, (2 * j) * 16:(2 * j + 1) * 16],
                              rmax[:, (2 * j + 1) * 16:(2 * j + 2) * 16])
            pool_ref[:, i * half * 16 + j * 16:i * half * 16 + (j + 1) * 16] = blk

    # ---- encoder Linear(e1 -> 1024): bf16 weight, f32 accumulate ----
    z = jnp.dot(pool_ref[...].astype(wfe_ref.dtype), wfe_ref[...],
                preferred_element_type=f32) + bfe_ref[...]            # (N, 1024)

    # ---- decoder Linear(1024 -> e1) + (View) + ReLU; weight columns/bias are
    #      pre-permuted to the slab order h*(half*16) + w*16 + c. ----
    d1 = jnp.dot(z.astype(wfd_ref.dtype), wfd_ref[...],
                 preferred_element_type=f32) + bfd_ref[...]
    d1 = jnp.maximum(d1, 0.0)                                         # (N, e1)

    # ---- ConvTranspose2d(16,8,k2,s2) + ReLU: one matmul per input row h emits
    #      both output rows (2h, 2h+1) already W-interleaved; written straight
    #      into the zero-padded slab consumed by the final conv. ----
    upad_ref[...] = jnp.zeros(upad_ref.shape, f32)
    u1 = u1_ref[...]
    bt1 = bt1_ref[...]
    for h in range(half):
        row = d1[:, h * half * 16:(h + 1) * half * 16]                # (N, half*16)
        y = jnp.maximum(jnp.dot(row, u1, preferred_element_type=f32) + bt1, 0.0)
        upad_ref[:, 2 * h + 1, 8:8 + img * 8] = y[:, 0:img * 8]
        upad_ref[:, 2 * h + 2, 8:8 + img * 8] = y[:, img * 8:2 * img * 8]

    # ---- ConvTranspose2d(8,3,k3,s1,p1) + Tanh == 3x3 conv with flipped kernel;
    #      output columns are channel-major [o*W + w] so NCHW is emitted with
    #      three static slice stores. ----
    acc = jnp.dot(upad_ref[:, 0:img, :].reshape(n * img, 8 * wp), t3_ref[0],
                  preferred_element_type=f32) + b3_ref[...]
    for kh in (1, 2):
        acc = acc + jnp.dot(upad_ref[:, kh:kh + img, :].reshape(n * img, 8 * wp),
                            t3_ref[kh], preferred_element_type=f32)
    y3 = jnp.tanh(acc).reshape(n, img, 3 * img)                       # [n, h, o*W+w]
    for o in range(3):
        out_ref[:, o, :, :] = y3[:, :, o * img:(o + 1) * img]


# --------------------- one-time host-side parameter prep ---------------------

def _conv_slab_weights(w_conv, w_out, row_order, col_order):
    """Toeplitz 'slab' weights for a 3x3 same-padded conv.

    w_conv: (Cout, Cin, 3, 3).  Returns T of shape (3, (w_out+2)*Cin, w_out*Cout)
    with out_slab[n, h, :] = sum_kh xpad_slab[n, h+kh, :] @ T[kh].
    row layout: "cw" -> c*(w_out+2)+wi ; "wc" -> wi*Cin+c
    col layout: "wo" -> wo*Cout+o      ; "ow" -> o*w_out+wo
    """
    w_conv = np.asarray(w_conv, np.float32)
    cout, cin, nkh, nkw = w_conv.shape
    wp = w_out + 2
    t = np.zeros((nkh, wp * cin, w_out * cout), np.float32)
    ci = np.arange(cin)
    co = np.arange(cout)
    for kh in range(nkh):
        for kw in range(nkw):
            blk = w_conv[:, :, kh, kw].T                      # (Cin, Cout)
            for wo in range(w_out):
                wi = wo + kw
                rows = ci * wp + wi if row_order == "cw" else wi * cin + ci
                cols = co * w_out + wo if col_order == "ow" else wo * cout + co
                t[kh, rows[:, None], cols[None, :]] = blk
    return t


def prepare_params(params, img_size, fc_dtype=jnp.bfloat16):
    """Hoisted out of the jitted forward: all layout transforms happen once."""
    w = img_size
    half = w // 2
    e1 = 16 * half * half

    c1w = np.asarray(params["conv1_w"], np.float32)     # (8, 3, 3, 3)
    c2w = np.asarray(params["conv2_w"], np.float32)     # (16, 8, 3, 3)
    d1w = np.asarray(params["deconv1_w"], np.float32)   # (16, 8, 2, 2) ConvT (Cin,Cout,kh,kw)
    d2w = np.asarray(params["deconv2_w"], np.float32)   # (8, 3, 3, 3)  ConvT

    t1 = _conv_slab_weights(c1w, w, row_order="cw", col_order="wo")
    b1 = np.tile(np.asarray(params["conv1_b"], np.float32), w)[None, :]
    t2 = _conv_slab_weights(c2w, w, row_order="wc", col_order="wo")
    b2 = np.tile(np.asarray(params["conv2_b"], np.float32), w)[None, :]

    # slab flat index q = i*(half*16) + j*16 + c  <->  torch flatten k = c*hh + i*half + j
    q = np.arange(e1)
    i = q // (half * 16)
    j = (q // 16) % half
    c = q % 16
    perm = c * half * half + i * half + j

    wfe = np.asarray(params["enc_fc_w"], np.float32)    # (e2, e1) torch (out, in)
    wfe_p = wfe.T[perm, :]                              # (e1, e2), rows in slab order
    bfe = np.asarray(params["enc_fc_b"], np.float32)[None, :]

    wfd = np.asarray(params["dec_fc_w"], np.float32)    # (e1, e2) torch (out, in)
    wfd_p = wfd.T[:, perm]                              # (e2, e1), cols in slab order
    bfd = np.asarray(params["dec_fc_b"], np.float32)[perm][None, :]

    # ConvT(16,8,k2,s2): U[w*16+c, kh*(W*8) + (2w+kw)*8 + o] = W[c, o, kh, kw]
    u1 = np.zeros((half * 16, 2 * w * 8), np.float32)
    for ww in range(half):
        for kh in range(2):
            for kw in range(2):
                col0 = kh * (w * 8) + (2 * ww + kw) * 8
                u1[ww * 16:(ww + 1) * 16, col0:col0 + 8] = d1w[:, :, kh, kw]
    bt1 = np.tile(np.asarray(params["deconv1_b"], np.float32), 2 * w)[None, :]

    # ConvT(8,3,k3,s1,p1) == 3x3 conv with spatially flipped kernel, in/out swapped.
    d2_conv = np.transpose(d2w[:, :, ::-1, ::-1], (1, 0, 2, 3))       # (3, 8, 3, 3)
    t3 = _conv_slab_weights(d2_conv, w, row_order="wc", col_order="ow")
    b3 = np.repeat(np.asarray(params["deconv2_b"], np.float32), w)[None, :]

    jf = lambda a: jnp.asarray(a, jnp.float32)
    return {
        "t1": jf(t1), "b1": jf(b1),
        "t2": jf(t2), "b2": jf(b2),
        "wfe": jnp.asarray(wfe_p, fc_dtype), "bfe": jf(bfe),
        "wfd": jnp.asarray(wfd_p, fc_dtype), "bfd": jf(bfd),
        "u1": jf(u1), "bt1": jf(bt1),
        "t3": jf(t3), "b3": jf(b3),
    }


# ------------------------------- forward ------------------------------------

def autoencoder_forward(kparams, x_nchw, img_size):
    n = x_nchw.shape[0]
    half = img_size // 2
    wp = img_size + 2
    e1 = 16 * half * half

    args = (
        x_nchw,
        kparams["t1"], kparams["b1"],
        kparams["t2"], kparams["b2"],
        kparams["wfe"], kparams["bfe"],
        kparams["wfd"], kparams["bfd"],
        kparams["u1"], kparams["bt1"],
        kparams["t3"], kparams["b3"],
    )
    kernel = functools.partial(_autoencoder_kernel, n=n, img=img_size, half=half)
    out_shape = jax.ShapeDtypeStruct((n, 3, img_size, img_size), jnp.float32)

    return pl.pallas_call(
        kernel,
        grid=(1,),
        in_specs=[_full_spec(a.shape) for a in args],
        out_specs=_full_spec(out_shape.shape),
        out_shape=out_shape,
        scratch_shapes=[
            pltpu.VMEM((n, wp, 3 * wp), jnp.float32),               # padded input slab
            pltpu.VMEM((n, wp, 8 * wp), jnp.float32),               # padded conv1 output
            pltpu.VMEM((n, img_size, 16 * img_size), jnp.float32),  # conv2 output
            pltpu.VMEM((n, wp, 8 * wp), jnp.float32),               # padded upsampled act
            pltpu.VMEM((n, e1), jnp.float32),                       # pooled / flattened
        ],
        compiler_params=pltpu.CompilerParams(
            dimension_semantics=("arbitrary",),
            vmem_limit_bytes=48 * 1024 * 1024,
        ),
    )(*args)


# ----------------------------- parameters -----------------------------------

def init_params(key, img_size):
    """Deterministic synthetic params, stored in PyTorch-convention shapes."""
    half = img_size // 2
    e1 = 16 * half * half
    e2 = 1024
    ks = jax.random.split(key, 12)

    def nrm(k, shape, scale):
        return scale * jax.random.normal(k, shape, jnp.float32)

    return {
        "conv1_w": nrm(ks[0], (8, 3, 3, 3), 0.10),     # Conv2d: (Cout,Cin,kH,kW)
        "conv1_b": nrm(ks[1], (8,), 0.10),
        "conv2_w": nrm(ks[2], (16, 8, 3, 3), 0.10),
        "conv2_b": nrm(ks[3], (16,), 0.10),
        "enc_fc_w": nrm(ks[4], (e2, e1), 0.02),        # Linear: (out,in)
        "enc_fc_b": nrm(ks[5], (e2,), 0.02),
        "dec_fc_w": nrm(ks[6], (e1, e2), 0.02),
        "dec_fc_b": nrm(ks[7], (e1,), 0.02),
        "deconv1_w": nrm(ks[8], (16, 8, 2, 2), 0.10),  # ConvT: (Cin,Cout,kH,kW)
        "deconv1_b": nrm(ks[9], (8,), 0.10),
        "deconv2_w": nrm(ks[10], (8, 3, 3, 3), 0.10),
        "deconv2_b": nrm(ks[11], (3,), 0.10),
    }


# --------------------------------- main --------------------------------------

if __name__ == "__main__":
    IMG = 16                       # dense_dim = [16, 8, 8] -> e1 = 1024, e2 = 1024
    key = jax.random.PRNGKey(0)
    pkey, xkey = jax.random.split(key)

    params = init_params(pkey, IMG)
    kparams = prepare_params(params, IMG)          # one-time layout prep (not jitted)
    x = jax.random.normal(xkey, (2, 3, IMG, IMG), jnp.float32)   # NCHW like PyTorch

    fwd = jax.jit(functools.partial(autoencoder_forward, img_size=IMG))
    y = fwd(kparams, x)
    jax.block_until_ready(y)

    assert y.shape == (2, 3, IMG, IMG), y.shape
    assert y.dtype == jnp.float32
    assert bool(jnp.all(jnp.isfinite(y)))
    assert bool(jnp.all(jnp.abs(y) <= 1.0))        # tanh output range
    print("KERNEL_OK")
</pallas_src>

<mosaic_0001>
module attributes {stable_mosaic.version = 11 : i64} {
  func.func @_autoencoder_kernel(%arg0: i32, %arg1: memref<2x3x16x16xf32, #tpu.memory_space<vmem>>, %arg2: memref<3x54x128xf32, #tpu.memory_space<vmem>>, %arg3: memref<1x128xf32, #tpu.memory_space<vmem>>, %arg4: memref<3x144x256xf32, #tpu.memory_space<vmem>>, %arg5: memref<1x256xf32, #tpu.memory_space<vmem>>, %arg6: memref<1024x1024xbf16, #tpu.memory_space<vmem>>, %arg7: memref<1x1024xf32, #tpu.memory_space<vmem>>, %arg8: memref<1024x1024xbf16, #tpu.memory_space<vmem>>, %arg9: memref<1x1024xf32, #tpu.memory_space<vmem>>, %arg10: memref<128x256xf32, #tpu.memory_space<vmem>>, %arg11: memref<1x256xf32, #tpu.memory_space<vmem>>, %arg12: memref<3x144x48xf32, #tpu.memory_space<vmem>>, %arg13: memref<1x48xf32, #tpu.memory_space<vmem>>, %arg14: memref<2x3x16x16xf32, #tpu.memory_space<vmem>>, %arg15: memref<2x18x54xf32, #tpu.memory_space<vmem>>, %arg16: memref<2x18x144xf32, #tpu.memory_space<vmem>>, %arg17: memref<2x16x256xf32, #tpu.memory_space<vmem>>, %arg18: memref<2x18x144xf32, #tpu.memory_space<vmem>>, %arg19: memref<2x1024xf32, #tpu.memory_space<vmem>>) attributes {dimension_semantics = [#tpu.dimension_semantics<arbitrary>], iteration_bounds = array<i64: 1>, scalar_prefetch = 0 : i64, scratch_operands = 5 : i64, tpu.core_type = #tpu.core_type<tc>, window_params = [{pipeline_mode = #tpu.pipeline_mode<synchronous>, transform_indices = @transform_0, window_bounds = array<i64: 2, 3, 16, 16>}, {pipeline_mode = #tpu.pipeline_mode<synchronous>, transform_indices = @transform_1, window_bounds = array<i64: 3, 54, 128>}, {pipeline_mode = #tpu.pipeline_mode<synchronous>, transform_indices = @transform_2, window_bounds = array<i64: 1, 128>}, {pipeline_mode = #tpu.pipeline_mode<synchronous>, transform_indices = @transform_3, window_bounds = array<i64: 3, 144, 256>}, {pipeline_mode = #tpu.pipeline_mode<synchronous>, transform_indices = @transform_4, window_bounds = array<i64: 1, 256>}, {pipeline_mode = #tpu.pipeline_mode<synchronous>, transform_indices = @transform_5, window_bounds = array<i64: 1024, 1024>}, {pipeline_mode = #tpu.pipeline_mode<synchronous>, transform_indices = @transform_6, window_bounds = array<i64: 1, 1024>}, {pipeline_mode = #tpu.pipeline_mode<synchronous>, transform_indices = @transform_7, window_bounds = array<i64: 1024, 1024>}, {pipeline_mode = #tpu.pipeline_mode<synchronous>, transform_indices = @transform_8, window_bounds = array<i64: 1, 1024>}, {pipeline_mode = #tpu.pipeline_mode<synchronous>, transform_indices = @transform_9, window_bounds = array<i64: 128, 256>}, {pipeline_mode = #tpu.pipeline_mode<synchronous>, transform_indices = @transform_10, window_bounds = array<i64: 1, 256>}, {pipeline_mode = #tpu.pipeline_mode<synchronous>, transform_indices = @transform_11, window_bounds = array<i64: 3, 144, 48>}, {pipeline_mode = #tpu.pipeline_mode<synchronous>, transform_indices = @transform_12, window_bounds = array<i64: 1, 48>}, {pipeline_mode = #tpu.pipeline_mode<synchronous>, transform_indices = @transform_13, window_bounds = array<i64: 2, 3, 16, 16>}]} {
    %cst = arith.constant 0.000000e+00 : f32
    %0 = vector.broadcast %cst : f32 to vector<2x18x54xf32>
    %c0 = arith.constant 0 : index
    %c0_0 = arith.constant 0 : index
    %c0_1 = arith.constant 0 : index
    %1 = vector.load %arg15[%c0, %c0_0, %c0_1] : memref<2x18x54xf32, #tpu.memory_space<vmem>>, vector<2x18x54xf32>
    tpu.vector_store %arg15[%c0, %c0_0, %c0_1], %0 {strides = array<i32>} : memref<2x18x54xf32, #tpu.memory_space<vmem>>, vector<2x18x54xf32>,
    %c0_2 = arith.constant 0 : index
    %c0_3 = arith.constant 0 : index
    %c0_4 = arith.constant 0 : index
    %c0_5 = arith.constant 0 : index
    %2 = vector.load %arg1[%c0_2, %c0_3, %c0_4, %c0_5] : memref<2x3x16x16xf32, #tpu.memory_space<vmem>>, vector<2x1x16x16xf32>
    %3 = vector.shape_cast %2 : vector<2x1x16x16xf32> to vector<2x16x16xf32>
    %c0_6 = arith.constant 0 : index
    %c1 = arith.constant 1 : index
    %c1_7 = arith.constant 1 : index
    %4 = vector.load %arg15[%c0_6, %c1, %c1_7] : memref<2x18x54xf32, #tpu.memory_space<vmem>>, vector<2x16x16xf32>
    tpu.vector_store %arg15[%c0_6, %c1, %c1_7], %3 {strides = array<i32>} : memref<2x18x54xf32, #tpu.memory_space<vmem>>, vector<2x16x16xf32>,
    %c0_8 = arith.constant 0 : index
    %c1_9 = arith.constant 1 : index
    %c0_10 = arith.constant 0 : index
    %c0_11 = arith.constant 0 : index
    %5 = vector.load %arg1[%c0_8, %c1_9, %c0_10, %c0_11] : memref<2x3x16x16xf32, #tpu.memory_space<vmem>>, vector<2x1x16x16xf32>
    %6 = vector.shape_cast %5 : vector<2x1x16x16xf32> to vector<2x16x16xf32>
    %c0_12 = arith.constant 0 : index
    %c1_13 = arith.constant 1 : index
    %c19 = arith.constant 19 : index
    %7 = vector.load %arg15[%c0_12, %c1_13, %c19] : memref<2x18x54xf32, #tpu.memory_space<vmem>>, vector<2x16x16xf32>
    tpu.vector_store %arg15[%c0_12, %c1_13, %c19], %6 {strides = array<i32>} : memref<2x18x54xf32, #tpu.memory_space<vmem>>, vector<2x16x16xf32>,
    %c0_14 = arith.constant 0 : index
    %c2 = arith.constant 2 : index
    %c0_15 = arith.constant 0 : index
    %c0_16 = arith.constant 0 : index
    %8 = vector.load %arg1[%c0_14, %c2, %c0_15, %c0_16] : memref<2x3x16x16xf32, #tpu.memory_space<vmem>>, vector<2x1x16x16xf32>
    %9 = vector.shape_cast %8 : vector<2x1x16x16xf32> to vector<2x16x16xf32>
    %c0_17 = arith.constant 0 : index
    %c1_18 = arith.constant 1 : index
    %c37 = arith.constant 37 : index
    %10 = vector.load %arg15[%c0_17, %c1_18, %c37] : memref<2x18x54xf32, #tpu.memory_space<vmem>>, vector<2x16x16xf32>
    tpu.vector_store %arg15[%c0_17, %c1_18, %c37], %9 {strides = array<i32>} : memref<2x18x54xf32, #tpu.memory_space<vmem>>, vector<2x16x16xf32>,
    %c0_19 = arith.constant 0 : index
    %c0_20 = arith.constant 0 : index
    %c0_21 = arith.constant 0 : index
    %11 = vector.load %arg15[%c0_19, %c0_20, %c0_21] : memref<2x18x54xf32, #tpu.memory_space<vmem>>, vector<2x16x54xf32>
    %12 = vector.shape_cast %11 : vector<2x16x54xf32> to vector<32x54xf32>
    %c0_22 = arith.constant 0 : index
    %c0_23 = arith.constant 0 : index
    %c0_24 = arith.constant 0 : index
    %13 = vector.load %arg2[%c0_22, %c0_23, %c0_24] : memref<3x54x128xf32, #tpu.memory_space<vmem>>, vector<1x54x128xf32>
    %14 = vector.shape_cast %13 : vector<1x54x128xf32> to vector<54x128xf32>
    %cst_25 = arith.constant dense<0.000000e+00> : vector<32x128xf32>
    %15 = tpu.matmul %12, %14, %cst_25 {dimension_numbers = #tpu.dot_dimension_numbers<[1], [0], [0], [1], [0, 0, 1, 1], [], []>} : vector<32x54xf32>, vector<54x128xf32>, vector<32x128xf32> -> vector<32x128xf32>
    %c0_26 = arith.constant 0 : index
    %c0_27 = arith.constant 0 : index
    %16 = vector.load %arg3[%c0_26, %c0_27] : memref<1x128xf32, #tpu.memory_space<vmem>>, vector<1x128xf32>
    %17 = vector.broadcast %16 : vector<1x128xf32> to vector<32x128xf32>
    %18 = arith.addf %15, %17 : vector<32x128xf32>
    %c0_28 = arith.constant 0 : index
    %c1_29 = arith.constant 1 : index
    %c0_30 = arith.constant 0 : index
    %19 = vector.load %arg15[%c0_28, %c1_29, %c0_30] : memref<2x18x54xf32, #tpu.memory_space<vmem>>, vector<2x16x54xf32>
    %20 = vector.shape_cast %19 : vector<2x16x54xf32> to vector<32x54xf32>
    %c1_31 = arith.constant 1 : index
    %c0_32 = arith.constant 0 : index
    %c0_33 = arith.constant 0 : index
    %21 = vector.load %arg2[%c1_31, %c0_32, %c0_33] : memref<3x54x128xf32, #tpu.memory_space<vmem>>, vector<1x54x128xf32>
    %22 = vector.shape_cast %21 : vector<1x54x128xf32> to vector<54x128xf32>
    %cst_34 = arith.constant dense<0.000000e+00> : vector<32x128xf32>
    %23 = tpu.matmul %20, %22, %cst_34 {dimension_numbers = #tpu.dot_dimension_numbers<[1], [0], [0], [1], [0, 0, 1, 1], [], []>} : vector<32x54xf32>, vector<54x128xf32>, vector<32x128xf32> -> vector<32x128xf32>
    %24 = arith.addf %18, %23 : vector<32x128xf32>
    %c0_35 = arith.constant 0 : index
    %c2_36 = arith.constant 2 : index
    %c0_37 = arith.constant 0 : index
    %25 = vector.load %arg15[%c0_35, %c2_36, %c0_37] : memref<2x18x54xf32, #tpu.memory_space<vmem>>, vector<2x16x54xf32>
    %26 = vector.shape_cast %25 : vector<2x16x54xf32> to vector<32x54xf32>
    %c2_38 = arith.constant 2 : index
    %c0_39 = arith.constant 0 : index
    %c0_40 = arith.constant 0 : index
    %27 = vector.load %arg2[%c2_38, %c0_39, %c0_40] : memref<3x54x128xf32, #tpu.memory_space<vmem>>, vector<1x54x128xf32>
    %28 = vector.shape_cast %27 : vector<1x54x128xf32> to vector<54x128xf32>
    %cst_41 = arith.constant dense<0.000000e+00> : vector<32x128xf32>
    %29 = tpu.matmul %26, %28, %cst_41 {dimension_numbers = #tpu.dot_dimension_numbers<[1], [0], [0], [1], [0, 0, 1, 1], [], []>} : vector<32x54xf32>, vector<54x128xf32>, vector<32x128xf32> -> vector<32x128xf32>
    %30 = arith.addf %24, %29 : vector<32x128xf32>
    %cst_42 = arith.constant 0.000000e+00 : f32
    %31 = vector.broadcast %cst_42 : f32 to vector<32x128xf32>
    %32 = arith.maximumf %30, %31 : vector<32x128xf32>
    %cst_43 = arith.constant 0.000000e+00 : f32
    %33 = vector.broadcast %cst_43 : f32 to vector<2x18x144xf32>
    %c0_44 = arith.constant 0 : index
    %c0_45 = arith.constant 0 : index
    %c0_46 = arith.constant 0 : index
    %34 = vector.load %arg16[%c0_44, %c0_45, %c0_46] : memref<2x18x144xf32, #tpu.memory_space<vmem>>, vector<2x18x144xf32>
    tpu.vector_store %arg16[%c0_44, %c0_45, %c0_46], %33 {strides = array<i32>} : memref<2x18x144xf32, #tpu.memory_space<vmem>>, vector<2x18x144xf32>,
    %35 = vector.shape_cast %32 : vector<32x128xf32> to vector<2x16x128xf32>
    %c0_47 = arith.constant 0 : index
    %c1_48 = arith.constant 1 : index
    %c8 = arith.constant 8 : index
    %36 = vector.load %arg16[%c0_47, %c1_48, %c8] : memref<2x18x144xf32, #tpu.memory_space<vmem>>, vector<2x16x128xf32>
    tpu.vector_store %arg16[%c0_47, %c1_48, %c8], %35 {strides = array<i32>} : memref<2x18x144xf32, #tpu.memory_space<vmem>>, vector<2x16x128xf32>,
    %c0_49 = arith.constant 0 : index
    %c0_50 = arith.constant 0 : index
    %c0_51 = arith.constant 0 : index
    %37 = vector.load %arg16[%c0_49, %c0_50, %c0_51] : memref<2x18x144xf32, #tpu.memory_space<vmem>>, vector<2x16x144xf32>
    %38 = vector.shape_cast %37 : vector<2x16x144xf32> to vector<32x144xf32>
    %c0_52 = arith.constant 0 : index
    %c0_53 = arith.constant 0 : index
    %c0_54 = arith.constant 0 : index
    %39 = vector.load %arg4[%c0_52, %c0_53, %c0_54] : memref<3x144x256xf32, #tpu.memory_space<vmem>>, vector<1x144x256xf32>
    %40 = vector.shape_cast %39 : vector<1x144x256xf32> to vector<144x256xf32>
    %cst_55 = arith.constant dense<0.000000e+00> : vector<32x256xf32>
    %41 = tpu.matmul %38, %40, %cst_55 {dimension_numbers = #tpu.dot_dimension_numbers<[1], [0], [0], [1], [0, 0, 1, 1], [], []>} : vector<32x144xf32>, vector<144x256xf32>, vector<32x256xf32> -> vector<32x256xf32>
    %c0_56 = arith.constant 0 : index
    %c0_57 = arith.constant 0 : index
    %42 = vector.load %arg5[%c0_56, %c0_57] : memref<1x256xf32, #tpu.memory_space<vmem>>, vector<1x256xf32>
    %43 = vector.broadcast %42 : vector<1x256xf32> to vector<32x256xf32>
    %44 = arith.addf %41, %43 : vector<32x256xf32>
    %c0_58 = arith.constant 0 : index
    %c1_59 = arith.constant 1 : index
    %c0_60 = arith.constant 0 : index
    %45 = vector.load %arg16[%c0_58, %c1_59, %c0_60] : memref<2x18x144xf32, #tpu.memory_space<vmem>>, vector<2x16x144xf32>
    %46 = vector.shape_cast %45 : vector<2x16x144xf32> to vector<32x144xf32>
    %c1_61 = arith.constant 1 : index
    %c0_62 = arith.constant 0 : index
    %c0_63 = arith.constant 0 : index
    %47 = vector.load %arg4[%c1_61, %c0_62, %c0_63] : memref<3x144x256xf32, #tpu.memory_space<vmem>>, vector<1x144x256xf32>
    %48 = vector.shape_cast %47 : vector<1x144x256xf32> to vector<144x256xf32>
    %cst_64 = arith.constant dense<0.000000e+00> : vector<32x256xf32>
    %49 = tpu.matmul %46, %48, %cst_64 {dimension_numbers = #tpu.dot_dimension_numbers<[1], [0], [0], [1], [0, 0, 1, 1], [], []>} : vector<32x144xf32>, vector<144x256xf32>, vector<32x256xf32> -> vector<32x256xf32>
    %50 = arith.addf %44, %49 : vector<32x256xf32>
    %c0_65 = arith.constant 0 : index
    %c2_66 = arith.constant 2 : index
    %c0_67 = arith.constant 0 : index
    %51 = vector.load %arg16[%c0_65, %c2_66, %c0_67] : memref<2x18x144xf32, #tpu.memory_space<vmem>>, vector<2x16x144xf32>
    %52 = vector.shape_cast %51 : vector<2x16x144xf32> to vector<32x144xf32>
    %c2_68 = arith.constant 2 : index
    %c0_69 = arith.constant 0 : index
    %c0_70 = arith.constant 0 : index
    %53 = vector.load %arg4[%c2_68, %c0_69, %c0_70] : memref<3x144x256xf32, #tpu.memory_space<vmem>>, vector<1x144x256xf32>
    %54 = vector.shape_cast %53 : vector<1x144x256xf32> to vector<144x256xf32>
    %cst_71 = arith.constant dense<0.000000e+00> : vector<32x256xf32>
    %55 = tpu.matmul %52, %54, %cst_71 {dimension_numbers = #tpu.dot_dimension_numbers<[1], [0], [0], [1], [0, 0, 1, 1], [], []>} : vector<32x144xf32>, vector<144x256xf32>, vector<32x256xf32> -> vector<32x256xf32>
    %56 = arith.addf %50, %55 : vector<32x256xf32>
    %cst_72 = arith.constant 0.000000e+00 : f32
    %57 = vector.broadcast %cst_72 : f32 to vector<32x256xf32>
    %58 = arith.maximumf %56, %57 : vector<32x256xf32>
    %59 = vector.shape_cast %58 : vector<32x256xf32> to vector<2x16x256xf32>
    %c0_73 = arith.constant 0 : index
    %c0_74 = arith.constant 0 : index
    %c0_75 = arith.constant 0 : index
    %60 = vector.load %arg17[%c0_73, %c0_74, %c0_75] : memref<2x16x256xf32, #tpu.memory_space<vmem>>, vector<2x16x256xf32>
    tpu.vector_store %arg17[%c0_73, %c0_74, %c0_75], %59 {strides = array<i32>} : memref<2x16x256xf32, #tpu.memory_space<vmem>>, vector<2x16x256xf32>,
    %c0_76 = arith.constant 0 : index
    %c0_77 = arith.constant 0 : index
    %c0_78 = arith.constant 0 : index
    %61 = vector.load %arg17[%c0_76, %c0_77, %c0_78] : memref<2x16x256xf32, #tpu.memory_space<vmem>>, vector<2x1x256xf32>
    %62 = vector.shape_cast %61 : vector<2x1x256xf32> to vector<2x256xf32>
    %c0_79 = arith.constant 0 : index
    %c1_80 = arith.constant 1 : index
    %c0_81 = arith.constant 0 : index
    %63 = vector.load %arg17[%c0_79, %c1_80, %c0_81] : memref<2x16x256xf32, #tpu.memory_space<vmem>>, vector<2x1x256xf32>
    %64 = vector.shape_cast %63 : vector<2x1x256xf32> to vector<2x256xf32>
    %65 = arith.maximumf %62, %64 : vector<2x256xf32>
    %66 = vector.extract_strided_slice %65 {offsets = [0, 0], sizes = [2, 16], strides = [1, 1]} : vector<2x256xf32> to vector<2x16xf32>
    %67 = vector.extract_strided_slice %65 {offsets = [0, 16], sizes = [2, 16], strides = [1, 1]} : vector<2x256xf32> to vector<2x16xf32>
    %68 = arith.maximumf %66, %67 : vector<2x16xf32>
    %c0_82 = arith.constant 0 : index
    %c0_83 = arith.constant 0 : index
    %69 = vector.load %arg19[%c0_82, %c0_83] : memref<2x1024xf32, #tpu.memory_space<vmem>>, vector<2x16xf32>
    tpu.vector_store %arg19[%c0_82, %c0_83], %68 {strides = array<i32>} : memref<2x1024xf32, #tpu.memory_space<vmem>>, vector<2x16xf32>,
    %70 = vector.extract_strided_slice %65 {offsets = [0, 32], sizes = [2, 16], strides = [1, 1]} : vector<2x256xf32> to vector<2x16xf32>
    %71 = vector.extract_strided_slice %65 {offsets = [0, 48], sizes = [2, 16], strides = [1, 1]} : vector<2x256xf32> to vector<2x16xf32>
    %72 = arith.maximumf %70, %71 : vector<2x16xf32>
    %c0_84 = arith.constant 0 : index
    %c16 = arith.constant 16 : index
    %73 = vector.load %arg19[%c0_84, %c16] : memref<2x1024xf32, #tpu.memory_space<vmem>>, vector<2x16xf32>
    tpu.vector_store %arg19[%c0_84, %c16], %72 {strides = array<i32>} : memref<2x1024xf32, #tpu.memory_space<vmem>>, vector<2x16xf32>,
    %74 = vector.extract_strided_slice %65 {offsets = [0, 64], sizes = [2, 16], strides = [1, 1]} : vector<2x256xf32> to vector<2x16xf32>
    %75 = vector.extract_strided_slice %65 {offsets = [0, 80], sizes = [2, 16], strides = [1, 1]} : vector<2x256xf32> to vector<2x16xf32>
    %76 = arith.maximumf %74, %75 : vector<2x16xf32>
    %c0_85 = arith.constant 0 : index
    %c32 = arith.constant 32 : index
    %77 = vector.load %arg19[%c0_85, %c32] : memref<2x1024xf32, #tpu.memory_space<vmem>>, vector<2x16xf32>
    tpu.vector_store %arg19[%c0_85, %c32], %76 {strides = array<i32>} : memref<2x1024xf32, #tpu.memory_space<vmem>>, vector<2x16xf32>,
    %78 = vector.extract_strided_slice %65 {offsets = [0, 96], sizes = [2, 16], strides = [1, 1]} : vector<2x256xf32> to vector<2x16xf32>
    %79 = vector.extract_strided_slice %65 {offsets = [0, 112], sizes = [2, 16], strides = [1, 1]} : vector<2x256xf32> to vector<2x16xf32>
    %80 = arith.maximumf %78, %79 : vector<2x16xf32>
    %c0_86 = arith.constant 0 : index
    %c48 = arith.constant 48 : index
    %81 = vector.load %arg19[%c0_86, %c48] : memref<2x1024xf32, #tpu.memory_space<vmem>>, vector<2x16xf32>
    tpu.vector_store %arg19[%c0_86, %c48], %80 {strides = array<i32>} : memref<2x1024xf32, #tpu.memory_space<vmem>>, vector<2x16xf32>,
    %82 = vector.extract_strided_slice %65 {offsets = [0, 128], sizes = [2, 16], strides = [1, 1]} : vector<2x256xf32> to vector<2x16xf32>
    %83 = vector.extract_strided_slice %65 {offsets = [0, 144], sizes = [2, 16], strides = [1, 1]} : vector<2x256xf32> to vector<2x16xf32>
    %84 = arith.maximumf %82, %83 : vector<2x16xf32>
    %c0_87 = arith.constant 0 : index
    %c64 = arith.constant 64 : index
    %85 = vector.load %arg19[%c0_87, %c64] : memref<2x1024xf32, #tpu.memory_space<vmem>>, vector<2x16xf32>
    tpu.vector_store %arg19[%c0_87, %c64], %84 {strides = array<i32>} : memref<2x1024xf32, #tpu.memory_space<vmem>>, vector<2x16xf32>,
    %86 = vector.extract_strided_slice %65 {offsets = [0, 160], sizes = [2, 16], strides = [1, 1]} : vector<2x256xf32> to vector<2x16xf32>
    %87 = vector.extract_strided_slice %65 {offsets = [0, 176], sizes = [2, 16], strides = [1, 1]} : vector<2x256xf32> to vector<2x16xf32>
    %88 = arith.maximumf %86, %87 : vector<2x16xf32>
    %c0_88 = arith.constant 0 : index
    %c80 = arith.constant 80 : index
    %89 = vector.load %arg19[%c0_88, %c80] : memref<2x1024xf32, #tpu.memory_space<vmem>>, vector<2x16xf32>
    tpu.vector_store %arg19[%c0_88, %c80], %88 {strides = array<i32>} : memref<2x1024xf32, #tpu.memory_space<vmem>>, vector<2x16xf32>,
    %90 = vector.extract_strided_slice %65 {offsets = [0, 192], sizes = [2, 16], strides = [1, 1]} : vector<2x256xf32> to vector<2x16xf32>
    %91 = vector.extract_strided_slice %65 {offsets = [0, 208], sizes = [2, 16], strides = [1, 1]} : vector<2x256xf32> to vector<2x16xf32>
    %92 = arith.maximumf %90, %91 : vector<2x16xf32>
    %c0_89 = arith.constant 0 : index
    %c96 = arith.constant 96 : index
    %93 = vector.load %arg19[%c0_89, %c96] : memref<2x1024xf32, #tpu.memory_space<vmem>>, vector<2x16xf32>
    tpu.vector_store %arg19[%c0_89, %c96], %92 {strides = array<i32>} : memref<2x1024xf32, #tpu.memory_space<vmem>>, vector<2x16xf32>,
    %94 = vector.extract_strided_slice %65 {offsets = [0, 224], sizes = [2, 16], strides = [1, 1]} : vector<2x256xf32> to vector<2x16xf32>
    %95 = vector.extract_strided_slice %65 {offsets = [0, 240], sizes = [2, 16], strides = [1, 1]} : vector<2x256xf32> to vector<2x16xf32>
    %96 = arith.maximumf %94, %95 : vector<2x16xf32>
    %c0_90 = arith.constant 0 : index
    %c112 = arith.constant 112 : index
    %97 = vector.load %arg19[%c0_90, %c112] : memref<2x1024xf32, #tpu.memory_space<vmem>>, vector<2x16xf32>
    tpu.vector_store %arg19[%c0_90, %c112], %96 {strides = array<i32>} : memref<2x1024xf32, #tpu.memory_space<vmem>>, vector<2x16xf32>,
    %c0_91 = arith.constant 0 : index
    %c2_92 = arith.constant 2 : index
    %c0_93 = arith.constant 0 : index
    %98 = vector.load %arg17[%c0_91, %c2_92, %c0_93] : memref<2x16x256xf32, #tpu.memory_space<vmem>>, vector<2x1x256xf32>
    %99 = vector.shape_cast %98 : vector<2x1x256xf32> to vector<2x256xf32>
    %c0_94 = arith.constant 0 : index
    %c3 = arith.constant 3 : index
    %c0_95 = arith.constant 0 : index
    %100 = vector.load %arg17[%c0_94, %c3, %c0_95] : memref<2x16x256xf32, #tpu.memory_space<vmem>>, vector<2x1x256xf32>
    %101 = vector.shape_cast %100 : vector<2x1x256xf32> to vector<2x256xf32>
    %102 = arith.maximumf %99, %101 : vector<2x256xf32>
    %103 = vector.extract_strided_slice %102 {offsets = [0, 0], sizes = [2, 16], strides = [1, 1]} : vector<2x256xf32> to vector<2x16xf32>
    %104 = vector.extract_strided_slice %102 {offsets = [0, 16], sizes = [2, 16], strides = [1, 1]} : vector<2x256xf32> to vector<2x16xf32>
    %105 = arith.maximumf %103, %104 : vector<2x16xf32>
    %c0_96 = arith.constant 0 : index
    %c128 = arith.constant 128 : index
    %106 = vector.load %arg19[%c0_96, %c128] : memref<2x1024xf32, #tpu.memory_space<vmem>>, vector<2x16xf32>
    tpu.vector_store %arg19[%c0_96, %c128], %105 {strides = array<i32>} : memref<2x1024xf32, #tpu.memory_space<vmem>>, vector<2x16xf32>,
    %107 = vector.extract_strided_slice %102 {offsets = [0, 32], sizes = [2, 16], strides = [1, 1]} : vector<2x256xf32> to vector<2x16xf32>
    %108 = vector.extract_strided_slice %102 {offsets = [0, 48], sizes = [2, 16], strides = [1, 1]} : vector<2x256xf32> to vector<2x16xf32>
    %109 = arith.maximumf %107, %108 : vector<2x16xf32>
    %c0_97 = arith.constant 0 : index
    %c144 = arith.constant 144 : index
    %110 = vector.load %arg19[%c0_97, %c144] : memref<2x1024xf32, #tpu.memory_space<vmem>>, vector<2x16xf32>
    tpu.vector_store %arg19[%c0_97, %c144], %109 {strides = array<i32>} : memref<2x1024xf32, #tpu.memory_space<vmem>>, vector<2x16xf32>,
    %111 = vector.extract_strided_slice %102 {offsets = [0, 64], sizes = [2, 16], strides = [1, 1]} : vector<2x256xf32> to vector<2x16xf32>
    %112 = vector.extract_strided_slice %102 {offsets = [0, 80], sizes = [2, 16], strides = [1, 1]} : vector<2x256xf32> to vector<2x16xf32>
    %113 = arith.maximumf %111, %112 : vector<2x16xf32>
    %c0_98 = arith.constant 0 : index
    %c160 = arith.constant 160 : index
    %114 = vector.load %arg19[%c0_98, %c160] : memref<2x1024xf32, #tpu.memory_space<vmem>>, vector<2x16xf32>
    tpu.vector_store %arg19[%c0_98, %c160], %113 {strides = array<i32>} : memref<2x1024xf32, #tpu.memory_space<vmem>>, vector<2x16xf32>,
    %115 = vector.extract_strided_slice %102 {offsets = [0, 96], sizes = [2, 16], strides = [1, 1]} : vector<2x256xf32> to vector<2x16xf32>
    %116 = vector.extract_strided_slice %102 {offsets = [0, 112], sizes = [2, 16], strides = [1, 1]} : vector<2x256xf32> to vector<2x16xf32>
    %117 = arith.maximumf %115, %116 : vector<2x16xf32>
    %c0_99 = arith.constant 0 : index
    %c176 = arith.constant 176 : index
    %118 = vector.load %arg19[%c0_99, %c176] : memref<2x1024xf32, #tpu.memory_space<vmem>>, vector<2x16xf32>
    tpu.vector_store %arg19[%c0_99, %c176], %117 {strides = array<i32>} : memref<2x1024xf32, #tpu.memory_space<vmem>>, vector<2x16xf32>,
    %119 = vector.extract_strided_slice %102 {offsets = [0, 128], sizes = [2, 16], strides = [1, 1]} : vector<2x256xf32> to vector<2x16xf32>
    %120 = vector.extract_strided_slice %102 {offsets = [0, 144], sizes = [2, 16], strides = [1, 1]} : vector<2x256xf32> to vector<2x16xf32>
    %121 = arith.maximumf %119, %120 : vector<2x16xf32>
    %c0_100 = arith.constant 0 : index
    %c192 = arith.constant 192 : index
    %122 = vector.load %arg19[%c0_100, %c192] : memref<2x1024xf32, #tpu.memory_space<vmem>>, vector<2x16xf32>
    tpu.vector_store %arg19[%c0_100, %c192], %121 {strides = array<i32>} : memref<2x1024xf32, #tpu.memory_space<vmem>>, vector<2x16xf32>,
    %123 = vector.extract_strided_slice %102 {offsets = [0, 160], sizes = [2, 16], strides = [1, 1]} : vector<2x256xf32> to vector<2x16xf32>
    %124 = vector.extract_strided_slice %102 {offsets = [0, 176], sizes = [2, 16], strides = [1, 1]} : vector<2x256xf32> to vector<2x16xf32>
    %125 = arith.maximumf %123, %124 : vector<2x16xf32>
    %c0_101 = arith.constant 0 : index
    %c208 = arith.constant 208 : index
    %126 = vector.load %arg19[%c0_101, %c208] : memref<2x1024xf32, #tpu.memory_space<vmem>>, vector<2x16xf32>
    tpu.vector_store %arg19[%c0_101, %c208], %125 {strides = array<i32>} : memref<2x1024xf32, #tpu.memory_space<vmem>>, vector<2x16xf32>,
    %127 = vector.extract_strided_slice %102 {offsets = [0, 192], sizes = [2, 16], strides = [1, 1]} : vector<2x256xf32> to vector<2x16xf32>
    %128 = vector.extract_strided_slice %102 {offsets = [0, 208], sizes = [2, 16], strides = [1, 1]} : vector<2x256xf32> to vector<2x16xf32>
    %129 = arith.maximumf %127, %128 : vector<2x16xf32>
    %c0_102 = arith.constant 0 : index
    %c224 = arith.constant 224 : index
    %130 = vector.load %arg19[%c0_102, %c224] : memref<2x1024xf32, #tpu.memory_space<vmem>>, vector<2x16xf32>
    tpu.vector_store %arg19[%c0_102, %c224], %129 {strides = array<i32>} : memref<2x1024xf32, #tpu.memory_space<vmem>>, vector<2x16xf32>,
    %131 = vector.extract_strided_slice %102 {offsets = [0, 224], sizes = [2, 16], strides = [1, 1]} : vector<2x256xf32> to vector<2x16xf32>
    %132 = vector.extract_strided_slice %102 {offsets = [0, 240], sizes = [2, 16], strides = [1, 1]} : vector<2x256xf32> to vector<2x16xf32>
    %133 = arith.maximumf %131, %132 : vector<2x16xf32>
    %c0_103 = arith.constant 0 : index
    %c240 = arith.constant 240 : index
    %134 = vector.load %arg19[%c0_103, %c240] : memref<2x1024xf32, #tpu.memory_space<vmem>>, vector<2x16xf32>
    tpu.vector_store %arg19[%c0_103, %c240], %133 {strides = array<i32>} : memref<2x1024xf32, #tpu.memory_space<vmem>>, vector<2x16xf32>,
    %c0_104 = arith.constant 0 : index
    %c4 = arith.constant 4 : index
    %c0_105 = arith.constant 0 : index
    %135 = vector.load %arg17[%c0_104, %c4, %c0_105] : memref<2x16x256xf32, #tpu.memory_space<vmem>>, vector<2x1x256xf32>
    %136 = vector.shape_cast %135 : vector<2x1x256xf32> to vector<2x256xf32>
    %c0_106 = arith.constant 0 : index
    %c5 = arith.constant 5 : index
    %c0_107 = arith.constant 0 : index
    %137 = vector.load %arg17[%c0_106, %c5, %c0_107] : memref<2x16x256xf32, #tpu.memory_space<vmem>>, vector<2x1x256xf32>
    %138 = vector.shape_cast %137 : vector<2x1x256xf32> to vector<2x256xf32>
    %139 = arith.maximumf %136, %138 : vector<2x256xf32>
    %140 = vector.extract_strided_slice %139 {offsets = [0, 0], sizes = [2, 16], strides = [1, 1]} : vector<2x256xf32> to vector<2x16xf32>
    %141 = vector.extract_strided_slice %139 {offsets = [0, 16], sizes = [2, 16], strides = [1, 1]} : vector<2x256xf32> to vector<2x16xf32>
    %142 = arith.maximumf %140, %141 : vector<2x16xf32>
    %c0_108 = arith.constant 0 : index
    %c256 = arith.constant 256 : index
    %143 = vector.load %arg19[%c0_108, %c256] : memref<2x1024xf32, #tpu.memory_space<vmem>>, vector<2x16xf32>
    tpu.vector_store %arg19[%c0_108, %c256], %142 {strides = array<i32>} : memref<2x1024xf32, #tpu.memory_space<vmem>>, vector<2x16xf32>,
    %144 = vector.extract_strided_slice %139 {offsets = [0, 32], sizes = [2, 16], strides = [1, 1]} : vector<2x256xf32> to vector<2x16xf32>
    %145 = vector.extract_strided_slice %139 {offsets = [0, 48], sizes = [2, 16], strides = [1, 1]} : vector<2x256xf32> to vector<2x16xf32>
    %146 = arith.maximumf %144, %145 : vector<2x16xf32>
    %c0_109 = arith.constant 0 : index
    %c272 = arith.constant 272 : index
    %147 = vector.load %arg19[%c0_109, %c272] : memref<2x1024xf32, #tpu.memory_space<vmem>>, vector<2x16xf32>
    tpu.vector_store %arg19[%c0_109, %c272], %146 {strides = array<i32>} : memref<2x1024xf32, #tpu.memory_space<vmem>>, vector<2x16xf32>,
    %148 = vector.extract_strided_slice %139 {offsets = [0, 64], sizes = [2, 16], strides = [1, 1]} : vector<2x256xf32> to vector<2x16xf32>
    %149 = vector.extract_strided_slice %139 {offsets = [0, 80], sizes = [2, 16], strides = [1, 1]} : vector<2x256xf32> to vector<2x16xf32>
    %150 = arith.maximumf %148, %149 : vector<2x16xf32>
    %c0_110 = arith.constant 0 : index
    %c288 = arith.constant 288 : index
    %151 = vector.load %arg19[%c0_110, %c288] : memref<2x1024xf32, #tpu.memory_space<vmem>>, vector<2x16xf32>
    tpu.vector_store %arg19[%c0_110, %c288], %150 {strides = array<i32>} : memref<2x1024xf32, #tpu.memory_space<vmem>>, vector<2x16xf32>,
    %152 = vector.extract_strided_slice %139 {offsets = [0, 96], sizes = [2, 16], strides = [1, 1]} : vector<2x256xf32> to vector<2x16xf32>
    %153 = vector.extract_strided_slice %139 {offsets = [0, 112], sizes = [2, 16], strides = [1, 1]} : vector<2x256xf32> to vector<2x16xf32>
    %154 = arith.maximumf %152, %153 : vector<2x16xf32>
    %c0_111 = arith.constant 0 : index
    %c304 = arith.constant 304 : index
    %155 = vector.load %arg19[%c0_111, %c304] : memref<2x1024xf32, #tpu.memory_space<vmem>>, vector<2x16xf32>
    tpu.vector_store %arg19[%c0_111, %c304], %154 {strides = array<i32>} : memref<2x1024xf32, #tpu.memory_space<vmem>>, vector<2x16xf32>,
    %156 = vector.extract_strided_slice %139 {offsets = [0, 128], sizes = [2, 16], strides = [1, 1]} : vector<2x256xf32> to vector<2x16xf32>
    %157 = vector.extract_strided_slice %139 {offsets = [0, 144], sizes = [2, 16], strides = [1, 1]} : vector<2x256xf32> to vector<2x16xf32>
    %158 = arith.maximumf %156, %157 : vector<2x16xf32>
    %c0_112 = arith.constant 0 : index
    %c320 = arith.constant 320 : index
    %159 = vector.load %arg19[%c0_112, %c320] : memref<2x1024xf32, #tpu.memory_space<vmem>>, vector<2x16xf32>
    tpu.vector_store %arg19[%c0_112, %c320], %158 {strides = array<i32>} : memref<2x1024xf32, #tpu.memory_space<vmem>>, vector<2x16xf32>,
    %160 = vector.extract_strided_slice %139 {offsets = [0, 160], sizes = [2, 16], strides = [1, 1]} : vector<2x256xf32> to vector<2x16xf32>
    %161 = vector.extract_strided_slice %139 {offsets = [0, 176], sizes = [2, 16], strides = [1, 1]} : vector<2x256xf32> to vector<2x16xf32>
    %162 = arith.maximumf %160, %161 : vector<2x16xf32>
    %c0_113 = arith.constant 0 : index
    %c336 = arith.constant 336 : index
    %163 = vector.load %arg19[%c0_113, %c336] : memref<2x1024xf32, #tpu.memory_space<vmem>>, vector<2x16xf32>
    tpu.vector_store %arg19[%c0_113, %c336], %162 {strides = array<i32>} : memref<2x1024xf32, #tpu.memory_space<vmem>>, vector<2x16xf32>,
    %164 = vector.extract_strided_slice %139 {offsets = [0, 192], sizes = [2, 16], strides = [1, 1]} : vector<2x256xf32> to vector<2x16xf32>
    %165 = vector.extract_strided_slice %139 {offsets = [0, 208], sizes = [2, 16], strides = [1, 1]} : vector<2x256xf32> to vector<2x16xf32>
    %166 = arith.maximumf %164, %165 : vector<2x16xf32>
    %c0_114 = arith.constant 0 : index
    %c352 = arith.constant 352 : index
    %167 = vector.load %arg19[%c0_114, %c352] : memref<2x1024xf32, #tpu.memory_space<vmem>>, vector<2x16xf32>
    tpu.vector_store %arg19[%c0_114, %c352], %166 {strides = array<i32>} : memref<2x1024xf32, #tpu.memory_space<vmem>>, vector<2x16xf32>,
    %168 = vector.extract_strided_slice %139 {offsets = [0, 224], sizes = [2, 16], strides = [1, 1]} : vector<2x256xf32> to vector<2x16xf32>
    %169 = vector.extract_strided_slice %139 {offsets = [0, 240], sizes = [2, 16], strides = [1, 1]} : vector<2x256xf32> to vector<2x16xf32>
    %170 = arith.maximumf %168, %169 : vector<2x16xf32>
    %c0_115 = arith.constant 0 : index
    %c368 = arith.constant 368 : index
    %171 = vector.load %arg19[%c0_115, %c368] : memref<2x1024xf32, #tpu.memory_space<vmem>>, vector<2x16xf32>
    tpu.vector_store %arg19[%c0_115, %c368], %170 {strides = array<i32>} : memref<2x1024xf32, #tpu.memory_space<vmem>>, vector<2x16xf32>,
    %c0_116 = arith.constant 0 : index
    %c6 = arith.constant 6 : index
    %c0_117 = arith.constant 0 : index
    %172 = vector.load %arg17[%c0_116, %c6, %c0_117] : memref<2x16x256xf32, #tpu.memory_space<vmem>>, vector<2x1x256xf32>
    %173 = vector.shape_cast %172 : vector<2x1x256xf32> to vector<2x256xf32>
    %c0_118 = arith.constant 0 : index
    %c7 = arith.constant 7 : index
    %c0_119 = arith.constant 0 : index
    %174 = vector.load %arg17[%c0_118, %c7, %c0_119] : memref<2x16x256xf32, #tpu.memory_space<vmem>>, vector<2x1x256xf32>
    %175 = vector.shape_cast %174 : vector<2x1x256xf32> to vector<2x256xf32>
    %176 = arith.maximumf %173, %175 : vector<2x256xf32>
    %177 = vector.extract_strided_slice %176 {offsets = [0, 0], sizes = [2, 16], strides = [1, 1]} : vector<2x256xf32> to vector<2x16xf32>
    %178 = vector.extract_strided_slice %176 {offsets = [0, 16], sizes = [2, 16], strides = [1, 1]} : vector<2x256xf32> to vector<2x16xf32>
    %179 = arith.maximumf %177, %178 : vector<2x16xf32>
    %c0_120 = arith.constant 0 : index
    %c384 = arith.constant 384 : index
    %180 = vector.load %arg19[%c0_120, %c384] : memref<2x1024xf32, #tpu.memory_space<vmem>>, vector<2x16xf32>
    tpu.vector_store %arg19[%c0_120, %c384], %179 {strides = array<i32>} : memref<2x1024xf32, #tpu.memory_space<vmem>>, vector<2x16xf32>,
    %181 = vector.extract_strided_slice %176 {offsets = [0, 32], sizes = [2, 16], strides = [1, 1]} : vector<2x256xf32> to vector<2x16xf32>
    %182 = vector.extract_strided_slice %176 {offsets = [0, 48], sizes = [2, 16], strides = [1, 1]} : vector<2x256xf32> to vector<2x16xf32>
    %183 = arith.maximumf %181, %182 : vector<2x16xf32>
    %c0_121 = arith.constant 0 : index
    %c400 = arith.constant 400 : index
    %184 = vector.load %arg19[%c0_121, %c400] : memref<2x1024xf32, #tpu.memory_space<vmem>>, vector<2x16xf32>
    tpu.vector_store %arg19[%c0_121, %c400], %183 {strides = array<i32>} : memref<2x1024xf32, #tpu.memory_space<vmem>>, vector<2x16xf32>,
    %185 = vector.extract_strided_slice %176 {offsets = [0, 64], sizes = [2, 16], strides = [1, 1]} : vector<2x256xf32> to vector<2x16xf32>
    %186 = vector.extract_strided_slice %176 {offsets = [0, 80], sizes = [2, 16], strides = [1, 1]} : vector<2x256xf32> to vector<2x16xf32>
    %187 = arith.maximumf %185, %186 : vector<2x16xf32>
    %c0_122 = arith.constant 0 : index
    %c416 = arith.constant 416 : index
    %188 = vector.load %arg19[%c0_122, %c416] : memref<2x1024xf32, #tpu.memory_space<vmem>>, vector<2x16xf32>
    tpu.vector_store %arg19[%c0_122, %c416], %187 {strides = array<i32>} : memref<2x1024xf32, #tpu.memory_space<vmem>>, vector<2x16xf32>,
    %189 = vector.extract_strided_slice %176 {offsets = [0, 96], sizes = [2, 16], strides = [1, 1]} : vector<2x256xf32> to vector<2x16xf32>
    %190 = vector.extract_strided_slice %176 {offsets = [0, 112], sizes = [2, 16], strides = [1, 1]} : vector<2x256xf32> to vector<2x16xf32>
    %191 = arith.maximumf %189, %190 : vector<2x16xf32>
    %c0_123 = arith.constant 0 : index
    %c432 = arith.constant 432 : index
    %192 = vector.load %arg19[%c0_123, %c432] : memref<2x1024xf32, #tpu.memory_space<vmem>>, vector<2x16xf32>
    tpu.vector_store %arg19[%c0_123, %c432], %191 {strides = array<i32>} : memref<2x1024xf32, #tpu.memory_space<vmem>>, vector<2x16xf32>,
    %193 = vector.extract_strided_slice %176 {offsets = [0, 128], sizes = [2, 16], strides = [1, 1]} : vector<2x256xf32> to vector<2x16xf32>
    %194 = vector.extract_strided_slice %176 {offsets = [0, 144], sizes = [2, 16], strides = [1, 1]} : vector<2x256xf32> to vector<2x16xf32>
    %195 = arith.maximumf %193, %194 : vector<2x16xf32>
    %c0_124 = arith.constant 0 : index
    %c448 = arith.constant 448 : index
    %196 = vector.load %arg19[%c0_124, %c448] : memref<2x1024xf32, #tpu.memory_space<vmem>>, vector<2x16xf32>
    tpu.vector_store %arg19[%c0_124, %c448], %195 {strides = array<i32>} : memref<2x1024xf32, #tpu.memory_space<vmem>>, vector<2x16xf32>,
    %197 = vector.extract_strided_slice %176 {offsets = [0, 160], sizes = [2, 16], strides = [1, 1]} : vector<2x256xf32> to vector<2x16xf32>
    %198 = vector.extract_strided_slice %176 {offsets = [0, 176], sizes = [2, 16], strides = [1, 1]} : vector<2x256xf32> to vector<2x16xf32>
    %199 = arith.maximumf %197, %198 : vector<2x16xf32>
    %c0_125 = arith.constant 0 : index
    %c464 = arith.constant 464 : index
    %200 = vector.load %arg19[%c0_125, %c464] : memref<2x1024xf32, #tpu.memory_space<vmem>>, vector<2x16xf32>
    tpu.vector_store %arg19[%c0_125, %c464], %199 {strides = array<i32>} : memref<2x1024xf32, #tpu.memory_space<vmem>>, vector<2x16xf32>,
    %201 = vector.extract_strided_slice %176 {offsets = [0, 192], sizes = [2, 16], strides = [1, 1]} : vector<2x256xf32> to vector<2x16xf32>
    %202 = vector.extract_strided_slice %176 {offsets = [0, 208], sizes = [2, 16], strides = [1, 1]} : vector<2x256xf32> to vector<2x16xf32>
    %203 = arith.maximumf %201, %202 : vector<2x16xf32>
    %c0_126 = arith.constant 0 : index
    %c480 = arith.constant 480 : index
    %204 = vector.load %arg19[%c0_126, %c480] : memref<2x1024xf32, #tpu.memory_space<vmem>>, vector<2x16xf32>
    tpu.vector_store %arg19[%c0_126, %c480], %203 {strides = array<i32>} : memref<2x1024xf32, #tpu.memory_space<vmem>>, vector<2x16xf32>,
    %205 = vector.extract_strided_slice %176 {offsets = [0, 224], sizes = [2, 16], strides = [1, 1]} : vector<2x256xf32> to vector<2x16xf32>
    %206 = vector.extract_strided_slice %176 {offsets = [0, 240], sizes = [2, 16], strides = [1, 1]} : vector<2x256xf32> to vector<2x16xf32>
    %207 = arith.maximumf %205, %206 : vector<2x16xf32>
    %c0_127 = arith.constant 0 : index
    %c496 = arith.constant 496 : index
    %208 = vector.load %arg19[%c0_127, %c496] : memref<2x1024xf32, #tpu.memory_space<vmem>>, vector<2x16xf32>
    tpu.vector_store %arg19[%c0_127, %c496], %207 {strides = array<i32>} : memref<2x1024xf32, #tpu.memory_space<vmem>>, vector<2x16xf32>,
    %c0_128 = arith.constant 0 : index
    %c8_129 = arith.constant 8 : index
    %c0_130 = arith.constant 0 : index
    %209 = vector.load %arg17[%c0_128, %c8_129, %c0_130] : memref<2x16x256xf32, #tpu.memory_space<vmem>>, vector<2x1x256xf32>
    %210 = vector.shape_cast %209 : vector<2x1x256xf32> to vector<2x256xf32>
    %c0_131 = arith.constant 0 : index
    %c9 = arith.constant 9 : index
    %c0_132 = arith.constant 0 : index
    %211 = vector.load %arg17[%c0_131, %c9, %c0_132] : memref<2x16x256xf32, #tpu.memory_space<vmem>>, vector<2x1x256xf32>
    %212 = vector.shape_cast %211 : vector<2x1x256xf32> to vector<2x256xf32>
    %213 = arith.maximumf %210, %212 : vector<2x256xf32>
    %214 = vector.extract_strided_slice %213 {offsets = [0, 0], sizes = [2, 16], strides = [1, 1]} : vector<2x256xf32> to vector<2x16xf32>
    %215 = vector.extract_strided_slice %213 {offsets = [0, 16], sizes = [2, 16], strides = [1, 1]} : vector<2x256xf32> to vector<2x16xf32>
    %216 = arith.maximumf %214, %215 : vector<2x16xf32>
    %c0_133 = arith.constant 0 : index
    %c512 = arith.constant 512 : index
    %217 = vector.load %arg19[%c0_133, %c512] : memref<2x1024xf32, #tpu.memory_space<vmem>>, vector<2x16xf32>
    tpu.vector_store %arg19[%c0_133, %c512], %216 {strides = array<i32>} : memref<2x1024xf32, #tpu.memory_space<vmem>>, vector<2x16xf32>,
    %218 = vector.extract_strided_slice %213 {offsets = [0, 32], sizes = [2, 16], strides = [1, 1]} : vector<2x256xf32> to vector<2x16xf32>
    %219 = vector.extract_strided_slice %213 {offsets = [0, 48], sizes = [2, 16], strides = [1, 1]} : vector<2x256xf32> to vector<2x16xf32>
    %220 = arith.maximumf %218, %219 : vector<2x16xf32>
    %c0_134 = arith.constant 0 : index
    %c528 = arith.constant 528 : index
    %221 = vector.load %arg19[%c0_134, %c528] : memref<2x1024xf32, #tpu.memory_space<vmem>>, vector<2x16xf32>
    tpu.vector_store %arg19[%c0_134, %c528], %220 {strides = array<i32>} : memref<2x1024xf32, #tpu.memory_space<vmem>>, vector<2x16xf32>,
    %222 = vector.extract_strided_slice %213 {offsets = [0, 64], sizes = [2, 16], strides = [1, 1]} : vector<2x256xf32> to vector<2x16xf32>
    %223 = vector.extract_strided_slice %213 {offsets = [0, 80], sizes = [2, 16], strides = [1, 1]} : vector<2x256xf32> to vector<2x16xf32>
    %224 = arith.maximumf %222, %223 : vector<2x16xf32>
    %c0_135 = arith.constant 0 : index
    %c544 = arith.constant 544 : index
    %225 = vector.load %arg19[%c0_135, %c544] : memref<2x1024xf32, #tpu.memory_space<vmem>>, vector<2x16xf32>
    tpu.vector_store %arg19[%c0_135, %c544], %224 {strides = array<i32>} : memref<2x1024xf32, #tpu.memory_space<vmem>>, vector<2x16xf32>,
    %226 = vector.extract_strided_slice %213 {offsets = [0, 96], sizes = [2, 16], strides = [1, 1]} : vector<2x256xf32> to vector<2x16xf32>
    %227 = vector.extract_strided_slice %213 {offsets = [0, 112], sizes = [2, 16], strides = [1, 1]} : vector<2x256xf32> to vector<2x16xf32>
    %228 = arith.maximumf %226, %227 : vector<2x16xf32>
    %c0_136 = arith.constant 0 : index
    %c560 = arith.constant 560 : index
    %229 = vector.load %arg19[%c0_136, %c560] : memref<2x1024xf32, #tpu.memory_space<vmem>>, vector<2x16xf32>
    tpu.vector_store %arg19[%c0_136, %c560], %228 {strides = array<i32>} : memref<2x1024xf32, #tpu.memory_space<vmem>>, vector<2x16xf32>,
    %230 = vector.extract_strided_slice %213 {offsets = [0, 128], sizes = [2, 16], strides = [1, 1]} : vector<2x256xf32> to vector<2x16xf32>
    %231 = vector.extract_strided_slice %213 {offsets = [0, 144], sizes = [2, 16], strides = [1, 1]} : vector<2x256xf32> to vector<2x16xf32>
    %232 = arith.maximumf %230, %231 : vector<2x16xf32>
    %c0_137 = arith.constant 0 : index
    %c576 = arith.constant 576 : index
    %233 = vector.load %arg19[%c0_137, %c576] : memref<2x1024xf32, #tpu.memory_space<vmem>>, vector<2x16xf32>
    tpu.vector_store %arg19[%c0_137, %c576], %232 {strides = array<i32>} : memref<2x1024xf32, #tpu.memory_space<vmem>>, vector<2x16xf32>,
    %234 = vector.extract_strided_slice %213 {offsets = [0, 160], sizes = [2, 16], strides = [1, 1]} : vector<2x256xf32> to vector<2x16xf32>
    %235 = vector.extract_strided_slice %213 {offsets = [0, 176], sizes = [2, 16], strides = [1, 1]} : vector<2x256xf32> to vector<2x16xf32>
    %236 = arith.maximumf %234, %235 : vector<2x16xf32>
    %c0_138 = arith.constant 0 : index
    %c592 = arith.constant 592 : index
    %237 = vector.load %arg19[%c0_138, %c592] : memref<2x1024xf32, #tpu.memory_space<vmem>>, vector<2x16xf32>
    tpu.vector_store %arg19[%c0_138, %c592], %236 {strides = array<i32>} : memref<2x1024xf32, #tpu.memory_space<vmem>>, vector<2x16xf32>,
    %238 = vector.extract_strided_slice %213 {offsets = [0, 192], sizes = [2, 16], strides = [1, 1]} : vector<2x256xf32> to vector<2x16xf32>
    %239 = vector.extract_strided_slice %213 {offsets = [0, 208], sizes = [2, 16], strides = [1, 1]} : vector<2x256xf32> to vector<2x16xf32>
    %240 = arith.maximumf %238, %239 : vector<2x16xf32>
    %c0_139 = arith.constant 0 : index
    %c608 = arith.constant 608 : index
    %241 = vector.load %arg19[%c0_139, %c608] : memref<2x1024xf32, #tpu.memory_space<vmem>>, vector<2x16xf32>
    tpu.vector_store %arg19[%c0_139, %c608], %240 {strides = array<i32>} : memref<2x1024xf32, #tpu.memory_space<vmem>>, vector<2x16xf32>,
    %242 = vector.extract_strided_slice %213 {offsets = [0, 224], sizes = [2, 16], strides = [1, 1]} : vector<2x256xf32> to vector<2x16xf32>
    %243 = vector.extract_strided_slice %213 {offsets = [0, 240], sizes = [2, 16], strides = [1, 1]} : vector<2x256xf32> to vector<2x16xf32>
    %244 = arith.maximumf %242, %243 : vector<2x16xf32>
    %c0_140 = arith.constant 0 : index
    %c624 = arith.constant 624 : index
    %245 = vector.load %arg19[%c0_140, %c624] : memref<2x1024xf32, #tpu.memory_space<vmem>>, vector<2x16xf32>
    tpu.vector_store %arg19[%c0_140, %c624], %244 {strides = array<i32>} : memref<2x1024xf32, #tpu.memory_space<vmem>>, vector<2x16xf32>,
    %c0_141 = arith.constant 0 : index
    %c10 = arith.constant 10 : index
    %c0_142 = arith.constant 0 : index
    %246 = vector.load %arg17[%c0_141, %c10, %c0_142] : memref<2x16x256xf32, #tpu.memory_space<vmem>>, vector<2x1x256xf32>
    %247 = vector.shape_cast %246 : vector<2x1x256xf32> to vector<2x256xf32>
    %c0_143 = arith.constant 0 : index
    %c11 = arith.constant 11 : index
    %c0_144 = arith.constant 0 : index
    %248 = vector.load %arg17[%c0_143, %c11, %c0_144] : memref<2x16x256xf32, #tpu.memory_space<vmem>>, vector<2x1x256xf32>
    %249 = vector.shape_cast %248 : vector<2x1x256xf32> to vector<2x256xf32>
    %250 = arith.maximumf %247, %249 : vector<2x256xf32>
    %251 = vector.extract_strided_slice %250 {offsets = [0, 0], sizes = [2, 16], strides = [1, 1]} : vector<2x256xf32> to vector<2x16xf32>
    %252 = vector.extract_strided_slice %250 {offsets = [0, 16], sizes = [2, 16], strides = [1, 1]} : vector<2x256xf32> to vector<2x16xf32>
    %253 = arith.maximumf %251, %252 : vector<2x16xf32>
    %c0_145 = arith.constant 0 : index
    %c640 = arith.constant 640 : index
    %254 = vector.load %arg19[%c0_145, %c640] : memref<2x1024xf32, #tpu.memory_space<vmem>>, vector<2x16xf32>
    tpu.vector_store %arg19[%c0_145, %c640], %253 {strides = array<i32>} : memref<2x1024xf32, #tpu.memory_space<vmem>>, vector<2x16xf32>,
    %255 = vector.extract_strided_slice %250 {offsets = [0, 32], sizes = [2, 16], strides = [1, 1]} : vector<2x256xf32> to vector<2x16xf32>
    %256 = vector.extract_strided_slice %250 {offsets = [0, 48], sizes = [2, 16], strides = [1, 1]} : vector<2x256xf32> to vector<2x16xf32>
    %257 = arith.maximumf %255, %256 : vector<2x16xf32>
    %c0_146 = arith.constant 0 : index
    %c656 = arith.constant 656 : index
    %258 = vector.load %arg19[%c0_146, %c656] : memref<2x1024xf32, #tpu.memory_space<vmem>>, vector<2x16xf32>
    tpu.vector_store %arg19[%c0_146, %c656], %257 {strides = array<i32>} : memref<2x1024xf32, #tpu.memory_space<vmem>>, vector<2x16xf32>,
    %259 = vector.extract_strided_slice %250 {offsets = [0, 64], sizes = [2, 16], strides = [1, 1]} : vector<2x256xf32> to vector<2x16xf32>
    %260 = vector.extract_strided_slice %250 {offsets = [0, 80], sizes = [2, 16], strides = [1, 1]} : vector<2x256xf32> to vector<2x16xf32>
    %261 = arith.maximumf %259, %260 : vector<2x16xf32>
    %c0_147 = arith.constant 0 : index
    %c672 = arith.constant 672 : index
    %262 = vector.load %arg19[%c0_147, %c672] : memref<2x1024xf32, #tpu.memory_space<vmem>>, vector<2x16xf32>
    tpu.vector_store %arg19[%c0_147, %c672], %261 {strides = array<i32>} : memref<2x1024xf32, #tpu.memory_space<vmem>>, vector<2x16xf32>,
    %263 = vector.extract_strided_slice %250 {offsets = [0, 96], sizes = [2, 16], strides = [1, 1]} : vector<2x256xf32> to vector<2x16xf32>
    %264 = vector.extract_strided_slice %250 {offsets = [0, 112], sizes = [2, 16], strides = [1, 1]} : vector<2x256xf32> to vector<2x16xf32>
    %265 = arith.maximumf %263, %264 : vector<2x16xf32>
    %c0_148 = arith.constant 0 : index
    %c688 = arith.constant 688 : index
    %266 = vector.load %arg19[%c0_148, %c688] : memref<2x1024xf32, #tpu.memory_space<vmem>>, vector<2x16xf32>
    tpu.vector_store %arg19[%c0_148, %c688], %265 {strides = array<i32>} : memref<2x1024xf32, #tpu.memory_space<vmem>>, vector<2x16xf32>,
    %267 = vector.extract_strided_slice %250 {offsets = [0, 128], sizes = [2, 16], strides = [1, 1]} : vector<2x256xf32> to vector<2x16xf32>
    %268 = vector.extract_strided_slice %250 {offsets = [0, 144], sizes = [2, 16], strides = [1, 1]} : vector<2x256xf32> to vector<2x16xf32>
    %269 = arith.maximumf %267, %268 : vector<2x16xf32>
    %c0_149 = arith.constant 0 : index
    %c704 = arith.constant 704 : index
    %270 = vector.load %arg19[%c0_149, %c704] : memref<2x1024xf32, #tpu.memory_space<vmem>>, vector<2x16xf32>
    tpu.vector_store %arg19[%c0_149, %c704], %269 {strides = array<i32>} : memref<2x1024xf32, #tpu.memory_space<vmem>>, vector<2x16xf32>,
    %271 = vector.extract_strided_slice %250 {offsets = [0, 160], sizes = [2, 16], strides = [1, 1]} : vector<2x256xf32> to vector<2x16xf32>
    %272 = vector.extract_strided_slice %250 {offsets = [0, 176], sizes = [2, 16], strides = [1, 1]} : vector<2x256xf32> to vector<2x16xf32>
    %273 = arith.maximumf %271, %272 : vector<2x16xf32>
    %c0_150 = arith.constant 0 : index
    %c720 = arith.constant 720 : index
    %274 = vector.load %arg19[%c0_150, %c720] : memref<2x1024xf32, #tpu.memory_space<vmem>>, vector<2x16xf32>
    tpu.vector_store %arg19[%c0_150, %c720], %273 {strides = array<i32>} : memref<2x1024xf32, #tpu.memory_space<vmem>>, vector<2x16xf32>,
    %275 = vector.extract_strided_slice %250 {offsets = [0, 192], sizes = [2, 16], strides = [1, 1]} : vector<2x256xf32> to vector<2x16xf32>
    %276 = vector.extract_strided_slice %250 {offsets = [0, 208], sizes = [2, 16], strides = [1, 1]} : vector<2x256xf32> to vector<2x16xf32>
    %277 = arith.maximumf %275, %276 : vector<2x16xf32>
    %c0_151 = arith.constant 0 : index
    %c736 = arith.constant 736 : index
    %278 = vector.load %arg19[%c0_151, %c736] : memref<2x1024xf32, #tpu.memory_space<vmem>>, vector<2x16xf32>
    tpu.vector_store %arg19[%c0_151, %c736], %277 {strides = array<i32>} : memref<2x1024xf32, #tpu.memory_space<vmem>>, vector<2x16xf32>,
    %279 = vector.extract_strided_slice %250 {offsets = [0, 224], sizes = [2, 16], strides = [1, 1]} : vector<2x256xf32> to vector<2x16xf32>
    %280 = vector.extract_strided_slice %250 {offsets = [0, 240], sizes = [2, 16], strides = [1, 1]} : vector<2x256xf32> to vector<2x16xf32>
    %281 = arith.maximumf %279, %280 : vector<2x16xf32>
    %c0_152 = arith.constant 0 : index
    %c752 = arith.constant 752 : index
    %282 = vector.load %arg19[%c0_152, %c752] : memref<2x1024xf32, #tpu.memory_space<vmem>>, vector<2x16xf32>
    tpu.vector_store %arg19[%c0_152, %c752], %281 {strides = array<i32>} : memref<2x1024xf32, #tpu.memory_space<vmem>>, vector<2x16xf32>,
    %c0_153 = arith.constant 0 : index
    %c12 = arith.constant 12 : index
    %c0_154 = arith.constant 0 : index
    %283 = vector.load %arg17[%c0_153, %c12, %c0_154] : memref<2x16x256xf32, #tpu.memory_space<vmem>>, vector<2x1x256xf32>
    %284 = vector.shape_cast %283 : vector<2x1x256xf32> to vector<2x256xf32>
    %c0_155 = arith.constant 0 : index
    %c13 = arith.constant 13 : index
    %c0_156 = arith.constant 0 : index
    %285 = vector.load %arg17[%c0_155, %c13, %c0_156] : memref<2x16x256xf32, #tpu.memory_space<vmem>>, vector<2x1x256xf32>
    %286 = vector.shape_cast %285 : vector<2x1x256xf32> to vector<2x256xf32>
    %287 = arith.maximumf %284, %286 : vector<2x256xf32>
    %288 = vector.extract_strided_slice %287 {offsets = [0, 0], sizes = [2, 16], strides = [1, 1]} : vector<2x256xf32> to vector<2x16xf32>
    %289 = vector.extract_strided_slice %287 {offsets = [0, 16], sizes = [2, 16], strides = [1, 1]} : vector<2x256xf32> to vector<2x16xf32>
    %290 = arith.maximumf %288, %289 : vector<2x16xf32>
    %c0_157 = arith.constant 0 : index
    %c768 = arith.constant 768 : index
    %291 = vector.load %arg19[%c0_157, %c768] : memref<2x1024xf32, #tpu.memory_space<vmem>>, vector<2x16xf32>
    tpu.vector_store %arg19[%c0_157, %c768], %290 {strides = array<i32>} : memref<2x1024xf32, #tpu.memory_space<vmem>>, vector<2x16xf32>,
    %292 = vector.extract_strided_slice %287 {offsets = [0, 32], sizes = [2, 16], strides = [1, 1]} : vector<2x256xf32> to vector<2x16xf32>
    %293 = vector.extract_strided_slice %287 {offsets = [0, 48], sizes = [2, 16], strides = [1, 1]} : vector<2x256xf32> to vector<2x16xf32>
    %294 = arith.maximumf %292, %293 : vector<2x16xf32>
    %c0_158 = arith.constant 0 : index
    %c784 = arith.constant 784 : index
    %295 = vector.load %arg19[%c0_158, %c784] : memref<2x1024xf32, #tpu.memory_space<vmem>>, vector<2x16xf32>
    tpu.vector_store %arg19[%c0_158, %c784], %294 {strides = array<i32>} : memref<2x1024xf32, #tpu.memory_space<vmem>>, vector<2x16xf32>,
    %296 = vector.extract_strided_slice %287 {offsets = [0, 64], sizes = [2, 16], strides = [1, 1]} : vector<2x256xf32> to vector<2x16xf32>
    %297 = vector.extract_strided_slice %287 {offsets = [0, 80], sizes = [2, 16], strides = [1, 1]} : vector<2x256xf32> to vector<2x16xf32>
    %298 = arith.maximumf %296, %297 : vector<2x16xf32>
    %c0_159 = arith.constant 0 : index
    %c800 = arith.constant 800 : index
    %299 = vector.load %arg19[%c0_159, %c800] : memref<2x1024xf32, #tpu.memory_space<vmem>>, vector<2x16xf32>
    tpu.vector_store %arg19[%c0_159, %c800], %298 {strides = array<i32>} : memref<2x1024xf32, #tpu.memory_space<vmem>>, vector<2x16xf32>,
    %300 = vector.extract_strided_slice %287 {offsets = [0, 96], sizes = [2, 16], strides = [1, 1]} : vector<2x256xf32> to vector<2x16xf32>
    %301 = vector.extract_strided_slice %287 {offsets = [0, 112], sizes = [2, 16], strides = [1, 1]} : vector<2x256xf32> to vector<2x16xf32>
    %302 = arith.maximumf %300, %301 : vector<2x16xf32>
    %c0_160 = arith.constant 0 : index
    %c816 = arith.constant 816 : index
    %303 = vector.load %arg19[%c0_160, %c816] : memref<2x1024xf32, #tpu.memory_space<vmem>>, vector<2x16xf32>
    tpu.vector_store %arg19[%c0_160, %c816], %302 {strides = array<i32>} : memref<2x1024xf32, #tpu.memory_space<vmem>>, vector<2x16xf32>,
    %304 = vector.extract_strided_slice %287 {offsets = [0, 128], sizes = [2, 16], strides = [1, 1]} : vector<2x256xf32> to vector<2x16xf32>
    %305 = vector.extract_strided_slice %287 {offsets = [0, 144], sizes = [2, 16], strides = [1, 1]} : vector<2x256xf32> to vector<2x16xf32>
    %306 = arith.maximumf %304, %305 : vector<2x16xf32>
    %c0_161 = arith.constant 0 : index
    %c832 = arith.constant 832 : index
    %307 = vector.load %arg19[%c0_161, %c832] : memref<2x1024xf32, #tpu.memory_space<vmem>>, vector<2x16xf32>
    tpu.vector_store %arg19[%c0_161, %c832], %306 {strides = array<i32>} : memref<2x1024xf32, #tpu.memory_space<vmem>>, vector<2x16xf32>,
    %308 = vector.extract_strided_slice %287 {offsets = [0, 160], sizes = [2, 16], strides = [1, 1]} : vector<2x256xf32> to vector<2x16xf32>
    %309 = vector.extract_strided_slice %287 {offsets = [0, 176], sizes = [2, 16], strides = [1, 1]} : vector<2x256xf32> to vector<2x16xf32>
    %310 = arith.maximumf %308, %309 : vector<2x16xf32>
    %c0_162 = arith.constant 0 : index
    %c848 = arith.constant 848 : index
    %311 = vector.load %arg19[%c0_162, %c848] : memref<2x1024xf32, #tpu.memory_space<vmem>>, vector<2x16xf32>
    tpu.vector_store %arg19[%c0_162, %c848], %310 {strides = array<i32>} : memref<2x1024xf32, #tpu.memory_space<vmem>>, vector<2x16xf32>,
    %312 = vector.extract_strided_slice %287 {offsets = [0, 192], sizes = [2, 16], strides = [1, 1]} : vector<2x256xf32> to vector<2x16xf32>
    %313 = vector.extract_strided_slice %287 {offsets = [0, 208], sizes = [2, 16], strides = [1, 1]} : vector<2x256xf32> to vector<2x16xf32>
    %314 = arith.maximumf %312, %313 : vector<2x16xf32>
    %c0_163 = arith.constant 0 : index
    %c864 = arith.constant 864 : index
    %315 = vector.load %arg19[%c0_163, %c864] : memref<2x1024xf32, #tpu.memory_space<vmem>>, vector<2x16xf32>
    tpu.vector_store %arg19[%c0_163, %c864], %314 {strides = array<i32>} : memref<2x1024xf32, #tpu.memory_space<vmem>>, vector<2x16xf32>,
    %316 = vector.extract_strided_slice %287 {offsets = [0, 224], sizes = [2, 16], strides = [1, 1]} : vector<2x256xf32> to vector<2x16xf32>
    %317 = vector.extract_strided_slice %287 {offsets = [0, 240], sizes = [2, 16], strides = [1, 1]} : vector<2x256xf32> to vector<2x16xf32>
    %318 = arith.maximumf %316, %317 : vector<2x16xf32>
    %c0_164 = arith.constant 0 : index
    %c880 = arith.constant 880 : index
    %319 = vector.load %arg19[%c0_164, %c880] : memref<2x1024xf32, #tpu.memory_space<vmem>>, vector<2x16xf32>
    tpu.vector_store %arg19[%c0_164, %c880], %318 {strides = array<i32>} : memref<2x1024xf32, #tpu.memory_space<vmem>>, vector<2x16xf32>,
    %c0_165 = arith.constant 0 : index
    %c14 = arith.constant 14 : index
    %c0_166 = arith.constant 0 : index
    %320 = vector.load %arg17[%c0_165, %c14, %c0_166] : memref<2x16x256xf32, #tpu.memory_space<vmem>>, vector<2x1x256xf32>
    %321 = vector.shape_cast %320 : vector<2x1x256xf32> to vector<2x256xf32>
    %c0_167 = arith.constant 0 : index
    %c15 = arith.constant 15 : index
    %c0_168 = arith.constant 0 : index
    %322 = vector.load %arg17[%c0_167, %c15, %c0_168] : memref<2x16x256xf32, #tpu.memory_space<vmem>>, vector<2x1x256xf32>
    %323 = vector.shape_cast %322 : vector<2x1x256xf32> to vector<2x256xf32>
    %324 = arith.maximumf %321, %323 : vector<2x256xf32>
    %325 = vector.extract_strided_slice %324 {offsets = [0, 0], sizes = [2, 16], strides = [1, 1]} : vector<2x256xf32> to vector<2x16xf32>
    %326 = vector.extract_strided_slice %324 {offsets = [0, 16], sizes = [2, 16], strides = [1, 1]} : vector<2x256xf32> to vector<2x16xf32>
    %327 = arith.maximumf %325, %326 : vector<2x16xf32>
    %c0_169 = arith.constant 0 : index
    %c896 = arith.constant 896 : index
    %328 = vector.load %arg19[%c0_169, %c896] : memref<2x1024xf32, #tpu.memory_space<vmem>>, vector<2x16xf32>
    tpu.vector_store %arg19[%c0_169, %c896], %327 {strides = array<i32>} : memref<2x1024xf32, #tpu.memory_space<vmem>>, vector<2x16xf32>,
    %329 = vector.extract_strided_slice %324 {offsets = [0, 32], sizes = [2, 16], strides = [1, 1]} : vector<2x256xf32> to vector<2x16xf32>
    %330 = vector.extract_strided_slice %324 {offsets = [0, 48], sizes = [2, 16], strides = [1, 1]} : vector<2x256xf32> to vector<2x16xf32>
    %331 = arith.maximumf %329, %330 : vector<2x16xf32>
    %c0_170 = arith.constant 0 : index
    %c912 = arith.constant 912 : index
    %332 = vector.load %arg19[%c0_170, %c912] : memref<2x1024xf32, #tpu.memory_space<vmem>>, vector<2x16xf32>
    tpu.vector_store %arg19[%c0_170, %c912], %331 {strides = array<i32>} : memref<2x1024xf32, #tpu.memory_space<vmem>>, vector<2x16xf32>,
    %333 = vector.extract_strided_slice %324 {offsets = [0, 64], sizes = [2, 16], strides = [1, 1]} : vector<2x256xf32> to vector<2x16xf32>
    %334 = vector.extract_strided_slice %324 {offsets = [0, 80], sizes = [2, 16], strides = [1, 1]} : vector<2x256xf32> to vector<2x16xf32>
    %335 = arith.maximumf %333, %334 : vector<2x16xf32>
    %c0_171 = arith.constant 0 : index
    %c928 = arith.constant 928 : index
    %336 = vector.load %arg19[%c0_171, %c928] : memref<2x1024xf32, #tpu.memory_space<vmem>>, vector<2x16xf32>
    tpu.vector_store %arg19[%c0_171, %c928], %335 {strides = array<i32>} : memref<2x1024xf32, #tpu.memory_space<vmem>>, vector<2x16xf32>,
    %337 = vector.extract_strided_slice %324 {offsets = [0, 96], sizes = [2, 16], strides = [1, 1]} : vector<2x256xf32> to vector<2x16xf32>
    %338 = vector.extract_strided_slice %324 {offsets = [0, 112], sizes = [2, 16], strides = [1, 1]} : vector<2x256xf32> to vector<2x16xf32>
    %339 = arith.maximumf %337, %338 : vector<2x16xf32>
    %c0_172 = arith.constant 0 : index
    %c944 = arith.constant 944 : index
    %340 = vector.load %arg19[%c0_172, %c944] : memref<2x1024xf32, #tpu.memory_space<vmem>>, vector<2x16xf32>
    tpu.vector_store %arg19[%c0_172, %c944], %339 {strides = array<i32>} : memref<2x1024xf32, #tpu.memory_space<vmem>>, vector<2x16xf32>,
    %341 = vector.extract_strided_slice %324 {offsets = [0, 128], sizes = [2, 16], strides = [1, 1]} : vector<2x256xf32> to vector<2x16xf32>
    %342 = vector.extract_strided_slice %324 {offsets = [0, 144], sizes = [2, 16], strides = [1, 1]} : vector<2x256xf32> to vector<2x16xf32>
    %343 = arith.maximumf %341, %342 : vector<2x16xf32>
    %c0_173 = arith.constant 0 : index
    %c960 = arith.constant 960 : index
    %344 = vector.load %arg19[%c0_173, %c960] : memref<2x1024xf32, #tpu.memory_space<vmem>>, vector<2x16xf32>
    tpu.vector_store %arg19[%c0_173, %c960], %343 {strides = array<i32>} : memref<2x1024xf32, #tpu.memory_space<vmem>>, vector<2x16xf32>,
    %345 = vector.extract_strided_slice %324 {offsets = [0, 160], sizes = [2, 16], strides = [1, 1]} : vector<2x256xf32> to vector<2x16xf32>
    %346 = vector.extract_strided_slice %324 {offsets = [0, 176], sizes = [2, 16], strides = [1, 1]} : vector<2x256xf32> to vector<2x16xf32>
    %347 = arith.maximumf %345, %346 : vector<2x16xf32>
    %c0_174 = arith.constant 0 : index
    %c976 = arith.constant 976 : index
    %348 = vector.load %arg19[%c0_174, %c976] : memref<2x1024xf32, #tpu.memory_space<vmem>>, vector<2x16xf32>
    tpu.vector_store %arg19[%c0_174, %c976], %347 {strides = array<i32>} : memref<2x1024xf32, #tpu.memory_space<vmem>>, vector<2x16xf32>,
    %349 = vector.extract_strided_slice %324 {offsets = [0, 192], sizes = [2, 16], strides = [1, 1]} : vector<2x256xf32> to vector<2x16xf32>
    %350 = vector.extract_strided_slice %324 {offsets = [0, 208], sizes = [2, 16], strides = [1, 1]} : vector<2x256xf32> to vector<2x16xf32>
    %351 = arith.maximumf %349, %350 : vector<2x16xf32>
    %c0_175 = arith.constant 0 : index
    %c992 = arith.constant 992 : index
    %352 = vector.load %arg19[%c0_175, %c992] : memref<2x1024xf32, #tpu.memory_space<vmem>>, vector<2x16xf32>
    tpu.vector_store %arg19[%c0_175, %c992], %351 {strides = array<i32>} : memref<2x1024xf32, #tpu.memory_space<vmem>>, vector<2x16xf32>,
    %353 = vector.extract_strided_slice %324 {offsets = [0, 224], sizes = [2, 16], strides = [1, 1]} : vector<2x256xf32> to vector<2x16xf32>
    %354 = vector.extract_strided_slice %324 {offsets = [0, 240], sizes = [2, 16], strides = [1, 1]} : vector<2x256xf32> to vector<2x16xf32>
    %355 = arith.maximumf %353, %354 : vector<2x16xf32>
    %c0_176 = arith.constant 0 : index
    %c1008 = arith.constant 1008 : index
    %356 = vector.load %arg19[%c0_176, %c1008] : memref<2x1024xf32, #tpu.memory_space<vmem>>, vector<2x16xf32>
    tpu.vector_store %arg19[%c0_176, %c1008], %355 {strides = array<i32>} : memref<2x1024xf32, #tpu.memory_space<vmem>>, vector<2x16xf32>,
    %c0_177 = arith.constant 0 : index
    %c0_178 = arith.constant 0 : index
    %357 = vector.load %arg19[%c0_177, %c0_178] : memref<2x1024xf32, #tpu.memory_space<vmem>>, vector<2x1024xf32>
    %358 = arith.truncf %357 : vector<2x1024xf32> to vector<2x1024xbf16>
    %c0_179 = arith.constant 0 : index
    %c0_180 = arith.constant 0 : index
    %359 = vector.load %arg6[%c0_179, %c0_180] : memref<1024x1024xbf16, #tpu.memory_space<vmem>>, vector<1024x1024xbf16>
    %cst_181 = arith.constant dense<0.000000e+00> : vector<2x1024xf32>
    %360 = tpu.matmul %358, %359, %cst_181 {dimension_numbers = #tpu.dot_dimension_numbers<[1], [0], [0], [1], [0, 0, 1, 1], [], []>} : vector<2x1024xbf16>, vector<1024x1024xbf16>, vector<2x1024xf32> -> vector<2x1024xf32>
    %c0_182 = arith.constant 0 : index
    %c0_183 = arith.constant 0 : index
    %361 = vector.load %arg7[%c0_182, %c0_183] : memref<1x1024xf32, #tpu.memory_space<vmem>>, vector<1x1024xf32>
    %362 = vector.broadcast %361 : vector<1x1024xf32> to vector<2x1024xf32>
    %363 = arith.addf %360, %362 : vector<2x1024xf32>
    %364 = arith.truncf %363 : vector<2x1024xf32> to vector<2x1024xbf16>
    %c0_184 = arith.constant 0 : index
    %c0_185 = arith.constant 0 : index
    %365 = vector.load %arg8[%c0_184, %c0_185] : memref<1024x1024xbf16, #tpu.memory_space<vmem>>, vector<1024x1024xbf16>
    %cst_186 = arith.constant dense<0.000000e+00> : vector<2x1024xf32>
    %366 = tpu.matmul %364, %365, %cst_186 {dimension_numbers = #tpu.dot_dimension_numbers<[1], [0], [0], [1], [0, 0, 1, 1], [], []>} : vector<2x1024xbf16>, vector<1024x1024xbf16>, vector<2x1024xf32> -> vector<2x1024xf32>
    %c0_187 = arith.constant 0 : index
    %c0_188 = arith.constant 0 : index
    %367 = vector.load %arg9[%c0_187, %c0_188] : memref<1x1024xf32, #tpu.memory_space<vmem>>, vector<1x1024xf32>
    %368 = vector.broadcast %367 : vector<1x1024xf32> to vector<2x1024xf32>
    %369 = arith.addf %366, %368 : vector<2x1024xf32>
    %cst_189 = arith.constant 0.000000e+00 : f32
    %370 = vector.broadcast %cst_189 : f32 to vector<2x1024xf32>
    %371 = arith.maximumf %369, %370 : vector<2x1024xf32>
    %cst_190 = arith.constant 0.000000e+00 : f32
    %372 = vector.broadcast %cst_190 : f32 to vector<2x18x144xf32>
    %c0_191 = arith.constant 0 : index
    %c0_192 = arith.constant 0 : index
    %c0_193 = arith.constant 0 : index
    %373 = vector.load %arg18[%c0_191, %c0_192, %c0_193] : memref<2x18x144xf32, #tpu.memory_space<vmem>>, vector<2x18x144xf32>
    tpu.vector_store %arg18[%c0_191, %c0_192, %c0_193], %372 {strides = array<i32>} : memref<2x18x144xf32, #tpu.memory_space<vmem>>, vector<2x18x144xf32>,
    %c0_194 = arith.constant 0 : index
    %c0_195 = arith.constant 0 : index
    %374 = vector.load %arg10[%c0_194, %c0_195] : memref<128x256xf32, #tpu.memory_space<vmem>>, vector<128x256xf32>
    %c0_196 = arith.constant 0 : index
    %c0_197 = arith.constant 0 : index
    %375 = vector.load %arg11[%c0_196, %c0_197] : memref<1x256xf32, #tpu.memory_space<vmem>>, vector<1x256xf32>
    %376 = vector.extract_strided_slice %371 {offsets = [0, 0], sizes = [2, 128], strides = [1, 1]} : vector<2x1024xf32> to vector<2x128xf32>
    %cst_198 = arith.constant dense<0.000000e+00> : vector<2x256xf32>
    %377 = tpu.matmul %376, %374, %cst_198 {dimension_numbers = #tpu.dot_dimension_numbers<[1], [0], [0], [1], [0, 0, 1, 1], [], []>} : vector<2x128xf32>, vector<128x256xf32>, vector<2x256xf32> -> vector<2x256xf32>
    %378 = vector.broadcast %375 : vector<1x256xf32> to vector<2x256xf32>
    %379 = arith.addf %377, %378 : vector<2x256xf32>
    %cst_199 = arith.constant 0.000000e+00 : f32
    %380 = vector.broadcast %cst_199 : f32 to vector<2x256xf32>
    %381 = arith.maximumf %379, %380 : vector<2x256xf32>
    %382 = vector.extract_strided_slice %381 {offsets = [0, 0], sizes = [2, 128], strides = [1, 1]} : vector<2x256xf32> to vector<2x128xf32>
    %c0_200 = arith.constant 0 : index
    %c1_201 = arith.constant 1 : index
    %c8_202 = arith.constant 8 : index
    %383 = vector.load %arg18[%c0_200, %c1_201, %c8_202] : memref<2x18x144xf32, #tpu.memory_space<vmem>>, vector<2x1x128xf32>
    %384 = vector.shape_cast %383 : vector<2x1x128xf32> to vector<2x128xf32>
    %385 = vector.shape_cast %382 : vector<2x128xf32> to vector<2x1x128xf32>
    tpu.vector_store %arg18[%c0_200, %c1_201, %c8_202], %385 {strides = array<i32>} : memref<2x18x144xf32, #tpu.memory_space<vmem>>, vector<2x1x128xf32>,
    %386 = vector.extract_strided_slice %381 {offsets = [0, 128], sizes = [2, 128], strides = [1, 1]} : vector<2x256xf32> to vector<2x128xf32>
    %c0_203 = arith.constant 0 : index
    %c2_204 = arith.constant 2 : index
    %c8_205 = arith.constant 8 : index
    %387 = vector.load %arg18[%c0_203, %c2_204, %c8_205] : memref<2x18x144xf32, #tpu.memory_space<vmem>>, vector<2x1x128xf32>
    %388 = vector.shape_cast %387 : vector<2x1x128xf32> to vector<2x128xf32>
    %389 = vector.shape_cast %386 : vector<2x128xf32> to vector<2x1x128xf32>
    tpu.vector_store %arg18[%c0_203, %c2_204, %c8_205], %389 {strides = array<i32>} : memref<2x18x144xf32, #tpu.memory_space<vmem>>, vector<2x1x128xf32>,
    %390 = vector.extract_strided_slice %371 {offsets = [0, 128], sizes = [2, 128], strides = [1, 1]} : vector<2x1024xf32> to vector<2x128xf32>
    %cst_206 = arith.constant dense<0.000000e+00> : vector<2x256xf32>
    %391 = tpu.matmul %390, %374, %cst_206 {dimension_numbers = #tpu.dot_dimension_numbers<[1], [0], [0], [1], [0, 0, 1, 1], [], []>} : vector<2x128xf32>, vector<128x256xf32>, vector<2x256xf32> -> vector<2x256xf32>
    %392 = vector.broadcast %375 : vector<1x256xf32> to vector<2x256xf32>
    %393 = arith.addf %391, %392 : vector<2x256xf32>
    %cst_207 = arith.constant 0.000000e+00 : f32
    %394 = vector.broadcast %cst_207 : f32 to vector<2x256xf32>
    %395 = arith.maximumf %393, %394 : vector<2x256xf32>
    %396 = vector.extract_strided_slice %395 {offsets = [0, 0], sizes = [2, 128], strides = [1, 1]} : vector<2x256xf32> to vector<2x128xf32>
    %c0_208 = arith.constant 0 : index
    %c3_209 = arith.constant 3 : index
    %c8_210 = arith.constant 8 : index
    %397 = vector.load %arg18[%c0_208, %c3_209, %c8_210] : memref<2x18x144xf32, #tpu.memory_space<vmem>>, vector<2x1x128xf32>
    %398 = vector.shape_cast %397 : vector<2x1x128xf32> to vector<2x128xf32>
    %399 = vector.shape_cast %396 : vector<2x128xf32> to vector<2x1x128xf32>
    tpu.vector_store %arg18[%c0_208, %c3_209, %c8_210], %399 {strides = array<i32>} : memref<2x18x144xf32, #tpu.memory_space<vmem>>, vector<2x1x128xf32>,
    %400 = vector.extract_strided_slice %395 {offsets = [0, 128], sizes = [2, 128], strides = [1, 1]} : vector<2x256xf32> to vector<2x128xf32>
    %c0_211 = arith.constant 0 : index
    %c4_212 = arith.constant 4 : index
    %c8_213 = arith.constant 8 : index
    %401 = vector.load %arg18[%c0_211, %c4_212, %c8_213] : memref<2x18x144xf32, #tpu.memory_space<vmem>>, vector<2x1x128xf32>
    %402 = vector.shape_cast %401 : vector<2x1x128xf32> to vector<2x128xf32>
    %403 = vector.shape_cast %400 : vector<2x128xf32> to vector<2x1x128xf32>
    tpu.vector_store %arg18[%c0_211, %c4_212, %c8_213], %403 {strides = array<i32>} : memref<2x18x144xf32, #tpu.memory_space<vmem>>, vector<2x1x128xf32>,
    %404 = vector.extract_strided_slice %371 {offsets = [0, 256], sizes = [2, 128], strides = [1, 1]} : vector<2x1024xf32> to vector<2x128xf32>
    %cst_214 = arith.constant dense<0.000000e+00> : vector<2x256xf32>
    %405 = tpu.matmul %404, %374, %cst_214 {dimension_numbers = #tpu.dot_dimension_numbers<[1], [0], [0], [1], [0, 0, 1, 1], [], []>} : vector<2x128xf32>, vector<128x256xf32>, vector<2x256xf32> -> vector<2x256xf32>
    %406 = vector.broadcast %375 : vector<1x256xf32> to vector<2x256xf32>
    %407 = arith.addf %405, %406 : vector<2x256xf32>
    %cst_215 = arith.constant 0.000000e+00 : f32
    %408 = vector.broadcast %cst_215 : f32 to vector<2x256xf32>
    %409 = arith.maximumf %407, %408 : vector<2x256xf32>
    %410 = vector.extract_strided_slice %409 {offsets = [0, 0], sizes = [2, 128], strides = [1, 1]} : vector<2x256xf32> to vector<2x128xf32>
    %c0_216 = arith.constant 0 : index
    %c5_217 = arith.constant 5 : index
    %c8_218 = arith.constant 8 : index
    %411 = vector.load %arg18[%c0_216, %c5_217, %c8_218] : memref<2x18x144xf32, #tpu.memory_space<vmem>>, vector<2x1x128xf32>
    %412 = vector.shape_cast %411 : vector<2x1x128xf32> to vector<2x128xf32>
    %413 = vector.shape_cast %410 : vector<2x128xf32> to vector<2x1x128xf32>
    tpu.vector_store %arg18[%c0_216, %c5_217, %c8_218], %413 {strides = array<i32>} : memref<2x18x144xf32, #tpu.memory_space<vmem>>, vector<2x1x128xf32>,
    %414 = vector.extract_strided_slice %409 {offsets = [0, 128], sizes = [2, 128], strides = [1, 1]} : vector<2x256xf32> to vector<2x128xf32>
    %c0_219 = arith.constant 0 : index
    %c6_220 = arith.constant 6 : index
    %c8_221 = arith.constant 8 : index
    %415 = vector.load %arg18[%c0_219, %c6_220, %c8_221] : memref<2x18x144xf32, #tpu.memory_space<vmem>>, vector<2x1x128xf32>
    %416 = vector.shape_cast %415 : vector<2x1x128xf32> to vector<2x128xf32>
    %417 = vector.shape_cast %414 : vector<2x128xf32> to vector<2x1x128xf32>
    tpu.vector_store %arg18[%c0_219, %c6_220, %c8_221], %417 {strides = array<i32>} : memref<2x18x144xf32, #tpu.memory_space<vmem>>, vector<2x1x128xf32>,
    %418 = vector.extract_strided_slice %371 {offsets = [0, 384], sizes = [2, 128], strides = [1, 1]} : vector<2x1024xf32> to vector<2x128xf32>
    %cst_222 = arith.constant dense<0.000000e+00> : vector<2x256xf32>
    %419 = tpu.matmul %418, %374, %cst_222 {dimension_numbers = #tpu.dot_dimension_numbers<[1], [0], [0], [1], [0, 0, 1, 1], [], []>} : vector<2x128xf32>, vector<128x256xf32>, vector<2x256xf32> -> vector<2x256xf32>
    %420 = vector.broadcast %375 : vector<1x256xf32> to vector<2x256xf32>
    %421 = arith.addf %419, %420 : vector<2x256xf32>
    %cst_223 = arith.constant 0.000000e+00 : f32
    %422 = vector.broadcast %cst_223 : f32 to vector<2x256xf32>
    %423 = arith.maximumf %421, %422 : vector<2x256xf32>
    %424 = vector.extract_strided_slice %423 {offsets = [0, 0], sizes = [2, 128], strides = [1, 1]} : vector<2x256xf32> to vector<2x128xf32>
    %c0_224 = arith.constant 0 : index
    %c7_225 = arith.constant 7 : index
    %c8_226 = arith.constant 8 : index
    %425 = vector.load %arg18[%c0_224, %c7_225, %c8_226] : memref<2x18x144xf32, #tpu.memory_space<vmem>>, vector<2x1x128xf32>
    %426 = vector.shape_cast %425 : vector<2x1x128xf32> to vector<2x128xf32>
    %427 = vector.shape_cast %424 : vector<2x128xf32> to vector<2x1x128xf32>
    tpu.vector_store %arg18[%c0_224, %c7_225, %c8_226], %427 {strides = array<i32>} : memref<2x18x144xf32, #tpu.memory_space<vmem>>, vector<2x1x128xf32>,
    %428 = vector.extract_strided_slice %423 {offsets = [0, 128], sizes = [2, 128], strides = [1, 1]} : vector<2x256xf32> to vector<2x128xf32>
    %c0_227 = arith.constant 0 : index
    %c8_228 = arith.constant 8 : index
    %c8_229 = arith.constant 8 : index
    %429 = vector.load %arg18[%c0_227, %c8_228, %c8_229] : memref<2x18x144xf32, #tpu.memory_space<vmem>>, vector<2x1x128xf32>
    %430 = vector.shape_cast %429 : vector<2x1x128xf32> to vector<2x128xf32>
    %431 = vector.shape_cast %428 : vector<2x128xf32> to vector<2x1x128xf32>
    tpu.vector_store %arg18[%c0_227, %c8_228, %c8_229], %431 {strides = array<i32>} : memref<2x18x144xf32, #tpu.memory_space<vmem>>, vector<2x1x128xf32>,
    %432 = vector.extract_strided_slice %371 {offsets = [0, 512], sizes = [2, 128], strides = [1, 1]} : vector<2x1024xf32> to vector<2x128xf32>
    %cst_230 = arith.constant dense<0.000000e+00> : vector<2x256xf32>
    %433 = tpu.matmul %432, %374, %cst_230 {dimension_numbers = #tpu.dot_dimension_numbers<[1], [0], [0], [1], [0, 0, 1, 1], [], []>} : vector<2x128xf32>, vector<128x256xf32>, vector<2x256xf32> -> vector<2x256xf32>
    %434 = vector.broadcast %375 : vector<1x256xf32> to vector<2x256xf32>
    %435 = arith.addf %433, %434 : vector<2x256xf32>
    %cst_231 = arith.constant 0.000000e+00 : f32
    %436 = vector.broadcast %cst_231 : f32 to vector<2x256xf32>
    %437 = arith.maximumf %435, %436 : vector<2x256xf32>
    %438 = vector.extract_strided_slice %437 {offsets = [0, 0], sizes = [2, 128], strides = [1, 1]} : vector<2x256xf32> to vector<2x128xf32>
    %c0_232 = arith.constant 0 : index
    %c9_233 = arith.constant 9 : index
    %c8_234 = arith.constant 8 : index
    %439 = vector.load %arg18[%c0_232, %c9_233, %c8_234] : memref<2x18x144xf32, #tpu.memory_space<vmem>>, vector<2x1x128xf32>
    %440 = vector.shape_cast %439 : vector<2x1x128xf32> to vector<2x128xf32>
    %441 = vector.shape_cast %438 : vector<2x128xf32> to vector<2x1x128xf32>
    tpu.vector_store %arg18[%c0_232, %c9_233, %c8_234], %441 {strides = array<i32>} : memref<2x18x144xf32, #tpu.memory_space<vmem>>, vector<2x1x128xf32>,
    %442 = vector.extract_strided_slice %437 {offsets = [0, 128], sizes = [2, 128], strides = [1, 1]} : vector<2x256xf32> to vector<2x128xf32>
    %c0_235 = arith.constant 0 : index
    %c10_236 = arith.constant 10 : index
    %c8_237 = arith.constant 8 : index
    %443 = vector.load %arg18[%c0_235, %c10_236, %c8_237] : memref<2x18x144xf32, #tpu.memory_space<vmem>>, vector<2x1x128xf32>
    %444 = vector.shape_cast %443 : vector<2x1x128xf32> to vector<2x128xf32>
    %445 = vector.shape_cast %442 : vector<2x128xf32> to vector<2x1x128xf32>
    tpu.vector_store %arg18[%c0_235, %c10_236, %c8_237], %445 {strides = array<i32>} : memref<2x18x144xf32, #tpu.memory_space<vmem>>, vector<2x1x128xf32>,
    %446 = vector.extract_strided_slice %371 {offsets = [0, 640], sizes = [2, 128], strides = [1, 1]} : vector<2x1024xf32> to vector<2x128xf32>
    %cst_238 = arith.constant dense<0.000000e+00> : vector<2x256xf32>
    %447 = tpu.matmul %446, %374, %cst_238 {dimension_numbers = #tpu.dot_dimension_numbers<[1], [0], [0], [1], [0, 0, 1, 1], [], []>} : vector<2x128xf32>, vector<128x256xf32>, vector<2x256xf32> -> vector<2x256xf32>
    %448 = vector.broadcast %375 : vector<1x256xf32> to vector<2x256xf32>
    %449 = arith.addf %447, %448 : vector<2x256xf32>
    %cst_239 = arith.constant 0.000000e+00 : f32
    %450 = vector.broadcast %cst_239 : f32 to vector<2x256xf32>
    %451 = arith.maximumf %449, %450 : vector<2x256xf32>
    %452 = vector.extract_strided_slice %451 {offsets = [0, 0], sizes = [2, 128], strides = [1, 1]} : vector<2x256xf32> to vector<2x128xf32>
    %c0_240 = arith.constant 0 : index
    %c11_241 = arith.constant 11 : index
    %c8_242 = arith.constant 8 : index
    %453 = vector.load %arg18[%c0_240, %c11_241, %c8_242] : memref<2x18x144xf32, #tpu.memory_space<vmem>>, vector<2x1x128xf32>
    %454 = vector.shape_cast %453 : vector<2x1x128xf32> to vector<2x128xf32>
    %455 = vector.shape_cast %452 : vector<2x128xf32> to vector<2x1x128xf32>
    tpu.vector_store %arg18[%c0_240, %c11_241, %c8_242], %455 {strides = array<i32>} : memref<2x18x144xf32, #tpu.memory_space<vmem>>, vector<2x1x128xf32>,
    %456 = vector.extract_strided_slice %451 {offsets = [0, 128], sizes = [2, 128], strides = [1, 1]} : vector<2x256xf32> to vector<2x128xf32>
    %c0_243 = arith.constant 0 : index
    %c12_244 = arith.constant 12 : index
    %c8_245 = arith.constant 8 : index
    %457 = vector.load %arg18[%c0_243, %c12_244, %c8_245] : memref<2x18x144xf32, #tpu.memory_space<vmem>>, vector<2x1x128xf32>
    %458 = vector.shape_cast %457 : vector<2x1x128xf32> to vector<2x128xf32>
    %459 = vector.shape_cast %456 : vector<2x128xf32> to vector<2x1x128xf32>
    tpu.vector_store %arg18[%c0_243, %c12_244, %c8_245], %459 {strides = array<i32>} : memref<2x18x144xf32, #tpu.memory_space<vmem>>, vector<2x1x128xf32>,
    %460 = vector.extract_strided_slice %371 {offsets = [0, 768], sizes = [2, 128], strides = [1, 1]} : vector<2x1024xf32> to vector<2x128xf32>
    %cst_246 = arith.constant dense<0.000000e+00> : vector<2x256xf32>
    %461 = tpu.matmul %460, %374, %cst_246 {dimension_numbers = #tpu.dot_dimension_numbers<[1], [0], [0], [1], [0, 0, 1, 1], [], []>} : vector<2x128xf32>, vector<128x256xf32>, vector<2x256xf32> -> vector<2x256xf32>
    %462 = vector.broadcast %375 : vector<1x256xf32> to vector<2x256xf32>
    %463 = arith.addf %461, %462 : vector<2x256xf32>
    %cst_247 = arith.constant 0.000000e+00 : f32
    %464 = vector.broadcast %cst_247 : f32 to vector<2x256xf32>
    %465 = arith.maximumf %463, %464 : vector<2x256xf32>
    %466 = vector.extract_strided_slice %465 {offsets = [0, 0], sizes = [2, 128], strides = [1, 1]} : vector<2x256xf32> to vector<2x128xf32>
    %c0_248 = arith.constant 0 : index
    %c13_249 = arith.constant 13 : index
    %c8_250 = arith.constant 8 : index
    %467 = vector.load %arg18[%c0_248, %c13_249, %c8_250] : memref<2x18x144xf32, #tpu.memory_space<vmem>>, vector<2x1x128xf32>
    %468 = vector.shape_cast %467 : vector<2x1x128xf32> to vector<2x128xf32>
    %469 = vector.shape_cast %466 : vector<2x128xf32> to vector<2x1x128xf32>
    tpu.vector_store %arg18[%c0_248, %c13_249, %c8_250], %469 {strides = array<i32>} : memref<2x18x144xf32, #tpu.memory_space<vmem>>, vector<2x1x128xf32>,
    %470 = vector.extract_strided_slice %465 {offsets = [0, 128], sizes = [2, 128], strides = [1, 1]} : vector<2x256xf32> to vector<2x128xf32>
    %c0_251 = arith.constant 0 : index
    %c14_252 = arith.constant 14 : index
    %c8_253 = arith.constant 8 : index
    %471 = vector.load %arg18[%c0_251, %c14_252, %c8_253] : memref<2x18x144xf32, #tpu.memory_space<vmem>>, vector<2x1x128xf32>
    %472 = vector.shape_cast %471 : vector<2x1x128xf32> to vector<2x128xf32>
    %473 = vector.shape_cast %470 : vector<2x128xf32> to vector<2x1x128xf32>
    tpu.vector_store %arg18[%c0_251, %c14_252, %c8_253], %473 {strides = array<i32>} : memref<2x18x144xf32, #tpu.memory_space<vmem>>, vector<2x1x128xf32>,
    %474 = vector.extract_strided_slice %371 {offsets = [0, 896], sizes = [2, 128], strides = [1, 1]} : vector<2x1024xf32> to vector<2x128xf32>
    %cst_254 = arith.constant dense<0.000000e+00> : vector<2x256xf32>
    %475 = tpu.matmul %474, %374, %cst_254 {dimension_numbers = #tpu.dot_dimension_numbers<[1], [0], [0], [1], [0, 0, 1, 1], [], []>} : vector<2x128xf32>, vector<128x256xf32>, vector<2x256xf32> -> vector<2x256xf32>
    %476 = vector.broadcast %375 : vector<1x256xf32> to vector<2x256xf32>
    %477 = arith.addf %475, %476 : vector<2x256xf32>
    %cst_255 = arith.constant 0.000000e+00 : f32
    %478 = vector.broadcast %cst_255 : f32 to vector<2x256xf32>
    %479 = arith.maximumf %477, %478 : vector<2x256xf32>
    %480 = vector.extract_strided_slice %479 {offsets = [0, 0], sizes = [2, 128], strides = [1, 1]} : vector<2x256xf32> to vector<2x128xf32>
    %c0_256 = arith.constant 0 : index
    %c15_257 = arith.constant 15 : index
    %c8_258 = arith.constant 8 : index
    %481 = vector.load %arg18[%c0_256, %c15_257, %c8_258] : memref<2x18x144xf32, #tpu.memory_space<vmem>>, vector<2x1x128xf32>
    %482 = vector.shape_cast %481 : vector<2x1x128xf32> to vector<2x128xf32>
    %483 = vector.shape_cast %480 : vector<2x128xf32> to vector<2x1x128xf32>
    tpu.vector_store %arg18[%c0_256, %c15_257, %c8_258], %483 {strides = array<i32>} : memref<2x18x144xf32, #tpu.memory_space<vmem>>, vector<2x1x128xf32>,
    %484 = vector.extract_strided_slice %479 {offsets = [0, 128], sizes = [2, 128], strides = [1, 1]} : vector<2x256xf32> to vector<2x128xf32>
    %c0_259 = arith.constant 0 : index
    %c16_260 = arith.constant 16 : index
    %c8_261 = arith.constant 8 : index
    %485 = vector.load %arg18[%c0_259, %c16_260, %c8_261] : memref<2x18x144xf32, #tpu.memory_space<vmem>>, vector<2x1x128xf32>
    %486 = vector.shape_cast %485 : vector<2x1x128xf32> to vector<2x128xf32>
    %487 = vector.shape_cast %484 : vector<2x128xf32> to vector<2x1x128xf32>
    tpu.vector_store %arg18[%c0_259, %c16_260, %c8_261], %487 {strides = array<i32>} : memref<2x18x144xf32, #tpu.memory_space<vmem>>, vector<2x1x128xf32>,
    %c0_262 = arith.constant 0 : index
    %c0_263 = arith.constant 0 : index
    %c0_264 = arith.constant 0 : index
    %488 = vector.load %arg18[%c0_262, %c0_263, %c0_264] : memref<2x18x144xf32, #tpu.memory_space<vmem>>, vector<2x16x144xf32>
    %489 = vector.shape_cast %488 : vector<2x16x144xf32> to vector<32x144xf32>
    %c0_265 = arith.constant 0 : index
    %c0_266 = arith.constant 0 : index
    %c0_267 = arith.constant 0 : index
    %490 = vector.load %arg12[%c0_265, %c0_266, %c0_267] : memref<3x144x48xf32, #tpu.memory_space<vmem>>, vector<1x144x48xf32>
    %491 = vector.shape_cast %490 : vector<1x144x48xf32> to vector<144x48xf32>
    %cst_268 = arith.constant dense<0.000000e+00> : vector<32x48xf32>
    %492 = tpu.matmul %489, %491, %cst_268 {dimension_numbers = #tpu.dot_dimension_numbers<[1], [0], [0], [1], [0, 0, 1, 1], [], []>} : vector<32x144xf32>, vector<144x48xf32>, vector<32x48xf32> -> vector<32x48xf32>
    %c0_269 = arith.constant 0 : index
    %c0_270 = arith.constant 0 : index
    %493 = vector.load %arg13[%c0_269, %c0_270] : memref<1x48xf32, #tpu.memory_space<vmem>>, vector<1x48xf32>
    %494 = vector.broadcast %493 : vector<1x48xf32> to vector<32x48xf32>
    %495 = arith.addf %492, %494 : vector<32x48xf32>
    %c0_271 = arith.constant 0 : index
    %c1_272 = arith.constant 1 : index
    %c0_273 = arith.constant 0 : index
    %496 = vector.load %arg18[%c0_271, %c1_272, %c0_273] : memref<2x18x144xf32, #tpu.memory_space<vmem>>, vector<2x16x144xf32>
    %497 = vector.shape_cast %496 : vector<2x16x144xf32> to vector<32x144xf32>
    %c1_274 = arith.constant 1 : index
    %c0_275 = arith.constant 0 : index
    %c0_276 = arith.constant 0 : index
    %498 = vector.load %arg12[%c1_274, %c0_275, %c0_276] : memref<3x144x48xf32, #tpu.memory_space<vmem>>, vector<1x144x48xf32>
    %499 = vector.shape_cast %498 : vector<1x144x48xf32> to vector<144x48xf32>
    %cst_277 = arith.constant dense<0.000000e+00> : vector<32x48xf32>
    %500 = tpu.matmul %497, %499, %cst_277 {dimension_numbers = #tpu.dot_dimension_numbers<[1], [0], [0], [1], [0, 0, 1, 1], [], []>} : vector<32x144xf32>, vector<144x48xf32>, vector<32x48xf32> -> vector<32x48xf32>
    %501 = arith.addf %495, %500 : vector<32x48xf32>
    %c0_278 = arith.constant 0 : index
    %c2_279 = arith.constant 2 : index
    %c0_280 = arith.constant 0 : index
    %502 = vector.load %arg18[%c0_278, %c2_279, %c0_280] : memref<2x18x144xf32, #tpu.memory_space<vmem>>, vector<2x16x144xf32>
    %503 = vector.shape_cast %502 : vector<2x16x144xf32> to vector<32x144xf32>
    %c2_281 = arith.constant 2 : index
    %c0_282 = arith.constant 0 : index
    %c0_283 = arith.constant 0 : index
    %504 = vector.load %arg12[%c2_281, %c0_282, %c0_283] : memref<3x144x48xf32, #tpu.memory_space<vmem>>, vector<1x144x48xf32>
    %505 = vector.shape_cast %504 : vector<1x144x48xf32> to vector<144x48xf32>
    %cst_284 = arith.constant dense<0.000000e+00> : vector<32x48xf32>
    %506 = tpu.matmul %503, %505, %cst_284 {dimension_numbers = #tpu.dot_dimension_numbers<[1], [0], [0], [1], [0, 0, 1, 1], [], []>} : vector<32x144xf32>, vector<144x48xf32>, vector<32x48xf32> -> vector<32x48xf32>
    %507 = arith.addf %501, %506 : vector<32x48xf32>
    %508 = math.tanh %507 : vector<32x48xf32>
    %509 = vector.shape_cast %508 : vector<32x48xf32> to vector<2x16x48xf32>
    %510 = vector.extract_strided_slice %509 {offsets = [0, 0, 0], sizes = [2, 16, 16], strides = [1, 1, 1]} : vector<2x16x48xf32> to vector<2x16x16xf32>
    %c0_285 = arith.constant 0 : index
    %c0_286 = arith.constant 0 : index
    %c0_287 = arith.constant 0 : index
    %c0_288 = arith.constant 0 : index
    %511 = vector.load %arg14[%c0_285, %c0_286, %c0_287, %c0_288] : memref<2x3x16x16xf32, #tpu.memory_space<vmem>>, vector<2x1x16x16xf32>
    %512 = vector.shape_cast %511 : vector<2x1x16x16xf32> to vector<2x16x16xf32>
    %513 = vector.shape_cast %510 : vector<2x16x16xf32> to vector<2x1x16x16xf32>
    tpu.vector_store %arg14[%c0_285, %c0_286, %c0_287, %c0_288], %513 {strides = array<i32>} : memref<2x3x16x16xf32, #tpu.memory_space<vmem>>, vector<2x1x16x16xf32>,
    %514 = vector.extract_strided_slice %509 {offsets = [0, 0, 16], sizes = [2, 16, 16], strides = [1, 1, 1]} : vector<2x16x48xf32> to vector<2x16x16xf32>
    %c0_289 = arith.constant 0 : index
    %c1_290 = arith.constant 1 : index
    %c0_291 = arith.constant 0 : index
    %c0_292 = arith.constant 0 : index
    %515 = vector.load %arg14[%c0_289, %c1_290, %c0_291, %c0_292] : memref<2x3x16x16xf32, #tpu.memory_space<vmem>>, vector<2x1x16x16xf32>
    %516 = vector.shape_cast %515 : vector<2x1x16x16xf32> to vector<2x16x16xf32>
    %517 = vector.shape_cast %514 : vector<2x16x16xf32> to vector<2x1x16x16xf32>
    tpu.vector_store %arg14[%c0_289, %c1_290, %c0_291, %c0_292], %517 {strides = array<i32>} : memref<2x3x16x16xf32, #tpu.memory_space<vmem>>, vector<2x1x16x16xf32>,
    %518 = vector.extract_strided_slice %509 {offsets = [0, 0, 32], sizes = [2, 16, 16], strides = [1, 1, 1]} : vector<2x16x48xf32> to vector<2x16x16xf32>
    %c0_293 = arith.constant 0 : index
    %c2_294 = arith.constant 2 : index
    %c0_295 = arith.constant 0 : index
    %c0_296 = arith.constant 0 : index
    %519 = vector.load %arg14[%c0_293, %c2_294, %c0_295, %c0_296] : memref<2x3x16x16xf32, #tpu.memory_space<vmem>>, vector<2x1x16x16xf32>
    %520 = vector.shape_cast %519 : vector<2x1x16x16xf32> to vector<2x16x16xf32>
    %521 = vector.shape_cast %518 : vector<2x16x16xf32> to vector<2x1x16x16xf32>
    tpu.vector_store %arg14[%c0_293, %c2_294, %c0_295, %c0_296], %521 {strides = array<i32>} : memref<2x3x16x16xf32, #tpu.memory_space<vmem>>, vector<2x1x16x16xf32>,
    return
  }
  func.func @transform_0(%arg0: i32) -> (i32, i32, i32, i32) {
    %c0_i32 = arith.constant 0 : i32
    %c0_i32_0 = arith.constant 0 : i32
    %c0_i32_1 = arith.constant 0 : i32
    %c0_i32_2 = arith.constant 0 : i32
    %c0_i32_3 = arith.constant 0 : i32
    return %c0_i32, %c0_i32_0, %c0_i32_1, %c0_i32_2 : i32, i32, i32, i32
  }
  func.func @transform_1(%arg0: i32) -> (i32, i32, i32) {
    %c0_i32 = arith.constant 0 : i32
    %c0_i32_0 = arith.constant 0 : i32
    %c0_i32_1 = arith.constant 0 : i32
    %c0_i32_2 = arith.constant 0 : i32
    return %c0_i32, %c0_i32_0, %c0_i32_1 : i32, i32, i32
  }
  func.func @transform_2(%arg0: i32) -> (i32, i32) {
    %c0_i32 = arith.constant 0 : i32
    %c0_i32_0 = arith.constant 0 : i32
    %c0_i32_1 = arith.constant 0 : i32
    return %c0_i32, %c0_i32_0 : i32, i32
  }
  func.func @transform_3(%arg0: i32) -> (i32, i32, i32) {
    %c0_i32 = arith.constant 0 : i32
    %c0_i32_0 = arith.constant 0 : i32
    %c0_i32_1 = arith.constant 0 : i32
    %c0_i32_2 = arith.constant 0 : i32
    return %c0_i32, %c0_i32_0, %c0_i32_1 : i32, i32, i32
  }
  func.func @transform_4(%arg0: i32) -> (i32, i32) {
    %c0_i32 = arith.constant 0 : i32
    %c0_i32_0 = arith.constant 0 : i32
    %c0_i32_1 = arith.constant 0 : i32
    return %c0_i32, %c0_i32_0 : i32, i32
  }
  func.func @transform_5(%arg0: i32) -> (i32, i32) {
    %c0_i32 = arith.constant 0 : i32
    %c0_i32_0 = arith.constant 0 : i32
    %c0_i32_1 = arith.constant 0 : i32
    return %c0_i32, %c0_i32_0 : i32, i32
  }
  func.func @transform_6(%arg0: i32) -> (i32, i32) {
    %c0_i32 = arith.constant 0 : i32
    %c0_i32_0 = arith.constant 0 : i32
    %c0_i32_1 = arith.constant 0 : i32
    return %c0_i32, %c0_i32_0 : i32, i32
  }
  func.func @transform_7(%arg0: i32) -> (i32, i32) {
    %c0_i32 = arith.constant 0 : i32
    %c0_i32_0 = arith.constant 0 : i32
    %c0_i32_1 = arith.constant 0 : i32
    return %c0_i32, %c0_i32_0 : i32, i32
  }
  func.func @transform_8(%arg0: i32) -> (i32, i32) {
    %c0_i32 = arith.constant 0 : i32
    %c0_i32_0 = arith.constant 0 : i32
    %c0_i32_1 = arith.constant 0 : i32
    return %c0_i32, %c0_i32_0 : i32, i32
  }
  func.func @transform_9(%arg0: i32) -> (i32, i32) {
    %c0_i32 = arith.constant 0 : i32
    %c0_i32_0 = arith.constant 0 : i32
    %c0_i32_1 = arith.constant 0 : i32
    return %c0_i32, %c0_i32_0 : i32, i32
  }
  func.func @transform_10(%arg0: i32) -> (i32, i32) {
    %c0_i32 = arith.constant 0 : i32
    %c0_i32_0 = arith.constant 0 : i32
    %c0_i32_1 = arith.constant 0 : i32
    return %c0_i32, %c0_i32_0 : i32, i32
  }
  func.func @transform_11(%arg0: i32) -> (i32, i32, i32) {
    %c0_i32 = arith.constant 0 : i32
    %c0_i32_0 = arith.constant 0 : i32
    %c0_i32_1 = arith.constant 0 : i32
    %c0_i32_2 = arith.constant 0 : i32
    return %c0_i32, %c0_i32_0, %c0_i32_1 : i32, i32, i32
  }
  func.func @transform_12(%arg0: i32) -> (i32, i32) {
    %c0_i32 = arith.constant 0 : i32
    %c0_i32_0 = arith.constant 0 : i32
    %c0_i32_1 = arith.constant 0 : i32
    return %c0_i32, %c0_i32_0 : i32, i32
  }
  func.func @transform_13(%arg0: i32) -> (i32, i32, i32, i32) {
    %c0_i32 = arith.constant 0 : i32
    %c0_i32_0 = arith.constant 0 : i32
    %c0_i32_1 = arith.constant 0 : i32
    %c0_i32_2 = arith.constant 0 : i32
    %c0_i32_3 = arith.constant 0 : i32
    return %c0_i32, %c0_i32_0, %c0_i32_1, %c0_i32_2 : i32, i32, i32, i32
  }
}

</mosaic_0001>

<bundles_post_ra>
// kernel: autoencoder_forward.1
= control target key start
LH: loop header
LB: loop body
LE: loop exit
PB: predicated region body
PF: predicated region fallthrough
CT: control target
= control target key end

     0   :  { %18 = vsyncpa [#allocation8], 0  ;;  %s15779_s0 = inlined_call_operand.hbm [shape: f32[2,3,16,16], index: 0, kind: input, shape index: {}]   ;;  %s15780_s1 = inlined_call_operand.hbm [shape: f32[3,54,128], index: 1, kind: input, shape index: {}]   ;;  %s15781_s2 = inlined_call_operand.hbm [shape: f32[1,128], index: 2, kind: input, shape index: {}]   ;;  %s15782_s3 = inlined_call_operand.hbm [shape: f32[3,144,256], index: 3, kind: input, shape index: {}]   ;;  %s15783_s4 = inlined_call_operand.hbm [shape: f32[1,256], index: 4, kind: input, shape index: {}]   ;;  %s15784_s5 = inlined_call_operand.hbm [shape: bf16[1024,1024], index: 5, kind: input, shape index: {}]   ;;  %s15785_s6 = inlined_call_operand.hbm [shape: f32[1,1024], index: 6, kind: input, shape index: {}]   ;;  %s15786_s7 = inlined_call_operand.hbm [shape: bf16[1024,1024], index: 7, kind: input, shape index: {}]   ;;  %s15787_s8 = inlined_call_operand.hbm [shape: f32[1,1024], index: 8, kind: input, shape index: {}]   ;;  %s15788_s9 = inlined_call_operand.hbm [shape: f32[128,256], index: 9, kind: input, shape index: {}]   ;;  %s15789_s10 = inlined_call_operand.hbm [shape: f32[1,256], index: 10, kind: input, shape index: {}]   ;;  %s15790_s11 = inlined_call_operand.vmem [shape: f32[3,144,48], index: 11, kind: input, shape index: {}]   ;;  %s15791_s12 = inlined_call_operand.hbm [shape: f32[1,48], index: 12, kind: input, shape index: {}]   ;;  %s15792_s13 = inlined_call_operand.hbm [shape: f32[2,3,16,16], index: 13, kind: output, shape index: {}]  }
   0x1   :  { %19 = vsyncpa [#allocation11], 0 }
   0x2   :  { %20 = vsyncpa [#allocation14], 0 }
   0x3   :  { %21 = vsyncpa [#allocation17], 0 }
   0x4   :  { %22 = vsyncpa [#allocation20], 0 }
   0x5   :  { %23 = vsyncpa [#allocation23], 0 }
   0x6   :  { %24 = vsyncpa [#allocation26], 0 }
   0x7   :  { %25 = vsyncpa [#allocation9], 0  ;;  %s13502_s25 = smov [#allocation10]   ;;  %s13503_s27 = smov [#allocation13]  }
   0x8   :  { %s43_s26 = sshll.u32 %s13502_s25, 4  ;;  %s65_s28 = sshll.u32 %s13503_s27, 4  ;;  %s44_s26 = int_to_ptr.vmem [resolvable:$true] %s43_s26  ;;  %s66_s28 = int_to_ptr.vmem [resolvable:$true] %s65_s28 }
   0x9   :  { %s13234_s29 = scalar_lea.vmem %s44_s26, 2688  ;;  %p13239_p1 = scmp.lt.s32.totalorder %s44_s26, %s44_s26 }
   0xa   :  { %p13235_p0 = scmp.ne.s32.totalorder %s44_s26, %s13234_s29  ;;  %p13240_p2 = scmp.lt.s32.totalorder %s13234_s29, %s13234_s29 }
   0xc   :  { %p13241_p3 = por %p13240_p2, %p13239_p1 }
   0xe   :  { %p13242_p4 = pnand %p13241_p3, %p13235_p0 }
  0x10   :  { %13245 = shalt.err (!%p13242_p4)
}
  0x11   :  { %s13504_s30 = smov 128   ;;  %s13505_s14 = smov 8  }
  0x12   :  { %49 = dma.hbm_to_vmem [thread:$0]  %s15780_s1, 2688, %s44_s26, [#allocation11], %s13504_s30, %s13504_s30, %s13505_s14  }
  0x13   :  { %s13254_s17 = scalar_lea.vmem %s66_s28, 13824  ;;  %p13259_p6 = scmp.lt.s32.totalorder %s66_s28, %s66_s28 }
  0x14   :  { %p13255_p5 = scmp.ne.s32.totalorder %s66_s28, %s13254_s17  ;;  %p13260_p7 = scmp.lt.s32.totalorder %s13254_s17, %s13254_s17 }
  0x16   :  { %p13261_p8 = por %p13260_p7, %p13259_p6 }
  0x18   :  { %p13262_p9 = pnand %p13261_p8, %p13255_p5 }
  0x1a   :  { %13265 = shalt.err (!%p13262_p9)
}
  0x1b   :  { %s13506_s18 = smov 256   ;;  %s13507_s19 = smov 16  }
  0x1c   :  { %71 = dma.hbm_to_vmem [thread:$0]  %s15782_s3, 13824, %s66_s28, [#allocation14], %s13506_s18, %s13506_s18, %s13507_s19  }
  0x1d   :  { %s13508_s22 = smov [#allocation16]  }
  0x1e   :  { %s87_s23 = sshll.u32 %s13508_s22, 4  ;;  %s88_s23 = int_to_ptr.vmem [resolvable:$true] %s87_s23 }
  0x1f   :  { %s13274_s1 = scalar_lea.vmem %s88_s23, 65536  ;;  %p13279_p11 = scmp.lt.s32.totalorder %s88_s23, %s88_s23 }
  0x20   :  { %p13275_p10 = scmp.ne.s32.totalorder %s88_s23, %s13274_s1  ;;  %p13280_p12 = scmp.lt.s32.totalorder %s13274_s1, %s13274_s1 }
  0x22   :  { %p13281_p13 = por %p13280_p12, %p13279_p11 }
  0x24   :  { %p13282_p0 = pnand %p13281_p13, %p13275_p10 }
  0x26   :  { %13285 = shalt.err (!%p13282_p0)
}
  0x27   :  { %s13509_s24 = smov 512   ;;  %s13510_s25 = smov 32  }
  0x28   :  { %93 = dma.hbm_to_vmem [thread:$0]  %s15784_s5, 65536, %s88_s23, [#allocation17], %s13509_s24, %s13509_s24, %s13510_s25  }
  0x29   :  { %s13511_s29 = smov [#allocation19]   ;;  %s13512_s3 = smov [#allocation22]  }
  0x2a   :  { %s109_s15 = sshll.u32 %s13511_s29, 4  ;;  %s131_s28 = sshll.u32 %s13512_s3, 4  ;;  %s110_s15 = int_to_ptr.vmem [resolvable:$true] %s109_s15  ;;  %s132_s28 = int_to_ptr.vmem [resolvable:$true] %s131_s28 }
  0x2b   :  { %s13294_s16 = scalar_lea.vmem %s110_s15, 65536  ;;  %p13299_p2 = scmp.lt.s32.totalorder %s110_s15, %s110_s15 }
  0x2c   :  { %p13295_p1 = scmp.ne.s32.totalorder %s110_s15, %s13294_s16  ;;  %p13300_p3 = scmp.lt.s32.totalorder %s13294_s16, %s13294_s16 }
  0x2e   :  { %p13301_p4 = por %p13300_p3, %p13299_p2 }
  0x30   :  { %p13302_p5 = pnand %p13301_p4, %p13295_p1 }
  0x32   :  { %13305 = shalt.err (!%p13302_p5)
}
  0x33   :  { %115 = dma.hbm_to_vmem [thread:$0]  %s15786_s7, 65536, %s110_s15, [#allocation20], %s13509_s24, %s13509_s24, %s13510_s25  }
  0x34   :  { %s13314_s21 = scalar_lea.vmem %s132_s28, 4096  ;;  %p13319_p7 = scmp.lt.s32.totalorder %s132_s28, %s132_s28 }
  0x35   :  { %p13315_p6 = scmp.ne.s32.totalorder %s132_s28, %s13314_s21  ;;  %p13320_p8 = scmp.lt.s32.totalorder %s13314_s21, %s13314_s21 }
  0x37   :  { %p13321_p9 = por %p13320_p8, %p13319_p7 }
  0x39   :  { %p13322_p10 = pnand %p13321_p9, %p13315_p6 }
  0x3b   :  { %13325 = shalt.err (!%p13322_p10)
}
  0x3c   :  { %137 = dma.hbm_to_vmem [thread:$0]  %s15788_s9, 4096, %s132_s28, [#allocation23], %s13506_s18, %s13506_s18, %s13507_s19  }
  0x3d   :  { %s13513_s23 = smov [#allocation7]   ;;  %s13514_s26 = smov [#allocation12]  }
  0x3e   :  { %s31_s1 = sshll.u32 %s13513_s23, 4  ;;  %s56_s7 = sshll.u32 %s13514_s26, 4  ;;  %s32_s1 = int_to_ptr.vmem [resolvable:$true] %s31_s1  ;;  %s57_s7 = int_to_ptr.vmem [resolvable:$true] %s56_s7 }
  0x3f   :  { %s13334_s24 = scalar_lea.vmem %s32_s1, 1536  ;;  %p13339_p12 = scmp.lt.s32.totalorder %s32_s1, %s32_s1 }
  0x40   :  { %p13335_p11 = scmp.ne.s32.totalorder %s32_s1, %s13334_s24  ;;  %p13340_p13 = scmp.lt.s32.totalorder %s13334_s24, %s13334_s24 }
  0x42   :  { %p13341_p0 = por %p13340_p13, %p13339_p12 }
  0x44   :  { %p13342_p1 = pnand %p13341_p0, %p13335_p11 }
  0x46   :  { %13345 = shalt.err (!%p13342_p1)
}
  0x47   :  { %37 = dma.hbm_to_vmem [thread:$0]  %s15779_s0, 1536, %s32_s1, [#allocation8], %s13504_s30, %s13504_s30, %s13505_s14  }
  0x48   :  { %s13354_s9 = scalar_lea.vmem %s57_s7, 16  ;;  %s13358_s18 = scalar_lea.vmem %s57_s7, 32 }
  0x49   :  { %p13355_p2 = scmp.ne.s32.totalorder %s57_s7, %s13354_s9  ;;  %p13359_p3 = scmp.lt.s32.totalorder %s57_s7, %s57_s7 }
  0x4a   :  { %p13360_p4 = scmp.lt.s32.totalorder %s13358_s18, %s13354_s9 }
  0x4c   :  { %p13361_p5 = por %p13360_p4, %p13359_p3 }
  0x4e   :  { %p13362_p6 = pnand %p13361_p5, %p13355_p2 }
  0x50   :  { %13365 = shalt.err (!%p13362_p6)
}
  0x51   :  { %59 = dma.hbm_to_vmem [thread:$0]  %s15781_s2, 16, %s57_s7, [#allocation11]  }
  0x52   :  { %s13515_s28 = smov [#allocation15]   ;;  %s13516_s17 = smov [#allocation18]  }
  0x53   :  { %s78_s16 = sshll.u32 %s13515_s28, 4  ;;  %s100_s20 = sshll.u32 %s13516_s17, 4  ;;  %s79_s16 = int_to_ptr.vmem [resolvable:$true] %s78_s16  ;;  %s101_s20 = int_to_ptr.vmem [resolvable:$true] %s100_s20 }
  0x54   :  { %s13374_s21 = scalar_lea.vmem %s79_s16, 32  ;;  %p13379_p8 = scmp.lt.s32.totalorder %s79_s16, %s79_s16 }
  0x55   :  { %p13375_p7 = scmp.ne.s32.totalorder %s79_s16, %s13374_s21  ;;  %p13380_p9 = scmp.lt.s32.totalorder %s13374_s21, %s13374_s21 }
  0x57   :  { %p13381_p10 = por %p13380_p9, %p13379_p8 }
  0x59   :  { %p13382_p11 = pnand %p13381_p10, %p13375_p7 }
  0x5b   :  { %13385 = shalt.err (!%p13382_p11)
}
  0x5c   :  { %81 = dma.hbm_to_vmem [thread:$0]  %s15783_s4, 32, %s79_s16, [#allocation14]  }
  0x5d   :  { %s13394_s22 = scalar_lea.vmem %s101_s20, 128  ;;  %p13399_p13 = scmp.lt.s32.totalorder %s101_s20, %s101_s20 }
  0x5e   :  { %p13395_p12 = scmp.ne.s32.totalorder %s101_s20, %s13394_s22  ;;  %p13400_p0 = scmp.lt.s32.totalorder %s13394_s22, %s13394_s22 }
  0x60   :  { %p13401_p1 = por %p13400_p0, %p13399_p13 }
  0x62   :  { %p13402_p2 = pnand %p13401_p1, %p13395_p12 }
  0x64   :  { %13405 = shalt.err (!%p13402_p2)
}
  0x65   :  { %103 = dma.hbm_to_vmem [thread:$0]  %s15785_s6, 128, %s101_s20, [#allocation17]  }
  0x66   :  { %s13517_s1 = smov [#allocation21]   ;;  %s13518_s7 = smov [#allocation24]  }
  0x67   :  { %s122_s26 = sshll.u32 %s13517_s1, 4  ;;  %s144_s24 = sshll.u32 %s13518_s7, 4  ;;  %s123_s26 = int_to_ptr.vmem [resolvable:$true] %s122_s26  ;;  %s145_s24 = int_to_ptr.vmem [resolvable:$true] %s144_s24 }
  0x68   :  { %s13414_s27 = scalar_lea.vmem %s123_s26, 128  ;;  %p13419_p4 = scmp.lt.s32.totalorder %s123_s26, %s123_s26 }
  0x69   :  { %p13415_p3 = scmp.ne.s32.totalorder %s123_s26, %s13414_s27  ;;  %p13420_p5 = scmp.lt.s32.totalorder %s13414_s27, %s13414_s27 }
  0x6b   :  { %p13421_p6 = por %p13420_p5, %p13419_p4 }
  0x6d   :  { %p13422_p7 = pnand %p13421_p6, %p13415_p3 }
  0x6f   :  { %13425 = shalt.err (!%p13422_p7)
}
  0x70   :  { %125 = dma.hbm_to_vmem [thread:$0]  %s15787_s8, 128, %s123_s26, [#allocation20]  }
  0x71   :  { %s13434_s9 = scalar_lea.vmem %s145_s24, 32  ;;  %p13439_p9 = scmp.lt.s32.totalorder %s145_s24, %s145_s24 }
  0x72   :  { %p13435_p8 = scmp.ne.s32.totalorder %s145_s24, %s13434_s9  ;;  %p13440_p10 = scmp.lt.s32.totalorder %s13434_s9, %s13434_s9 }
  0x74   :  { %p13441_p11 = por %p13440_p10, %p13439_p9 }
  0x76   :  { %p13442_p12 = pnand %p13441_p11, %p13435_p8 }
  0x78   :  { %13445 = shalt.err (!%p13442_p12)
}
  0x79   :  { %147 = dma.hbm_to_vmem [thread:$0]  %s15789_s10, 32, %s145_s24, [#allocation23]  }
  0x7a   :  { %s13519_s15 = smov [#allocation25]  }
  0x7b   :  { %s156_s3 = sshll.u32 %s13519_s15, 4  ;;  %s157_s3 = int_to_ptr.vmem [resolvable:$true] %s156_s3 }
  0x7c   :  { %s13454_s28 = scalar_lea.vmem %s157_s3, 16  ;;  %s13458_s16 = scalar_lea.vmem %s157_s3, 32 }
  0x7d   :  { %p13455_p13 = scmp.ne.s32.totalorder %s157_s3, %s13454_s28  ;;  %p13459_p0 = scmp.lt.s32.totalorder %s157_s3, %s157_s3 }
  0x7e   :  { %p13460_p1 = scmp.lt.s32.totalorder %s13458_s16, %s13454_s28 }
  0x80   :  { %p13461_p2 = por %p13460_p1, %p13459_p0 }
  0x82   :  { %p13462_p3 = pnand %p13461_p2, %p13455_p13 }
  0x84   :  { %13465 = shalt.err (!%p13462_p3)
}
  0x85   :  { %159 = dma.hbm_to_vmem [thread:$0]  %s15791_s12, 16, %s157_s3, [#allocation26]  }
  0x86   :  { %13486 = dma.done.wait [#allocation8], 1536  }
  0x87   :  { %13487 = vsyncadd [#allocation8], 4294965760 }
  0x88   :  { %13488 = dma.done.wait [#allocation11], 2704  }
  0x89   :  { %13489 = vsyncadd [#allocation11], 4294964592 }
  0x8a   :  { %13490 = dma.done.wait [#allocation14], 13856  }
  0x8b   :  { %13491 = vsyncadd [#allocation14], 4294953440 }
  0x8c   :  { %13492 = dma.done.wait [#allocation17], 65664  }
  0x8d   :  { %13493 = vsyncadd [#allocation17], 4294901632 }
  0x8e   :  { %13494 = dma.done.wait [#allocation20], 65664  }
  0x8f   :  { %13495 = vsyncadd [#allocation20], 4294901632 }
  0x90   :  { %13496 = dma.done.wait [#allocation23], 4128  }
  0x91   :  { %13497 = vsyncadd [#allocation23], 4294963168 }
  0x92   :  { %13498 = dma.done.wait [#allocation26], 16  }
  0x93   :  { %13499 = vsyncadd [#allocation26], 4294967280  ;;  %vm196_vm0 = vcmask 441344   ;;  %v13520_v0 = vmov 0.0   ;;  %vm199_vm1 = vcmask 435200   ;;  %v230_v1 = vld [vmem:[#allocation7 + $0x10] sm:$0xff] }
  0x94   :  { %197 = vst.msk [vmem:[#allocation2] sm:$0xff] %vm196_vm0, %v13520_v0  ;;  %198 = vst.msk [vmem:[#allocation2 + $0x8] sm:$0xff] %vm196_vm0, %v13520_v0  ;;  %v204_v2 = vld [vmem:[#allocation7] sm:$0xff]  ;;  %s13521_s10 = smov 19   ;;  %s13522_s12 = smov 1   ;;  %v231_v3 = vld [vmem:[#allocation7 + $0x18] sm:$0xff] }
  0x95   :  { %201 = vst.msk [vmem:[#allocation2 + $0x18] sm:$0xff] %vm196_vm0, %v13520_v0  ;;  %202 = vst.msk [vmem:[#allocation2 + $0x20] sm:$0xff] %vm196_vm0, %v13520_v0  ;;  %238 = vrot.lane.b32.xlu1 %v230_v1, %s13521_s10  ;;  %212 = vrot.lane.b32.xlu0 %v204_v2, %s13522_s12  ;;  %v205_v4 = vld [vmem:[#allocation7 + $0x8] sm:$0xff]  ;;  %vm311_vm2 = vcmask 1045504   ;;  %v291_v5 = vld [vmem:[#allocation10 + $0x30] sm:$0x3f] }
  0x96   :  { %636 = vst [vmem:[#allocation3] sm:$0xff] %v13520_v0  ;;  %639 = vst [vmem:[#allocation3 + $0x10] sm:$0xff] %v13520_v0  ;;  %v411_v6 = vld [vmem:[#allocation10 + $0x68] sm:$0x3f]  ;;  %v410_v8 = vld [vmem:[#allocation10 + $0x60] sm:$0xff]  ;;  %13120 = vmatprep.subr.msk.mxu0 %vm311_vm2, %v291_v5  ;;  %s13523_s20 = smov 37  }
  0x97   :  { %641 = vst [vmem:[#allocation3 + $0x20] sm:$0x3] %v13520_v0  ;;  %644 = vst [vmem:[#allocation3 + $0x30] sm:$0xff] %v13520_v0  ;;  %v290_v7 = vld [vmem:[#allocation10 + $0x28] sm:$0xff]  ;;  %v256_v10 = vld [vmem:[#allocation7 + $0x20] sm:$0xff]  ;;  %13140 = vmatprep.subr.msk.mxu1 %vm311_vm2, %v411_v6  ;;  %13121 = vmatpush3.msk.msra.mxu0 %vm311_vm2, %v291_v5  ;;  %vm224_vm3 = vcmask 138248  }
  0x98   :  { %646 = vst [vmem:[#allocation3 + $0x40] sm:$0xff] %v13520_v0  ;;  %648 = vst [vmem:[#allocation3 + $0x50] sm:$0x3] %v13520_v0  ;;  %v257_v9 = vld [vmem:[#allocation7 + $0x28] sm:$0xff]  ;;  %13141 = vmatpush3.msk.msra.mxu1 %vm311_vm2, %v411_v6  ;;  %13122 = vmatprep.subr.mxu0 %v290_v7  ;;  %v289_v11 = vld [vmem:[#allocation10 + $0x20] sm:$0xff]  ;;  %vm250_vm4 = vcmask 285848  }
  0x99   :  { %10171 = vst [vmem:[#allocation5] sm:$0xff] %v13520_v0  ;;  %10173 = vst [vmem:[#allocation5 + $0x10] sm:$0xff] %v13520_v0  ;;  %240 = vrot.lane.b32.xlu1 %v231_v3, %s13521_s10  ;;  %214 = vrot.lane.b32.xlu0 %v205_v4, %s13522_s12  ;;  %v409_v12 = vld [vmem:[#allocation10 + $0x58] sm:$0xff]  ;;  %v206_v14 = vld [vmem:[#allocation7 + $0x30] sm:$0xff]  ;;  %vm276_vm5 = vcmask 433448   ;;  %vm637_vm6 = vcmask 130048  }
  0x9a   :  { %10175 = vst [vmem:[#allocation5 + $0x20] sm:$0x3] %v13520_v0  ;;  %10177 = vst [vmem:[#allocation5 + $0x30] sm:$0xff] %v13520_v0  ;;  %13142 = vmatprep.subr.mxu1 %v410_v8  ;;  %v207_v13 = vld [vmem:[#allocation7 + $0x38] sm:$0xff]  ;;  %13123 = vmatpush3.msra.mxu0 %v290_v7  ;;  %v408_v16 = vld [vmem:[#allocation10 + $0x50] sm:$0xff]  ;;  %vm642_vm7 = vcmask 123904  }
  0x9b   :  { %10179 = vst [vmem:[#allocation5 + $0x40] sm:$0xff] %v13520_v0  ;;  %10181 = vst [vmem:[#allocation5 + $0x50] sm:$0x3] %v13520_v0  ;;  %13143 = vmatpush3.msra.mxu1 %v410_v8  ;;  %13124 = vmatprep.subr.mxu0 %v289_v11  ;;  %v288_v15 = vld [vmem:[#allocation10 + $0x18] sm:$0xff]  ;;  %v287_v17 = vld [vmem:[#allocation10 + $0x10] sm:$0xff]  ;;  %vm654_vm8 = vcmask 1040384  }
  0x9c   :  { %200 = vst.msk [vmem:[#allocation2 + $0x10] sm:$0x3] %vm199_vm1, %v13520_v0  ;;  %203 = vst.msk [vmem:[#allocation2 + $0x28] sm:$0x3] %vm199_vm1, %v13520_v0  ;;  %13144 = vmatprep.subr.mxu1 %v409_v12  ;;  %13125 = vmatpush3.msra.mxu0 %v289_v11  ;;  %v407_v18 = vld [vmem:[#allocation10 + $0x48] sm:$0xff]  ;;  %v232_v20 = vld [vmem:[#allocation7 + $0x40] sm:$0xff] }
  0x9d   :  { %266 = vrot.lane.b32.xlu1 %v257_v9, %s13523_s20  ;;  %264 = vrot.lane.b32.xlu0 %v256_v10, %s13523_s20  ;;  %v233_v19 = vld [vmem:[#allocation7 + $0x48] sm:$0xff]  ;;  %v406_v22 = vld [vmem:[#allocation10 + $0x40] sm:$0xff]  ;;  %v259_v23 = vld [vmem:[#allocation7 + $0x58] sm:$0xff]  ;;  %638 = vst.msk [vmem:[#allocation3 + $0x8] sm:$0xff] %vm637_vm6, %v13520_v0  ;;  %vm679_vm9 = vcmask 1047617   ;;  %vm681_vm10 = vcmask 64513  }
  0x9e   :  { %13145 = vmatpush3.msra.mxu1 %v409_v12  ;;  %13126 = vmatprep.subr.mxu0 %v288_v15  ;;  %v286_v21 = vld [vmem:[#allocation10 + $0x8] sm:$0xff]  ;;  %v258_v24 = vld [vmem:[#allocation7 + $0x50] sm:$0xff]  ;;  %v285_v25 = vld [vmem:[#allocation10] sm:$0xff]  ;;  %640 = vst.msk [vmem:[#allocation3 + $0x18] sm:$0xff] %vm637_vm6, %v13520_v0  ;;  %vm683_vm11 = vcmask 1047616   ;;  %vm685_vm12 = vcmask 64512  }
  0x9f   :  { %13146 = vmatprep.subr.mxu1 %v408_v16  ;;  %13127 = vmatpush3.msra.mxu0 %v288_v15  ;;  %v405_v26 = vld [vmem:[#allocation10 + $0x38] sm:$0xff]  ;;  %v527_v27 = vld [vmem:[#allocation10 + $0xa0] sm:$0x3f]  ;;  %v525_v43 = vld [vmem:[#allocation10 + $0x90] sm:$0xff]  ;;  %645 = vst.msk [vmem:[#allocation3 + $0x38] sm:$0xff] %vm637_vm6, %v13520_v0  ;;  %vm687_vm13 = vcmask 1040448  }
  0xa0   :  { %13147 = vmatpush3.msra.mxu1 %v408_v16  ;;  %13128 = vmatprep.subr.mxu0 %v287_v17  ;;  %v526_v42 = vld [vmem:[#allocation10 + $0x98] sm:$0xff]  ;;  %v524_v46 = vld [vmem:[#allocation10 + $0x88] sm:$0xff]  ;;  %v523_v47 = vld [vmem:[#allocation10 + $0x80] sm:$0xff]  ;;  %647 = vst.msk [vmem:[#allocation3 + $0x48] sm:$0xff] %vm637_vm6, %v13520_v0  ;;  %vm689_vm14 = vcmask 57344   ;;  %vm878_vm15 = vcmask 1046528  }
  0xa1   :  { %218 = vrot.lane.b32.xlu1 %v207_v13, %s13522_s12  ;;  %216 = vrot.lane.b32.xlu0 %v206_v14, %s13522_s12  ;;  %v522_v48 = vld [vmem:[#allocation10 + $0x78] sm:$0xff]  ;;  %v521_v53 = vld [vmem:[#allocation10 + $0x70] sm:$0xff]  ;;  %v736_v58 = vld [vmem:[#allocation13 + $0xf8] sm:$0xff]  ;;  %10172 = vst.msk [vmem:[#allocation5 + $0x8] sm:$0xff] %vm637_vm6, %v13520_v0  ;;  %s13524_s21 = smov 112   ;;  %s13525_s0 = smov 96  }
  0xa2   :  { %13148 = vmatprep.subr.mxu1 %v407_v18  ;;  %13129 = vmatpush3.msra.mxu0 %v287_v17  ;;  %v735_v59 = vld [vmem:[#allocation13 + $0xf0] sm:$0xff]  ;;  %v734_v60 = vld [vmem:[#allocation13 + $0xe8] sm:$0xff]  ;;  %v733_v61 = vld [vmem:[#allocation13 + $0xe0] sm:$0xff]  ;;  %10174 = vst.msk [vmem:[#allocation5 + $0x18] sm:$0xff] %vm637_vm6, %v13520_v0  ;;  %s13526_s5 = smov 80   ;;  %s13527_s22 = smov 64  }
  0xa3   :  { %13149 = vmatpush3.msra.mxu1 %v407_v18  ;;  %13130 = vmatprep.subr.mxu0 %v286_v21  ;;  %10178 = vst.msk [vmem:[#allocation5 + $0x38] sm:$0xff] %vm637_vm6, %v13520_v0  ;;  %10180 = vst.msk [vmem:[#allocation5 + $0x48] sm:$0xff] %vm637_vm6, %v13520_v0  ;;  %v732_v62 = vld [vmem:[#allocation13 + $0xd8] sm:$0xff]  ;;  %v934_v1 = vld [vmem:[#allocation13 + $0x210] sm:$0xff]  ;;  %s13528_s2 = smov 48   ;;  %vm1282_vm1 = vcmask 386304  }
  0xa4   :  { %13150 = vmatprep.subr.mxu1 %v406_v22  ;;  %13131 = vmatpush3.msra.mxu0 %v286_v21  ;;  %v935_v63 = vld [vmem:[#allocation13 + $0x218] sm:$0xff]  ;;  %v731_v2 = vld [vmem:[#allocation13 + $0xd0] sm:$0xff]  ;;  %v933_v3 = vld [vmem:[#allocation13 + $0x208] sm:$0xff]  ;;  %643 = vst.msk [vmem:[#allocation3 + $0x28] sm:$0x3] %vm642_vm7, %v13520_v0 }
  0xa5   :  { %244 = vrot.lane.b32.xlu1 %v233_v19, %s13521_s10  ;;  %242 = vrot.lane.b32.xlu0 %v232_v20, %s13521_s10  ;;  %v730_v4 = vld [vmem:[#allocation13 + $0xc8] sm:$0xff]  ;;  %v932_v5 = vld [vmem:[#allocation13 + $0x200] sm:$0xff]  ;;  %v931_v6 = vld [vmem:[#allocation13 + $0x1f8] sm:$0xff]  ;;  %649 = vst.msk [vmem:[#allocation3 + $0x58] sm:$0x3] %vm642_vm7, %v13520_v0 }
  0xa6   :  { %13151 = vmatpush3.msra.mxu1 %v406_v22  ;;  %13132 = vmatprep.subr.mxu0 %v285_v25  ;;  %v729_v7 = vld [vmem:[#allocation13 + $0xc0] sm:$0xff]  ;;  %v930_v8 = vld [vmem:[#allocation13 + $0x1f0] sm:$0xff]  ;;  %v728_v9 = vld [vmem:[#allocation13 + $0xb8] sm:$0xff]  ;;  %10176 = vst.msk [vmem:[#allocation5 + $0x28] sm:$0x3] %vm642_vm7, %v13520_v0 }
  0xa7   :  { %13152 = vmatprep.subr.mxu1 %v405_v26  ;;  %13133 = vmatpush3.msra.mxu0 %v285_v25  ;;  %v929_v10 = vld [vmem:[#allocation13 + $0x1e8] sm:$0xff]  ;;  %v727_v11 = vld [vmem:[#allocation13 + $0xb0] sm:$0xff]  ;;  %v928_v12 = vld [vmem:[#allocation13 + $0x1e0] sm:$0xff]  ;;  %10182 = vst.msk [vmem:[#allocation5 + $0x58] sm:$0x3] %vm642_vm7, %v13520_v0 }
  0xa8   :  { %13153 = vmatpush3.msra.mxu1 %v405_v26  ;;  %13160 = vmatprep.subr.msk.mxu0 %vm311_vm2, %v527_v27  ;;  %v726_v13 = vld [vmem:[#allocation13 + $0xa8] sm:$0xff]  ;;  %v927_v14 = vld [vmem:[#allocation13 + $0x1d8] sm:$0xff]  ;;  %v725_v15 = vld [vmem:[#allocation13 + $0xa0] sm:$0xff] }
  0xa9   :  { %270 = vrot.lane.b32.xlu1 %v259_v23, %s13523_s20  ;;  %268 = vrot.lane.b32.xlu0 %v258_v24, %s13523_s20  ;;  %v926_v16 = vld [vmem:[#allocation13 + $0x1d0] sm:$0xff]  ;;  %v724_v17 = vld [vmem:[#allocation13 + $0x98] sm:$0xff]  ;;  %v925_v18 = vld [vmem:[#allocation13 + $0x1c8] sm:$0xff] }
  0xaa   :  { %765 = vmatprep.subr.mxu1 %v736_v58  ;;  %v723_v19 = vld [vmem:[#allocation13 + $0x90] sm:$0xff]  ;;  %v924_v20 = vld [vmem:[#allocation13 + $0x1c0] sm:$0xff]  ;;  %v722_v21 = vld [vmem:[#allocation13 + $0x88] sm:$0xff] }
  0xab   :  { %v923_v22 = vld [vmem:[#allocation13 + $0x1b8] sm:$0xff]  ;;  %v721_v23 = vld [vmem:[#allocation13 + $0x80] sm:$0xff]  ;;  %v922_v24 = vld [vmem:[#allocation13 + $0x1b0] sm:$0xff] }
  0xac   :  { %v720_v25 = vld [vmem:[#allocation13 + $0x78] sm:$0xff]  ;;  %v921_v26 = vld [vmem:[#allocation13 + $0x1a8] sm:$0xff]  ;;  %v938_v0 = vld [vmem:[#allocation13 + $0x230] sm:$0xff] }
 0x107   :  { %v239_v28 = vpop.permute.xlu1 %238  ;;  %v213_v29 = vpop.permute.xlu0 %212 }
 0x108   :  { %225 = vst.msk [vmem:[#allocation2 + $0x1] sm:$0xff] %vm224_vm3, %v213_v29  ;;  %v718_v29 = vld [vmem:[#allocation13 + $0x68] sm:$0xff] }
 0x109   :  { %251 = vst.msk [vmem:[#allocation2 + $0x1] sm:$0xff] %vm250_vm4, %v239_v28  ;;  %v920_v28 = vld [vmem:[#allocation13 + $0x1a0] sm:$0xff] }
 0x10b   :  { %v241_v30 = vpop.permute.xlu1 %240  ;;  %v215_v31 = vpop.permute.xlu0 %214 }
 0x10c   :  { %226 = vst.msk [vmem:[#allocation2 + $0x9] sm:$0xff] %vm224_vm3, %v215_v31  ;;  %v717_v31 = vld [vmem:[#allocation13 + $0x60] sm:$0xff] }
 0x10d   :  { %252 = vst.msk [vmem:[#allocation2 + $0x9] sm:$0xff] %vm250_vm4, %v241_v30  ;;  %v919_v30 = vld [vmem:[#allocation13 + $0x198] sm:$0xff] }
 0x10f   :  { %v267_v32 = vpop.permute.xlu1 %266  ;;  %v265_v33 = vpop.permute.xlu0 %264 }
 0x110   :  { %278 = vst.msk [vmem:[#allocation2 + $0x9] sm:$0xff] %vm276_vm5, %v267_v32  ;;  %277 = vst.msk [vmem:[#allocation2 + $0x1] sm:$0xff] %vm276_vm5, %v265_v33  ;;  %v918_v32 = vld [vmem:[#allocation13 + $0x190] sm:$0xff]  ;;  %v716_v33 = vld [vmem:[#allocation13 + $0x58] sm:$0xff] }
 0x113   :  { %v219_v34 = vpop.permute.xlu1 %218  ;;  %v217_v35 = vpop.permute.xlu0 %216 }
 0x114   :  { %228 = vst.msk [vmem:[#allocation2 + $0x21] sm:$0xff] %vm224_vm3, %v219_v34  ;;  %227 = vst.msk [vmem:[#allocation2 + $0x19] sm:$0xff] %vm224_vm3, %v217_v35  ;;  %v917_v34 = vld [vmem:[#allocation13 + $0x188] sm:$0xff]  ;;  %v715_v35 = vld [vmem:[#allocation13 + $0x50] sm:$0xff]  ;;  %vm1287_vm3 = vcmask 517504  }
 0x117   :  { %v245_v36 = vpop.permute.xlu1 %244  ;;  %v243_v37 = vpop.permute.xlu0 %242  ;;  %v281_v38 = vld [vmem:[#allocation2] sm:$0xff]  ;;  %v282_v40 = vld [vmem:[#allocation2 + $0x8] sm:$0xff] }
 0x118   :  { %v400_v39 = vld [vmem:[#allocation2 + $0x1] sm:$0xff]  ;;  %254 = vst.msk [vmem:[#allocation2 + $0x21] sm:$0xff] %vm250_vm4, %v245_v36  ;;  %253 = vst.msk [vmem:[#allocation2 + $0x19] sm:$0xff] %vm250_vm4, %v243_v37  ;;  %13134 = vmatprep.mubr.msk.f32.mxu0 %vm196_vm0, %v281_v38  ;;  %v401_v41 = vld [vmem:[#allocation2 + $0x9] sm:$0xff]  ;;  %vm1312_vm4 = vcmask 648704  }
 0x119   :  { %13154 = vmatprep.mubr.msk.f32.mxu1 %vm196_vm0, %v400_v39  ;;  %13135 = vmatmul.mubr.msk.f32.vlgmr.msra.gmra.mxu0 %vm196_vm0, %v282_v40  ;;  %v516_v54 = vld [vmem:[#allocation2 + $0x2] sm:$0xff]  ;;  %v517_v55 = vld [vmem:[#allocation2 + $0xa] sm:$0xff]  ;;  %v714_v37 = vld [vmem:[#allocation13 + $0x48] sm:$0xff] }
 0x11a   :  { %13155 = vmatmul.mubr.msk.f32.vlgmr.msra.gmra.mxu1 %vm196_vm0, %v401_v41  ;;  %13161 = vmatpush3.msk.msra.mxu0 %vm311_vm2, %v527_v27  ;;  %v719_v27 = vld [vmem:[#allocation13 + $0x70] sm:$0xff]  ;;  %v916_v36 = vld [vmem:[#allocation13 + $0x180] sm:$0xff]  ;;  %v915_v38 = vld [vmem:[#allocation13 + $0x178] sm:$0xff] }
 0x11b   :  { %v271_v44 = vpop.permute.xlu1 %270  ;;  %v269_v45 = vpop.permute.xlu0 %268  ;;  %13162 = vmatprep.subr.mxu0 %v526_v42  ;;  %766 = vmatpush1.msra.mxu1 %v735_v59  ;;  %v713_v39 = vld [vmem:[#allocation13 + $0x40] sm:$0xff]  ;;  %v914_v40 = vld [vmem:[#allocation13 + $0x170] sm:$0xff]  ;;  %v712_v41 = vld [vmem:[#allocation13 + $0x38] sm:$0xff] }
 0x11c   :  { %280 = vst.msk [vmem:[#allocation2 + $0x21] sm:$0xff] %vm276_vm5, %v271_v44  ;;  %279 = vst.msk [vmem:[#allocation2 + $0x19] sm:$0xff] %vm276_vm5, %v269_v45  ;;  %13163 = vmatpush3.msra.mxu0 %v526_v42  ;;  %767 = vmatprep.subr.mxu1 %v734_v60  ;;  %v913_v42 = vld [vmem:[#allocation13 + $0x168] sm:$0xff]  ;;  %v709_v45 = vld [vmem:[#allocation13 + $0x20] sm:$0xff]  ;;  %vm1345_vm5 = vcmask 779904  }
 0x11d   :  { %13164 = vmatprep.subr.mxu0 %v525_v43  ;;  %768 = vmatpush1.msra.mxu1 %v733_v61  ;;  %v710_v44 = vld [vmem:[#allocation13 + $0x28] sm:$0xff]  ;;  %v910_v60 = vld [vmem:[#allocation13 + $0x150] sm:$0xff]  ;;  %v705_v61 = vld [vmem:[#allocation13] sm:$0xff] }
 0x11e   :  { %13165 = vmatpush3.msra.mxu0 %v525_v43  ;;  %769 = vmatprep.subr.mxu1 %v732_v62  ;;  %v711_v43 = vld [vmem:[#allocation13 + $0x30] sm:$0xff]  ;;  %v909_v62 = vld [vmem:[#allocation13 + $0x148] sm:$0xff] }
 0x11f   :  { %13166 = vmatprep.subr.mxu0 %v524_v46  ;;  %770 = vmatpush1.msra.mxu1 %v731_v2 }
 0x120   :  { %13167 = vmatpush3.msra.mxu0 %v524_v46  ;;  %771 = vmatprep.subr.mxu1 %v730_v4  ;;  %v740_v4 = vld [vmem:[#allocation13 + $0x118] sm:$0xff] }
 0x121   :  { %13168 = vmatprep.subr.mxu0 %v523_v47  ;;  %772 = vmatpush1.msra.mxu1 %v729_v7 }
 0x122   :  { %13169 = vmatpush3.msra.mxu0 %v523_v47  ;;  %773 = vmatprep.subr.mxu1 %v728_v9  ;;  %v11986_v47 = vld [vmem:[#allocation12] ss:$0 sm:$0xff]  ;;  %v739_v9 = vld [vmem:[#allocation13 + $0x110] sm:$0xff] }
 0x123   :  { %v283_v49 = vld [vmem:[#allocation2 + $0x18] sm:$0xff]  ;;  %v284_v51 = vld [vmem:[#allocation2 + $0x20] sm:$0xff]  ;;  %13170 = vmatprep.subr.mxu0 %v522_v48  ;;  %774 = vmatpush1.msra.mxu1 %v727_v11 }
 0x124   :  { %v402_v50 = vld [vmem:[#allocation2 + $0x19] sm:$0xff]  ;;  %13137 = vmatprep.mubr.msk.f32.mxu0 %vm196_vm0, %v283_v49  ;;  %v403_v52 = vld [vmem:[#allocation2 + $0x21] sm:$0xff]  ;;  %13171 = vmatpush3.msra.mxu0 %v522_v48 }
 0x125   :  { %13157 = vmatprep.mubr.msk.f32.mxu1 %vm196_vm0, %v402_v50  ;;  %13138 = vmatmul.mubr.msk.f32.gmra.mxu0 %vm196_vm0, %v284_v51  ;;  %v518_v56 = vld [vmem:[#allocation2 + $0x1a] sm:$0xff]  ;;  %v519_v57 = vld [vmem:[#allocation2 + $0x22] sm:$0xff]  ;;  %v738_v11 = vld [vmem:[#allocation13 + $0x108] sm:$0xff] }
 0x126   :  { %13158 = vmatmul.mubr.msk.f32.gmra.mxu1 %vm196_vm0, %v403_v52  ;;  %13174 = vmatprep.mubr.msk.f32.mxu0 %vm196_vm0, %v516_v54  ;;  %v708_v52 = vld [vmem:[#allocation13 + $0x18] sm:$0xff] }
 0x127   :  { %13172 = vmatprep.subr.mxu0 %v521_v53  ;;  %775 = vmatprep.subr.mxu1 %v726_v13  ;;  %v906_v13 = vld [vmem:[#allocation13 + $0x130] sm:$0xff] }
 0x128   :  { %13173 = vmatpush3.msra.mxu0 %v521_v53  ;;  %776 = vmatpush1.msra.mxu1 %v725_v15  ;;  %v912_v53 = vld [vmem:[#allocation13 + $0x160] sm:$0xff]  ;;  %v905_v15 = vld [vmem:[#allocation13 + $0x128] sm:$0xff] }
 0x129   :  { %13175 = vmatmul.mubr.msk.f32.vlgmr.msra.gmra.mxu0 %vm196_vm0, %v517_v55  ;;  %948 = vmatprep.subr.mxu0 %v935_v63  ;;  %v707_v55 = vld [vmem:[#allocation13 + $0x10] sm:$0xff] }
 0x12a   :  { %13177 = vmatprep.mubr.msk.f32.mxu0 %vm196_vm0, %v518_v56  ;;  %949 = vmatpush1.msra.mxu0 %v934_v1  ;;  %v911_v56 = vld [vmem:[#allocation13 + $0x158] sm:$0xff] }
 0x12b   :  { %950 = vmatprep.subr.mxu0 %v933_v3  ;;  %777 = vmatprep.subr.mxu1 %v724_v17 }
 0x12c   :  { %951 = vmatpush1.msra.mxu0 %v932_v5  ;;  %778 = vmatpush1.msra.mxu1 %v723_v19  ;;  %v908_v5 = vld [vmem:[#allocation13 + $0x140] sm:$0xff] }
 0x12d   :  { %13178 = vmatmul.mubr.msk.f32.gmra.mxu0 %vm196_vm0, %v519_v57  ;;  %952 = vmatprep.subr.mxu0 %v931_v6  ;;  %v706_v57 = vld [vmem:[#allocation13 + $0x8] sm:$0xff]  ;;  %vm1277_vm0 = vcmask 255104  }
 0x12e   :  { %953 = vmatpush1.msra.mxu0 %v930_v8  ;;  %779 = vmatprep.subr.mxu1 %v722_v21  ;;  %v904_v21 = vld [vmem:[#allocation13 + $0x120] sm:$0xff] }
 0x12f   :  { %954 = vmatprep.subr.mxu0 %v929_v10  ;;  %780 = vmatpush1.msra.mxu1 %v721_v23  ;;  %v907_v10 = vld [vmem:[#allocation13 + $0x138] sm:$0xff] }
 0x130   :  { %955 = vmatpush1.msra.mxu0 %v928_v12  ;;  %781 = vmatprep.subr.mxu1 %v720_v25 }
 0x131   :  { %956 = vmatprep.subr.mxu0 %v927_v14  ;;  %782 = vmatpush1.msra.mxu1 %v719_v27  ;;  %v737_v14 = vld [vmem:[#allocation13 + $0x100] sm:$0xff] }
 0x132   :  { %957 = vmatpush1.msra.mxu0 %v926_v16  ;;  %783 = vmatprep.subr.mxu1 %v718_v29 }
 0x133   :  { %958 = vmatprep.subr.mxu0 %v925_v18  ;;  %784 = vmatpush1.msra.mxu1 %v717_v31 }
 0x134   :  { %959 = vmatpush1.msra.mxu0 %v924_v20  ;;  %785 = vmatprep.subr.mxu1 %v716_v33  ;;  %v936_v33 = vld [vmem:[#allocation13 + $0x220] sm:$0xff] }
 0x135   :  { %960 = vmatprep.subr.mxu0 %v923_v22  ;;  %786 = vmatpush1.msra.mxu1 %v715_v35  ;;  %v1117_v22 = vld [vmem:[#allocation13 + $0x338] sm:$0xff] }
 0x136   :  { %961 = vmatpush1.msra.mxu0 %v922_v24  ;;  %787 = vmatprep.subr.mxu1 %v714_v37 }
 0x137   :  { %962 = vmatprep.subr.mxu0 %v921_v26  ;;  %788 = vmatpush1.msra.mxu1 %v713_v39  ;;  %v939_v26 = vld [vmem:[#allocation13 + $0x238] sm:$0xff] }
 0x138   :  { %963 = vmatpush1.msra.mxu0 %v920_v28  ;;  %789 = vmatprep.subr.mxu1 %v712_v41 }
 0x139   :  { %964 = vmatprep.subr.mxu0 %v919_v30  ;;  %790 = vmatpush1.msra.mxu1 %v711_v43  ;;  %v1116_v43 = vld [vmem:[#allocation13 + $0x330] sm:$0xff] }
 0x13a   :  { %965 = vmatpush1.msra.mxu0 %v918_v32  ;;  %791 = vmatprep.subr.mxu1 %v710_v44  ;;  %v937_v32 = vld [vmem:[#allocation13 + $0x228] sm:$0xff] }
 0x13b   :  { %966 = vmatprep.subr.mxu0 %v917_v34  ;;  %792 = vmatpush1.msra.mxu1 %v709_v45  ;;  %v1115_v44 = vld [vmem:[#allocation13 + $0x328] sm:$0xff] }
 0x13c   :  { %967 = vmatpush1.msra.mxu0 %v916_v36  ;;  %793 = vmatprep.subr.mxu1 %v708_v52 }
 0x13d   :  { %968 = vmatprep.subr.mxu0 %v915_v38  ;;  %794 = vmatpush1.msra.mxu1 %v707_v55 }
 0x13e   :  { %969 = vmatpush1.msra.mxu0 %v914_v40  ;;  %795 = vmatprep.subr.mxu1 %v706_v57 }
 0x13f   :  { %970 = vmatprep.subr.mxu0 %v913_v42  ;;  %796 = vmatpush1.msra.mxu1 %v705_v61  ;;  %v1112_v61 = vld [vmem:[#allocation13 + $0x310] sm:$0xff] }
 0x140   :  { %971 = vmatpush1.msra.mxu0 %v912_v53  ;;  %825 = vmatprep.subr.mxu1 %v740_v4 }
 0x141   :  { %972 = vmatprep.subr.mxu0 %v911_v56  ;;  %826 = vmatpush2.msra.mxu1 %v739_v9 }
 0x142   :  { %973 = vmatpush1.msra.mxu0 %v910_v60  ;;  %827 = vmatprep.subr.mxu1 %v738_v11 }
 0x143   :  { %974 = vmatprep.subr.mxu0 %v909_v62  ;;  %828 = vmatpush2.msra.mxu1 %v737_v14  ;;  %v1111_v62 = vld [vmem:[#allocation13 + $0x308] sm:$0xff] }
 0x144   :  { %975 = vmatpush1.msra.mxu0 %v908_v5  ;;  %1130 = vmatprep.subr.mxu1 %v1117_v22  ;;  %v1107_v5 = vld [vmem:[#allocation13 + $0x2e8] sm:$0xff] }
 0x145   :  { %976 = vmatprep.subr.mxu0 %v907_v10 }
 0x146   :  { %977 = vmatpush1.msra.mxu0 %v906_v13 }
 0x147   :  { %978 = vmatprep.subr.mxu0 %v905_v15  ;;  %v1106_v15 = vld [vmem:[#allocation13 + $0x2e0] sm:$0xff] }
 0x148   :  { %979 = vmatpush1.msra.mxu0 %v904_v21  ;;  %v1105_v21 = vld [vmem:[#allocation13 + $0x2d8] sm:$0xff] }
 0x149   :  { %1008 = vmatprep.subr.mxu0 %v939_v26 }
 0x14a   :  { %1009 = vmatpush2.msra.mxu0 %v938_v0 }
 0x14b   :  { %1010 = vmatprep.subr.mxu0 %v937_v32  ;;  %v1101_v32 = vld [vmem:[#allocation13 + $0x2b8] sm:$0xff] }
 0x14c   :  { %1011 = vmatpush2.msra.mxu0 %v936_v33 }
 0x1d9   :  { %v13136_v46 = vpop.f32.mrf.mxu0 }
 0x1da   :  { %v13156_v48 = vpop.f32.mrf.mxu1  ;;  %v387_v50 = vadd.f32 %v13136_v46, %v11986_v47 }
 0x1db   :  { %v381_v49 = vpop.f32.mrf.mxu0 }
 0x1dc   :  { %v382_v54 = vadd.f32 %v11986_v47, %v381_v49  ;;  %v493_v58 = vpop.f32.mrf.mxu1  ;;  %v513_v63 = vadd.f32 %v13156_v48, %v387_v50 }
 0x1de   :  { %v512_v6 = vadd.f32 %v493_v58, %v382_v54  ;;  %v1114_v54 = vld [vmem:[#allocation13 + $0x320] sm:$0xff]  ;;  %v1113_v58 = vld [vmem:[#allocation13 + $0x318] sm:$0xff] }
 0x1e5   :  { %v13139_v51 = vpop.f32.mrf.mxu0 }
 0x1e6   :  { %v397_v1 = vadd.f32 %v13139_v51, %v11986_v47  ;;  %v13159_v2 = vpop.f32.mrf.mxu1 }
 0x1e7   :  { %v391_v59 = vpop.f32.mrf.mxu0 }
 0x1e8   :  { %v392_v7 = vadd.f32 %v11986_v47, %v391_v59  ;;  %v515_v16 = vadd.f32 %v13159_v2, %v397_v1  ;;  %v503_v19 = vpop.f32.mrf.mxu1  ;;  %v1109_v1 = vld [vmem:[#allocation13 + $0x2f8] sm:$0xff]  ;;  %v1108_v2 = vld [vmem:[#allocation13 + $0x2f0] sm:$0xff] }
 0x1e9   :  { %v13176_v3 = vpop.f32.mrf.mxu0 }
 0x1ea   :  { %v629_v8 = vadd.f32 %v13176_v3, %v513_v63  ;;  %v514_v23 = vadd.f32 %v503_v19, %v392_v7  ;;  %v1110_v63 = vld [vmem:[#allocation13 + $0x300] sm:$0xff] }
 0x1eb   :  { %v609_v12 = vpop.f32.mrf.mxu0 }
 0x1ec   :  { %v633_v17 = vmax.f32 %v629_v8, 0.0  ;;  %v628_v18 = vadd.f32 %v609_v12, %v512_v6 }
 0x1ed   :  { %v13179_v20 = vpop.f32.mrf.mxu0 }
 0x1ee   :  { %v632_v24 = vmax.f32 %v628_v18, 0.0  ;;  %v631_v25 = vadd.f32 %v13179_v20, %v515_v16  ;;  %v656_v28 = vrot.slane %v633_v17, 7 }
 0x1ef   :  { %v619_v27 = vpop.f32.mrf.mxu0 }
 0x1f0   :  { %v635_v29 = vmax.f32 %v631_v25, 0.0  ;;  %v630_v30 = vadd.f32 %v619_v27, %v514_v23  ;;  %v655_v31 = vrot.slane %v632_v24, 7  ;;  %v1104_v24 = vld [vmem:[#allocation13 + $0x2d0] sm:$0xff]  ;;  %v1103_v27 = vld [vmem:[#allocation13 + $0x2c8] sm:$0xff] }
 0x1f2   :  { %v634_v34 = vmax.f32 %v630_v30, 0.0  ;;  %661 = vrot.lane.b32.xlu0 %v655_v31, %s13505_s14  ;;  %v657_v35 = vsel %vm654_vm8, %v655_v31, %v656_v28  ;;  %v659_v36 = vrot.slane %v635_v29, 7  ;;  %v1102_v30 = vld [vmem:[#allocation13 + $0x2c0] sm:$0xff] }
 0x1f3   :  { %663 = vrot.lane.b32.xlu1 %v657_v35, %s13505_s14 }
 0x1f4   :  { %v658_v37 = vrot.slane %v634_v34, 7  ;;  %v1100_v34 = vld [vmem:[#allocation13 + $0x2b0] sm:$0xff] }
 0x1f6   :  { %667 = vrot.lane.b32.xlu0 %v658_v37, %s13505_s14  ;;  %v660_v38 = vsel %vm654_vm8, %v658_v37, %v659_v36  ;;  %v1099_v37 = vld [vmem:[#allocation13 + $0x2a8] sm:$0xff]  ;;  %vm1411_vm8 = vcmask 1042304  }
 0x1f7   :  { %669 = vrot.lane.b32.xlu1 %v660_v38, %s13505_s14  ;;  %v1098_v38 = vld [vmem:[#allocation13 + $0x2a0] sm:$0xff] }
 0x1fa   :  { %665 = vrot.lane.b32.xlu0 %v656_v28, %s13505_s14 }
 0x1fb   :  { %671 = vrot.lane.b32.xlu1 %v659_v36, %s13505_s14 }
 0x264   :  { %v662_v39 = vpop.permute.xlu0 %661 }
 0x265   :  { %680 = vst.msk [vmem:[#allocation3] sm:$0xfe] %vm679_vm9, %v662_v39  ;;  %v664_v40 = vpop.permute.xlu1 %663 }
 0x266   :  { %682 = vst.msk [vmem:[#allocation3 + $0x8] sm:$0xfe] %vm681_vm10, %v662_v39  ;;  %v1097_v39 = vld [vmem:[#allocation13 + $0x298] sm:$0xff] }
 0x267   :  { %684 = vst.msk [vmem:[#allocation3 + $0x10] sm:$0xff] %vm683_vm11, %v664_v40 }
 0x268   :  { %686 = vst.msk [vmem:[#allocation3 + $0x18] sm:$0xff] %vm685_vm12, %v664_v40  ;;  %v668_v41 = vpop.permute.xlu0 %667 }
 0x269   :  { %691 = vst.msk [vmem:[#allocation3 + $0x30] sm:$0xfe] %vm679_vm9, %v668_v41  ;;  %v670_v42 = vpop.permute.xlu1 %669 }
 0x26a   :  { %692 = vst.msk [vmem:[#allocation3 + $0x38] sm:$0xfe] %vm681_vm10, %v668_v41  ;;  %v1096_v41 = vld [vmem:[#allocation13 + $0x290] sm:$0xff] }
 0x26b   :  { %693 = vst.msk [vmem:[#allocation3 + $0x40] sm:$0xff] %vm683_vm11, %v670_v42 }
 0x26c   :  { %694 = vst.msk [vmem:[#allocation3 + $0x48] sm:$0xff] %vm685_vm12, %v670_v42  ;;  %v666_v45 = vpop.permute.xlu0 %665  ;;  %v697_v47 = vld [vmem:[#allocation3] sm:$0xff] }
 0x26d   :  { %v698_v46 = vld [vmem:[#allocation3 + $0x8] sm:$0xff]  ;;  %688 = vst.msk [vmem:[#allocation3 + $0x20] sm:$0x1] %vm687_vm13, %v666_v45  ;;  %v672_v49 = vpop.permute.xlu1 %671  ;;  %v854_v53 = vld [vmem:[#allocation3] sm:$0xfe] }
 0x26e   :  { %v855_v48 = vld [vmem:[#allocation3 + $0x8] sm:$0xfe]  ;;  %690 = vst.msk [vmem:[#allocation3 + $0x28] sm:$0x1] %vm689_vm14, %v666_v45  ;;  %12002 = vmatprep.mubr.msk.f32.mxu1 %vm637_vm6, %v698_v46  ;;  %v13754_v52 = vld [vmem:[#allocation3 + $0x10] sm:$0xff]  ;;  %v879_v56 = vrot.slane %v854_v53, 1 }
 0x26f   :  { %v13752_v50 = vld [vmem:[#allocation3 + $0x18] sm:$0xff]  ;;  %v882_v51 = vrot.slane %v855_v48, 1  ;;  %695 = vst.msk [vmem:[#allocation3 + $0x50] sm:$0x1] %vm687_vm13, %v672_v49  ;;  %830 = vmatmul.mubr.f32.vlgmr.msra.gmra.mxu1 %v697_v47  ;;  %v880_v57 = vrot.slane %v13754_v52, 1  ;;  %v1095_v42 = vld [vmem:[#allocation13 + $0x288] sm:$0xff] }
 0x270   :  { %696 = vst.msk [vmem:[#allocation3 + $0x58] sm:$0x1] %vm689_vm14, %v672_v49  ;;  %v883_v55 = vrot.slane %v13752_v50, 1  ;;  %1131 = vmatpush1.msra.mxu1 %v1116_v43  ;;  %12003 = vmatprep.mubr.msk.f32.mxu1 %vm637_vm6, %v13752_v50  ;;  %v1046_v9 = vld [vmem:[#allocation3 + $0x8] sm:$0xfc]  ;;  %v701_v10 = vld [vmem:[#allocation3 + $0x30] sm:$0xff] }
 0x271   :  { %1132 = vmatprep.subr.mxu1 %v1115_v44  ;;  %v881_v60 = vsel %vm878_vm15, %v879_v56, %v880_v57  ;;  %v702_v3 = vld [vmem:[#allocation3 + $0x38] sm:$0xff]  ;;  %v860_v14 = vld [vmem:[#allocation3 + $0x30] sm:$0xfe]  ;;  %v1064_v22 = vrot.slane %v1046_v9, 2  ;;  %v1065_v23 = vrot.slane %v13752_v50, 2  ;;  %v1091_v46 = vld [vmem:[#allocation13 + $0x268] sm:$0xff] }
 0x272   :  { %v884_v59 = vsel %vm878_vm15, %v882_v51, %v883_v55  ;;  %1133 = vmatpush1.msra.mxu1 %v1114_v54  ;;  %v861_v6 = vld [vmem:[#allocation3 + $0x38] sm:$0xfe]  ;;  %v13769_v13 = vld [vmem:[#allocation3 + $0x40] sm:$0xff]  ;;  %v889_v25 = vrot.slane %v860_v14, 1  ;;  %v1092_v45 = vld [vmem:[#allocation13 + $0x270] sm:$0xff] }
 0x273   :  { %12006 = vmatprep.mubr.msk.f32.mxu0 %vm637_vm6, %v884_v59  ;;  %1134 = vmatprep.subr.mxu1 %v1113_v58  ;;  %v13766_v4 = vld [vmem:[#allocation3 + $0x48] sm:$0xff]  ;;  %v892_v16 = vrot.slane %v861_v6, 1  ;;  %v890_v26 = vrot.slane %v13769_v13, 1  ;;  %v1066_v31 = vsel %vm311_vm2, %v1064_v22, %v1065_v23  ;;  %v1094_v43 = vld [vmem:[#allocation13 + $0x280] sm:$0xff]  ;;  %v1093_v44 = vld [vmem:[#allocation13 + $0x278] sm:$0xff] }
 0x274   :  { %836 = vmatmul.mubr.f32.gmra.mxu1 %v13754_v52  ;;  %1013 = vmatmul.mubr.f32.vlgmr.msra.gmra.mxu0 %v881_v60  ;;  %v858_v8 = vld [vmem:[#allocation3 + $0x20] sm:$0x1]  ;;  %v893_v17 = vrot.slane %v13766_v4, 1  ;;  %v1089_v48 = vld [vmem:[#allocation13 + $0x258] sm:$0xff]  ;;  %v1088_v49 = vld [vmem:[#allocation13 + $0x250] sm:$0xff]  ;;  %v1062_v60 = vrot.slane %v13754_v52, 2 }
 0x275   :  { %1135 = vmatpush1.msra.mxu1 %v1112_v61  ;;  %12004 = vmatprep.mubr.msk.f32.mxu1 %vm637_vm6, %v702_v3  ;;  %v859_v7 = vld [vmem:[#allocation3 + $0x28] sm:$0x1]  ;;  %v885_v12 = vrot.slane %v858_v8, 1  ;;  %v891_v33 = vsel %vm878_vm15, %v889_v25, %v890_v26  ;;  %v1090_v47 = vld [vmem:[#allocation13 + $0x260] sm:$0xff]  ;;  %v1045_v54 = vld [vmem:[#allocation3] sm:$0xfc] }
 0x276   :  { %1136 = vmatprep.subr.mxu1 %v1111_v62  ;;  %v887_v11 = vrot.slane %v859_v7, 1  ;;  %v864_v28 = vld [vmem:[#allocation3 + $0x50] sm:$0x1]  ;;  %v894_v29 = vsel %vm878_vm15, %v892_v16, %v893_v17  ;;  %v1087_v51 = vld [vmem:[#allocation13 + $0x248] sm:$0xff]  ;;  %v1086_v53 = vld [vmem:[#allocation13 + $0x240] sm:$0xff]  ;;  %v1061_v59 = vrot.slane %v1045_v54, 2 }
 0x277   :  { %1137 = vmatpush1.msra.mxu1 %v1110_v63  ;;  %v865_v18 = vld [vmem:[#allocation3 + $0x58] sm:$0x1]  ;;  %v886_v20 = vsel %vm878_vm15, %v880_v57, %v885_v12  ;;  %v895_v35 = vrot.slane %v864_v28, 1  ;;  %v1048_v56 = vld [vmem:[#allocation3 + $0x28] sm:$0x3]  ;;  %v1120_v57 = vld [vmem:[#allocation13 + $0x350] sm:$0xff] }
 0x278   :  { %1138 = vmatprep.subr.mxu1 %v1109_v1  ;;  %842 = vmatmul.mubr.f32.gmra.mxu1 %v701_v10  ;;  %v888_v19 = vsel %vm878_vm15, %v883_v55, %v887_v11  ;;  %v897_v0 = vrot.slane %v865_v18, 1  ;;  %v1121_v55 = vld [vmem:[#allocation13 + $0x358] sm:$0xff]  ;;  %v1119_v58 = vld [vmem:[#allocation13 + $0x348] sm:$0xff]  ;;  %v1118_v61 = vld [vmem:[#allocation13 + $0x340] sm:$0xff]  ;;  %v1069_v62 = vrot.slane %v1048_v56, 2  ;;  %v1075_v7 = vrot.slane %v13766_v4, 2 }
 0x279   :  { %1139 = vmatpush1.msra.mxu1 %v1108_v2  ;;  %12005 = vmatprep.mubr.msk.f32.mxu1 %vm637_vm6, %v13766_v4  ;;  %v896_v40 = vsel %vm878_vm15, %v890_v26, %v895_v35  ;;  %v1047_v63 = vld [vmem:[#allocation3 + $0x20] sm:$0x3]  ;;  %v1050_v1 = vld [vmem:[#allocation3 + $0x38] sm:$0xfc]  ;;  %v1063_v2 = vsel %vm311_vm2, %v1061_v59, %v1062_v60  ;;  %v1049_v52 = vld [vmem:[#allocation3 + $0x30] sm:$0xfc] }
 0x27a   :  { %1140 = vmatprep.subr.mxu1 %v1107_v5  ;;  %12007 = vmatprep.mubr.msk.f32.mxu0 %vm637_vm6, %v888_v19  ;;  %v898_v36 = vsel %vm878_vm15, %v893_v17, %v897_v0  ;;  %v1067_v3 = vrot.slane %v1047_v63, 2  ;;  %v1070_v5 = vsel %vm311_vm2, %v1065_v23, %v1069_v62  ;;  %v1074_v6 = vrot.slane %v1050_v1, 2  ;;  %v1052_v8 = vld [vmem:[#allocation3 + $0x58] sm:$0x3]  ;;  %v741_v26 = vld [vmem:[#allocation15] sm:$0x3] }
 0x27b   :  { %1141 = vmatpush1.msra.mxu1 %v1106_v15  ;;  %1019 = vmatmul.mubr.f32.gmra.mxu0 %v886_v20  ;;  %v1071_v10 = vrot.slane %v1049_v52, 2  ;;  %v1072_v11 = vrot.slane %v13769_v13, 2  ;;  %v1079_v14 = vrot.slane %v1052_v8, 2  ;;  %v1051_v15 = vld [vmem:[#allocation3 + $0x50] sm:$0x3]  ;;  %v743_v20 = vlaneseq }
 0x27c   :  { %1142 = vmatprep.subr.mxu1 %v1105_v21  ;;  %848 = vmatmul.mubr.f32.gmra.mxu1 %v13769_v13  ;;  %v1068_v9 = vsel %vm311_vm2, %v1062_v60, %v1067_v3  ;;  %v1076_v12 = vsel %vm311_vm2, %v1074_v6, %v1075_v7  ;;  %v1077_v16 = vrot.slane %v1051_v15, 2 }
 0x27d   :  { %12008 = vmatprep.mubr.msk.f32.mxu0 %vm637_vm6, %v894_v29  ;;  %1143 = vmatpush1.msra.mxu1 %v1104_v24  ;;  %v1073_v50 = vsel %vm311_vm2, %v1071_v10, %v1072_v11  ;;  %v1080_v4 = vsel %vm311_vm2, %v1075_v7, %v1079_v14  ;;  %v13805_v22 = vshrl.u32 %v743_v20, 7 }
 0x27e   :  { %1144 = vmatprep.subr.mxu1 %v1103_v27  ;;  %12010 = vmatprep.mubr.msk.f32.mxu1 %vm637_vm6, %v1066_v31  ;;  %v1078_v17 = vsel %vm311_vm2, %v1072_v11, %v1077_v16 }
 0x27f   :  { %1145 = vmatpush1.msra.mxu1 %v1102_v30  ;;  %1025 = vmatmul.mubr.f32.gmra.mxu0 %v891_v33  ;;  %15799 = vst [vmem:[#allocation36_spill] sm:$0xff] %v13805_v22  ;;  %v13808_v25 = vsub.s32 0, %v13805_v22  ;;  %v13811_v0 = vsub.s32 1, %v13805_v22 }
 0x280   :  { %1146 = vmatprep.subr.mxu1 %v1101_v32  ;;  %12009 = vmatprep.mubr.msk.f32.mxu0 %vm637_vm6, %v898_v36 }
 0x281   :  { %1147 = vmatpush1.msra.mxu1 %v1100_v34  ;;  %15800 = vst [vmem:[#allocation37_spill] sm:$0xff] %v13808_v25  ;;  %15801 = vst [vmem:[#allocation38_spill] sm:$0xff] %v13811_v0  ;;  %v746_v29 = vrot.slane %v741_v26, %v13808_v25  ;;  %v750_v32 = vrot.slane %v741_v26, %v13811_v0 }
 0x282   :  { %1148 = vmatprep.subr.mxu1 %v1099_v37 }
 0x283   :  { %1149 = vmatpush1.msra.mxu1 %v1098_v38  ;;  %1031 = vmatmul.mubr.f32.gmra.mxu0 %v896_v40 }
 0x284   :  { %1150 = vmatprep.subr.mxu1 %v1097_v39 }
 0x285   :  { %1151 = vmatpush1.msra.mxu1 %v1096_v41 }
 0x286   :  { %1152 = vmatprep.subr.mxu1 %v1095_v42 }
 0x287   :  { %1153 = vmatpush1.msra.mxu1 %v1094_v43 }
 0x288   :  { %1154 = vmatprep.subr.mxu1 %v1093_v44 }
 0x289   :  { %1155 = vmatpush1.msra.mxu1 %v1092_v45 }
 0x28a   :  { %1156 = vmatprep.subr.mxu1 %v1091_v46 }
 0x28b   :  { %1157 = vmatpush1.msra.mxu1 %v1090_v47 }
 0x28c   :  { %1158 = vmatprep.subr.mxu1 %v1089_v48 }
 0x28d   :  { %1159 = vmatpush1.msra.mxu1 %v1088_v49 }
 0x28e   :  { %1160 = vmatprep.subr.mxu1 %v1087_v51 }
 0x28f   :  { %1161 = vmatpush1.msra.mxu1 %v1086_v53 }
 0x290   :  { %1190 = vmatprep.subr.mxu1 %v1121_v55 }
 0x291   :  { %1191 = vmatpush2.msra.mxu1 %v1120_v57 }
 0x292   :  { %1192 = vmatprep.subr.mxu1 %v1119_v58 }
 0x293   :  { %1193 = vmatpush2.msra.mxu1 %v1118_v61 }
 0x294   :  { %1195 = vmatmul.mubr.f32.vlgmr.msra.gmra.mxu1 %v1063_v2 }
 0x295   :  { %12011 = vmatprep.mubr.msk.f32.mxu1 %vm637_vm6, %v1070_v5 }
 0x298   :  { %1201 = vmatmul.mubr.f32.gmra.mxu1 %v1068_v9 }
 0x299   :  { %12012 = vmatprep.mubr.msk.f32.mxu1 %vm637_vm6, %v1076_v12 }
 0x29c   :  { %1207 = vmatmul.mubr.f32.gmra.mxu1 %v1073_v50 }
 0x29d   :  { %12013 = vmatprep.mubr.msk.f32.mxu1 %vm637_vm6, %v1080_v4 }
 0x2a0   :  { %1213 = vmatmul.mubr.f32.gmra.mxu1 %v1078_v17 }
 0x32f   :  { %v831_v18 = vpop.f32.mrf.mxu1 }
 0x330   :  { %v832_v33 = vadd.f32 %v831_v18, %v746_v29 }
 0x331   :  { %v833_v13 = vpop.f32.mrf.mxu1 }
 0x332   :  { %v834_v36 = vadd.f32 %v833_v13, %v750_v32 }
 0x334   :  { %v837_v19 = vpop.f32.mrf.mxu1  ;;  %v1014_v24 = vpop.f32.mrf.mxu0 }
 0x335   :  { %v1037_v37 = vadd.f32 %v1014_v24, %v832_v33  ;;  %v838_v39 = vadd.f32 %v837_v19, %v746_v29 }
 0x336   :  { %v839_v21 = vpop.f32.mrf.mxu1  ;;  %v1016_v28 = vpop.f32.mrf.mxu0 }
 0x337   :  { %v1038_v40 = vadd.f32 %v1016_v28, %v834_v36  ;;  %v840_v44 = vadd.f32 %v839_v21, %v750_v32 }
 0x338   :  { %v843_v23 = vpop.f32.mrf.mxu1 }
 0x339   :  { %v844_v49 = vadd.f32 %v843_v23, %v746_v29 }
 0x33a   :  { %v845_v27 = vpop.f32.mrf.mxu1 }
 0x33b   :  { %v1020_v30 = vpop.f32.mrf.mxu0  ;;  %v846_v57 = vadd.f32 %v845_v27, %v750_v32 }
 0x33c   :  { %v849_v31 = vpop.f32.mrf.mxu1  ;;  %v1039_v45 = vadd.f32 %v1020_v30, %v838_v39 }
 0x33d   :  { %v1022_v34 = vpop.f32.mrf.mxu0  ;;  %v850_v15 = vadd.f32 %v849_v31, %v746_v29 }
 0x33e   :  { %v851_v35 = vpop.f32.mrf.mxu1  ;;  %v1040_v51 = vadd.f32 %v1022_v34, %v840_v44 }
 0x33f   :  { %v1026_v42 = vpop.f32.mrf.mxu0  ;;  %v852_v50 = vadd.f32 %v851_v35, %v750_v32 }
 0x340   :  { %v1041_v58 = vadd.f32 %v1026_v42, %v844_v49 }
 0x341   :  { %v1028_v55 = vpop.f32.mrf.mxu0 }
 0x342   :  { %v1042_v62 = vadd.f32 %v1028_v55, %v846_v57  ;;  %v13529_v55 = vmov 1935823168  }
 0x343   :  { %v1032_v6 = vpop.f32.mrf.mxu0 }
 0x344   :  { %v1043_v17 = vadd.f32 %v1032_v6, %v850_v15 }
 0x345   :  { %v1034_v14 = vpop.f32.mrf.mxu0 }
 0x346   :  { %v1044_v18 = vadd.f32 %v1034_v14, %v852_v50 }
 0x354   :  { %v1196_v38 = vpop.f32.mrf.mxu1 }
 0x355   :  { %v1219_v41 = vadd.f32 %v1196_v38, %v1037_v37 }
 0x356   :  { %v1198_v43 = vpop.f32.mrf.mxu1 }
 0x357   :  { %v1227_v46 = vmax.f32 %v1219_v41, 0.0  ;;  %v1220_v47 = vadd.f32 %v1198_v43, %v1038_v40 }
 0x358   :  { %v1202_v48 = vpop.f32.mrf.mxu1 }
 0x359   :  { %1235 = vst [vmem:[#allocation4] sm:$0xff] %v1227_v46  ;;  %v1228_v53 = vmax.f32 %v1220_v47, 0.0  ;;  %v1221_v54 = vadd.f32 %v1202_v48, %v1039_v45 }
 0x35a   :  { %v1204_v56 = vpop.f32.mrf.mxu1 }
 0x35b   :  { %1236 = vst [vmem:[#allocation4 + $0x8] sm:$0xff] %v1228_v53  ;;  %v1229_v59 = vmax.f32 %v1221_v54, 0.0  ;;  %v1222_v60 = vadd.f32 %v1204_v56, %v1040_v51  ;;  %v1266_v56 = vunpack.c.l.s4 %v13529_v55 }
 0x35c   :  { %v1208_v61 = vpop.f32.mrf.mxu1 }
 0x35d   :  { %1237 = vst [vmem:[#allocation4 + $0x10] sm:$0xff] %v1229_v59  ;;  %v1230_v63 = vmax.f32 %v1222_v60, 0.0  ;;  %v1223_v1 = vadd.f32 %v1208_v61, %v1041_v58 }
 0x35e   :  { %v1210_v2 = vpop.f32.mrf.mxu1 }
 0x35f   :  { %1238 = vst [vmem:[#allocation4 + $0x18] sm:$0xff] %v1230_v63  ;;  %v1231_v3 = vmax.f32 %v1223_v1, 0.0  ;;  %v1224_v5 = vadd.f32 %v1210_v2, %v1042_v62  ;;  %v1267_v1 = vunpack.c.0.s8 %v1266_v56 }
 0x360   :  { %v1214_v10 = vpop.f32.mrf.mxu1 }
 0x361   :  { %1239 = vst [vmem:[#allocation4 + $0x20] sm:$0xff] %v1231_v3  ;;  %v1232_v7 = vmax.f32 %v1224_v5, 0.0  ;;  %v1225_v23 = vadd.f32 %v1214_v10, %v1043_v17 }
 0x362   :  { %v1243_v52 = vld [vmem:[#allocation4] ss:$8 sm:$0x3]  ;;  %v1247_v8 = vld [vmem:[#allocation4 + $0x1] ss:$8 sm:$0x3]  ;;  %v1216_v4 = vpop.f32.mrf.mxu1 }
 0x363   :  { %v13815_v9 = vmax.f32 %v1243_v52, %v1247_v8  ;;  %1240 = vst [vmem:[#allocation4 + $0x28] sm:$0xff] %v1232_v7  ;;  %v1414_v11 = vld [vmem:[#allocation4 + $0x2] ss:$8 sm:$0x3]  ;;  %v1226_v24 = vadd.f32 %v1216_v4, %v1044_v18  ;;  %v1233_v32 = vmax.f32 %v1225_v23, 0.0 }
 0x364   :  { %v1418_v12 = vld [vmem:[#allocation4 + $0x3] ss:$8 sm:$0x3]  ;;  %v1578_v13 = vld [vmem:[#allocation4 + $0x4] ss:$8 sm:$0x3] }
 0x365   :  { %1254 = vrot.lane.b32.xlu0 %v13815_v9, %s13524_s21  ;;  %v13819_v16 = vmax.f32 %v1414_v11, %v1418_v12  ;;  %v1582_v19 = vld [vmem:[#allocation4 + $0x5] ss:$8 sm:$0x3]  ;;  %v1742_v27 = vld [vmem:[#allocation4 + $0x6] ss:$8 sm:$0x3]  ;;  %v13980_v11 = vsub.s32 %v1267_v1, %v13805_v22 }
 0x366   :  { %v13823_v26 = vmax.f32 %v1578_v13, %v1582_v19  ;;  %v1746_v28 = vld [vmem:[#allocation4 + $0x7] ss:$8 sm:$0x3]  ;;  %v1234_v33 = vmax.f32 %v1226_v24, 0.0  ;;  %1241 = vst [vmem:[#allocation4 + $0x30] sm:$0xff] %v1233_v32 }
 0x367   :  { %v13831_v34 = vmax.f32 %v1742_v27, %v1746_v28  ;;  %v1906_v42 = vld [vmem:[#allocation4 + $0x10] ss:$8 sm:$0x3]  ;;  %v1910_v43 = vld [vmem:[#allocation4 + $0x11] ss:$8 sm:$0x3] }
 0x368   :  { %1242 = vst [vmem:[#allocation4 + $0x38] sm:$0xff] %v1234_v33  ;;  %v13939_v44 = vmax.f32 %v1906_v42, %v1910_v43  ;;  %v2070_v45 = vld [vmem:[#allocation4 + $0x12] ss:$8 sm:$0x3] }
 0x369   :  { %1425 = vrot.lane.b32.xlu0 %v13819_v16, %s13524_s21  ;;  %v2074_v46 = vld [vmem:[#allocation4 + $0x13] ss:$8 sm:$0x3]  ;;  %v2234_v48 = vld [vmem:[#allocation4 + $0x14] ss:$8 sm:$0x3] }
 0x36a   :  { %v1245_v20 = vld [vmem:[#allocation4 + $0x20] ss:$8 sm:$0x3]  ;;  %v1249_v21 = vld [vmem:[#allocation4 + $0x21] ss:$8 sm:$0x3]  ;;  %v13945_v47 = vmax.f32 %v2070_v45, %v2074_v46 }
 0x36b   :  { %v13825_v29 = vmax.f32 %v1245_v20, %v1249_v21  ;;  %v1416_v30 = vld [vmem:[#allocation4 + $0x22] ss:$8 sm:$0x3]  ;;  %v1420_v31 = vld [vmem:[#allocation4 + $0x23] ss:$8 sm:$0x3] }
 0x36c   :  { %v13833_v35 = vmax.f32 %v1416_v30, %v1420_v31  ;;  %v1580_v36 = vld [vmem:[#allocation4 + $0x24] ss:$8 sm:$0x3]  ;;  %v1584_v37 = vld [vmem:[#allocation4 + $0x25] ss:$8 sm:$0x3] }
 0x36d   :  { %1589 = vrot.lane.b32.xlu0 %v13823_v26, %s13524_s21  ;;  %1256 = vrot.lane.b32.xlu1 %v13825_v29, %s13524_s21  ;;  %v13839_v38 = vmax.f32 %v1580_v36, %v1584_v37  ;;  %v1744_v39 = vld [vmem:[#allocation4 + $0x26] ss:$8 sm:$0x3]  ;;  %v1748_v40 = vld [vmem:[#allocation4 + $0x27] ss:$8 sm:$0x3] }
 0x36e   :  { %v13845_v41 = vmax.f32 %v1744_v39, %v1748_v40  ;;  %v2238_v49 = vld [vmem:[#allocation4 + $0x15] ss:$8 sm:$0x3]  ;;  %v2398_v58 = vld [vmem:[#allocation4 + $0x16] ss:$8 sm:$0x3] }
 0x36f   :  { %v1908_v53 = vld [vmem:[#allocation4 + $0x30] ss:$8 sm:$0x3]  ;;  %v1912_v54 = vld [vmem:[#allocation4 + $0x31] ss:$8 sm:$0x3]  ;;  %v13953_v57 = vmax.f32 %v2234_v48, %v2238_v49 }
 0x370   :  { %v2402_v59 = vld [vmem:[#allocation4 + $0x17] ss:$8 sm:$0x3]  ;;  %v13955_v60 = vmax.f32 %v1908_v53, %v1912_v54  ;;  %v2072_v62 = vld [vmem:[#allocation4 + $0x32] ss:$8 sm:$0x3] }
 0x371   :  { %1753 = vrot.lane.b32.xlu0 %v13831_v34, %s13524_s21  ;;  %1427 = vrot.lane.b32.xlu1 %v13833_v35, %s13524_s21  ;;  %v2076_v63 = vld [vmem:[#allocation4 + $0x33] ss:$8 sm:$0x3]  ;;  %v13963_v2 = vmax.f32 %v2398_v58, %v2402_v59  ;;  %v2236_v7 = vld [vmem:[#allocation4 + $0x34] ss:$8 sm:$0x3] }
 0x372   :  { %v13965_v3 = vmax.f32 %v2072_v62, %v2076_v63  ;;  %v2240_v52 = vld [vmem:[#allocation4 + $0x35] ss:$8 sm:$0x3]  ;;  %v2400_v4 = vld [vmem:[#allocation4 + $0x36] ss:$8 sm:$0x3] }
 0x373   :  { %v13982_v14 = vmax.f32 %v2236_v7, %v2240_v52  ;;  %v2404_v17 = vld [vmem:[#allocation4 + $0x37] ss:$8 sm:$0x3] }
 0x374   :  { %v13999_v21 = vmax.f32 %v2400_v4, %v2404_v17 }
 0x375   :  { %1314 = vrot.lane.b32.xlu0 %v13815_v9, %s13525_s0  ;;  %1591 = vrot.lane.b32.xlu1 %v13839_v38, %s13524_s21 }
 0x379   :  { %1322 = vrot.lane.b32.xlu0 %v13815_v9, %s13526_s5  ;;  %1755 = vrot.lane.b32.xlu1 %v13845_v41, %s13524_s21 }
 0x37d   :  { %1481 = vrot.lane.b32.xlu0 %v13819_v16, %s13525_s0  ;;  %1316 = vrot.lane.b32.xlu1 %v13825_v29, %s13525_s0 }
 0x381   :  { %1489 = vrot.lane.b32.xlu0 %v13819_v16, %s13526_s5  ;;  %1324 = vrot.lane.b32.xlu1 %v13825_v29, %s13526_s5 }
 0x385   :  { %1645 = vrot.lane.b32.xlu0 %v13823_v26, %s13525_s0  ;;  %1483 = vrot.lane.b32.xlu1 %v13833_v35, %s13525_s0 }
 0x389   :  { %1653 = vrot.lane.b32.xlu0 %v13823_v26, %s13526_s5  ;;  %1491 = vrot.lane.b32.xlu1 %v13833_v35, %s13526_s5 }
 0x38d   :  { %1809 = vrot.lane.b32.xlu0 %v13831_v34, %s13525_s0  ;;  %1647 = vrot.lane.b32.xlu1 %v13839_v38, %s13525_s0 }
 0x391   :  { %1817 = vrot.lane.b32.xlu0 %v13831_v34, %s13526_s5  ;;  %1655 = vrot.lane.b32.xlu1 %v13839_v38, %s13526_s5 }
 0x395   :  { %1347 = vrot.lane.b32.xlu0 %v13815_v9, %s13527_s22  ;;  %1811 = vrot.lane.b32.xlu1 %v13845_v41, %s13525_s0 }
 0x399   :  { %1355 = vrot.lane.b32.xlu0 %v13815_v9, %s13528_s2  ;;  %1819 = vrot.lane.b32.xlu1 %v13845_v41, %s13526_s5 }
 0x39d   :  { %1513 = vrot.lane.b32.xlu0 %v13819_v16, %s13527_s22  ;;  %1349 = vrot.lane.b32.xlu1 %v13825_v29, %s13527_s22 }
 0x3a1   :  { %1521 = vrot.lane.b32.xlu0 %v13819_v16, %s13528_s2  ;;  %1357 = vrot.lane.b32.xlu1 %v13825_v29, %s13528_s2 }
 0x3a5   :  { %1677 = vrot.lane.b32.xlu0 %v13823_v26, %s13527_s22  ;;  %1515 = vrot.lane.b32.xlu1 %v13833_v35, %s13527_s22 }
 0x3a9   :  { %1685 = vrot.lane.b32.xlu0 %v13823_v26, %s13528_s2  ;;  %1523 = vrot.lane.b32.xlu1 %v13833_v35, %s13528_s2 }
 0x3ad   :  { %1841 = vrot.lane.b32.xlu0 %v13831_v34, %s13527_s22  ;;  %1679 = vrot.lane.b32.xlu1 %v13839_v38, %s13527_s22 }
 0x3b1   :  { %1849 = vrot.lane.b32.xlu0 %v13831_v34, %s13528_s2  ;;  %1687 = vrot.lane.b32.xlu1 %v13839_v38, %s13528_s2 }
 0x3b5   :  { %1380 = vrot.lane.b32.xlu0 %v13815_v9, %s13510_s25  ;;  %1843 = vrot.lane.b32.xlu1 %v13845_v41, %s13527_s22 }
 0x3b9   :  { %1388 = vrot.lane.b32.xlu0 %v13815_v9, %s13507_s19  ;;  %1851 = vrot.lane.b32.xlu1 %v13845_v41, %s13528_s2 }
 0x3bd   :  { %1545 = vrot.lane.b32.xlu0 %v13819_v16, %s13510_s25  ;;  %1382 = vrot.lane.b32.xlu1 %v13825_v29, %s13510_s25 }
 0x3c1   :  { %1553 = vrot.lane.b32.xlu0 %v13819_v16, %s13507_s19  ;;  %1390 = vrot.lane.b32.xlu1 %v13825_v29, %s13507_s19 }
 0x3c5   :  { %1709 = vrot.lane.b32.xlu0 %v13823_v26, %s13510_s25  ;;  %1547 = vrot.lane.b32.xlu1 %v13833_v35, %s13510_s25 }
 0x3c9   :  { %1717 = vrot.lane.b32.xlu0 %v13823_v26, %s13507_s19  ;;  %1555 = vrot.lane.b32.xlu1 %v13833_v35, %s13507_s19 }
 0x3cd   :  { %1873 = vrot.lane.b32.xlu0 %v13831_v34, %s13510_s25  ;;  %1711 = vrot.lane.b32.xlu1 %v13839_v38, %s13510_s25 }
 0x3d1   :  { %1881 = vrot.lane.b32.xlu0 %v13831_v34, %s13507_s19  ;;  %1719 = vrot.lane.b32.xlu1 %v13839_v38, %s13507_s19 }
 0x3d5   :  { %1917 = vrot.lane.b32.xlu0 %v13939_v44, %s13524_s21  ;;  %1875 = vrot.lane.b32.xlu1 %v13845_v41, %s13510_s25 }
 0x3d7   :  { %v13947_v51 = vpop.permute.xlu0 %1254 }
 0x3d8   :  { %v1260_v8 = vmax.f32 %v13815_v9, %v13947_v51 }
 0x3d9   :  { %2081 = vrot.lane.b32.xlu0 %v13945_v47, %s13524_s21  ;;  %1883 = vrot.lane.b32.xlu1 %v13845_v41, %s13507_s19 }
 0x3db   :  { %v13957_v61 = vpop.permute.xlu0 %1425 }
 0x3dc   :  { %v1431_v18 = vmax.f32 %v13819_v16, %v13957_v61 }
 0x3dd   :  { %2245 = vrot.lane.b32.xlu0 %v13953_v57, %s13524_s21  ;;  %1919 = vrot.lane.b32.xlu1 %v13955_v60, %s13524_s21 }
 0x3df   :  { %v13967_v5 = vpop.permute.xlu0 %1589  ;;  %v13969_v6 = vpop.permute.xlu1 %1256 }
 0x3e0   :  { %v1261_v10 = vmax.f32 %v13825_v29, %v13969_v6  ;;  %v1595_v27 = vmax.f32 %v13823_v26, %v13967_v5 }
 0x3e1   :  { %2409 = vrot.lane.b32.xlu0 %v13963_v2, %s13524_s21  ;;  %2083 = vrot.lane.b32.xlu1 %v13965_v3, %s13524_s21 }
 0x3e2   :  { %v1264_v12 = vcombine.low %v1260_v8, %v1261_v10 }
 0x3e3   :  { %v13984_v15 = vpop.permute.xlu0 %1753  ;;  %v13986_v50 = vpop.permute.xlu1 %1427 }
 0x3e4   :  { %v1432_v13 = vmax.f32 %v13833_v35, %v13986_v50  ;;  %v13997_v19 = vrot.slane %v1264_v12, %v13980_v11  ;;  %v1759_v36 = vmax.f32 %v13831_v34, %v13984_v15 }
 0x3e5   :  { %1973 = vrot.lane.b32.xlu0 %v13939_v44, %s13525_s0  ;;  %2247 = vrot.lane.b32.xlu1 %v13982_v14, %s13524_s21 }
 0x3e6   :  { %v1435_v20 = vcombine.low %v1431_v18, %v1432_v13  ;;  %1273 = vst.msk [vmem:[#allocation6] sm:$0x3] %vm642_vm7, %v13997_v19 }
 0x3e7   :  { %v14001_v23 = vpop.permute.xlu0 %1314  ;;  %v14003_v24 = vpop.permute.xlu1 %1591 }
 0x3e8   :  { %v1596_v28 = vmax.f32 %v13839_v38, %v14003_v24  ;;  %v14012_v30 = vrot.slane %v1435_v20, %v13980_v11 }
 0x3e9   :  { %1981 = vrot.lane.b32.xlu0 %v13939_v44, %s13526_s5  ;;  %2411 = vrot.lane.b32.xlu1 %v13999_v21, %s13524_s21 }
 0x3ea   :  { %v1599_v31 = vcombine.low %v1595_v27, %v1596_v28  ;;  %1444 = vst.msk [vmem:[#allocation6 + $0x2] sm:$0x3] %vm642_vm7, %v14012_v30 }
 0x3eb   :  { %v14020_v32 = vpop.permute.xlu0 %1322  ;;  %v14022_v33 = vpop.permute.xlu1 %1755 }
 0x3ec   :  { %v1760_v37 = vmax.f32 %v13845_v41, %v14022_v33  ;;  %v14033_v39 = vrot.slane %v1599_v31, %v13980_v11 }
 0x3ed   :  { %2137 = vrot.lane.b32.xlu0 %v13945_v47, %s13525_s0  ;;  %1975 = vrot.lane.b32.xlu1 %v13955_v60, %s13525_s0 }
 0x3ee   :  { %v1763_v40 = vcombine.low %v1759_v36, %v1760_v37  ;;  %1608 = vst.msk [vmem:[#allocation6 + $0x4] sm:$0x3] %vm642_vm7, %v14033_v39 }
 0x3ef   :  { %v14035_v42 = vpop.permute.xlu0 %1481  ;;  %v14037_v43 = vpop.permute.xlu1 %1316 }
 0x3f0   :  { %v14042_v45 = vrot.slane %v1763_v40, %v13980_v11 }
 0x3f1   :  { %2145 = vrot.lane.b32.xlu0 %v13945_v47, %s13526_s5  ;;  %1983 = vrot.lane.b32.xlu1 %v13955_v60, %s13526_s5 }
 0x3f2   :  { %1772 = vst.msk [vmem:[#allocation6 + $0x6] sm:$0x3] %vm642_vm7, %v14042_v45 }
 0x3f3   :  { %v14050_v46 = vpop.permute.xlu0 %1489  ;;  %v14052_v48 = vpop.permute.xlu1 %1324 }
 0x3f5   :  { %2301 = vrot.lane.b32.xlu0 %v13953_v57, %s13525_s0  ;;  %2139 = vrot.lane.b32.xlu1 %v13965_v3, %s13525_s0 }
 0x3f7   :  { %v14058_v49 = vpop.permute.xlu0 %1645  ;;  %v14060_v53 = vpop.permute.xlu1 %1483 }
 0x3f9   :  { %2309 = vrot.lane.b32.xlu0 %v13953_v57, %s13526_s5  ;;  %2147 = vrot.lane.b32.xlu1 %v13965_v3, %s13526_s5 }
 0x3fb   :  { %v14066_v54 = vpop.permute.xlu0 %1653  ;;  %v14068_v55 = vpop.permute.xlu1 %1491 }
 0x3fd   :  { %2465 = vrot.lane.b32.xlu0 %v13963_v2, %s13525_s0  ;;  %2303 = vrot.lane.b32.xlu1 %v13982_v14, %s13525_s0 }
 0x3ff   :  { %v14074_v56 = vpop.permute.xlu0 %1809  ;;  %v14076_v58 = vpop.permute.xlu1 %1647 }
 0x401   :  { %2473 = vrot.lane.b32.xlu0 %v13963_v2, %s13526_s5  ;;  %2311 = vrot.lane.b32.xlu1 %v13982_v14, %s13526_s5 }
 0x403   :  { %v14082_v59 = vpop.permute.xlu0 %1817  ;;  %v14084_v62 = vpop.permute.xlu1 %1655 }
 0x405   :  { %2005 = vrot.lane.b32.xlu0 %v13939_v44, %s13527_s22  ;;  %2467 = vrot.lane.b32.xlu1 %v13999_v21, %s13525_s0 }
 0x407   :  { %v14090_v63 = vpop.permute.xlu0 %1347  ;;  %v14092_v1 = vpop.permute.xlu1 %1811 }
 0x408   :  { %15802 = vst [vmem:[#allocation39_spill] sm:$0xff] %v14090_v63 }
 0x409   :  { %2013 = vrot.lane.b32.xlu0 %v13939_v44, %s13528_s2  ;;  %2475 = vrot.lane.b32.xlu1 %v13999_v21, %s13526_s5 }
 0x40b   :  { %v14098_v7 = vpop.permute.xlu0 %1355  ;;  %v14100_v52 = vpop.permute.xlu1 %1819 }
 0x40c   :  { %15803 = vst [vmem:[#allocation40_spill] sm:$0xff] %v14098_v7 }
 0x40d   :  { %2169 = vrot.lane.b32.xlu0 %v13945_v47, %s13527_s22  ;;  %2007 = vrot.lane.b32.xlu1 %v13955_v60, %s13527_s22 }
 0x40f   :  { %v14106_v8 = vpop.permute.xlu0 %1513  ;;  %v14108_v10 = vpop.permute.xlu1 %1349 }
 0x410   :  { %15804 = vst [vmem:[#allocation41_spill] sm:$0xff] %v14106_v8  ;;  %15805 = vst [vmem:[#allocation42_spill] sm:$0xff] %v14108_v10  ;;  %v2803_v8 = vld [vmem:[#allocation16 + $0x5e0] sm:$0xff]  ;;  %v1457_v10 = vrot.slane %v13819_v16, 1  ;;  %v1626_v16 = vrot.slane %v14003_v24, 1  ;;  %v1622_v24 = vrot.slane %v13839_v38, 1 }
 0x411   :  { %2177 = vrot.lane.b32.xlu0 %v13945_v47, %s13528_s2  ;;  %2015 = vrot.lane.b32.xlu1 %v13955_v60, %s13528_s2  ;;  %v1327_v38 = vrot.slane %v14052_v48, 1  ;;  %v2775_v48 = vld [vmem:[#allocation16 + $0x500] sm:$0xff] }
 0x413   :  { %v14114_v12 = vpop.permute.xlu0 %1521  ;;  %v14116_v4 = vpop.permute.xlu1 %1357 }
 0x414   :  { %15806 = vst [vmem:[#allocation43_spill] sm:$0xff] %v14114_v12 }
 0x415   :  { %2333 = vrot.lane.b32.xlu0 %v13953_v57, %s13527_s22  ;;  %2171 = vrot.lane.b32.xlu1 %v13965_v3, %s13527_s22 }
 0x417   :  { %v14122_v17 = vpop.permute.xlu0 %1677  ;;  %v14124_v18 = vpop.permute.xlu1 %1515 }
 0x418   :  { %15807 = vst [vmem:[#allocation44_spill] sm:$0xff] %v14122_v17  ;;  %15808 = vst [vmem:[#allocation45_spill] sm:$0xff] %v14124_v18  ;;  %v2799_v17 = vld [vmem:[#allocation16 + $0x5c0] sm:$0xff] }
 0x419   :  { %2341 = vrot.lane.b32.xlu0 %v13953_v57, %s13528_s2  ;;  %2179 = vrot.lane.b32.xlu1 %v13965_v3, %s13528_s2 }
 0x41b   :  { %v14130_v13 = vpop.permute.xlu0 %1685  ;;  %v14132_v20 = vpop.permute.xlu1 %1523 }
 0x41c   :  { %15809 = vst [vmem:[#allocation46_spill] sm:$0xff] %v14130_v13  ;;  %15810 = vst [vmem:[#allocation47_spill] sm:$0xff] %v14132_v20  ;;  %v2667_v20 = vld [vmem:[#allocation16 + $0x1a0] sm:$0xff]  ;;  %v1294_v13 = vrot.slane %v13969_v6, 1 }
 0x41d   :  { %2497 = vrot.lane.b32.xlu0 %v13963_v2, %s13527_s22  ;;  %2335 = vrot.lane.b32.xlu1 %v13982_v14, %s13527_s22  ;;  %v2791_v6 = vld [vmem:[#allocation16 + $0x580] sm:$0xff] }
 0x41f   :  { %v14138_v27 = vpop.permute.xlu0 %1841  ;;  %v14140_v28 = vpop.permute.xlu1 %1679 }
 0x420   :  { %15811 = vst [vmem:[#allocation48_spill] sm:$0xff] %v14138_v27  ;;  %15812 = vst [vmem:[#allocation49_spill] sm:$0xff] %v14140_v28  ;;  %v2663_v28 = vld [vmem:[#allocation16 + $0x180] sm:$0xff] }
 0x421   :  { %2505 = vrot.lane.b32.xlu0 %v13963_v2, %s13528_s2  ;;  %2343 = vrot.lane.b32.xlu1 %v13982_v14, %s13528_s2  ;;  %v12062_v63 = vcombine.low %v2663_v28, %v2667_v20 }
 0x423   :  { %v14146_v31 = vpop.permute.xlu0 %1849  ;;  %v14148_v36 = vpop.permute.xlu1 %1687 }
 0x424   :  { %15813 = vst [vmem:[#allocation50_spill] sm:$0xff] %v14146_v31  ;;  %15814 = vst [vmem:[#allocation51_spill] sm:$0xff] %v14148_v36  ;;  %v1293_v36 = vrot.slane %v13947_v51, 1 }
 0x425   :  { %2037 = vrot.lane.b32.xlu0 %v13939_v44, %s13510_s25  ;;  %2499 = vrot.lane.b32.xlu1 %v13999_v21, %s13527_s22 }
 0x427   :  { %v14154_v37 = vpop.permute.xlu0 %1380  ;;  %v14156_v40 = vpop.permute.xlu1 %1843 }
 0x428   :  { %15815 = vst [vmem:[#allocation52_spill] sm:$0xff] %v14154_v37  ;;  %15816 = vst [vmem:[#allocation53_spill] sm:$0xff] %v14156_v40 }
 0x429   :  { %2045 = vrot.lane.b32.xlu0 %v13939_v44, %s13507_s19  ;;  %2507 = vrot.lane.b32.xlu1 %v13999_v21, %s13528_s2 }
 0x42b   :  { %v14162_v0 = vpop.permute.xlu0 %1388  ;;  %v14164_v25 = vpop.permute.xlu1 %1851 }
 0x42c   :  { %15817 = vst [vmem:[#allocation54_spill] sm:$0xff] %v14162_v0  ;;  %15818 = vst [vmem:[#allocation55_spill] sm:$0xff] %v14164_v25 }
 0x42d   :  { %2201 = vrot.lane.b32.xlu0 %v13945_v47, %s13510_s25  ;;  %2039 = vrot.lane.b32.xlu1 %v13955_v60, %s13510_s25 }
 0x42f   :  { %v14170_v22 = vpop.permute.xlu0 %1545  ;;  %v14172_v27 = vpop.permute.xlu1 %1382 }
 0x430   :  { %15819 = vst [vmem:[#allocation56_spill] sm:$0xff] %v14170_v22  ;;  %15820 = vst [vmem:[#allocation57_spill] sm:$0xff] %v14172_v27 }
 0x431   :  { %2209 = vrot.lane.b32.xlu0 %v13945_v47, %s13507_s19  ;;  %2047 = vrot.lane.b32.xlu1 %v13955_v60, %s13507_s19 }
 0x433   :  { %v14178_v40 = vpop.permute.xlu0 %1553  ;;  %v14180_v37 = vpop.permute.xlu1 %1390 }
 0x434   :  { %15821 = vst [vmem:[#allocation58_spill] sm:$0xff] %v14178_v40  ;;  %15822 = vst [vmem:[#allocation59_spill] sm:$0xff] %v14180_v37 }
 0x435   :  { %2365 = vrot.lane.b32.xlu0 %v13953_v57, %s13510_s25  ;;  %2203 = vrot.lane.b32.xlu1 %v13965_v3, %s13510_s25 }
 0x437   :  { %v14186_v25 = vpop.permute.xlu0 %1709  ;;  %v14188_v22 = vpop.permute.xlu1 %1547 }
 0x438   :  { %15823 = vst [vmem:[#allocation60_spill] sm:$0xff] %v14186_v25  ;;  %15824 = vst [vmem:[#allocation61_spill] sm:$0xff] %v14188_v22  ;;  %v2671_v22 = vld [vmem:[#allocation16 + $0x1c0] sm:$0xff] }
 0x439   :  { %2373 = vrot.lane.b32.xlu0 %v13953_v57, %s13507_s19  ;;  %2211 = vrot.lane.b32.xlu1 %v13965_v3, %s13507_s19 }
 0x43b   :  { %v14194_v27 = vpop.permute.xlu0 %1717  ;;  %v14196_v40 = vpop.permute.xlu1 %1555 }
 0x43c   :  { %15825 = vst [vmem:[#allocation62_spill] sm:$0xff] %v14194_v27  ;;  %15826 = vst [vmem:[#allocation63_spill] sm:$0xff] %v14196_v40  ;;  %v2675_v27 = vld [vmem:[#allocation16 + $0x1e0] sm:$0xff] }
 0x43d   :  { %2529 = vrot.lane.b32.xlu0 %v13963_v2, %s13510_s25  ;;  %2367 = vrot.lane.b32.xlu1 %v13982_v14, %s13510_s25  ;;  %v12070_v37 = vcombine.low %v2671_v22, %v2675_v27  ;;  %v12071_v18 = vcombine.high %v2671_v22, %v2675_v27  ;;  %v1290_v22 = vrot.slane %v13825_v29, 1  ;;  %v1289_v29 = vrot.slane %v13815_v9, 1 }
 0x43e   :  { %v1789_v9 = vrot.slane %v13984_v15, 1  ;;  %v2647_v15 = vld [vmem:[#allocation16 + $0x100] sm:$0xff] }
 0x43f   :  { %v14202_v31 = vpop.permute.xlu0 %1873  ;;  %v14204_v25 = vpop.permute.xlu1 %1711  ;;  %5729 = vmatprep.subr.bf16.mxu0 %v12071_v18  ;;  %v2655_v18 = vld [vmem:[#allocation16 + $0x140] sm:$0xff] }
 0x440   :  { %15827 = vst [vmem:[#allocation64_spill] sm:$0xff] %v14202_v31  ;;  %15828 = vst [vmem:[#allocation65_spill] sm:$0xff] %v14204_v25  ;;  %v12198_v31 = vcombine.low %v2799_v17, %v2803_v8  ;;  %v12199_v25 = vcombine.high %v2799_v17, %v2803_v8  ;;  %5730 = vmatpush1.bf16.msra.mxu0 %v12070_v37  ;;  %v1461_v8 = vrot.slane %v13957_v61, 1  ;;  %v1458_v17 = vrot.slane %v13833_v35, 1  ;;  %v2659_v61 = vld [vmem:[#allocation16 + $0x160] sm:$0xff] }
 0x441   :  { %2537 = vrot.lane.b32.xlu0 %v13963_v2, %s13507_s19  ;;  %2375 = vrot.lane.b32.xlu1 %v13982_v14, %s13507_s19  ;;  %v1625_v35 = vrot.slane %v13967_v5, 1  ;;  %v1621_v37 = vrot.slane %v13823_v26, 1  ;;  %v12054_v7 = vcombine.low %v2655_v18, %v2659_v61  ;;  %v1785_v5 = vrot.slane %v13831_v34, 1  ;;  %v2783_v26 = vld [vmem:[#allocation16 + $0x540] sm:$0xff] }
 0x442   :  { %5770 = vmatprep.subr.bf16.mxu1 %v12199_v25  ;;  %v2651_v34 = vld [vmem:[#allocation16 + $0x120] sm:$0xff] }
 0x443   :  { %v14210_v0 = vpop.permute.xlu0 %1881  ;;  %v14212_v40 = vpop.permute.xlu1 %1719  ;;  %5771 = vmatpush1.bf16.msra.mxu1 %v12198_v31  ;;  %v12055_v31 = vcombine.high %v2655_v18, %v2659_v61  ;;  %v14252_v18 = vmax.f32 %v1785_v5, %v1789_v9  ;;  %v1326_v61 = vrot.slane %v14020_v32, 1  ;;  %v1319_v9 = vrot.slane %v14037_v43, 1 }
 0x444   :  { %15829 = vst [vmem:[#allocation66_spill] sm:$0xff] %v14210_v0  ;;  %15830 = vst [vmem:[#allocation67_spill] sm:$0xff] %v14212_v40  ;;  %v1462_v0 = vrot.slane %v13986_v50, 1  ;;  %v12063_v40 = vcombine.high %v2663_v28, %v2667_v20  ;;  %v2795_v50 = vld [vmem:[#allocation16 + $0x5a0] sm:$0xff]  ;;  %v1298_v20 = vmax.f32 %v1290_v22, %v1294_v13  ;;  %v1786_v22 = vrot.slane %v13845_v41, 1 }
 0x445   :  { %1274 = vrot.lane.b32.xlu0 %v13997_v19, %s13524_s21  ;;  %2531 = vrot.lane.b32.xlu1 %v13999_v21, %s13510_s25  ;;  %v12190_v25 = vcombine.low %v2791_v6, %v2795_v50  ;;  %v12191_v51 = vcombine.high %v2791_v6, %v2795_v50  ;;  %v1297_v6 = vmax.f32 %v1289_v29, %v1293_v36  ;;  %v2787_v13 = vld [vmem:[#allocation16 + $0x560] sm:$0xff]  ;;  %v1485_v43 = vrot.slane %v14035_v42, 1 }
 0x446   :  { %5731 = vmatprep.subr.bf16.mxu0 %v12063_v40  ;;  %v1466_v28 = vmax.f32 %v1458_v17, %v1462_v0  ;;  %v1465_v50 = vmax.f32 %v1457_v10, %v1461_v8  ;;  %v1790_v0 = vrot.slane %v14022_v33, 1  ;;  %v12183_v10 = vcombine.high %v2783_v26, %v2787_v13 }
 0x447   :  { %v14221_v27 = vpop.permute.xlu0 %1917  ;;  %v14223_v12 = vpop.permute.xlu1 %1875  ;;  %5732 = vmatpush1.bf16.msra.mxu0 %v12062_v63  ;;  %5772 = vmatprep.subr.bf16.mxu1 %v12191_v51  ;;  %v12182_v63 = vcombine.low %v2783_v26, %v2787_v13  ;;  %v14250_v36 = vmax.f32 %v1621_v37, %v1625_v35  ;;  %v1301_v33 = vcombine.low %v1297_v6, %v1298_v20  ;;  %v2639_v37 = vld [vmem:[#allocation16 + $0xc0] sm:$0xff] }
 0x448   :  { %15831 = vst [vmem:[#allocation68_spill] sm:$0xff] %v14223_v12  ;;  %5773 = vmatpush1.bf16.msra.mxu1 %v12190_v25  ;;  %5733 = vmatprep.subr.bf16.mxu0 %v12055_v31  ;;  %v1469_v8 = vcombine.low %v1465_v50, %v1466_v28  ;;  %v12047_v17 = vcombine.high %v2647_v15, %v2651_v34  ;;  %v2779_v31 = vld [vmem:[#allocation16 + $0x520] sm:$0xff]  ;;  %v1318_v50 = vrot.slane %v14001_v23, 1 }
 0x449   :  { %1609 = vrot.lane.b32.xlu0 %v14033_v39, %s13524_s21  ;;  %2539 = vrot.lane.b32.xlu1 %v13999_v21, %s13507_s19  ;;  %v14254_v29 = vmax.f32 %v1622_v24, %v1626_v16  ;;  %v12046_v51 = vcombine.low %v2647_v15, %v2651_v34  ;;  %v14262_v35 = vmax.f32 %v1786_v22, %v1790_v0  ;;  %v2643_v6 = vld [vmem:[#allocation16 + $0xe0] sm:$0xff] }
 0x44a   :  { %5774 = vmatprep.subr.bf16.mxu1 %v12183_v10  ;;  %v1923_v20 = vmax.f32 %v13939_v44, %v14221_v27  ;;  %v12174_v32 = vcombine.low %v2775_v48, %v2779_v31  ;;  %v12175_v16 = vcombine.high %v2775_v48, %v2779_v31  ;;  %v14276_v0 = vrot.slane %v1301_v33, %v13980_v11  ;;  %v2767_v34 = vld [vmem:[#allocation16 + $0x4c0] sm:$0xff] }
 0x44b   :  { %v14238_v40 = vpop.permute.xlu0 %2081  ;;  %v14240_v12 = vpop.permute.xlu1 %1883  ;;  %5734 = vmatpush1.bf16.msra.mxu0 %v12054_v7  ;;  %v1493_v7 = vrot.slane %v14050_v46, 1  ;;  %v14279_v26 = vrot.slane %v1469_v8, %v13980_v11  ;;  %v14282_v46 = vmax.f32 %v1319_v9, %v1327_v38  ;;  %v12038_v24 = vcombine.low %v2639_v37, %v2643_v6  ;;  %v2771_v33 = vld [vmem:[#allocation16 + $0x4e0] sm:$0xff] }
 0x44c   :  { %5775 = vmatpush1.bf16.msra.mxu1 %v12182_v63  ;;  %5735 = vmatprep.subr.bf16.mxu0 %v12047_v17  ;;  %v12039_v22 = vcombine.high %v2639_v37, %v2643_v6  ;;  %v1633_v23 = vcombine.low %v14250_v36, %v14254_v29  ;;  %v14290_v63 = vmax.f32 %v1318_v50, %v1326_v61  ;;  %v2631_v8 = vld [vmem:[#allocation16 + $0x80] sm:$0xff]  ;;  %v1658_v9 = vrot.slane %v14084_v62, 1 }
 0x44d   :  { %1279 = vrot.lane.b32.xlu0 %v13997_v19, %s13525_s0  ;;  %1445 = vrot.lane.b32.xlu1 %v14012_v30, %s13524_s21  ;;  %v2087_v10 = vmax.f32 %v13945_v47, %v14238_v40  ;;  %v14298_v38 = vmax.f32 %v1485_v43, %v1493_v7  ;;  %v2635_v61 = vld [vmem:[#allocation16 + $0xa0] sm:$0xff]  ;;  %v12166_v48 = vcombine.low %v2767_v34, %v2771_v33  ;;  %v1657_v6 = vrot.slane %v14066_v54, 1 }
 0x44e   :  { %5776 = vmatprep.subr.bf16.mxu1 %v12175_v16  ;;  %v12167_v31 = vcombine.high %v2767_v34, %v2771_v33  ;;  %v1334_v37 = vcombine.low %v14290_v63, %v14282_v46  ;;  %v12031_v16 = vcombine.high %v2631_v8, %v2635_v61  ;;  %v2763_v43 = vld [vmem:[#allocation16 + $0x4a0] sm:$0xff]  ;;  %v1649_v34 = vrot.slane %v14058_v49, 1  ;;  %v15836_v63 = vld [vmem:[#allocation51_spill] sm:$0xff] }
 0x44f   :  { %v14257_v41 = vpop.permute.xlu0 %2245  ;;  %v14259_v25 = vpop.permute.xlu1 %1919  ;;  %5736 = vmatpush1.bf16.msra.mxu0 %v12046_v51  ;;  %v15833_v29 = vcombine.low %v14252_v18, %v14262_v35  ;;  %v2739_v35 = vld [vmem:[#allocation16 + $0x3e0] sm:$0xff] }
 0x450   :  { %v1924_v28 = vmax.f32 %v13955_v60, %v14259_v25  ;;  %5777 = vmatpush1.bf16.msra.mxu1 %v12174_v32  ;;  %5737 = vmatprep.subr.bf16.mxu0 %v12039_v22  ;;  %v12030_v32 = vcombine.low %v2631_v8, %v2635_v61  ;;  %v2251_v50 = vmax.f32 %v13953_v57, %v14257_v41  ;;  %v2623_v22 = vld [vmem:[#allocation16 + $0x40] sm:$0xff] }
 0x451   :  { %1613 = vrot.lane.b32.xlu0 %v14033_v39, %s13525_s0  ;;  %1773 = vrot.lane.b32.xlu1 %v14042_v45, %s13524_s21  ;;  %v1341_v36 = vrot.slane %v1334_v37, %v13980_v11  ;;  %v1690_v37 = vrot.slane %v15836_v63, 1 }
 0x452   :  { %v1927_v5 = vcombine.low %v1923_v20, %v1924_v28  ;;  %v1494_v20 = vrot.slane %v14068_v55, 1  ;;  %v1486_v55 = vrot.slane %v14060_v53, 1  ;;  %5778 = vmatprep.subr.bf16.mxu1 %v12167_v31 }
 0x453   :  { %v14284_v13 = vpop.permute.xlu0 %2409  ;;  %v14286_v15 = vpop.permute.xlu1 %2083  ;;  %5738 = vmatpush1.bf16.msra.mxu0 %v12038_v24  ;;  %v1822_v24 = vrot.slane %v14100_v52, 1  ;;  %v1821_v52 = vrot.slane %v14082_v59, 1 }
 0x454   :  { %v2088_v42 = vmax.f32 %v13965_v3, %v14286_v15  ;;  %v14305_v51 = vrot.slane %v1927_v5, %v13980_v11  ;;  %v2759_v5 = vld [vmem:[#allocation16 + $0x480] sm:$0xff]  ;;  %v1498_v33 = vmax.f32 %v1486_v55, %v1494_v20  ;;  %5779 = vmatpush1.bf16.msra.mxu1 %v12166_v48  ;;  %5739 = vmatprep.subr.bf16.mxu0 %v12031_v16  ;;  %v1813_v55 = vrot.slane %v14074_v56, 1 }
 0x455   :  { %1284 = vrot.lane.b32.xlu0 %v13997_v19, %s13526_s5  ;;  %1449 = vrot.lane.b32.xlu1 %v14012_v30, %s13525_s0  ;;  %v12159_v54 = vcombine.high %v2759_v5, %v2763_v43  ;;  %v1661_v20 = vmax.f32 %v1649_v34, %v1657_v6  ;;  %v2615_v16 = vld [vmem:[#allocation16] sm:$0xff]  ;;  %v1640_v56 = vrot.slane %v1633_v23, %v13980_v11 }
 0x456   :  { %v2091_v28 = vcombine.low %v2087_v10, %v2088_v42  ;;  %1936 = vst.msk [vmem:[#allocation6 + $0x8] sm:$0x3] %vm642_vm7, %v14305_v51  ;;  %v1650_v10 = vrot.slane %v14076_v58, 1  ;;  %v2627_v42 = vld [vmem:[#allocation16 + $0x60] sm:$0xff]  ;;  %v12158_v58 = vcombine.low %v2759_v5, %v2763_v43  ;;  %v1501_v5 = vcombine.low %v14298_v38, %v1498_v33 }
 0x457   :  { %v14311_v7 = vpop.permute.xlu0 %1973  ;;  %v14313_v19 = vpop.permute.xlu1 %2247  ;;  %5740 = vmatpush1.bf16.msra.mxu0 %v12030_v32  ;;  %5780 = vmatprep.subr.bf16.mxu1 %v12159_v54  ;;  %v12023_v49 = vcombine.high %v2623_v22, %v2627_v42  ;;  %v12022_v48 = vcombine.low %v2623_v22, %v2627_v42  ;;  %v2743_v34 = vld [vmem:[#allocation16 + $0x400] sm:$0xff] }
 0x458   :  { %v2252_v62 = vmax.f32 %v13982_v14, %v14313_v19  ;;  %v14330_v53 = vrot.slane %v2091_v28, %v13980_v11  ;;  %v14334_v61 = vmax.f32 %v1650_v10, %v1658_v9  ;;  %v2415_v28 = vmax.f32 %v13963_v2, %v14284_v13  ;;  %v2751_v9 = vld [vmem:[#allocation16 + $0x440] sm:$0xff]  ;;  %5781 = vmatpush1.bf16.msra.mxu1 %v12158_v58  ;;  %v15834_v58 = vld [vmem:[#allocation40_spill] sm:$0xff] }
 0x459   :  { %1617 = vrot.lane.b32.xlu0 %v14033_v39, %s13526_s5  ;;  %1777 = vrot.lane.b32.xlu1 %v14042_v45, %s13525_s0  ;;  %v1814_v39 = vrot.slane %v14092_v1, 1  ;;  %v2755_v1 = vld [vmem:[#allocation16 + $0x460] sm:$0xff]  ;;  %v1825_v10 = vmax.f32 %v1813_v55, %v1821_v52  ;;  %v1359_v52 = vrot.slane %v15834_v58, 1 }
 0x45a   :  { %v2255_v8 = vcombine.low %v2251_v50, %v2252_v62  ;;  %2100 = vst.msk [vmem:[#allocation6 + $0xa] sm:$0x3] %vm642_vm7, %v14330_v53  ;;  %v12151_v6 = vcombine.high %v2751_v9, %v2755_v1  ;;  %v2619_v62 = vld [vmem:[#allocation16 + $0x20] sm:$0xff]  ;;  %v12150_v22 = vcombine.low %v2751_v9, %v2755_v1  ;;  %5741 = vmatprep.subr.bf16.mxu0 %v12023_v49  ;;  %v15838_v9 = vld [vmem:[#allocation43_spill] sm:$0xff] }
 0x45b   :  { %v14337_v31 = vpop.permute.xlu0 %1981  ;;  %v14339_v17 = vpop.permute.xlu1 %2411  ;;  %v1826_v50 = vmax.f32 %v1814_v39, %v1822_v24  ;;  %v12015_v38 = vcombine.high %v2615_v16, %v2619_v62  ;;  %5742 = vmatpush1.bf16.msra.mxu0 %v12022_v48  ;;  %v12014_v42 = vcombine.low %v2615_v16, %v2619_v62  ;;  %v2747_v33 = vld [vmem:[#allocation16 + $0x420] sm:$0xff]  ;;  %v14388_v49 = vrot.slane %v1501_v5, %v13980_v11  ;;  %v15840_v5 = vld [vmem:[#allocation47_spill] sm:$0xff] }
 0x45c   :  { %v2416_v59 = vmax.f32 %v13999_v21, %v14339_v17  ;;  %v14353_v32 = vrot.slane %v2255_v8, %v13980_v11  ;;  %5782 = vmatprep.subr.bf16.mxu1 %v12151_v6  ;;  %v2735_v8 = vld [vmem:[#allocation16 + $0x3c0] sm:$0xff]  ;;  %v12143_v18 = vcombine.high %v2743_v34, %v2747_v33  ;;  %v1525_v1 = vrot.slane %v15838_v9, 1 }
 0x45d   :  { %1309 = vrot.lane.b32.xlu0 %v14276_v0, %s13527_s22  ;;  %1453 = vrot.lane.b32.xlu1 %v14012_v30, %s13526_s5  ;;  %v1665_v0 = vcombine.low %v1661_v20, %v14334_v61  ;;  %v1360_v30 = vrot.slane %v14116_v4, 1  ;;  %v14376_v4 = vrot.slane %v15833_v29, %v13980_v11  ;;  %v1829_v61 = vcombine.low %v1825_v10, %v1826_v50  ;;  %v15835_v39 = vld [vmem:[#allocation42_spill] sm:$0xff] }
 0x45e   :  { %v2419_v43 = vcombine.low %v2415_v28, %v2416_v59  ;;  %2264 = vst.msk [vmem:[#allocation6 + $0xc] sm:$0x3] %vm642_vm7, %v14353_v32  ;;  %v1352_v46 = vrot.slane %v15835_v39, 1  ;;  %5783 = vmatpush1.bf16.msra.mxu1 %v12150_v22  ;;  %5743 = vmatprep.subr.bf16.mxu0 %v12015_v38  ;;  %v12142_v20 = vcombine.low %v2743_v34, %v2747_v33  ;;  %v15837_v59 = vld [vmem:[#allocation39_spill] sm:$0xff]  ;;  %v15839_v6 = vld [vmem:[#allocation46_spill] sm:$0xff] }
 0x45f   :  { %v14362_v24 = vpop.permute.xlu0 %2137  ;;  %v14364_v54 = vpop.permute.xlu1 %1975  ;;  %v12135_v28 = vcombine.high %v2735_v8, %v2739_v35  ;;  %v1351_v48 = vrot.slane %v15837_v59, 1  ;;  %v1672_v50 = vrot.slane %v1665_v0, %v13980_v11  ;;  %5784 = vmatprep.subr.bf16.mxu1 %v12143_v18  ;;  %v1689_v62 = vrot.slane %v15839_v6, 1  ;;  %5744 = vmatpush1.bf16.msra.mxu0 %v12014_v42  ;;  %v2863_v38 = vld [vmem:[#allocation16 + $0x7c0] sm:$0xff]  ;;  %v15843_v18 = vld [vmem:[#allocation44_spill] sm:$0xff] }
 0x460   :  { %15832 = vst [vmem:[#allocation69_spill] sm:$0xff] %v14362_v24  ;;  %v14379_v23 = vrot.slane %v2419_v43, %v13980_v11  ;;  %v1364_v16 = vmax.f32 %v1352_v46, %v1360_v30  ;;  %v1526_v43 = vrot.slane %v15840_v5, 1  ;;  %v12134_v10 = vcombine.low %v2735_v8, %v2739_v35  ;;  %v2867_v29 = vld [vmem:[#allocation16 + $0x7e0] sm:$0xff] }
 0x461   :  { %1641 = vrot.lane.b32.xlu0 %v1640_v56, %s13527_s22  ;;  %1781 = vrot.lane.b32.xlu1 %v14042_v45, %s13526_s5  ;;  %v15841_v56 = vld [vmem:[#allocation49_spill] sm:$0xff]  ;;  %v1363_v33 = vmax.f32 %v1351_v48, %v1359_v52  ;;  %v14407_v0 = vrot.slane %v1829_v61, %v13980_v11  ;;  %v12263_v39 = vcombine.high %v2863_v38, %v2867_v29  ;;  %v1681_v63 = vrot.slane %v15843_v18, 1 }
 0x462   :  { %2428 = vst.msk [vmem:[#allocation6 + $0xe] sm:$0x3] %vm642_vm7, %v14379_v23  ;;  %v1682_v22 = vrot.slane %v15841_v56, 1  ;;  %v2727_v34 = vld [vmem:[#allocation16 + $0x380] sm:$0xff]  ;;  %5785 = vmatpush1.bf16.msra.mxu1 %v12142_v20  ;;  %5745 = vmatprep.subr.bf16.mxu0 %v12135_v28  ;;  %v12262_v52 = vcombine.low %v2863_v38, %v2867_v29  ;;  %v15848_v38 = vld [vmem:[#allocation55_spill] sm:$0xff]  ;;  %vm1378_vm7 = vcmask 911104  }
 0x463   :  { %v14394_v45 = vpop.permute.xlu0 %2145  ;;  %v14396_v55 = vpop.permute.xlu1 %1983  ;;  %v15842_v30 = vld [vmem:[#allocation41_spill] sm:$0xff]  ;;  %v1367_v48 = vcombine.low %v1363_v33, %v1364_v16  ;;  %5786 = vmatprep.subr.bf16.mxu1 %v12263_v39  ;;  %v1693_v5 = vmax.f32 %v1681_v63, %v1689_v62  ;;  %5746 = vmatpush2.bf16.msra.mxu0 %v12134_v10  ;;  %v1854_v29 = vrot.slane %v15848_v38, 1  ;;  %v15850_v63 = vld [vmem:[#allocation52_spill] sm:$0xff] }
 0x464   :  { %v1517_v58 = vrot.slane %v15842_v30, 1  ;;  %v2731_v46 = vld [vmem:[#allocation16 + $0x3a0] sm:$0xff]  ;;  %v1694_v35 = vmax.f32 %v1682_v22, %v1690_v37  ;;  %v1384_v10 = vrot.slane %v15850_v63, 1 }
 0x465   :  { %1342 = vrot.lane.b32.xlu0 %v1341_v36, %s13526_s5  ;;  %1477 = vrot.lane.b32.xlu1 %v14279_v26, %s13527_s22  ;;  %v15844_v42 = vld [vmem:[#allocation45_spill] sm:$0xff]  ;;  %v15845_v36 = vld [vmem:[#allocation59_spill] sm:$0xff]  ;;  %v12127_v61 = vcombine.high %v2727_v34, %v2731_v46  ;;  %v15846_v30 = vld [vmem:[#allocation54_spill] sm:$0xff]  ;;  %v12126_v37 = vcombine.low %v2727_v34, %v2731_v46 }
 0x466   :  { %v1518_v8 = vrot.slane %v15844_v42, 1  ;;  %v14411_v59 = vmax.f32 %v1517_v58, %v1525_v1  ;;  %v1393_v9 = vrot.slane %v15845_v36, 1  ;;  %v1392_v18 = vrot.slane %v15846_v30, 1  ;;  %v2855_v20 = vld [vmem:[#allocation16 + $0x780] sm:$0xff]  ;;  %5787 = vmatpush2.bf16.msra.mxu1 %v12262_v52  ;;  %v15852_v30 = vld [vmem:[#allocation67_spill] sm:$0xff] }
 0x467   :  { %v14414_v6 = vpop.permute.xlu0 %2301  ;;  %v14416_v26 = vpop.permute.xlu1 %2139  ;;  %v2859_v28 = vld [vmem:[#allocation16 + $0x7a0] sm:$0xff]  ;;  %v1697_v39 = vcombine.low %v1693_v5, %v1694_v35  ;;  %5747 = vmatprep.subr.bf16.mxu0 %v12127_v61  ;;  %v15853_v5 = vld [vmem:[#allocation48_spill] sm:$0xff] }
 0x468   :  { %v14418_v56 = vmax.f32 %v1518_v8, %v1526_v43  ;;  %v2719_v1 = vld [vmem:[#allocation16 + $0x340] sm:$0xff]  ;;  %v12255_v62 = vcombine.high %v2855_v20, %v2859_v28  ;;  %v12254_v34 = vcombine.low %v2855_v20, %v2859_v28  ;;  %v1845_v52 = vrot.slane %v15853_v5, 1  ;;  %5748 = vmatpush2.bf16.msra.mxu0 %v12126_v37 }
 0x469   :  { %v15847_v22 = vld [vmem:[#allocation50_spill] sm:$0xff]  ;;  %v15849_v33 = vld [vmem:[#allocation57_spill] sm:$0xff]  ;;  %1673 = vrot.lane.b32.xlu0 %v1672_v50, %s13526_s5  ;;  %1805 = vrot.lane.b32.xlu1 %v14376_v4, %s13527_s22  ;;  %v1374_v4 = vrot.slane %v1367_v48, %v13980_v11  ;;  %v1396_v61 = vmax.f32 %v1384_v10, %v1392_v18  ;;  %v1704_v37 = vrot.slane %v1697_v39, %v13980_v11 }
 0x46a   :  { %v1853_v16 = vrot.slane %v15847_v22, 1  ;;  %v1385_v58 = vrot.slane %v15849_v33, 1  ;;  %v2723_v43 = vld [vmem:[#allocation16 + $0x360] sm:$0xff]  ;;  %v1722_v22 = vrot.slane %v15852_v30, 1  ;;  %5788 = vmatprep.subr.bf16.mxu1 %v12255_v62  ;;  %v1533_v35 = vcombine.low %v14411_v59, %v14418_v56  ;;  %v15856_v62 = vld [vmem:[#allocation63_spill] sm:$0xff] }
 0x46b   :  { %v12119_v46 = vcombine.high %v2719_v1, %v2723_v43  ;;  %v15851_v42 = vld [vmem:[#allocation53_spill] sm:$0xff]  ;;  %v14430_v38 = vpop.permute.xlu0 %2309  ;;  %v14432_v50 = vpop.permute.xlu1 %2147  ;;  %v12118_v20 = vcombine.low %v2719_v1, %v2723_v43  ;;  %v15854_v63 = vld [vmem:[#allocation62_spill] sm:$0xff]  ;;  %v1558_v18 = vrot.slane %v15856_v62, 1  ;;  %5789 = vmatpush2.bf16.msra.mxu1 %v12254_v34  ;;  %v15857_v43 = vld [vmem:[#allocation60_spill] sm:$0xff] }
 0x46c   :  { %v1846_v8 = vrot.slane %v15851_v42, 1  ;;  %v1397_v36 = vmax.f32 %v1385_v58, %v1393_v9  ;;  %v2847_v28 = vld [vmem:[#allocation16 + $0x740] sm:$0xff]  ;;  %v1721_v42 = vrot.slane %v15854_v63, 1  ;;  %v1857_v56 = vmax.f32 %v1845_v52, %v1853_v16 }
 0x46d   :  { %v2851_v33 = vld [vmem:[#allocation16 + $0x760] sm:$0xff]  ;;  %1375 = vrot.lane.b32.xlu0 %v1374_v4, %s13525_s0  ;;  %1509 = vrot.lane.b32.xlu1 %v14388_v49, %s13526_s5  ;;  %v1713_v10 = vrot.slane %v15857_v43, 1 }
 0x46e   :  { %v2711_v9 = vld [vmem:[#allocation16 + $0x300] sm:$0xff]  ;;  %v1858_v58 = vmax.f32 %v1846_v8, %v1854_v29  ;;  %v12247_v48 = vcombine.high %v2847_v28, %v2851_v33  ;;  %5749 = vmatprep.subr.bf16.mxu0 %v12119_v46  ;;  %v12246_v1 = vcombine.low %v2847_v28, %v2851_v33  ;;  %v1400_v29 = vcombine.low %v1396_v61, %v1397_v36  ;;  %v15860_v61 = vld [vmem:[#allocation56_spill] sm:$0xff] }
 0x46f   :  { %v15855_v30 = vld [vmem:[#allocation65_spill] sm:$0xff]  ;;  %v14446_v5 = vpop.permute.xlu0 %2465  ;;  %v14448_v4 = vpop.permute.xlu1 %2303  ;;  %v15858_v63 = vld [vmem:[#allocation58_spill] sm:$0xff]  ;;  %5750 = vmatpush2.bf16.msra.mxu0 %v12118_v20  ;;  %v1725_v36 = vmax.f32 %v1713_v10, %v1721_v42  ;;  %v1549_v33 = vrot.slane %v15860_v61, 1 }
 0x470   :  { %v1714_v24 = vrot.slane %v15855_v30, 1  ;;  %v2715_v59 = vld [vmem:[#allocation16 + $0x320] sm:$0xff]  ;;  %5790 = vmatprep.subr.bf16.mxu1 %v12247_v48  ;;  %v1557_v30 = vrot.slane %v15858_v63, 1  ;;  %v1861_v28 = vcombine.low %v1857_v56, %v1858_v58  ;;  %v1407_v42 = vrot.slane %v1400_v29, %v13980_v11 }
 0x471   :  { %v12111_v49 = vcombine.high %v2711_v9, %v2715_v59  ;;  %v15859_v16 = vld [vmem:[#allocation61_spill] sm:$0xff]  ;;  %v12110_v62 = vcombine.low %v2711_v9, %v2715_v59  ;;  %1837 = vrot.lane.b32.xlu1 %v14407_v0, %s13526_s5  ;;  %1705 = vrot.lane.b32.xlu0 %v1704_v37, %s13525_s0  ;;  %v1886_v59 = vrot.slane %v14240_v12, 1  ;;  %v1540_v0 = vrot.slane %v1533_v35, %v13980_v11 }
 0x472   :  { %v1726_v8 = vmax.f32 %v1714_v24, %v1722_v22  ;;  %v1550_v52 = vrot.slane %v15859_v16, 1  ;;  %v2839_v39 = vld [vmem:[#allocation16 + $0x700] sm:$0xff]  ;;  %5791 = vmatpush2.bf16.msra.mxu1 %v12246_v1  ;;  %v1561_v56 = vmax.f32 %v1549_v33, %v1557_v30  ;;  %v1868_v29 = vrot.slane %v1861_v28, %v13980_v11 }
 0x473   :  { %v2843_v34 = vld [vmem:[#allocation16 + $0x720] sm:$0xff]  ;;  %5751 = vmatprep.subr.bf16.mxu0 %v12111_v49  ;;  %v14457_v63 = vpop.permute.xlu0 %2473  ;;  %v14459_v58 = vpop.permute.xlu1 %2311 }
 0x474   :  { %v2703_v46 = vld [vmem:[#allocation16 + $0x2c0] sm:$0xff]  ;;  %v12239_v24 = vcombine.high %v2839_v39, %v2843_v34  ;;  %v1562_v48 = vmax.f32 %v1550_v52, %v1558_v18  ;;  %v12238_v43 = vcombine.low %v2839_v39, %v2843_v34  ;;  %v1729_v9 = vcombine.low %v1725_v36, %v1726_v8  ;;  %5752 = vmatpush2.bf16.msra.mxu0 %v12110_v62  ;;  %v15862_v8 = vld [vmem:[#allocation68_spill] sm:$0xff] }
 0x475   :  { %v2707_v22 = vld [vmem:[#allocation16 + $0x2e0] sm:$0xff]  ;;  %v1878_v52 = vrot.slane %v15862_v8, 1  ;;  %1541 = vrot.lane.b32.xlu1 %v1540_v0, %s13525_s0  ;;  %1408 = vrot.lane.b32.xlu0 %v1407_v42, %s13524_s21  ;;  %v15863_v62 = vld [vmem:[#allocation64_spill] sm:$0xff] }
 0x476   :  { %v12103_v20 = vcombine.high %v2703_v46, %v2707_v22  ;;  %5792 = vmatprep.subr.bf16.mxu1 %v12239_v24  ;;  %v12102_v37 = vcombine.low %v2703_v46, %v2707_v22  ;;  %v2831_v18 = vld [vmem:[#allocation16 + $0x6c0] sm:$0xff]  ;;  %v1565_v35 = vcombine.low %v1561_v56, %v1562_v48  ;;  %v1877_v34 = vrot.slane %v15863_v62, 1 }
 0x477   :  { %v2835_v1 = vld [vmem:[#allocation16 + $0x6e0] sm:$0xff]  ;;  %5793 = vmatpush2.bf16.msra.mxu1 %v12238_v43  ;;  %v1890_v46 = vmax.f32 %v1878_v52, %v1886_v59  ;;  %v14469_v36 = vpop.permute.xlu0 %2005  ;;  %v14471_v24 = vpop.permute.xlu1 %2467  ;;  %v1736_v22 = vrot.slane %v1729_v9, %v13980_v11 }
 0x478   :  { %v2695_v10 = vld [vmem:[#allocation16 + $0x280] sm:$0xff]  ;;  %v12231_v12 = vcombine.high %v2831_v18, %v2835_v1  ;;  %5753 = vmatprep.subr.bf16.mxu0 %v12103_v20  ;;  %v12230_v30 = vcombine.low %v2831_v18, %v2835_v1 }
 0x479   :  { %v15861_v49 = vld [vmem:[#allocation66_spill] sm:$0xff]  ;;  %5754 = vmatpush2.bf16.msra.mxu0 %v12102_v37  ;;  %1869 = vrot.lane.b32.xlu1 %v1868_v29, %s13525_s0  ;;  %v1572_v37 = vrot.slane %v1565_v35, %v13980_v11 }
 0x47a   :  { %v1885_v16 = vrot.slane %v15861_v49, 1  ;;  %v2699_v39 = vld [vmem:[#allocation16 + $0x2a0] sm:$0xff]  ;;  %5794 = vmatprep.subr.bf16.mxu1 %v12231_v12  ;;  %1737 = vrot.lane.b32.xlu0 %v1736_v22, %s13524_s21 }
 0x47b   :  { %v12095_v61 = vcombine.high %v2695_v10, %v2699_v39  ;;  %v12094_v33 = vcombine.low %v2695_v10, %v2699_v39  ;;  %v2823_v0 = vld [vmem:[#allocation16 + $0x680] sm:$0xff]  ;;  %5795 = vmatpush2.bf16.msra.mxu1 %v12230_v30  ;;  %v14476_v9 = vpop.permute.xlu0 %2013  ;;  %v14478_v1 = vpop.permute.xlu1 %2475 }
 0x47c   :  { %v2827_v48 = vld [vmem:[#allocation16 + $0x6a0] sm:$0xff]  ;;  %v1889_v28 = vmax.f32 %v1877_v34, %v1885_v16 }
 0x47d   :  { %v2687_v42 = vld [vmem:[#allocation16 + $0x240] sm:$0xff]  ;;  %v12223_v43 = vcombine.high %v2823_v0, %v2827_v48  ;;  %5755 = vmatprep.subr.bf16.mxu0 %v12095_v61  ;;  %v12222_v59 = vcombine.low %v2823_v0, %v2827_v48  ;;  %1573 = vrot.lane.b32.xlu1 %v1572_v37, %s13524_s21 }
 0x47e   :  { %v2691_v20 = vld [vmem:[#allocation16 + $0x260] sm:$0xff]  ;;  %v1893_v18 = vcombine.low %v1889_v28, %v1890_v46  ;;  %5756 = vmatpush2.bf16.msra.mxu0 %v12094_v33  ;;  %1937 = vrot.lane.b32.xlu0 %v14305_v51, %s13524_s21 }
 0x47f   :  { %v12087_v56 = vcombine.high %v2687_v42, %v2691_v20  ;;  %5796 = vmatprep.subr.bf16.mxu1 %v12223_v43  ;;  %v12086_v10 = vcombine.low %v2687_v42, %v2691_v20  ;;  %v2815_v49 = vld [vmem:[#allocation16 + $0x640] sm:$0xff]  ;;  %v14484_v29 = vpop.permute.xlu0 %2169  ;;  %v14486_v30 = vpop.permute.xlu1 %2007 }
 0x480   :  { %v2819_v16 = vld [vmem:[#allocation16 + $0x660] sm:$0xff]  ;;  %5797 = vmatpush2.bf16.msra.mxu1 %v12222_v59  ;;  %v1900_v35 = vrot.slane %v1893_v18, %v13980_v11  ;;  %v1954_v18 = vrot.slane %v14259_v25, 1  ;;  %v1949_v25 = vrot.slane %v13939_v44, 1  ;;  %v2117_v44 = vrot.slane %v14238_v40, 1 }
 0x481   :  { %v2679_v8 = vld [vmem:[#allocation16 + $0x200] sm:$0xff]  ;;  %v12215_v52 = vcombine.high %v2815_v49, %v2819_v16  ;;  %5757 = vmatprep.subr.bf16.mxu0 %v12087_v56  ;;  %v12214_v39 = vcombine.low %v2815_v49, %v2819_v16  ;;  %v2446_v40 = vrot.slane %v14339_v17, 1 }
 0x482   :  { %v2683_v12 = vld [vmem:[#allocation16 + $0x220] sm:$0xff]  ;;  %5758 = vmatpush2.bf16.msra.mxu0 %v12086_v10  ;;  %1901 = vrot.lane.b32.xlu1 %v1900_v35, %s13524_s21 }
 0x483   :  { %5798 = vmatprep.subr.bf16.mxu1 %v12215_v52  ;;  %v12079_v62 = vcombine.high %v2679_v8, %v2683_v12  ;;  %v12078_v34 = vcombine.low %v2679_v8, %v2683_v12  ;;  %v2807_v46 = vld [vmem:[#allocation16 + $0x600] sm:$0xff]  ;;  %2265 = vrot.lane.b32.xlu0 %v14353_v32, %s13524_s21  ;;  %v14492_v0 = vpop.permute.xlu0 %2177  ;;  %v14494_v48 = vpop.permute.xlu1 %2015  ;;  %v1953_v8 = vrot.slane %v14221_v27, 1  ;;  %v1950_v52 = vrot.slane %v13955_v60, 1 }
 0x484   :  { %v2811_v22 = vld [vmem:[#allocation16 + $0x620] sm:$0xff]  ;;  %5799 = vmatpush2.bf16.msra.mxu1 %v12214_v39  ;;  %v2282_v39 = vrot.slane %v14313_v19, 1  ;;  %v2281_v27 = vrot.slane %v14257_v41, 1  ;;  %v2118_v60 = vrot.slane %v14286_v15, 1  ;;  %v2277_v19 = vrot.slane %v13953_v57, 1 }
 0x485   :  { %v12207_v61 = vcombine.high %v2807_v46, %v2811_v22  ;;  %5759 = vmatprep.subr.bf16.mxu0 %v12079_v62  ;;  %v12206_v33 = vcombine.low %v2807_v46, %v2811_v22  ;;  %v14500_v42 = vld [vmem:[#allocation16 + $0x9c0] sm:$0xff]  ;;  %v1958_v12 = vmax.f32 %v1950_v52, %v1954_v18  ;;  %v2278_v46 = vrot.slane %v13982_v14, 1 }
 0x486   :  { %5760 = vmatpush2.bf16.msra.mxu0 %v12078_v34  ;;  %2101 = vrot.lane.b32.xlu1 %v14330_v53, %s13524_s21  ;;  %v14502_v28 = vld [vmem:[#allocation16 + $0x9e0] sm:$0xff]  ;;  %v1957_v34 = vmax.f32 %v1949_v25, %v1953_v8  ;;  %v1986_v41 = vrot.slane %v14396_v55, 1  ;;  %v2113_v14 = vrot.slane %v13945_v47, 1  ;;  %v1978_v57 = vrot.slane %v14364_v54, 1 }
 0x487   :  { %5800 = vmatprep.subr.bf16.mxu1 %v12207_v61  ;;  %1941 = vrot.lane.b32.xlu0 %v14305_v51, %s13525_s0  ;;  %v14504_v43 = vld [vmem:[#allocation16 + $0xdc0] sm:$0xff]  ;;  %v12326_v20 = vcombine.low %v14500_v42, %v14502_v28  ;;  %v12327_v59 = vcombine.high %v14500_v42, %v14502_v28  ;;  %v14513_v37 = vpop.permute.xlu0 %2333  ;;  %v14515_v10 = vpop.permute.xlu1 %2171  ;;  %v2114_v61 = vrot.slane %v13965_v3, 1  ;;  %v2445_v55 = vrot.slane %v14284_v13, 1 }
 0x488   :  { %5801 = vmatpush2.bf16.msra.mxu1 %v12206_v33  ;;  %v14510_v56 = vld [vmem:[#allocation16 + $0xde0] sm:$0xff]  ;;  %v1961_v22 = vcombine.low %v1957_v34, %v1958_v12  ;;  %v2286_v33 = vmax.f32 %v2278_v46, %v2282_v39  ;;  %v2121_v3 = vmax.f32 %v2113_v14, %v2117_v44  ;;  %v2442_v8 = vrot.slane %v13999_v21, 1 }
 0x489   :  { %v12454_v49 = vcombine.low %v14504_v43, %v14510_v56  ;;  %v12455_v16 = vcombine.high %v14504_v43, %v14510_v56  ;;  %5811 = vmatprep.subr.bf16.mxu0 %v12327_v59  ;;  %v2122_v18 = vmax.f32 %v2114_v61, %v2118_v60  ;;  %v2314_v47 = vrot.slane %v14459_v58, 1  ;;  %v3031_v28 = vld [vmem:[#allocation16 + $0xd00] sm:$0xff] }
 0x48a   :  { %2429 = vrot.lane.b32.xlu1 %v14379_v23, %s13524_s21  ;;  %v1977_v52 = vrot.slane %v14311_v7, 1  ;;  %v1990_v25 = vmax.f32 %v1978_v57, %v1986_v41  ;;  %v1968_v12 = vrot.slane %v1961_v22, %v13980_v11  ;;  %v2306_v39 = vrot.slane %v14448_v4, 1  ;;  %v15864_v41 = vld [vmem:[#allocation69_spill] sm:$0xff] }
 0x48b   :  { %2269 = vrot.lane.b32.xlu0 %v14353_v32, %s13525_s0  ;;  %5852 = vmatprep.subr.bf16.mxu1 %v12455_v16  ;;  %v14529_v35 = vpop.permute.xlu0 %2341  ;;  %v14531_v62 = vpop.permute.xlu1 %2179  ;;  %v1985_v16 = vrot.slane %v14337_v31, 1  ;;  %v2125_v13 = vcombine.low %v2121_v3, %v2122_v18  ;;  %v2450_v21 = vmax.f32 %v2442_v8, %v2446_v40  ;;  %v2305_v7 = vrot.slane %v14414_v6, 1  ;;  %v2895_v56 = vld [vmem:[#allocation16 + $0x8c0] sm:$0xff] }
 0x48c   :  { %v2150_v58 = vrot.slane %v14432_v50, 1  ;;  %v2318_v60 = vmax.f32 %v2306_v39, %v2314_v47  ;;  %v2149_v22 = vrot.slane %v14394_v45, 1  ;;  %v2142_v61 = vrot.slane %v14416_v26, 1 }
 0x48d   :  { %v1989_v34 = vmax.f32 %v1977_v52, %v1985_v16  ;;  %v2017_v6 = vrot.slane %v14476_v9, 1  ;;  %v2010_v50 = vrot.slane %v14486_v30, 1  ;;  %v2141_v14 = vrot.slane %v15864_v41, 1 }
 0x48e   :  { %2105 = vrot.lane.b32.xlu1 %v14330_v53, %s13525_s0  ;;  %v2478_v45 = vrot.slane %v14478_v1, 1  ;;  %v2009_v26 = vrot.slane %v14469_v36, 1  ;;  %v2345_v47 = vrot.slane %v14529_v35, 1 }
 0x48f   :  { %1945 = vrot.lane.b32.xlu0 %v14305_v51, %s13526_s5  ;;  %v14544_v59 = vpop.permute.xlu0 %2497  ;;  %v14546_v15 = vpop.permute.xlu1 %2335  ;;  %v2285_v51 = vmax.f32 %v2277_v19, %v2281_v27  ;;  %v2441_v27 = vrot.slane %v13963_v2, 1  ;;  %v1993_v44 = vcombine.low %v1989_v34, %v1990_v25  ;;  %v2153_v3 = vmax.f32 %v2141_v14, %v2149_v22 }
 0x490   :  { %v2021_v8 = vmax.f32 %v2009_v26, %v2017_v6  ;;  %v2338_v52 = vrot.slane %v14546_v15, 1 }
 0x491   :  { %v2289_v31 = vcombine.low %v2285_v51, %v2286_v33  ;;  %v2449_v46 = vmax.f32 %v2441_v27, %v2445_v55  ;;  %v2154_v51 = vmax.f32 %v2142_v61, %v2150_v58  ;;  %v2000_v30 = vrot.slane %v1993_v44, %v13980_v11 }
 0x492   :  { %2433 = vrot.lane.b32.xlu1 %v14379_v23, %s13525_s0  ;;  %v2477_v55 = vrot.slane %v14457_v63, 1  ;;  %v2181_v27 = vrot.slane %v14492_v0, 1 }
 0x493   :  { %2273 = vrot.lane.b32.xlu0 %v14353_v32, %s13526_s5  ;;  %v14560_v17 = vpop.permute.xlu0 %2505  ;;  %v2344_v54 = vpop.permute.xlu1 %2343  ;;  %v2313_v32 = vrot.slane %v14430_v38, 1  ;;  %v2018_v38 = vrot.slane %v14494_v48, 1  ;;  %v2296_v19 = vrot.slane %v2289_v31, %v13980_v11  ;;  %v2453_v33 = vcombine.low %v2449_v46, %v2450_v21 }
 0x494   :  { %v2132_v48 = vrot.slane %v2125_v13, %v13980_v11  ;;  %v2346_v40 = vrot.slane %v2344_v54, 1  ;;  %v2157_v1 = vcombine.low %v2153_v3, %v2154_v51  ;;  %v2469_v31 = vrot.slane %v14446_v5, 1 }
 0x495   :  { %v2022_v16 = vmax.f32 %v2010_v50, %v2018_v38  ;;  %v2460_v36 = vrot.slane %v2453_v33, %v13980_v11  ;;  %v2174_v13 = vrot.slane %v14515_v10, 1  ;;  %v2173_v21 = vrot.slane %v14484_v29, 1 }
 0x496   :  { %2109 = vrot.lane.b32.xlu1 %v14330_v53, %s13526_s5  ;;  %v2317_v53 = vmax.f32 %v2305_v7, %v2313_v32  ;;  %v2350_v35 = vmax.f32 %v2338_v52, %v2346_v40  ;;  %v2481_v39 = vmax.f32 %v2469_v31, %v2477_v55  ;;  %v2509_v61 = vrot.slane %v14560_v17, 1 }
 0x497   :  { %1969 = vrot.lane.b32.xlu0 %v1968_v12, %s13527_s22  ;;  %v14572_v4 = vpop.permute.xlu0 %2037  ;;  %v14574_v2 = vpop.permute.xlu1 %2499  ;;  %v2025_v63 = vcombine.low %v2021_v8, %v2022_v16  ;;  %v2182_v12 = vrot.slane %v14531_v62, 1  ;;  %v2185_v22 = vmax.f32 %v2173_v21, %v2181_v27 }
 0x498   :  { %v2321_v18 = vcombine.low %v2317_v53, %v2318_v60  ;;  %v2041_v10 = vrot.slane %v14572_v4, 1  ;;  %v2502_v53 = vrot.slane %v14574_v2, 1 }
 0x499   :  { %v2186_v62 = vmax.f32 %v2174_v13, %v2182_v12  ;;  %v2032_v0 = vrot.slane %v2025_v63, %v13980_v11 }
 0x49a   :  { %2437 = vrot.lane.b32.xlu1 %v14379_v23, %s13526_s5  ;;  %v2470_v23 = vrot.slane %v14471_v24, 1  ;;  %v2328_v54 = vrot.slane %v2321_v18, %v13980_v11  ;;  %v2337_v24 = vrot.slane %v14513_v37, 1  ;;  %v2164_v37 = vrot.slane %v2157_v1, %v13980_v11 }
 0x49b   :  { %2297 = vrot.lane.b32.xlu0 %v2296_v19, %s13527_s22  ;;  %v2046_v9 = vpop.permute.xlu0 %2045  ;;  %v2508_v57 = vpop.permute.xlu1 %2507  ;;  %v2189_v50 = vcombine.low %v2185_v22, %v2186_v62 }
 0x49c   :  { %v2482_v25 = vmax.f32 %v2470_v23, %v2478_v45  ;;  %v2349_v34 = vmax.f32 %v2337_v24, %v2345_v47  ;;  %v2049_v7 = vrot.slane %v2046_v9, 1  ;;  %v2510_v60 = vrot.slane %v2508_v57, 1 }
 0x49d   :  { %v2196_v9 = vrot.slane %v2189_v50, %v13980_v11 }
 0x49e   :  { %2133 = vrot.lane.b32.xlu1 %v2132_v48, %s13527_s22  ;;  %v2485_v5 = vcombine.low %v2481_v39, %v2482_v25  ;;  %v2353_v58 = vcombine.low %v2349_v34, %v2350_v35  ;;  %v2053_v29 = vmax.f32 %v2041_v10, %v2049_v7  ;;  %v2501_v48 = vrot.slane %v14544_v59, 1 }
 0x49f   :  { %2001 = vrot.lane.b32.xlu0 %v2000_v30, %s13526_s5  ;;  %v2202_v32 = vpop.permute.xlu0 %2201  ;;  %v2040_v15 = vpop.permute.xlu1 %2039  ;;  %v2514_v41 = vmax.f32 %v2502_v53, %v2510_v60 }
 0x4a0   :  { %v2042_v38 = vrot.slane %v2040_v15, 1  ;;  %v2492_v6 = vrot.slane %v2485_v5, %v13980_v11  ;;  %v2360_v51 = vrot.slane %v2353_v58, %v13980_v11  ;;  %v2513_v17 = vmax.f32 %v2501_v48, %v2509_v61 }
 0x4a1   :  { %v2205_v59 = vrot.slane %v2202_v32, 1 }
 0x4a2   :  { %2461 = vrot.lane.b32.xlu1 %v2460_v36, %s13527_s22  ;;  %v2517_v26 = vcombine.low %v2513_v17, %v2514_v41 }
 0x4a3   :  { %2329 = vrot.lane.b32.xlu0 %v2328_v54, %s13526_s5  ;;  %v2210_v46 = vpop.permute.xlu0 %2209  ;;  %v2048_v44 = vpop.permute.xlu1 %2047 }
 0x4a4   :  { %v2050_v19 = vrot.slane %v2048_v44, 1  ;;  %v2213_v2 = vrot.slane %v2210_v46, 1  ;;  %v2524_v47 = vrot.slane %v2517_v26, %v13980_v11 }
 0x4a6   :  { %2165 = vrot.lane.b32.xlu1 %v2164_v37, %s13526_s5  ;;  %v2054_v33 = vmax.f32 %v2042_v38, %v2050_v19  ;;  %v2217_v3 = vmax.f32 %v2205_v59, %v2213_v2  ;;  %v13530_v59 = vmov 1983009808  }
 0x4a7   :  { %2033 = vrot.lane.b32.xlu0 %v2032_v0, %s13525_s0  ;;  %v2366_v4 = vpop.permute.xlu0 %2365  ;;  %v2204_v14 = vpop.permute.xlu1 %2203 }
 0x4a8   :  { %v2057_v18 = vcombine.low %v2053_v29, %v2054_v33  ;;  %v2206_v57 = vrot.slane %v2204_v14, 1  ;;  %v2369_v54 = vrot.slane %v2366_v4, 1 }
 0x4aa   :  { %2493 = vrot.lane.b32.xlu1 %v2492_v6, %s13526_s5  ;;  %v2064_v45 = vrot.slane %v2057_v18, %v13980_v11 }
 0x4ab   :  { %2361 = vrot.lane.b32.xlu0 %v2360_v51, %s13525_s0  ;;  %v2374_v16 = vpop.permute.xlu0 %2373  ;;  %v2212_v40 = vpop.permute.xlu1 %2211 }
 0x4ac   :  { %v2214_v30 = vrot.slane %v2212_v40, 1  ;;  %v2377_v36 = vrot.slane %v2374_v16, 1 }
 0x4ae   :  { %2197 = vrot.lane.b32.xlu1 %v2196_v9, %s13525_s0  ;;  %v2218_v55 = vmax.f32 %v2206_v57, %v2214_v30  ;;  %v2381_v12 = vmax.f32 %v2369_v54, %v2377_v36  ;;  %v2567_v57 = vunpack.c.l.s4 %v13530_v59  ;;  %v3015_v59 = vld [vmem:[#allocation16 + $0xc80] sm:$0xff] }
 0x4af   :  { %2065 = vrot.lane.b32.xlu0 %v2064_v45, %s13524_s21  ;;  %v2530_v23 = vpop.permute.xlu0 %2529  ;;  %v2368_v8 = vpop.permute.xlu1 %2367 }
 0x4b0   :  { %v2221_v52 = vcombine.low %v2217_v3, %v2218_v55  ;;  %v2370_v63 = vrot.slane %v2368_v8, 1  ;;  %v2533_v21 = vrot.slane %v2530_v23, 1  ;;  %v2568_v55 = vunpack.c.0.s8 %v2567_v57  ;;  %v3019_v57 = vld [vmem:[#allocation16 + $0xca0] sm:$0xff] }
 0x4b2   :  { %2525 = vrot.lane.b32.xlu1 %v2524_v47, %s13525_s0  ;;  %v2228_v1 = vrot.slane %v2221_v52, %v13980_v11  ;;  %v15865_v47 = vld [vmem:[#allocation36_spill] sm:$0xff] }
 0x4b3   :  { %v2538_v31 = vpop.permute.xlu0 %2537  ;;  %v2376_v25 = vpop.permute.xlu1 %2375  ;;  %v14662_v52 = vsub.s32 %v2568_v55, %v15865_v47  ;;  %v2879_v55 = vld [vmem:[#allocation16 + $0x840] sm:$0xff] }
 0x4b4   :  { %v2378_v24 = vrot.slane %v2376_v25, 1  ;;  %v2541_v27 = vrot.slane %v2538_v31, 1 }
 0x4b6   :  { %2229 = vrot.lane.b32.xlu1 %v2228_v1, %s13524_s21  ;;  %v2382_v35 = vmax.f32 %v2370_v63, %v2378_v24  ;;  %v2545_v62 = vmax.f32 %v2533_v21, %v2541_v27 }
 0x4b7   :  { %v1275_v32 = vpop.permute.xlu0 %1274  ;;  %v2532_v15 = vpop.permute.xlu1 %2531 }
 0x4b8   :  { %v2385_v39 = vcombine.low %v2381_v12, %v2382_v35  ;;  %1278 = vst.msk [vmem:[#allocation6] sm:$0x3] %vm1277_vm0, %v1275_v32  ;;  %v2534_v7 = vrot.slane %v2532_v15, 1  ;;  %v2919_v12 = vld [vmem:[#allocation16 + $0x980] sm:$0xff] }
 0x4b9   :  { %v2923_v35 = vld [vmem:[#allocation16 + $0x9a0] sm:$0xff] }
 0x4ba   :  { %v2392_v13 = vrot.slane %v2385_v39, %v13980_v11  ;;  %v12319_v21 = vcombine.high %v2919_v12, %v2923_v35 }
 0x4bb   :  { %v1610_v34 = vpop.permute.xlu0 %1609  ;;  %v2540_v5 = vpop.permute.xlu1 %2539 }
 0x4bc   :  { %1612 = vst.msk [vmem:[#allocation6 + $0x4] sm:$0x3] %vm1277_vm0, %v1610_v34  ;;  %v2542_v37 = vrot.slane %v2540_v5, 1  ;;  %2393 = vrot.lane.b32.xlu0 %v2392_v13, %s13524_s21  ;;  %v3047_v13 = vld [vmem:[#allocation16 + $0xd80] sm:$0xff] }
 0x4bd   :  { %v3051_v34 = vld [vmem:[#allocation16 + $0xda0] sm:$0xff] }
 0x4be   :  { %v2546_v58 = vmax.f32 %v2534_v7, %v2542_v37  ;;  %v2911_v37 = vld [vmem:[#allocation16 + $0x940] sm:$0xff] }
 0x4bf   :  { %v1280_v60 = vpop.permute.xlu0 %1279  ;;  %v1446_v46 = vpop.permute.xlu1 %1445 }
 0x4c0   :  { %v2549_v44 = vcombine.low %v2545_v62, %v2546_v58  ;;  %1283 = vst.msk [vmem:[#allocation6] sm:$0x3] %vm1282_vm1, %v1280_v60  ;;  %v2915_v62 = vld [vmem:[#allocation16 + $0x960] sm:$0xff] }
 0x4c1   :  { %1448 = vst.msk [vmem:[#allocation6 + $0x2] sm:$0x3] %vm1277_vm0, %v1446_v46  ;;  %v12310_v42 = vcombine.low %v2911_v37, %v2915_v62 }
 0x4c2   :  { %v2556_v0 = vrot.slane %v2549_v44, %v13980_v11  ;;  %v12447_v44 = vcombine.high %v3047_v13, %v3051_v34 }
 0x4c3   :  { %v1614_v10 = vpop.permute.xlu0 %1613  ;;  %v1774_v38 = vpop.permute.xlu1 %1773 }
 0x4c4   :  { %1616 = vst.msk [vmem:[#allocation6 + $0x4] sm:$0x3] %vm1282_vm1, %v1614_v10  ;;  %2557 = vrot.lane.b32.xlu1 %v2556_v0, %s13524_s21  ;;  %v12318_v0 = vcombine.low %v2919_v12, %v2923_v35  ;;  %v3039_v10 = vld [vmem:[#allocation16 + $0xd40] sm:$0xff] }
 0x4c5   :  { %1776 = vst.msk [vmem:[#allocation6 + $0x6] sm:$0x3] %vm1277_vm0, %v1774_v38  ;;  %v3043_v38 = vld [vmem:[#allocation16 + $0xd60] sm:$0xff] }
 0x4c6   :  { %v12438_v43 = vcombine.low %v3039_v10, %v3043_v38  ;;  %v2871_v12 = vld [vmem:[#allocation16 + $0x800] sm:$0xff] }
 0x4c7   :  { %v1285_v19 = vpop.permute.xlu0 %1284  ;;  %v1450_v22 = vpop.permute.xlu1 %1449  ;;  %v2875_v35 = vld [vmem:[#allocation16 + $0x820] sm:$0xff] }
 0x4c8   :  { %1288 = vst.msk [vmem:[#allocation6] sm:$0x3] %vm1287_vm3, %v1285_v19  ;;  %v12311_v19 = vcombine.high %v2911_v37, %v2915_v62  ;;  %v12271_v37 = vcombine.high %v2871_v12, %v2875_v35 }
 0x4c9   :  { %1452 = vst.msk [vmem:[#allocation6 + $0x2] sm:$0x3] %vm1282_vm1, %v1450_v22  ;;  %v12446_v22 = vcombine.low %v3047_v13, %v3051_v34  ;;  %v2999_v34 = vld [vmem:[#allocation16 + $0xc00] sm:$0xff] }
 0x4cb   :  { %v1618_v61 = vpop.permute.xlu0 %1617  ;;  %v1778_v53 = vpop.permute.xlu1 %1777 }
 0x4cc   :  { %1620 = vst.msk [vmem:[#allocation6 + $0x4] sm:$0x3] %vm1287_vm3, %v1618_v61  ;;  %v2903_v61 = vld [vmem:[#allocation16 + $0x900] sm:$0xff] }
 0x4cd   :  { %1780 = vst.msk [vmem:[#allocation6 + $0x6] sm:$0x3] %vm1282_vm1, %v1778_v53  ;;  %v2907_v53 = vld [vmem:[#allocation16 + $0x920] sm:$0xff] }
 0x4cf   :  { %v1310_v11 = vpop.permute.xlu0 %1309  ;;  %v1454_v29 = vpop.permute.xlu1 %1453 }
 0x4d0   :  { %1313 = vst.msk [vmem:[#allocation6] sm:$0x3] %vm1312_vm4, %v1310_v11 }
 0x4d1   :  { %1456 = vst.msk [vmem:[#allocation6 + $0x2] sm:$0x3] %vm1287_vm3, %v1454_v29 }
 0x4d3   :  { %v1642_v33 = vpop.permute.xlu0 %1641  ;;  %v1782_v6 = vpop.permute.xlu1 %1781 }
 0x4d4   :  { %1644 = vst.msk [vmem:[#allocation6 + $0x4] sm:$0x3] %vm1312_vm4, %v1642_v33  ;;  %v12439_v33 = vcombine.high %v3039_v10, %v3043_v38  ;;  %v12270_v38 = vcombine.low %v2871_v12, %v2875_v35  ;;  %v2955_v12 = vld [vmem:[#allocation16 + $0xaa0] sm:$0xff] }
 0x4d5   :  { %1784 = vst.msk [vmem:[#allocation6 + $0x6] sm:$0x3] %vm1287_vm3, %v1782_v6  ;;  %v12303_v6 = vcombine.high %v2903_v61, %v2907_v53 }
 0x4d7   :  { %v1343_v50 = vpop.permute.xlu0 %1342  ;;  %v1478_v48 = vpop.permute.xlu1 %1477 }
 0x4d8   :  { %1346 = vst.msk [vmem:[#allocation6] sm:$0x3] %vm1345_vm5, %v1343_v50 }
 0x4d9   :  { %1480 = vst.msk [vmem:[#allocation6 + $0x2] sm:$0x3] %vm1312_vm4, %v1478_v48 }
 0x4db   :  { %v1674_v41 = vpop.permute.xlu0 %1673  ;;  %v1806_v4 = vpop.permute.xlu1 %1805 }
 0x4dc   :  { %1676 = vst.msk [vmem:[#allocation6 + $0x4] sm:$0x3] %vm1345_vm5, %v1674_v41 }
 0x4dd   :  { %1808 = vst.msk [vmem:[#allocation6 + $0x6] sm:$0x3] %vm1312_vm4, %v1806_v4  ;;  %v12302_v4 = vcombine.low %v2903_v61, %v2907_v53 }
 0x4df   :  { %v1376_v14 = vpop.permute.xlu0 %1375  ;;  %v1510_v51 = vpop.permute.xlu1 %1509 }
 0x4e0   :  { %1379 = vst.msk [vmem:[#allocation6] sm:$0x3] %vm1378_vm7, %v1376_v14  ;;  %v3023_v14 = vld [vmem:[#allocation16 + $0xcc0] sm:$0xff] }
 0x4e1   :  { %1512 = vst.msk [vmem:[#allocation6 + $0x2] sm:$0x3] %vm1345_vm5, %v1510_v51  ;;  %v3027_v51 = vld [vmem:[#allocation16 + $0xce0] sm:$0xff] }
 0x4e3   :  { %v1706_v18 = vpop.permute.xlu0 %1705  ;;  %v1838_v17 = vpop.permute.xlu1 %1837 }
 0x4e4   :  { %1708 = vst.msk [vmem:[#allocation6 + $0x4] sm:$0x3] %vm1378_vm7, %v1706_v18 }
 0x4e5   :  { %1840 = vst.msk [vmem:[#allocation6 + $0x6] sm:$0x3] %vm1345_vm5, %v1838_v17 }
 0x4e7   :  { %v1409_v2 = vpop.permute.xlu0 %1408  ;;  %v1542_v45 = vpop.permute.xlu1 %1541 }
 0x4e8   :  { %1412 = vst.msk [vmem:[#allocation6] sm:$0x3] %vm1411_vm8, %v1409_v2  ;;  %v2887_v2 = vld [vmem:[#allocation16 + $0x880] sm:$0xff] }
 0x4e9   :  { %1544 = vst.msk [vmem:[#allocation6 + $0x2] sm:$0x3] %vm1378_vm7, %v1542_v45  ;;  %v2891_v45 = vld [vmem:[#allocation16 + $0x8a0] sm:$0xff] }
 0x4eb   :  { %v1870_v16 = vpop.permute.xlu1 %1869 }
 0x4ec   :  { %v1738_v26 = vpop.permute.xlu0 %1737  ;;  %1872 = vst.msk [vmem:[#allocation6 + $0x6] sm:$0x3] %vm1378_vm7, %v1870_v16 }
 0x4ed   :  { %1740 = vst.msk [vmem:[#allocation6 + $0x4] sm:$0x3] %vm1411_vm8, %v1738_v26 }
 0x4ef   :  { %v1574_v9 = vpop.permute.xlu1 %1573 }
 0x4f0   :  { %v1938_v40 = vpop.permute.xlu0 %1937  ;;  %1576 = vst.msk [vmem:[#allocation6 + $0x2] sm:$0x3] %vm1411_vm8, %v1574_v9 }
 0x4f1   :  { %1940 = vst.msk [vmem:[#allocation6 + $0x8] sm:$0x3] %vm1277_vm0, %v1938_v40  ;;  %v12423_v40 = vcombine.high %v3023_v14, %v3027_v51 }
 0x4f4   :  { %v1902_v3 = vpop.permute.xlu1 %1901 }
 0x4f5   :  { %v2266_v30 = vpop.permute.xlu0 %2265  ;;  %1904 = vst.msk [vmem:[#allocation6 + $0x6] sm:$0x3] %vm1411_vm8, %v1902_v3  ;;  %v12422_v3 = vcombine.low %v3023_v14, %v3027_v51  ;;  %v3103_v51 = vld [vmem:[#allocation16 + $0xf40] sm:$0xff] }
 0x4f6   :  { %2268 = vst.msk [vmem:[#allocation6 + $0xc] sm:$0x3] %vm1277_vm0, %v2266_v30  ;;  %v12287_v30 = vcombine.high %v2887_v2, %v2891_v45 }
 0x4f8   :  { %v2102_v8 = vpop.permute.xlu1 %2101 }
 0x4f9   :  { %v1942_v23 = vpop.permute.xlu0 %1941  ;;  %2104 = vst.msk [vmem:[#allocation6 + $0xa] sm:$0x3] %vm1277_vm0, %v2102_v8 }
 0x4fa   :  { %1944 = vst.msk [vmem:[#allocation6 + $0x8] sm:$0x3] %vm1282_vm1, %v1942_v23  ;;  %v2883_v23 = vld [vmem:[#allocation16 + $0x860] sm:$0xff] }
 0x4fb   :  { %v12278_v13 = vcombine.low %v2879_v55, %v2883_v23 }
 0x4fc   :  { %v2430_v1 = vpop.permute.xlu1 %2429  ;;  %v2561_v31 = vld [vmem:[#allocation6] sm:$0xff] }
 0x4fd   :  { %v2270_v36 = vpop.permute.xlu0 %2269  ;;  %2432 = vst.msk [vmem:[#allocation6 + $0xe] sm:$0x3] %vm1277_vm0, %v2430_v1  ;;  %v2572_v25 = vrot.slane %v2561_v31, %v14662_v52  ;;  %v2565_v54 = vcombine.high %v2561_v31, %v2561_v31  ;;  %v12415_v1 = vcombine.high %v3015_v59, %v3019_v57  ;;  %v12286_v31 = vcombine.low %v2887_v2, %v2891_v45  ;;  %v2967_v45 = vld [vmem:[#allocation16 + $0xb00] sm:$0xff] }
 0x4fe   :  { %2272 = vst.msk [vmem:[#allocation6 + $0xc] sm:$0x3] %vm1282_vm1, %v2270_v36 }
 0x4ff   :  { %v2580_v63 = vcombine.high %v2572_v25, %v2572_v25  ;;  %v2579_v24 = vrot.slane %v2565_v54, %v14662_v52  ;;  %v14672_v5 = vpack.c.bf16 %v2572_v25, %v2572_v25  ;;  %v3007_v25 = vld [vmem:[#allocation16 + $0xc40] sm:$0xff] }
 0x500   :  { %v2106_v15 = vpop.permute.xlu1 %2105  ;;  %v3011_v54 = vld [vmem:[#allocation16 + $0xc60] sm:$0xff] }
 0x501   :  { %v1946_v32 = vpop.permute.xlu0 %1945  ;;  %2108 = vst.msk [vmem:[#allocation6 + $0xa] sm:$0x3] %vm1282_vm1, %v2106_v15  ;;  %v14670_v39 = vpack.c.bf16 %v2580_v63, %v2580_v63  ;;  %v2581_v27 = vcombine.high %v2579_v24, %v2579_v24  ;;  %v14678_v46 = vpack.c.bf16 %v2579_v24, %v2579_v24  ;;  %v12279_v63 = vcombine.high %v2879_v55, %v2883_v23  ;;  %v2959_v55 = vld [vmem:[#allocation16 + $0xac0] sm:$0xff] }
 0x502   :  { %1948 = vst.msk [vmem:[#allocation6 + $0x8] sm:$0x3] %vm1287_vm3, %v1946_v32  ;;  %v12414_v24 = vcombine.low %v3015_v59, %v3019_v57  ;;  %v12406_v62 = vcombine.low %v3007_v25, %v3011_v54  ;;  %v3095_v59 = vld [vmem:[#allocation16 + $0xf00] sm:$0xff] }
 0x503   :  { %5761 = vmatprep.mubr.bf16.mxu0 %v14670_v39  ;;  %v14675_v7 = vpack.c.bf16 %v2581_v27, %v2581_v27  ;;  %v12407_v27 = vcombine.high %v3007_v25, %v3011_v54  ;;  %v3099_v57 = vld [vmem:[#allocation16 + $0xf20] sm:$0xff] }
 0x504   :  { %5762 = vmatmul.mubr.bf16.vlgmr.msra.gmra.mxu0 %v14672_v5  ;;  %v2434_v60 = vpop.permute.xlu1 %2433  ;;  %v2963_v23 = vld [vmem:[#allocation16 + $0xae0] sm:$0xff] }
 0x505   :  { %v2274_v58 = vpop.permute.xlu0 %2273  ;;  %2436 = vst.msk [vmem:[#allocation6 + $0xe] sm:$0x3] %vm1282_vm1, %v2434_v60  ;;  %5802 = vmatprep.mubr.bf16.mxu1 %v14675_v7  ;;  %5812 = vmatpush1.bf16.msra.mxu0 %v12326_v20  ;;  %v3035_v20 = vld [vmem:[#allocation16 + $0xd20] sm:$0xff]  ;;  %v12359_v25 = vcombine.high %v2959_v55, %v2963_v23 }
 0x506   :  { %2276 = vst.msk [vmem:[#allocation6 + $0xc] sm:$0x3] %vm1287_vm3, %v2274_v58  ;;  %5803 = vmatmul.mubr.bf16.vlgmr.msra.gmra.mxu1 %v14678_v46  ;;  %5813 = vmatprep.subr.bf16.mxu0 %v12319_v21  ;;  %v12431_v41 = vcombine.high %v3031_v28, %v3035_v20  ;;  %v12430_v17 = vcombine.low %v3031_v28, %v3035_v20  ;;  %v3003_v21 = vld [vmem:[#allocation16 + $0xc20] sm:$0xff] }
 0x507   :  { %5853 = vmatpush1.bf16.msra.mxu1 %v12454_v49  ;;  %v2899_v49 = vld [vmem:[#allocation16 + $0x8e0] sm:$0xff]  ;;  %v12399_v10 = vcombine.high %v2999_v34, %v3003_v21  ;;  %v12398_v53 = vcombine.low %v2999_v34, %v3003_v21 }
 0x508   :  { %v2110_v29 = vpop.permute.xlu1 %2109  ;;  %5854 = vmatprep.subr.bf16.mxu1 %v12447_v44  ;;  %v12295_v18 = vcombine.high %v2895_v56, %v2899_v49  ;;  %v12294_v9 = vcombine.low %v2895_v56, %v2899_v49  ;;  %v2991_v58 = vld [vmem:[#allocation16 + $0xbc0] sm:$0xff] }
 0x509   :  { %v1970_v11 = vpop.permute.xlu0 %1969  ;;  %2112 = vst.msk [vmem:[#allocation6 + $0xa] sm:$0x3] %vm1287_vm3, %v2110_v29  ;;  %5814 = vmatpush1.bf16.msra.mxu0 %v12318_v0  ;;  %v2995_v60 = vld [vmem:[#allocation16 + $0xbe0] sm:$0xff] }
 0x50a   :  { %1972 = vst.msk [vmem:[#allocation6 + $0x8] sm:$0x3] %vm1312_vm4, %v1970_v11  ;;  %5815 = vmatprep.subr.bf16.mxu0 %v12311_v19  ;;  %v3119_v19 = vld [vmem:[#allocation16 + $0xfc0] sm:$0xff]  ;;  %v12391_v61 = vcombine.high %v2991_v58, %v2995_v60  ;;  %v12390_v20 = vcombine.low %v2991_v58, %v2995_v60 }
 0x50b   :  { %5855 = vmatpush1.bf16.msra.mxu1 %v12446_v22  ;;  %v3123_v22 = vld [vmem:[#allocation16 + $0xfe0] sm:$0xff] }
 0x50c   :  { %v2438_v48 = vpop.permute.xlu1 %2437  ;;  %5856 = vmatprep.subr.bf16.mxu1 %v12439_v33  ;;  %v2983_v11 = vld [vmem:[#allocation16 + $0xb80] sm:$0xff]  ;;  %v12519_v28 = vcombine.high %v3119_v19, %v3123_v22  ;;  %v12518_v49 = vcombine.low %v3119_v19, %v3123_v22 }
 0x50d   :  { %v2298_v50 = vpop.permute.xlu0 %2297  ;;  %2440 = vst.msk [vmem:[#allocation6 + $0xe] sm:$0x3] %vm1287_vm3, %v2438_v48  ;;  %5816 = vmatpush1.bf16.msra.mxu0 %v12310_v42  ;;  %v2987_v29 = vld [vmem:[#allocation16 + $0xba0] sm:$0xff] }
 0x50e   :  { %2300 = vst.msk [vmem:[#allocation6 + $0xc] sm:$0x3] %vm1312_vm4, %v2298_v50  ;;  %5817 = vmatprep.subr.bf16.mxu0 %v12303_v6  ;;  %v3111_v6 = vld [vmem:[#allocation16 + $0xf80] sm:$0xff]  ;;  %v12383_v56 = vcombine.high %v2983_v11, %v2987_v29  ;;  %v12382_v14 = vcombine.low %v2983_v11, %v2987_v29 }
 0x50f   :  { %5857 = vmatpush1.bf16.msra.mxu1 %v12438_v43  ;;  %v3115_v43 = vld [vmem:[#allocation16 + $0xfa0] sm:$0xff] }
 0x510   :  { %v2134_v16 = vpop.permute.xlu1 %2133  ;;  %5858 = vmatprep.subr.bf16.mxu1 %v12431_v41  ;;  %v2975_v50 = vld [vmem:[#allocation16 + $0xb40] sm:$0xff]  ;;  %v12510_v2 = vcombine.low %v3111_v6, %v3115_v43 }
 0x511   :  { %v2002_v26 = vpop.permute.xlu0 %2001  ;;  %2136 = vst.msk [vmem:[#allocation6 + $0xa] sm:$0x3] %vm1312_vm4, %v2134_v16  ;;  %5818 = vmatpush1.bf16.msra.mxu0 %v12302_v4  ;;  %v2979_v48 = vld [vmem:[#allocation16 + $0xb60] sm:$0xff]  ;;  %v12511_v4 = vcombine.high %v3111_v6, %v3115_v43 }
 0x512   :  { %2004 = vst.msk [vmem:[#allocation6 + $0x8] sm:$0x3] %vm1345_vm5, %v2002_v26  ;;  %5819 = vmatprep.subr.bf16.mxu0 %v12295_v18  ;;  %v3107_v18 = vld [vmem:[#allocation16 + $0xf60] sm:$0xff] }
 0x513   :  { %5859 = vmatpush1.bf16.msra.mxu1 %v12430_v17  ;;  %v12375_v17 = vcombine.high %v2975_v50, %v2979_v48  ;;  %v2971_v26 = vld [vmem:[#allocation16 + $0xb20] sm:$0xff] }
 0x514   :  { %v2462_v36 = vpop.permute.xlu1 %2461  ;;  %5860 = vmatprep.subr.bf16.mxu1 %v12423_v40  ;;  %v12503_v40 = vcombine.high %v3103_v51, %v3107_v18  ;;  %v2943_v21 = vld [vmem:[#allocation16 + $0xa40] sm:$0xff] }
 0x515   :  { %v2330_v8 = vpop.permute.xlu0 %2329  ;;  %2464 = vst.msk [vmem:[#allocation6 + $0xe] sm:$0x3] %vm1312_vm4, %v2462_v36  ;;  %5820 = vmatpush1.bf16.msra.mxu0 %v12294_v9  ;;  %v12374_v9 = vcombine.low %v2975_v50, %v2979_v48  ;;  %v12366_v36 = vcombine.low %v2967_v45, %v2971_v26  ;;  %v3071_v60 = vld [vmem:[#allocation16 + $0xe40] sm:$0xff] }
 0x516   :  { %2332 = vst.msk [vmem:[#allocation6 + $0xc] sm:$0x3] %vm1345_vm5, %v2330_v8  ;;  %5821 = vmatprep.subr.bf16.mxu0 %v12287_v30  ;;  %v12367_v30 = vcombine.high %v2967_v45, %v2971_v26  ;;  %v12495_v8 = vcombine.high %v3095_v59, %v3099_v57  ;;  %v2935_v19 = vld [vmem:[#allocation16 + $0xa00] sm:$0xff]  ;;  %v2668_v45 = vld [vmem:[#allocation16 + $0x1a8] sm:$0xff] }
 0x517   :  { %5861 = vmatpush1.bf16.msra.mxu1 %v12422_v3  ;;  %v12502_v3 = vcombine.low %v3103_v51, %v3107_v18  ;;  %v2939_v22 = vld [vmem:[#allocation16 + $0xa20] sm:$0xff] }
 0x518   :  { %v2166_v15 = vpop.permute.xlu1 %2165  ;;  %5862 = vmatprep.subr.bf16.mxu1 %v12415_v1  ;;  %v3087_v1 = vld [vmem:[#allocation16 + $0xec0] sm:$0xff]  ;;  %v12334_v43 = vcombine.low %v2935_v19, %v2939_v22 }
 0x519   :  { %v2034_v32 = vpop.permute.xlu0 %2033  ;;  %2168 = vst.msk [vmem:[#allocation6 + $0xa] sm:$0x3] %vm1345_vm5, %v2166_v15  ;;  %5822 = vmatpush1.bf16.msra.mxu0 %v12286_v31  ;;  %v3091_v31 = vld [vmem:[#allocation16 + $0xee0] sm:$0xff] }
 0x51a   :  { %2036 = vst.msk [vmem:[#allocation6 + $0x8] sm:$0x3] %vm1378_vm7, %v2034_v32  ;;  %5823 = vmatprep.subr.bf16.mxu0 %v12279_v63  ;;  %v12494_v63 = vcombine.low %v3095_v59, %v3099_v57  ;;  %v12487_v35 = vcombine.high %v3087_v1, %v3091_v31  ;;  %v12358_v32 = vcombine.low %v2959_v55, %v2963_v23  ;;  %v3079_v15 = vld [vmem:[#allocation16 + $0xe80] sm:$0xff]  ;;  %v2796_v59 = vld [vmem:[#allocation16 + $0x5a8] sm:$0xff] }
 0x51b   :  { %5863 = vmatpush1.bf16.msra.mxu1 %v12414_v24  ;;  %v2951_v24 = vld [vmem:[#allocation16 + $0xa80] sm:$0xff]  ;;  %v12486_v34 = vcombine.low %v3087_v1, %v3091_v31  ;;  %v2656_v23 = vld [vmem:[#allocation16 + $0x148] sm:$0xff] }
 0x51c   :  { %v2494_v0 = vpop.permute.xlu1 %2493  ;;  %5864 = vmatprep.subr.bf16.mxu1 %v12407_v27  ;;  %v3083_v27 = vld [vmem:[#allocation16 + $0xea0] sm:$0xff]  ;;  %v12350_v58 = vcombine.low %v2951_v24, %v2955_v12  ;;  %v2784_v31 = vld [vmem:[#allocation16 + $0x548] sm:$0xff] }
 0x51d   :  { %v2362_v44 = vpop.permute.xlu0 %2361  ;;  %2496 = vst.msk [vmem:[#allocation6 + $0xe] sm:$0x3] %vm1345_vm5, %v2494_v0  ;;  %5824 = vmatpush1.bf16.msra.mxu0 %v12278_v13  ;;  %v12351_v13 = vcombine.high %v2951_v24, %v2955_v12  ;;  %v3063_v11 = vld [vmem:[#allocation16 + $0xe00] sm:$0xff]  ;;  %v2648_v24 = vld [vmem:[#allocation16 + $0x108] sm:$0xff] }
 0x51e   :  { %2364 = vst.msk [vmem:[#allocation6 + $0xc] sm:$0x3] %vm1378_vm7, %v2362_v44  ;;  %5825 = vmatprep.subr.bf16.mxu0 %v12271_v37  ;;  %v2947_v37 = vld [vmem:[#allocation16 + $0xa60] sm:$0xff]  ;;  %v2652_v12 = vld [vmem:[#allocation16 + $0x128] sm:$0xff] }
 0x51f   :  { %5865 = vmatpush1.bf16.msra.mxu1 %v12406_v62  ;;  %v12479_v62 = vcombine.high %v3079_v15, %v3083_v27  ;;  %v3075_v44 = vld [vmem:[#allocation16 + $0xe60] sm:$0xff]  ;;  %v12343_v0 = vcombine.high %v2943_v21, %v2947_v37 }
 0x520   :  { %v2198_v42 = vpop.permute.xlu1 %2197  ;;  %5866 = vmatprep.subr.bf16.mxu1 %v12399_v10  ;;  %v3067_v29 = vld [vmem:[#allocation16 + $0xe20] sm:$0xff] }
 0x521   :  { %v2066_v33 = vpop.permute.xlu0 %2065  ;;  %2200 = vst.msk [vmem:[#allocation6 + $0xa] sm:$0x3] %vm1378_vm7, %v2198_v42  ;;  %5826 = vmatpush1.bf16.msra.mxu0 %v12270_v38  ;;  %v12478_v38 = vcombine.low %v3079_v15, %v3083_v27  ;;  %v12470_v42 = vcombine.low %v3071_v60, %v3075_v44  ;;  %v12463_v6 = vcombine.high %v3063_v11, %v3067_v29  ;;  %v2776_v15 = vld [vmem:[#allocation16 + $0x508] sm:$0xff] }
 0x522   :  { %2068 = vst.msk [vmem:[#allocation6 + $0x8] sm:$0x3] %vm1411_vm8, %v2066_v33  ;;  %5827 = vmatprep.subr.bf16.mxu0 %v12391_v61  ;;  %v12471_v61 = vcombine.high %v3071_v60, %v3075_v44  ;;  %v12335_v33 = vcombine.high %v2935_v19, %v2939_v22  ;;  %v12462_v48 = vcombine.low %v3063_v11, %v3067_v29  ;;  %v2780_v27 = vld [vmem:[#allocation16 + $0x528] sm:$0xff] }
 0x523   :  { %5867 = vmatpush1.bf16.msra.mxu1 %v12398_v53  ;;  %v12342_v53 = vcombine.low %v2943_v21, %v2947_v37  ;;  %v2640_v21 = vld [vmem:[#allocation16 + $0xc8] sm:$0xff] }
 0x524   :  { %v2526_v41 = vpop.permute.xlu1 %2525  ;;  %5868 = vmatprep.subr.bf16.mxu1 %v12519_v28  ;;  %v2672_v28 = vld [vmem:[#allocation16 + $0x1c8] sm:$0xff] }
 0x525   :  { %2528 = vst.msk [vmem:[#allocation6 + $0xe] sm:$0x3] %vm1378_vm7, %v2526_v41  ;;  %5828 = vmatpush2.bf16.msra.mxu0 %v12390_v20  ;;  %v2676_v20 = vld [vmem:[#allocation16 + $0x1e8] sm:$0xff] }
 0x526   :  { %5829 = vmatprep.subr.bf16.mxu0 %v12383_v56  ;;  %v2800_v56 = vld [vmem:[#allocation16 + $0x5c8] sm:$0xff]  ;;  %v12073_v50 = vcombine.high %v2672_v28, %v2676_v20 }
 0x527   :  { %5869 = vmatpush2.bf16.msra.mxu1 %v12518_v49  ;;  %v2804_v49 = vld [vmem:[#allocation16 + $0x5e8] sm:$0xff] }
 0x528   :  { %v2230_v16 = vpop.permute.xlu1 %2229  ;;  %5870 = vmatprep.subr.bf16.mxu1 %v12511_v4  ;;  %v12201_v51 = vcombine.high %v2800_v56, %v2804_v49  ;;  %v2644_v37 = vld [vmem:[#allocation16 + $0xe8] sm:$0xff] }
 0x529   :  { %2232 = vst.msk [vmem:[#allocation6 + $0xa] sm:$0x3] %vm1411_vm8, %v2230_v16  ;;  %5830 = vmatpush2.bf16.msra.mxu0 %v12382_v14  ;;  %v12072_v16 = vcombine.low %v2672_v28, %v2676_v20  ;;  %v2768_v60 = vld [vmem:[#allocation16 + $0x4c8] sm:$0xff] }
 0x52a   :  { %5831 = vmatprep.subr.bf16.mxu0 %v12375_v17  ;;  %v2772_v44 = vld [vmem:[#allocation16 + $0x4e8] sm:$0xff] }
 0x52b   :  { %5871 = vmatpush2.bf16.msra.mxu1 %v12510_v2  ;;  %v2664_v2 = vld [vmem:[#allocation16 + $0x188] sm:$0xff]  ;;  %v12169_v22 = vcombine.high %v2768_v60, %v2772_v44 }
 0x52c   :  { %5872 = vmatprep.subr.bf16.mxu1 %v12503_v40  ;;  %v12065_v55 = vcombine.high %v2664_v2, %v2668_v45  ;;  %v12064_v1 = vcombine.low %v2664_v2, %v2668_v45  ;;  %v2636_v19 = vld [vmem:[#allocation16 + $0xa8] sm:$0xff] }
 0x52d   :  { %5832 = vmatpush2.bf16.msra.mxu0 %v12374_v9  ;;  %v2792_v9 = vld [vmem:[#allocation16 + $0x588] sm:$0xff] }
 0x52e   :  { %5833 = vmatprep.subr.bf16.mxu0 %v12367_v30  ;;  %v2394_v54 = vpop.permute.xlu0 %2393  ;;  %v2764_v11 = vld [vmem:[#allocation16 + $0x4a8] sm:$0xff] }
 0x52f   :  { %5873 = vmatpush2.bf16.msra.mxu1 %v12502_v3  ;;  %2396 = vst.msk [vmem:[#allocation6 + $0xc] sm:$0x3] %vm1411_vm8, %v2394_v54  ;;  %v12200_v3 = vcombine.low %v2800_v56, %v2804_v49  ;;  %v2628_v28 = vld [vmem:[#allocation16 + $0x68] sm:$0xff] }
 0x530   :  { %5874 = vmatprep.subr.bf16.mxu1 %v12495_v8  ;;  %v2756_v56 = vld [vmem:[#allocation16 + $0x468] sm:$0xff] }
 0x531   :  { %5834 = vmatpush2.bf16.msra.mxu0 %v12366_v36  ;;  %v12193_v36 = vcombine.high %v2792_v9, %v2796_v59  ;;  %v2736_v45 = vld [vmem:[#allocation16 + $0x3c8] sm:$0xff] }
 0x532   :  { %5835 = vmatprep.subr.bf16.mxu0 %v12359_v25  ;;  %v2788_v25 = vld [vmem:[#allocation16 + $0x568] sm:$0xff] }
 0x533   :  { %5875 = vmatpush2.bf16.msra.mxu1 %v12494_v63  ;;  %v12192_v63 = vcombine.low %v2792_v9, %v2796_v59  ;;  %v2864_v59 = vld [vmem:[#allocation16 + $0x7c8] sm:$0xff] }
 0x534   :  { %5876 = vmatprep.subr.bf16.mxu1 %v12487_v35  ;;  %v12185_v35 = vcombine.high %v2784_v31, %v2788_v25 }
 0x535   :  { %5836 = vmatpush2.bf16.msra.mxu0 %v12358_v32 }
 0x536   :  { %5837 = vmatprep.subr.bf16.mxu0 %v12351_v13  ;;  %v2558_v10 = vpop.permute.xlu1 %2557  ;;  %v12049_v13 = vcombine.high %v2648_v24, %v2652_v12 }
 0x537   :  { %5877 = vmatpush2.bf16.msra.mxu1 %v12486_v34  ;;  %2560 = vst.msk [vmem:[#allocation6 + $0xe] sm:$0x3] %vm1411_vm8, %v2558_v10  ;;  %v12184_v34 = vcombine.low %v2784_v31, %v2788_v25  ;;  %v12176_v10 = vcombine.low %v2776_v15, %v2780_v27  ;;  %v2856_v25 = vld [vmem:[#allocation16 + $0x788] sm:$0xff] }
 0x538   :  { %5878 = vmatprep.subr.bf16.mxu1 %v12479_v62  ;;  %v12177_v62 = vcombine.high %v2776_v15, %v2780_v27  ;;  %v2848_v27 = vld [vmem:[#allocation16 + $0x748] sm:$0xff] }
 0x539   :  { %5838 = vmatpush2.bf16.msra.mxu0 %v12350_v58  ;;  %v12048_v58 = vcombine.low %v2648_v24, %v2652_v12  ;;  %v2720_v12 = vld [vmem:[#allocation16 + $0x348] sm:$0xff] }
 0x53a   :  { %5839 = vmatprep.subr.bf16.mxu0 %v12343_v0  ;;  %v12041_v0 = vcombine.high %v2640_v21, %v2644_v37 }
 0x53b   :  { %5879 = vmatpush2.bf16.msra.mxu1 %v12478_v38  ;;  %v2632_v38 = vld [vmem:[#allocation16 + $0x88] sm:$0xff] }
 0x53c   :  { %5880 = vmatprep.subr.bf16.mxu1 %v12471_v61  ;;  %v12040_v61 = vcombine.low %v2640_v21, %v2644_v37  ;;  %v12033_v29 = vcombine.high %v2632_v38, %v2636_v19  ;;  %v2712_v37 = vld [vmem:[#allocation16 + $0x308] sm:$0xff] }
 0x53d   :  { %5840 = vmatpush2.bf16.msra.mxu0 %v12342_v53  ;;  %v2760_v53 = vld [vmem:[#allocation16 + $0x488] sm:$0xff] }
 0x53e   :  { %5841 = vmatprep.subr.bf16.mxu0 %v12335_v33  ;;  %v2562_v41 = vld [vmem:[#allocation6 + $0x8] sm:$0xff]  ;;  %v12168_v33 = vcombine.low %v2768_v60, %v2772_v44  ;;  %v12161_v20 = vcombine.high %v2760_v53, %v2764_v11 }
 0x53f   :  { %5881 = vmatpush2.bf16.msra.mxu1 %v12470_v42  ;;  %v2589_v4 = vrot.slane %v2562_v41, %v14662_v52  ;;  %v2582_v14 = vcombine.high %v2562_v41, %v2562_v41  ;;  %v2624_v42 = vld [vmem:[#allocation16 + $0x48] sm:$0xff] }
 0x540   :  { %5882 = vmatprep.subr.bf16.mxu1 %v12463_v6  ;;  %v12032_v6 = vcombine.low %v2632_v38, %v2636_v19  ;;  %v12025_v49 = vcombine.high %v2624_v42, %v2628_v28  ;;  %v2620_v41 = vld [vmem:[#allocation16 + $0x28] sm:$0xff] }
 0x541   :  { %5842 = vmatpush2.bf16.msra.mxu0 %v12334_v43  ;;  %v2597_v18 = vcombine.high %v2589_v4, %v2589_v4  ;;  %v2596_v17 = vrot.slane %v2582_v14, %v14662_v52  ;;  %v14712_v57 = vpack.c.bf16 %v2589_v4, %v2589_v4  ;;  %v2660_v52 = vld [vmem:[#allocation16 + $0x168] sm:$0xff]  ;;  %v12024_v14 = vcombine.low %v2624_v42, %v2628_v28 }
 0x542   :  { %5893 = vmatprep.subr.bf16.mxu0 %v12073_v50  ;;  %v12057_v54 = vcombine.high %v2656_v23, %v2660_v52  ;;  %v12056_v32 = vcombine.low %v2656_v23, %v2660_v52  ;;  %v2752_v43 = vld [vmem:[#allocation16 + $0x448] sm:$0xff]  ;;  %v12160_v50 = vcombine.low %v2760_v53, %v2764_v11 }
 0x543   :  { %5883 = vmatpush2.bf16.msra.mxu1 %v12462_v48  ;;  %v14710_v26 = vpack.c.bf16 %v2597_v18, %v2597_v18  ;;  %v2598_v40 = vcombine.high %v2596_v17, %v2596_v17  ;;  %v14718_v8 = vpack.c.bf16 %v2596_v17, %v2596_v17  ;;  %v2616_v48 = vld [vmem:[#allocation16 + $0x8] sm:$0xff]  ;;  %v12153_v4 = vcombine.high %v2752_v43, %v2756_v56 }
 0x544   :  { %5934 = vmatprep.subr.bf16.mxu1 %v12201_v51  ;;  %v2744_v51 = vld [vmem:[#allocation16 + $0x408] sm:$0xff]  ;;  %v12017_v17 = vcombine.high %v2616_v48, %v2620_v41  ;;  %v12152_v2 = vcombine.low %v2752_v43, %v2756_v56  ;;  %v12016_v9 = vcombine.low %v2616_v48, %v2620_v41 }
 0x545   :  { %5843 = vmatprep.mubr.bf16.mxu0 %v14710_v26  ;;  %v14715_v30 = vpack.c.bf16 %v2598_v40, %v2598_v40  ;;  %v2748_v18 = vld [vmem:[#allocation16 + $0x428] sm:$0xff] }
 0x546   :  { %5844 = vmatmul.mubr.bf16.vlgmr.msra.gmra.mxu0 %v14712_v57  ;;  %v12145_v40 = vcombine.high %v2744_v51, %v2748_v18  ;;  %v12144_v23 = vcombine.low %v2744_v51, %v2748_v18  ;;  %v2728_v52 = vld [vmem:[#allocation16 + $0x388] sm:$0xff] }
 0x547   :  { %5894 = vmatpush1.bf16.msra.mxu0 %v12072_v16  ;;  %5884 = vmatprep.mubr.bf16.mxu1 %v14715_v30  ;;  %v2740_v16 = vld [vmem:[#allocation16 + $0x3e8] sm:$0xff] }
 0x548   :  { %5925 = vmatprep.mubr.bf16.mxu0 %v14670_v39  ;;  %5885 = vmatmul.mubr.bf16.vlgmr.msra.gmra.mxu1 %v14718_v8  ;;  %v12136_v31 = vcombine.low %v2736_v45, %v2740_v16  ;;  %v2840_v44 = vld [vmem:[#allocation16 + $0x708] sm:$0xff] }
 0x549   :  { %5935 = vmatpush1.bf16.msra.mxu1 %v12200_v3  ;;  %5895 = vmatprep.subr.bf16.mxu0 %v12065_v55  ;;  %v2868_v3 = vld [vmem:[#allocation16 + $0x7e8] sm:$0xff]  ;;  %v12137_v55 = vcombine.high %v2736_v45, %v2740_v16 }
 0x54a   :  { %5966 = vmatprep.mubr.bf16.mxu1 %v14675_v7  ;;  %5936 = vmatprep.subr.bf16.mxu1 %v12193_v36  ;;  %v2732_v36 = vld [vmem:[#allocation16 + $0x3a8] sm:$0xff]  ;;  %v12264_v24 = vcombine.low %v2864_v59, %v2868_v3 }
 0x54b   :  { %5896 = vmatpush1.bf16.msra.mxu0 %v12064_v1  ;;  %v12265_v1 = vcombine.high %v2864_v59, %v2868_v3  ;;  %v12128_v15 = vcombine.low %v2728_v52, %v2732_v36  ;;  %v2704_v19 = vld [vmem:[#allocation16 + $0x2c8] sm:$0xff] }
 0x54c   :  { %5897 = vmatprep.subr.bf16.mxu0 %v12057_v54  ;;  %v2860_v54 = vld [vmem:[#allocation16 + $0x7a8] sm:$0xff] }
 0x54d   :  { %5937 = vmatpush1.bf16.msra.mxu1 %v12192_v63  ;;  %v12129_v63 = vcombine.high %v2728_v52, %v2732_v36  ;;  %v12256_v21 = vcombine.low %v2856_v25, %v2860_v54  ;;  %v2832_v11 = vld [vmem:[#allocation16 + $0x6c8] sm:$0xff] }
 0x54e   :  { %5938 = vmatprep.subr.bf16.mxu1 %v12185_v35  ;;  %v2724_v35 = vld [vmem:[#allocation16 + $0x368] sm:$0xff] }
 0x54f   :  { %5898 = vmatpush1.bf16.msra.mxu0 %v12056_v32  ;;  %v12257_v32 = vcombine.high %v2856_v25, %v2860_v54  ;;  %v12120_v60 = vcombine.low %v2720_v12, %v2724_v35  ;;  %v2696_v28 = vld [vmem:[#allocation16 + $0x288] sm:$0xff] }
 0x550   :  { %5899 = vmatprep.subr.bf16.mxu0 %v12049_v13  ;;  %v2852_v13 = vld [vmem:[#allocation16 + $0x768] sm:$0xff] }
 0x551   :  { %5939 = vmatpush1.bf16.msra.mxu1 %v12184_v34  ;;  %v12121_v34 = vcombine.high %v2720_v12, %v2724_v35  ;;  %v12248_v38 = vcombine.low %v2848_v27, %v2852_v13  ;;  %v2824_v56 = vld [vmem:[#allocation16 + $0x688] sm:$0xff] }
 0x552   :  { %5940 = vmatprep.subr.bf16.mxu1 %v12177_v62  ;;  %v2716_v62 = vld [vmem:[#allocation16 + $0x328] sm:$0xff] }
 0x553   :  { %5900 = vmatpush1.bf16.msra.mxu0 %v12048_v58  ;;  %v12249_v58 = vcombine.high %v2848_v27, %v2852_v13  ;;  %v12112_v53 = vcombine.low %v2712_v37, %v2716_v62  ;;  %v2688_v41 = vld [vmem:[#allocation16 + $0x248] sm:$0xff] }
 0x554   :  { %5901 = vmatprep.subr.bf16.mxu0 %v12041_v0  ;;  %v2844_v0 = vld [vmem:[#allocation16 + $0x728] sm:$0xff] }
 0x555   :  { %5941 = vmatpush1.bf16.msra.mxu1 %v12176_v10  ;;  %v12113_v10 = vcombine.high %v2712_v37, %v2716_v62  ;;  %v12240_v42 = vcombine.low %v2840_v44, %v2844_v0  ;;  %v2816_v18 = vld [vmem:[#allocation16 + $0x648] sm:$0xff] }
 0x556   :  { %5942 = vmatprep.subr.bf16.mxu1 %v12169_v22  ;;  %v2708_v22 = vld [vmem:[#allocation16 + $0x2e8] sm:$0xff] }
 0x557   :  { %5902 = vmatpush1.bf16.msra.mxu0 %v12040_v61  ;;  %v12241_v61 = vcombine.high %v2840_v44, %v2844_v0  ;;  %v12104_v43 = vcombine.low %v2704_v19, %v2708_v22  ;;  %v2680_v16 = vld [vmem:[#allocation16 + $0x208] sm:$0xff] }
 0x558   :  { %5903 = vmatprep.subr.bf16.mxu0 %v12033_v29  ;;  %v2836_v29 = vld [vmem:[#allocation16 + $0x6e8] sm:$0xff] }
 0x559   :  { %5943 = vmatpush1.bf16.msra.mxu1 %v12168_v33  ;;  %v12105_v33 = vcombine.high %v2704_v19, %v2708_v22  ;;  %v12232_v48 = vcombine.low %v2832_v11, %v2836_v29  ;;  %v2808_v3 = vld [vmem:[#allocation16 + $0x608] sm:$0xff] }
 0x55a   :  { %5944 = vmatprep.subr.bf16.mxu1 %v12161_v20  ;;  %v2700_v20 = vld [vmem:[#allocation16 + $0x2a8] sm:$0xff] }
 0x55b   :  { %5904 = vmatpush1.bf16.msra.mxu0 %v12032_v6  ;;  %v12233_v6 = vcombine.high %v2832_v11, %v2836_v29  ;;  %v12096_v51 = vcombine.low %v2696_v28, %v2700_v20  ;;  %v2928_v36 = vld [vmem:[#allocation16 + $0x9c8] sm:$0xff] }
 0x55c   :  { %5905 = vmatprep.subr.bf16.mxu0 %v12025_v49  ;;  %v2828_v49 = vld [vmem:[#allocation16 + $0x6a8] sm:$0xff] }
 0x55d   :  { %5945 = vmatpush1.bf16.msra.mxu1 %v12160_v50  ;;  %v12097_v50 = vcombine.high %v2696_v28, %v2700_v20  ;;  %v12224_v45 = vcombine.low %v2824_v56, %v2828_v49  ;;  %v3056_v54 = vld [vmem:[#allocation16 + $0xdc8] sm:$0xff] }
 0x55e   :  { %5946 = vmatprep.subr.bf16.mxu1 %v12153_v4  ;;  %v2692_v4 = vld [vmem:[#allocation16 + $0x268] sm:$0xff] }
 0x55f   :  { %5906 = vmatpush1.bf16.msra.mxu0 %v12024_v14  ;;  %v12225_v14 = vcombine.high %v2824_v56, %v2828_v49  ;;  %v12088_v59 = vcombine.low %v2688_v41, %v2692_v4  ;;  %v2920_v35 = vld [vmem:[#allocation16 + $0x988] sm:$0xff] }
 0x560   :  { %5907 = vmatprep.subr.bf16.mxu0 %v12017_v17  ;;  %v2820_v17 = vld [vmem:[#allocation16 + $0x668] sm:$0xff] }
 0x561   :  { %5947 = vmatpush1.bf16.msra.mxu1 %v12152_v2  ;;  %v12089_v2 = vcombine.high %v2688_v41, %v2692_v4  ;;  %v12216_v52 = vcombine.low %v2816_v18, %v2820_v17  ;;  %v3048_v13 = vld [vmem:[#allocation16 + $0xd88] sm:$0xff] }
 0x562   :  { %5948 = vmatprep.subr.bf16.mxu1 %v12145_v40  ;;  %v2684_v40 = vld [vmem:[#allocation16 + $0x228] sm:$0xff] }
 0x563   :  { %5908 = vmatpush1.bf16.msra.mxu0 %v12016_v9  ;;  %v12217_v9 = vcombine.high %v2816_v18, %v2820_v17  ;;  %v12080_v25 = vcombine.low %v2680_v16, %v2684_v40  ;;  %v2912_v62 = vld [vmem:[#allocation16 + $0x948] sm:$0xff] }
 0x564   :  { %5909 = vmatprep.subr.bf16.mxu0 %v12137_v55  ;;  %v2812_v55 = vld [vmem:[#allocation16 + $0x628] sm:$0xff] }
 0x565   :  { %5949 = vmatpush1.bf16.msra.mxu1 %v12144_v23  ;;  %v12081_v23 = vcombine.high %v2680_v16, %v2684_v40  ;;  %v12208_v12 = vcombine.low %v2808_v3, %v2812_v55  ;;  %v3040_v0 = vld [vmem:[#allocation16 + $0xd48] sm:$0xff] }
 0x566   :  { %5950 = vmatprep.subr.bf16.mxu1 %v12265_v1  ;;  %v2932_v1 = vld [vmem:[#allocation16 + $0x9e8] sm:$0xff] }
 0x567   :  { %5910 = vmatpush2.bf16.msra.mxu0 %v12136_v31  ;;  %v12209_v31 = vcombine.high %v2808_v3, %v2812_v55  ;;  %v12328_v27 = vcombine.low %v2928_v36, %v2932_v1  ;;  %v2904_v22 = vld [vmem:[#allocation16 + $0x908] sm:$0xff] }
 0x568   :  { %5911 = vmatprep.subr.bf16.mxu0 %v12129_v63  ;;  %v3060_v63 = vld [vmem:[#allocation16 + $0xde8] sm:$0xff] }
 0x569   :  { %5951 = vmatpush2.bf16.msra.mxu1 %v12264_v24  ;;  %v12329_v24 = vcombine.high %v2928_v36, %v2932_v1  ;;  %v12456_v37 = vcombine.low %v3056_v54, %v3060_v63  ;;  %v3032_v29 = vld [vmem:[#allocation16 + $0xd08] sm:$0xff] }
 0x56a   :  { %5952 = vmatprep.subr.bf16.mxu1 %v12257_v32  ;;  %v2924_v32 = vld [vmem:[#allocation16 + $0x9a8] sm:$0xff] }
 0x56b   :  { %5912 = vmatpush2.bf16.msra.mxu0 %v12128_v15  ;;  %v12457_v15 = vcombine.high %v3056_v54, %v3060_v63  ;;  %v12320_v44 = vcombine.low %v2920_v35, %v2924_v32  ;;  %v2896_v20 = vld [vmem:[#allocation16 + $0x8c8] sm:$0xff] }
 0x56c   :  { %5913 = vmatprep.subr.bf16.mxu0 %v12121_v34  ;;  %v3052_v34 = vld [vmem:[#allocation16 + $0xda8] sm:$0xff] }
 0x56d   :  { %5953 = vmatpush2.bf16.msra.mxu1 %v12256_v21  ;;  %v12321_v21 = vcombine.high %v2920_v35, %v2924_v32  ;;  %v12448_v19 = vcombine.low %v3048_v13, %v3052_v34  ;;  %v3024_v49 = vld [vmem:[#allocation16 + $0xcc8] sm:$0xff] }
 0x56e   :  { %5954 = vmatprep.subr.bf16.mxu1 %v12249_v58  ;;  %v2916_v58 = vld [vmem:[#allocation16 + $0x968] sm:$0xff] }
 0x56f   :  { %5914 = vmatpush2.bf16.msra.mxu0 %v12120_v60  ;;  %v12449_v60 = vcombine.high %v3048_v13, %v3052_v34  ;;  %v12312_v11 = vcombine.low %v2912_v62, %v2916_v58  ;;  %v2888_v4 = vld [vmem:[#allocation16 + $0x888] sm:$0xff] }
 0x570   :  { %5915 = vmatprep.subr.bf16.mxu0 %v12113_v10  ;;  %v3044_v10 = vld [vmem:[#allocation16 + $0xd68] sm:$0xff] }
 0x571   :  { %5955 = vmatpush2.bf16.msra.mxu1 %v12248_v38  ;;  %v12313_v38 = vcombine.high %v2912_v62, %v2916_v58  ;;  %v12440_v28 = vcombine.low %v3040_v0, %v3044_v10  ;;  %v3016_v17 = vld [vmem:[#allocation16 + $0xc88] sm:$0xff] }
 0x572   :  { %5956 = vmatprep.subr.bf16.mxu1 %v12241_v61  ;;  %v2908_v61 = vld [vmem:[#allocation16 + $0x928] sm:$0xff] }
 0x573   :  { %5916 = vmatpush2.bf16.msra.mxu0 %v12112_v53  ;;  %v12441_v53 = vcombine.high %v3040_v0, %v3044_v10  ;;  %v12304_v56 = vcombine.low %v2904_v22, %v2908_v61  ;;  %v2880_v40 = vld [vmem:[#allocation16 + $0x848] sm:$0xff] }
 0x574   :  { %5917 = vmatprep.subr.bf16.mxu0 %v12105_v33  ;;  %v3036_v33 = vld [vmem:[#allocation16 + $0xd28] sm:$0xff] }
 0x575   :  { %5957 = vmatpush2.bf16.msra.mxu1 %v12240_v42  ;;  %v12305_v42 = vcombine.high %v2904_v22, %v2908_v61  ;;  %v12432_v41 = vcombine.low %v3032_v29, %v3036_v33  ;;  %v3008_v55 = vld [vmem:[#allocation16 + $0xc48] sm:$0xff] }
 0x576   :  { %5958 = vmatprep.subr.bf16.mxu1 %v12233_v6  ;;  %v2900_v6 = vld [vmem:[#allocation16 + $0x8e8] sm:$0xff] }
 0x577   :  { %5918 = vmatpush2.bf16.msra.mxu0 %v12104_v43  ;;  %v12433_v43 = vcombine.high %v3032_v29, %v3036_v33  ;;  %v12296_v18 = vcombine.low %v2896_v20, %v2900_v6  ;;  %v2872_v1 = vld [vmem:[#allocation16 + $0x808] sm:$0xff] }
 0x578   :  { %5919 = vmatprep.subr.bf16.mxu0 %v12097_v50  ;;  %v3028_v50 = vld [vmem:[#allocation16 + $0xce8] sm:$0xff] }
 0x579   :  { %5959 = vmatpush2.bf16.msra.mxu1 %v12232_v48  ;;  %v12297_v48 = vcombine.high %v2896_v20, %v2900_v6  ;;  %v12424_v16 = vcombine.low %v3024_v49, %v3028_v50  ;;  %v3000_v63 = vld [vmem:[#allocation16 + $0xc08] sm:$0xff] }
 0x57a   :  { %5960 = vmatprep.subr.bf16.mxu1 %v12225_v14  ;;  %v2892_v14 = vld [vmem:[#allocation16 + $0x8a8] sm:$0xff] }
 0x57b   :  { %5920 = vmatpush2.bf16.msra.mxu0 %v12096_v51  ;;  %v12425_v51 = vcombine.high %v3024_v49, %v3028_v50  ;;  %v12288_v3 = vcombine.low %v2888_v4, %v2892_v14  ;;  %v2992_v32 = vld [vmem:[#allocation16 + $0xbc8] sm:$0xff] }
 0x57c   :  { %5921 = vmatprep.subr.bf16.mxu0 %v12089_v2  ;;  %v3020_v2 = vld [vmem:[#allocation16 + $0xca8] sm:$0xff] }
 0x57d   :  { %5961 = vmatpush2.bf16.msra.mxu1 %v12224_v45  ;;  %v12289_v45 = vcombine.high %v2888_v4, %v2892_v14  ;;  %v12416_v36 = vcombine.low %v3016_v17, %v3020_v2  ;;  %v3120_v34 = vld [vmem:[#allocation16 + $0xfc8] sm:$0xff] }
 0x57e   :  { %5962 = vmatprep.subr.bf16.mxu1 %v12217_v9  ;;  %v2884_v9 = vld [vmem:[#allocation16 + $0x868] sm:$0xff] }
 0x57f   :  { %5922 = vmatpush2.bf16.msra.mxu0 %v12088_v59  ;;  %v12417_v59 = vcombine.high %v3016_v17, %v3020_v2  ;;  %v12280_v54 = vcombine.low %v2880_v40, %v2884_v9  ;;  %v2984_v58 = vld [vmem:[#allocation16 + $0xb88] sm:$0xff] }
 0x580   :  { %5923 = vmatprep.subr.bf16.mxu0 %v12081_v23  ;;  %v3012_v23 = vld [vmem:[#allocation16 + $0xc68] sm:$0xff] }
 0x581   :  { %5963 = vmatpush2.bf16.msra.mxu1 %v12216_v52  ;;  %v12281_v52 = vcombine.high %v2880_v40, %v2884_v9  ;;  %v12408_v35 = vcombine.low %v3008_v55, %v3012_v23  ;;  %v3112_v10 = vld [vmem:[#allocation16 + $0xf88] sm:$0xff] }
 0x582   :  { %5964 = vmatprep.subr.bf16.mxu1 %v12209_v31  ;;  %v2876_v31 = vld [vmem:[#allocation16 + $0x828] sm:$0xff] }
 0x583   :  { %5924 = vmatpush2.bf16.msra.mxu0 %v12080_v25  ;;  %v12409_v25 = vcombine.high %v3008_v55, %v3012_v23  ;;  %v12272_v13 = vcombine.low %v2872_v1, %v2876_v31  ;;  %v2976_v61 = vld [vmem:[#allocation16 + $0xb48] sm:$0xff] }
 0x584   :  { %5975 = vmatprep.subr.bf16.mxu0 %v12329_v24  ;;  %v3004_v24 = vld [vmem:[#allocation16 + $0xc28] sm:$0xff] }
 0x585   :  { %5965 = vmatpush2.bf16.msra.mxu1 %v12208_v12  ;;  %v12273_v12 = vcombine.high %v2872_v1, %v2876_v31  ;;  %v12400_v62 = vcombine.low %v3000_v63, %v3004_v24  ;;  %v3104_v33 = vld [vmem:[#allocation16 + $0xf48] sm:$0xff] }
 0x586   :  { %5926 = vmatmul.mubr.bf16.vlgmr.msra.gmra.mxu0 %v14672_v5  ;;  %6016 = vmatprep.subr.bf16.mxu1 %v12457_v15  ;;  %v2996_v15 = vld [vmem:[#allocation16 + $0xbe8] sm:$0xff] }
 0x587   :  { %5976 = vmatpush1.bf16.msra.mxu0 %v12328_v27  ;;  %6007 = vmatprep.mubr.bf16.mxu0 %v14710_v26  ;;  %v12401_v27 = vcombine.high %v3000_v63, %v3004_v24  ;;  %v12392_v0 = vcombine.low %v2992_v32, %v2996_v15  ;;  %v2968_v6 = vld [vmem:[#allocation16 + $0xb08] sm:$0xff] }
 0x588   :  { %5967 = vmatmul.mubr.bf16.vlgmr.msra.gmra.mxu1 %v14678_v46  ;;  %5977 = vmatprep.subr.bf16.mxu0 %v12321_v21  ;;  %v3124_v21 = vld [vmem:[#allocation16 + $0xfe8] sm:$0xff] }
 0x589   :  { %6017 = vmatpush1.bf16.msra.mxu1 %v12456_v37  ;;  %6048 = vmatprep.mubr.bf16.mxu1 %v14715_v30  ;;  %v12393_v37 = vcombine.high %v2992_v32, %v2996_v15  ;;  %v12520_v22 = vcombine.low %v3120_v34, %v3124_v21  ;;  %v3096_v50 = vld [vmem:[#allocation16 + $0xf08] sm:$0xff] }
 0x58a   :  { %6018 = vmatprep.subr.bf16.mxu1 %v12449_v60  ;;  %v2988_v60 = vld [vmem:[#allocation16 + $0xba8] sm:$0xff] }
 0x58b   :  { %5978 = vmatpush1.bf16.msra.mxu0 %v12320_v44  ;;  %v12521_v44 = vcombine.high %v3120_v34, %v3124_v21  ;;  %v12384_v29 = vcombine.low %v2984_v58, %v2988_v60  ;;  %v2960_v14 = vld [vmem:[#allocation16 + $0xac8] sm:$0xff] }
 0x58c   :  { %5979 = vmatprep.subr.bf16.mxu0 %v12313_v38  ;;  %v3116_v38 = vld [vmem:[#allocation16 + $0xfa8] sm:$0xff] }
 0x58d   :  { %6019 = vmatpush1.bf16.msra.mxu1 %v12448_v19  ;;  %v12385_v19 = vcombine.high %v2984_v58, %v2988_v60  ;;  %v12512_v20 = vcombine.low %v3112_v10, %v3116_v38  ;;  %v3088_v2 = vld [vmem:[#allocation16 + $0xec8] sm:$0xff]  ;;  %v14728_v60 = vld [vmem:[#allocation18] sm:$0xff] }
 0x58e   :  { %6020 = vmatprep.subr.bf16.mxu1 %v12441_v53  ;;  %v2980_v53 = vld [vmem:[#allocation16 + $0xb68] sm:$0xff] }
 0x58f   :  { %5980 = vmatpush1.bf16.msra.mxu0 %v12312_v11  ;;  %v12513_v11 = vcombine.high %v3112_v10, %v3116_v38  ;;  %v12376_v49 = vcombine.low %v2976_v61, %v2980_v53  ;;  %v2952_v9 = vld [vmem:[#allocation16 + $0xa88] sm:$0xff] }
 0x590   :  { %5981 = vmatprep.subr.bf16.mxu0 %v12305_v42  ;;  %v3108_v42 = vld [vmem:[#allocation16 + $0xf68] sm:$0xff] }
 0x591   :  { %6021 = vmatpush1.bf16.msra.mxu1 %v12440_v28  ;;  %v12377_v28 = vcombine.high %v2976_v61, %v2980_v53  ;;  %v12504_v4 = vcombine.low %v3104_v33, %v3108_v42  ;;  %v3080_v23 = vld [vmem:[#allocation16 + $0xe88] sm:$0xff]  ;;  %v15866_v61 = vld [vmem:[#allocation37_spill] sm:$0xff] }
 0x592   :  { %6022 = vmatprep.subr.bf16.mxu1 %v12433_v43  ;;  %v2972_v43 = vld [vmem:[#allocation16 + $0xb28] sm:$0xff]  ;;  %v3132_v53 = vrot.slane %v14728_v60, %v15866_v61 }
 0x593   :  { %5982 = vmatpush1.bf16.msra.mxu0 %v12304_v56  ;;  %v12505_v56 = vcombine.high %v3104_v33, %v3108_v42  ;;  %v12368_v17 = vcombine.low %v2968_v6, %v2972_v43  ;;  %v2944_v31 = vld [vmem:[#allocation16 + $0xa48] sm:$0xff]  ;;  %v2665_v33 = vld [vmem:[#allocation16 + $0x190] sm:$0xff] }
 0x594   :  { %5983 = vmatprep.subr.bf16.mxu0 %v12297_v48  ;;  %v3100_v48 = vld [vmem:[#allocation16 + $0xf28] sm:$0xff]  ;;  %v2669_v42 = vld [vmem:[#allocation16 + $0x1b0] sm:$0xff] }
 0x595   :  { %6023 = vmatpush1.bf16.msra.mxu1 %v12432_v41  ;;  %v12369_v41 = vcombine.high %v2968_v6, %v2972_v43  ;;  %v12496_v40 = vcombine.low %v3096_v50, %v3100_v48  ;;  %v3072_v24 = vld [vmem:[#allocation16 + $0xe48] sm:$0xff] }
 0x596   :  { %6024 = vmatprep.subr.bf16.mxu1 %v12425_v51  ;;  %v2964_v51 = vld [vmem:[#allocation16 + $0xae8] sm:$0xff] }
 0x597   :  { %5984 = vmatpush1.bf16.msra.mxu0 %v12296_v18  ;;  %v12497_v18 = vcombine.high %v3096_v50, %v3100_v48  ;;  %v12360_v55 = vcombine.low %v2960_v14, %v2964_v51  ;;  %v2936_v15 = vld [vmem:[#allocation16 + $0xa08] sm:$0xff]  ;;  %v2797_v50 = vld [vmem:[#allocation16 + $0x5b0] sm:$0xff] }
 0x598   :  { %5985 = vmatprep.subr.bf16.mxu0 %v12289_v45  ;;  %v3092_v45 = vld [vmem:[#allocation16 + $0xee8] sm:$0xff] }
 0x599   :  { %6025 = vmatpush1.bf16.msra.mxu1 %v12424_v16  ;;  %v12361_v16 = vcombine.high %v2960_v14, %v2964_v51  ;;  %v12488_v1 = vcombine.low %v3088_v2, %v3092_v45  ;;  %v3064_v21 = vld [vmem:[#allocation16 + $0xe08] sm:$0xff] }
 0x59a   :  { %6026 = vmatprep.subr.bf16.mxu1 %v12417_v59  ;;  %v2956_v59 = vld [vmem:[#allocation16 + $0xaa8] sm:$0xff] }
 0x59b   :  { %5986 = vmatpush1.bf16.msra.mxu0 %v12288_v3  ;;  %v12489_v3 = vcombine.high %v3088_v2, %v3092_v45  ;;  %v12352_v63 = vcombine.low %v2952_v9, %v2956_v59 }
 0x59c   :  { %5987 = vmatprep.subr.bf16.mxu0 %v12281_v52  ;;  %v3084_v52 = vld [vmem:[#allocation16 + $0xea8] sm:$0xff] }
 0x59d   :  { %6027 = vmatpush1.bf16.msra.mxu1 %v12416_v36  ;;  %v12353_v36 = vcombine.high %v2952_v9, %v2956_v59  ;;  %v12480_v32 = vcombine.low %v3080_v23, %v3084_v52  ;;  %v12066_v59 = vcombine.low %v2665_v33, %v2669_v42 }
 0x59e   :  { %6028 = vmatprep.subr.bf16.mxu1 %v12409_v25  ;;  %v2948_v25 = vld [vmem:[#allocation16 + $0xa68] sm:$0xff] }
 0x59f   :  { %5988 = vmatpush1.bf16.msra.mxu0 %v12280_v54  ;;  %v12481_v54 = vcombine.high %v3080_v23, %v3084_v52  ;;  %v12344_v34 = vcombine.low %v2944_v31, %v2948_v25 }
 0x5a0   :  { %5989 = vmatprep.subr.bf16.mxu0 %v12273_v12  ;;  %v3076_v12 = vld [vmem:[#allocation16 + $0xe68] sm:$0xff] }
 0x5a1   :  { %6029 = vmatpush1.bf16.msra.mxu1 %v12408_v35  ;;  %v12345_v35 = vcombine.high %v2944_v31, %v2948_v25  ;;  %v12472_v58 = vcombine.low %v3072_v24, %v3076_v12  ;;  %v2649_v25 = vld [vmem:[#allocation16 + $0x110] sm:$0xff] }
 0x5a2   :  { %6030 = vmatprep.subr.bf16.mxu1 %v12401_v27  ;;  %v2940_v27 = vld [vmem:[#allocation16 + $0xa28] sm:$0xff] }
 0x5a3   :  { %5990 = vmatpush1.bf16.msra.mxu0 %v12272_v13  ;;  %v12473_v13 = vcombine.high %v3072_v24, %v3076_v12  ;;  %v12336_v38 = vcombine.low %v2936_v15, %v2940_v27 }
 0x5a4   :  { %5991 = vmatprep.subr.bf16.mxu0 %v12393_v37  ;;  %v3068_v37 = vld [vmem:[#allocation16 + $0xe28] sm:$0xff] }
 0x5a5   :  { %6031 = vmatpush1.bf16.msra.mxu1 %v12400_v62  ;;  %v12337_v62 = vcombine.high %v2936_v15, %v2940_v27  ;;  %v12465_v10 = vcombine.high %v3064_v21, %v3068_v37 }
 0x5a6   :  { %6032 = vmatprep.subr.bf16.mxu1 %v12521_v44  ;;  %v2673_v44 = vld [vmem:[#allocation16 + $0x1d0] sm:$0xff] }
 0x5a7   :  { %5992 = vmatpush2.bf16.msra.mxu0 %v12392_v0  ;;  %v2677_v0 = vld [vmem:[#allocation16 + $0x1f0] sm:$0xff] }
 0x5a8   :  { %5993 = vmatprep.subr.bf16.mxu0 %v12385_v19  ;;  %v2801_v19 = vld [vmem:[#allocation16 + $0x5d0] sm:$0xff] }
 0x5a9   :  { %6033 = vmatpush2.bf16.msra.mxu1 %v12520_v22  ;;  %v2805_v22 = vld [vmem:[#allocation16 + $0x5f0] sm:$0xff] }
 0x5aa   :  { %6034 = vmatprep.subr.bf16.mxu1 %v12513_v11  ;;  %v12075_v11 = vcombine.high %v2673_v44, %v2677_v0  ;;  %v12203_v6 = vcombine.high %v2801_v19, %v2805_v22  ;;  %v12202_v51 = vcombine.low %v2801_v19, %v2805_v22 }
 0x5ab   :  { %5994 = vmatpush2.bf16.msra.mxu0 %v12384_v29  ;;  %v12464_v29 = vcombine.low %v3064_v21, %v3068_v37 }
 0x5ac   :  { %5995 = vmatprep.subr.bf16.mxu0 %v12377_v28  ;;  %v15867_v28 = vld [vmem:[#allocation38_spill] sm:$0xff] }
 0x5ad   :  { %6035 = vmatpush2.bf16.msra.mxu1 %v12512_v20  ;;  %v3136_v20 = vrot.slane %v14728_v60, %v15867_v28 }
 0x5ae   :  { %6036 = vmatprep.subr.bf16.mxu1 %v12505_v56  ;;  %v12074_v56 = vcombine.low %v2673_v44, %v2677_v0 }
 0x5af   :  { %5996 = vmatpush2.bf16.msra.mxu0 %v12376_v49  ;;  %v2793_v49 = vld [vmem:[#allocation16 + $0x590] sm:$0xff] }
 0x5b0   :  { %5997 = vmatprep.subr.bf16.mxu0 %v12369_v41  ;;  %v12067_v41 = vcombine.high %v2665_v33, %v2669_v42  ;;  %v12194_v31 = vcombine.low %v2793_v49, %v2797_v50  ;;  %v2625_v42 = vld [vmem:[#allocation16 + $0x50] sm:$0xff] }
 0x5b1   :  { %6037 = vmatpush2.bf16.msra.mxu1 %v12504_v4 }
 0x5b2   :  { %6038 = vmatprep.subr.bf16.mxu1 %v12497_v18  ;;  %v2657_v18 = vld [vmem:[#allocation16 + $0x150] sm:$0xff] }
 0x5b3   :  { %5998 = vmatpush2.bf16.msra.mxu0 %v12368_v17  ;;  %v2661_v17 = vld [vmem:[#allocation16 + $0x170] sm:$0xff] }
 0x5b4   :  { %5999 = vmatprep.subr.bf16.mxu0 %v12361_v16  ;;  %v12195_v16 = vcombine.high %v2793_v49, %v2797_v50  ;;  %v12059_v52 = vcombine.high %v2657_v18, %v2661_v17  ;;  %v12058_v12 = vcombine.low %v2657_v18, %v2661_v17  ;;  %v2757_v49 = vld [vmem:[#allocation16 + $0x470] sm:$0xff] }
 0x5b5   :  { %6039 = vmatpush2.bf16.msra.mxu1 %v12496_v40  ;;  %v2745_v18 = vld [vmem:[#allocation16 + $0x410] sm:$0xff] }
 0x5b6   :  { %6040 = vmatprep.subr.bf16.mxu1 %v12489_v3  ;;  %v2785_v3 = vld [vmem:[#allocation16 + $0x550] sm:$0xff] }
 0x5b7   :  { %6000 = vmatpush2.bf16.msra.mxu0 %v12360_v55  ;;  %v2789_v55 = vld [vmem:[#allocation16 + $0x570] sm:$0xff] }
 0x5b8   :  { %6001 = vmatprep.subr.bf16.mxu0 %v12353_v36  ;;  %v12186_v27 = vcombine.low %v2785_v3, %v2789_v55  ;;  %v2749_v17 = vld [vmem:[#allocation16 + $0x430] sm:$0xff] }
 0x5b9   :  { %6041 = vmatpush2.bf16.msra.mxu1 %v12488_v1 }
 0x5ba   :  { %6042 = vmatprep.subr.bf16.mxu1 %v12481_v54  ;;  %v2653_v54 = vld [vmem:[#allocation16 + $0x130] sm:$0xff] }
 0x5bb   :  { %6002 = vmatpush2.bf16.msra.mxu0 %v12352_v63  ;;  %v12187_v63 = vcombine.high %v2785_v3, %v2789_v55  ;;  %v12051_v15 = vcombine.high %v2649_v25, %v2653_v54  ;;  %v12050_v37 = vcombine.low %v2649_v25, %v2653_v54  ;;  %v2865_v55 = vld [vmem:[#allocation16 + $0x7d0] sm:$0xff] }
 0x5bc   :  { %6003 = vmatprep.subr.bf16.mxu0 %v12345_v35  ;;  %v2777_v35 = vld [vmem:[#allocation16 + $0x510] sm:$0xff] }
 0x5bd   :  { %6043 = vmatpush2.bf16.msra.mxu1 %v12480_v32  ;;  %v2781_v32 = vld [vmem:[#allocation16 + $0x530] sm:$0xff] }
 0x5be   :  { %6044 = vmatprep.subr.bf16.mxu1 %v12473_v13  ;;  %v2641_v13 = vld [vmem:[#allocation16 + $0xd0] sm:$0xff]  ;;  %v12179_v21 = vcombine.high %v2777_v35, %v2781_v32  ;;  %v12178_v0 = vcombine.low %v2777_v35, %v2781_v32 }
 0x5bf   :  { %6004 = vmatpush2.bf16.msra.mxu0 %v12344_v34  ;;  %v2645_v34 = vld [vmem:[#allocation16 + $0xf0] sm:$0xff] }
 0x5c0   :  { %6005 = vmatprep.subr.bf16.mxu0 %v12337_v62  ;;  %v2769_v62 = vld [vmem:[#allocation16 + $0x4d0] sm:$0xff]  ;;  %v12043_v44 = vcombine.high %v2641_v13, %v2645_v34  ;;  %v12042_v22 = vcombine.low %v2641_v13, %v2645_v34 }
 0x5c1   :  { %6045 = vmatpush2.bf16.msra.mxu1 %v12472_v58  ;;  %v2773_v58 = vld [vmem:[#allocation16 + $0x4f0] sm:$0xff] }
 0x5c2   :  { %6046 = vmatprep.subr.bf16.mxu1 %v12465_v10  ;;  %v2633_v10 = vld [vmem:[#allocation16 + $0x90] sm:$0xff]  ;;  %v12171_v19 = vcombine.high %v2769_v62, %v2773_v58  ;;  %v12170_v33 = vcombine.low %v2769_v62, %v2773_v58 }
 0x5c3   :  { %6006 = vmatpush2.bf16.msra.mxu0 %v12336_v38  ;;  %v2637_v38 = vld [vmem:[#allocation16 + $0xb0] sm:$0xff] }
 0x5c4   :  { %v5763_v43 = vpop.f32.mrf.mxu0  ;;  %6057 = vmatprep.subr.bf16.mxu0 %v12075_v11  ;;  %v2765_v11 = vld [vmem:[#allocation16 + $0x4b0] sm:$0xff] }
 0x5c5   :  { %v5764_v48 = vadd.f32 %v5763_v43, %v3132_v53  ;;  %6047 = vmatpush2.bf16.msra.mxu1 %v12464_v29  ;;  %v2761_v53 = vld [vmem:[#allocation16 + $0x490] sm:$0xff]  ;;  %v12035_v29 = vcombine.high %v2633_v10, %v2637_v38  ;;  %v12034_v43 = vcombine.low %v2633_v10, %v2637_v38 }
 0x5c6   :  { %v5765_v4 = vpop.f32.mrf.mxu0  ;;  %v5804_v14 = vpop.f32.mrf.mxu1  ;;  %6008 = vmatmul.mubr.bf16.vlgmr.msra.gmra.mxu0 %v14712_v57  ;;  %6098 = vmatprep.subr.bf16.mxu1 %v12203_v6  ;;  %v12163_v6 = vcombine.high %v2761_v53, %v2765_v11  ;;  %v2733_v25 = vld [vmem:[#allocation16 + $0x3b0] sm:$0xff] }
 0x5c7   :  { %v5766_v2 = vadd.f32 %v5765_v4, %v3136_v20  ;;  %v14734_v45 = vadd.f32 %v5804_v14, %v5764_v48  ;;  %6058 = vmatpush1.bf16.msra.mxu0 %v12074_v56  ;;  %6089 = vmatprep.mubr.bf16.mxu0 %v14670_v39  ;;  %v2629_v20 = vld [vmem:[#allocation16 + $0x70] sm:$0xff]  ;;  %v12162_v48 = vcombine.low %v2761_v53, %v2765_v11 }
 0x5c8   :  { %v5767_v40 = vpop.f32.mrf.mxu0  ;;  %v5806_v9 = vpop.f32.mrf.mxu1  ;;  %6049 = vmatmul.mubr.bf16.vlgmr.msra.gmra.mxu1 %v14718_v8  ;;  %6059 = vmatprep.subr.bf16.mxu0 %v12067_v41  ;;  %v2753_v56 = vld [vmem:[#allocation16 + $0x450] sm:$0xff]  ;;  %v12027_v50 = vcombine.high %v2625_v42, %v2629_v20 }
 0x5c9   :  { %v14738_v23 = vadd.f32 %v5806_v9, %v5766_v2  ;;  %6099 = vmatpush1.bf16.msra.mxu1 %v12202_v51  ;;  %6130 = vmatprep.mubr.bf16.mxu1 %v14675_v7  ;;  %v2617_v41 = vld [vmem:[#allocation16 + $0x10] sm:$0xff]  ;;  %v12155_v14 = vcombine.high %v2753_v56, %v2757_v49  ;;  %v12026_v51 = vcombine.low %v2625_v42, %v2629_v20 }
 0x5ca   :  { %v5768_v36 = vpop.f32.mrf.mxu0  ;;  %v5808_v1 = vpop.f32.mrf.mxu1  ;;  %6100 = vmatprep.subr.bf16.mxu1 %v12195_v16  ;;  %v2621_v4 = vld [vmem:[#allocation16 + $0x30] sm:$0xff]  ;;  %v12154_v16 = vcombine.low %v2753_v56, %v2757_v49 }
 0x5cb   :  { %6060 = vmatpush1.bf16.msra.mxu0 %v12066_v59  ;;  %v12019_v2 = vcombine.high %v2617_v41, %v2621_v4  ;;  %v2737_v40 = vld [vmem:[#allocation16 + $0x3d0] sm:$0xff]  ;;  %v12147_v59 = vcombine.high %v2745_v18, %v2749_v17  ;;  %v12018_v3 = vcombine.low %v2617_v41, %v2621_v4  ;;  %v12146_v1 = vcombine.low %v2745_v18, %v2749_v17 }
 0x5cc   :  { %v5809_v24 = vpop.f32.mrf.mxu1  ;;  %6061 = vmatprep.subr.bf16.mxu0 %v12059_v52  ;;  %v2741_v9 = vld [vmem:[#allocation16 + $0x3f0] sm:$0xff] }
 0x5cd   :  { %6101 = vmatpush1.bf16.msra.mxu1 %v12194_v31  ;;  %v2869_v52 = vld [vmem:[#allocation16 + $0x7f0] sm:$0xff]  ;;  %v12139_v36 = vcombine.high %v2737_v40, %v2741_v9 }
 0x5ce   :  { %6102 = vmatprep.subr.bf16.mxu1 %v12187_v63  ;;  %v2729_v31 = vld [vmem:[#allocation16 + $0x390] sm:$0xff]  ;;  %v12267_v54 = vcombine.high %v2865_v55, %v2869_v52  ;;  %v12138_v63 = vcombine.low %v2737_v40, %v2741_v9  ;;  %v12266_v32 = vcombine.low %v2865_v55, %v2869_v52 }
 0x5cf   :  { %6062 = vmatpush1.bf16.msra.mxu0 %v12058_v12  ;;  %v2857_v24 = vld [vmem:[#allocation16 + $0x790] sm:$0xff]  ;;  %v12131_v35 = vcombine.high %v2729_v31, %v2733_v25  ;;  %v12130_v34 = vcombine.low %v2729_v31, %v2733_v25 }
 0x5d0   :  { %6063 = vmatprep.subr.bf16.mxu0 %v12051_v15  ;;  %v2861_v12 = vld [vmem:[#allocation16 + $0x7b0] sm:$0xff] }
 0x5d1   :  { %6103 = vmatpush1.bf16.msra.mxu1 %v12186_v27  ;;  %v2721_v15 = vld [vmem:[#allocation16 + $0x350] sm:$0xff]  ;;  %v12259_v13 = vcombine.high %v2857_v24, %v2861_v12  ;;  %v12258_v58 = vcombine.low %v2857_v24, %v2861_v12 }
 0x5d2   :  { %6104 = vmatprep.subr.bf16.mxu1 %v12179_v21  ;;  %v2725_v27 = vld [vmem:[#allocation16 + $0x370] sm:$0xff] }
 0x5d3   :  { %6064 = vmatpush1.bf16.msra.mxu0 %v12050_v37  ;;  %v2849_v21 = vld [vmem:[#allocation16 + $0x750] sm:$0xff]  ;;  %v12123_v62 = vcombine.high %v2721_v15, %v2725_v27  ;;  %v12122_v38 = vcombine.low %v2721_v15, %v2725_v27 }
 0x5d4   :  { %6065 = vmatprep.subr.bf16.mxu0 %v12043_v44  ;;  %v2853_v37 = vld [vmem:[#allocation16 + $0x770] sm:$0xff] }
 0x5d5   :  { %6105 = vmatpush1.bf16.msra.mxu1 %v12178_v0  ;;  %v2713_v44 = vld [vmem:[#allocation16 + $0x310] sm:$0xff]  ;;  %v12251_v10 = vcombine.high %v2849_v21, %v2853_v37  ;;  %v12250_v11 = vcombine.low %v2849_v21, %v2853_v37 }
 0x5d6   :  { %6106 = vmatprep.subr.bf16.mxu1 %v12171_v19  ;;  %v2717_v0 = vld [vmem:[#allocation16 + $0x330] sm:$0xff] }
 0x5d7   :  { %6066 = vmatpush1.bf16.msra.mxu0 %v12042_v22  ;;  %v2841_v19 = vld [vmem:[#allocation16 + $0x710] sm:$0xff]  ;;  %v12115_v53 = vcombine.high %v2713_v44, %v2717_v0  ;;  %v12114_v20 = vcombine.low %v2713_v44, %v2717_v0 }
 0x5d8   :  { %6067 = vmatprep.subr.bf16.mxu0 %v12035_v29  ;;  %v2845_v22 = vld [vmem:[#allocation16 + $0x730] sm:$0xff] }
 0x5d9   :  { %6107 = vmatpush1.bf16.msra.mxu1 %v12170_v33  ;;  %v2705_v29 = vld [vmem:[#allocation16 + $0x2d0] sm:$0xff]  ;;  %v12243_v42 = vcombine.high %v2841_v19, %v2845_v22  ;;  %v12242_v49 = vcombine.low %v2841_v19, %v2845_v22 }
 0x5da   :  { %6108 = vmatprep.subr.bf16.mxu1 %v12163_v6  ;;  %v2709_v33 = vld [vmem:[#allocation16 + $0x2f0] sm:$0xff] }
 0x5db   :  { %6068 = vmatpush1.bf16.msra.mxu0 %v12034_v43  ;;  %v2833_v6 = vld [vmem:[#allocation16 + $0x6d0] sm:$0xff]  ;;  %v12107_v56 = vcombine.high %v2705_v29, %v2709_v33  ;;  %v12106_v4 = vcombine.low %v2705_v29, %v2709_v33 }
 0x5dc   :  { %6069 = vmatprep.subr.bf16.mxu0 %v12027_v50  ;;  %v2837_v43 = vld [vmem:[#allocation16 + $0x6f0] sm:$0xff] }
 0x5dd   :  { %6109 = vmatpush1.bf16.msra.mxu1 %v12162_v48  ;;  %v2697_v50 = vld [vmem:[#allocation16 + $0x290] sm:$0xff]  ;;  %v12235_v41 = vcombine.high %v2833_v6, %v2837_v43  ;;  %v12234_v17 = vcombine.low %v2833_v6, %v2837_v43 }
 0x5de   :  { %6110 = vmatprep.subr.bf16.mxu1 %v12155_v14  ;;  %v2701_v48 = vld [vmem:[#allocation16 + $0x2b0] sm:$0xff] }
 0x5df   :  { %6070 = vmatpush1.bf16.msra.mxu0 %v12026_v51  ;;  %v2825_v14 = vld [vmem:[#allocation16 + $0x690] sm:$0xff]  ;;  %v12099_v18 = vcombine.high %v2697_v50, %v2701_v48  ;;  %v12098_v9 = vcombine.low %v2697_v50, %v2701_v48 }
 0x5e0   :  { %6071 = vmatprep.subr.bf16.mxu0 %v12019_v2  ;;  %v2829_v51 = vld [vmem:[#allocation16 + $0x6b0] sm:$0xff] }
 0x5e1   :  { %6111 = vmatpush1.bf16.msra.mxu1 %v12154_v16  ;;  %v2689_v2 = vld [vmem:[#allocation16 + $0x250] sm:$0xff]  ;;  %v12227_v40 = vcombine.high %v2825_v14, %v2829_v51  ;;  %v12226_v52 = vcombine.low %v2825_v14, %v2829_v51 }
 0x5e2   :  { %6112 = vmatprep.subr.bf16.mxu1 %v12147_v59  ;;  %v2693_v16 = vld [vmem:[#allocation16 + $0x270] sm:$0xff] }
 0x5e3   :  { %6072 = vmatpush1.bf16.msra.mxu0 %v12018_v3  ;;  %v2817_v59 = vld [vmem:[#allocation16 + $0x650] sm:$0xff]  ;;  %v12091_v55 = vcombine.high %v2689_v2, %v2693_v16  ;;  %v12090_v25 = vcombine.low %v2689_v2, %v2693_v16 }
 0x5e4   :  { %6073 = vmatprep.subr.bf16.mxu0 %v12139_v36  ;;  %v2821_v3 = vld [vmem:[#allocation16 + $0x670] sm:$0xff] }
 0x5e5   :  { %6113 = vmatpush1.bf16.msra.mxu1 %v12146_v1  ;;  %v2681_v36 = vld [vmem:[#allocation16 + $0x210] sm:$0xff]  ;;  %v12219_v31 = vcombine.high %v2817_v59, %v2821_v3  ;;  %v12218_v12 = vcombine.low %v2817_v59, %v2821_v3 }
 0x5e6   :  { %6114 = vmatprep.subr.bf16.mxu1 %v12267_v54  ;;  %v2685_v1 = vld [vmem:[#allocation16 + $0x230] sm:$0xff] }
 0x5e7   :  { %6074 = vmatpush2.bf16.msra.mxu0 %v12138_v63  ;;  %v2809_v54 = vld [vmem:[#allocation16 + $0x610] sm:$0xff]  ;;  %v12083_v24 = vcombine.high %v2681_v36, %v2685_v1  ;;  %v12082_v27 = vcombine.low %v2681_v36, %v2685_v1 }
 0x5e8   :  { %6075 = vmatprep.subr.bf16.mxu0 %v12131_v35  ;;  %v2813_v63 = vld [vmem:[#allocation16 + $0x630] sm:$0xff] }
 0x5e9   :  { %6115 = vmatpush2.bf16.msra.mxu1 %v12266_v32  ;;  %v2929_v35 = vld [vmem:[#allocation16 + $0x9d0] sm:$0xff]  ;;  %v12211_v15 = vcombine.high %v2809_v54, %v2813_v63  ;;  %v12210_v37 = vcombine.low %v2809_v54, %v2813_v63 }
 0x5ea   :  { %6116 = vmatprep.subr.bf16.mxu1 %v12259_v13  ;;  %v2933_v32 = vld [vmem:[#allocation16 + $0x9f0] sm:$0xff] }
 0x5eb   :  { %6076 = vmatpush2.bf16.msra.mxu0 %v12130_v34  ;;  %v3057_v13 = vld [vmem:[#allocation16 + $0xdd0] sm:$0xff]  ;;  %v12331_v21 = vcombine.high %v2929_v35, %v2933_v32  ;;  %v12330_v0 = vcombine.low %v2929_v35, %v2933_v32 }
 0x5ec   :  { %6077 = vmatprep.subr.bf16.mxu0 %v12123_v62  ;;  %v3061_v34 = vld [vmem:[#allocation16 + $0xdf0] sm:$0xff] }
 0x5ed   :  { %6117 = vmatpush2.bf16.msra.mxu1 %v12258_v58  ;;  %v2921_v62 = vld [vmem:[#allocation16 + $0x990] sm:$0xff]  ;;  %v12459_v44 = vcombine.high %v3057_v13, %v3061_v34  ;;  %v12458_v22 = vcombine.low %v3057_v13, %v3061_v34 }
 0x5ee   :  { %6118 = vmatprep.subr.bf16.mxu1 %v12251_v10  ;;  %v2925_v58 = vld [vmem:[#allocation16 + $0x9b0] sm:$0xff] }
 0x5ef   :  { %6078 = vmatpush2.bf16.msra.mxu0 %v12122_v38  ;;  %v3049_v10 = vld [vmem:[#allocation16 + $0xd90] sm:$0xff]  ;;  %v12323_v19 = vcombine.high %v2921_v62, %v2925_v58 }
 0x5f0   :  { %6079 = vmatprep.subr.bf16.mxu0 %v12115_v53  ;;  %v3053_v38 = vld [vmem:[#allocation16 + $0xdb0] sm:$0xff] }
 0x5f1   :  { %6119 = vmatpush2.bf16.msra.mxu1 %v12250_v11  ;;  %v2913_v53 = vld [vmem:[#allocation16 + $0x950] sm:$0xff]  ;;  %v12451_v33 = vcombine.high %v3049_v10, %v3053_v38 }
 0x5f2   :  { %6120 = vmatprep.subr.bf16.mxu1 %v12243_v42  ;;  %v2917_v11 = vld [vmem:[#allocation16 + $0x970] sm:$0xff] }
 0x5f3   :  { %6080 = vmatpush2.bf16.msra.mxu0 %v12114_v20  ;;  %v12322_v20 = vcombine.low %v2921_v62, %v2925_v58  ;;  %v3041_v6 = vld [vmem:[#allocation16 + $0xd50] sm:$0xff]  ;;  %v12315_v50 = vcombine.high %v2913_v53, %v2917_v11  ;;  %v12314_v16 = vcombine.low %v2913_v53, %v2917_v11 }
 0x5f4   :  { %6081 = vmatprep.subr.bf16.mxu0 %v12107_v56  ;;  %v3045_v43 = vld [vmem:[#allocation16 + $0xd70] sm:$0xff] }
 0x5f5   :  { %6121 = vmatpush2.bf16.msra.mxu1 %v12242_v49  ;;  %v2909_v14 = vld [vmem:[#allocation16 + $0x930] sm:$0xff] }
 0x5f6   :  { %6122 = vmatprep.subr.bf16.mxu1 %v12235_v41  ;;  %v2901_v36 = vld [vmem:[#allocation16 + $0x8f0] sm:$0xff] }
 0x5f7   :  { %6082 = vmatpush2.bf16.msra.mxu0 %v12106_v4  ;;  %v2905_v4 = vld [vmem:[#allocation16 + $0x910] sm:$0xff] }
 0x5f8   :  { %6083 = vmatprep.subr.bf16.mxu0 %v12099_v18  ;;  %v12307_v3 = vcombine.high %v2905_v4, %v2909_v14  ;;  %v3025_v54 = vld [vmem:[#allocation16 + $0xcd0] sm:$0xff] }
 0x5f9   :  { %6123 = vmatpush2.bf16.msra.mxu1 %v12234_v17  ;;  %v12443_v17 = vcombine.high %v3041_v6, %v3045_v43  ;;  %v3029_v63 = vld [vmem:[#allocation16 + $0xcf0] sm:$0xff] }
 0x5fa   :  { %6124 = vmatprep.subr.bf16.mxu1 %v12227_v40  ;;  %v3033_v40 = vld [vmem:[#allocation16 + $0xd10] sm:$0xff] }
 0x5fb   :  { %6084 = vmatpush2.bf16.msra.mxu0 %v12098_v9  ;;  %v3037_v9 = vld [vmem:[#allocation16 + $0xd30] sm:$0xff] }
 0x5fc   :  { %6085 = vmatprep.subr.bf16.mxu0 %v12091_v55  ;;  %v12442_v55 = vcombine.low %v3041_v6, %v3045_v43  ;;  %v2889_v35 = vld [vmem:[#allocation16 + $0x890] sm:$0xff] }
 0x5fd   :  { %6125 = vmatpush2.bf16.msra.mxu1 %v12226_v52  ;;  %v2897_v52 = vld [vmem:[#allocation16 + $0x8d0] sm:$0xff] }
 0x5fe   :  { %6126 = vmatprep.subr.bf16.mxu1 %v12219_v31  ;;  %v12435_v31 = vcombine.high %v3033_v40, %v3037_v9  ;;  %v2893_v32 = vld [vmem:[#allocation16 + $0x8b0] sm:$0xff] }
 0x5ff   :  { %6086 = vmatpush2.bf16.msra.mxu0 %v12090_v25  ;;  %v12306_v25 = vcombine.low %v2905_v4, %v2909_v14  ;;  %v3017_v13 = vld [vmem:[#allocation16 + $0xc90] sm:$0xff] }
 0x600   :  { %6087 = vmatprep.subr.bf16.mxu0 %v12083_v24  ;;  %v12299_v24 = vcombine.high %v2897_v52, %v2901_v36  ;;  %v3021_v34 = vld [vmem:[#allocation16 + $0xcb0] sm:$0xff] }
 0x601   :  { %6127 = vmatpush2.bf16.msra.mxu1 %v12218_v12  ;;  %v12434_v12 = vcombine.low %v3033_v40, %v3037_v9  ;;  %v2881_v62 = vld [vmem:[#allocation16 + $0x850] sm:$0xff] }
 0x602   :  { %6128 = vmatprep.subr.bf16.mxu1 %v12211_v15  ;;  %v12427_v15 = vcombine.high %v3025_v54, %v3029_v63  ;;  %v2885_v58 = vld [vmem:[#allocation16 + $0x870] sm:$0xff] }
 0x603   :  { %6088 = vmatpush2.bf16.msra.mxu0 %v12082_v27  ;;  %v12298_v27 = vcombine.low %v2897_v52, %v2901_v36  ;;  %v2873_v53 = vld [vmem:[#allocation16 + $0x810] sm:$0xff] }
 0x604   :  { %6139 = vmatprep.subr.bf16.mxu0 %v12331_v21  ;;  %v12291_v21 = vcombine.high %v2889_v35, %v2893_v32  ;;  %v2877_v11 = vld [vmem:[#allocation16 + $0x830] sm:$0xff] }
 0x605   :  { %6129 = vmatpush2.bf16.msra.mxu1 %v12210_v37  ;;  %v12426_v37 = vcombine.low %v3025_v54, %v3029_v63  ;;  %v12275_v6 = vcombine.high %v2873_v53, %v2877_v11  ;;  %v3125_v4 = vld [vmem:[#allocation16 + $0xff0] sm:$0xff] }
 0x606   :  { %6090 = vmatmul.mubr.bf16.vlgmr.msra.gmra.mxu0 %v14672_v5  ;;  %v5845_v29 = vpop.f32.mrf.mxu0  ;;  %6180 = vmatprep.subr.bf16.mxu1 %v12459_v44  ;;  %v12419_v44 = vcombine.high %v3017_v13, %v3021_v34  ;;  %v3113_v9 = vld [vmem:[#allocation16 + $0xf90] sm:$0xff] }
 0x607   :  { %v5846_v42 = vadd.f32 %v5845_v29, %v14734_v45  ;;  %6140 = vmatpush1.bf16.msra.mxu0 %v12330_v0  ;;  %6171 = vmatprep.mubr.bf16.mxu0 %v14710_v26  ;;  %v12450_v45 = vcombine.low %v3049_v10, %v3053_v38  ;;  %v12290_v0 = vcombine.low %v2889_v35, %v2893_v32  ;;  %v3009_v10 = vld [vmem:[#allocation16 + $0xc50] sm:$0xff] }
 0x608   :  { %6131 = vmatmul.mubr.bf16.vlgmr.msra.gmra.mxu1 %v14678_v46  ;;  %v5847_v56 = vpop.f32.mrf.mxu0  ;;  %v5886_v49 = vpop.f32.mrf.mxu1  ;;  %6141 = vmatprep.subr.bf16.mxu0 %v12323_v19  ;;  %v3013_v38 = vld [vmem:[#allocation16 + $0xc70] sm:$0xff]  ;;  %v12283_v19 = vcombine.high %v2881_v62, %v2885_v58 }
 0x609   :  { %v5848_v48 = vadd.f32 %v5847_v56, %v14738_v23  ;;  %v14747_v41 = vadd.f32 %v5886_v49, %v5846_v42  ;;  %6181 = vmatpush1.bf16.msra.mxu1 %v12458_v22  ;;  %6212 = vmatprep.mubr.bf16.mxu1 %v14715_v30  ;;  %v12418_v22 = vcombine.low %v3017_v13, %v3021_v34  ;;  %v3001_v42 = vld [vmem:[#allocation16 + $0xc10] sm:$0xff] }
 0x60a   :  { %v5849_v51 = vpop.f32.mrf.mxu0  ;;  %v5888_v18 = vpop.f32.mrf.mxu1  ;;  %6182 = vmatprep.subr.bf16.mxu1 %v12451_v33  ;;  %v12411_v29 = vcombine.high %v3009_v10, %v3013_v38  ;;  %v12282_v33 = vcombine.low %v2881_v62, %v2885_v58  ;;  %v12410_v43 = vcombine.low %v3009_v10, %v3013_v38  ;;  %v2993_v56 = vld [vmem:[#allocation16 + $0xbd0] sm:$0xff] }
 0x60b   :  { %v14750_v2 = vadd.f32 %v5888_v18, %v5848_v48  ;;  %6142 = vmatpush1.bf16.msra.mxu0 %v12322_v20  ;;  %v3005_v20 = vld [vmem:[#allocation16 + $0xc30] sm:$0xff]  ;;  %v12274_v48 = vcombine.low %v2873_v53, %v2877_v11 }
 0x60c   :  { %v5850_v59 = vpop.f32.mrf.mxu0  ;;  %v5890_v23 = vpop.f32.mrf.mxu1  ;;  %6143 = vmatprep.subr.bf16.mxu0 %v12315_v50  ;;  %v2997_v49 = vld [vmem:[#allocation16 + $0xbf0] sm:$0xff]  ;;  %v12403_v50 = vcombine.high %v3001_v42, %v3005_v20  ;;  %v12402_v51 = vcombine.low %v3001_v42, %v3005_v20 }
 0x60d   :  { %6183 = vmatpush1.bf16.msra.mxu1 %v12450_v45  ;;  %v3121_v45 = vld [vmem:[#allocation16 + $0xfd0] sm:$0xff]  ;;  %v12395_v14 = vcombine.high %v2993_v56, %v2997_v49  ;;  %v12394_v40 = vcombine.low %v2993_v56, %v2997_v49 }
 0x60e   :  { %v5891_v1 = vpop.f32.mrf.mxu1  ;;  %6184 = vmatprep.subr.bf16.mxu1 %v12443_v17  ;;  %v2985_v18 = vld [vmem:[#allocation16 + $0xb90] sm:$0xff] }
 0x60f   :  { %6144 = vmatpush1.bf16.msra.mxu0 %v12314_v16  ;;  %v2989_v17 = vld [vmem:[#allocation16 + $0xbb0] sm:$0xff]  ;;  %v12523_v16 = vcombine.high %v3121_v45, %v3125_v4 }
 0x610   :  { %6145 = vmatprep.subr.bf16.mxu0 %v12307_v3  ;;  %v3117_v59 = vld [vmem:[#allocation16 + $0xfb0] sm:$0xff]  ;;  %v12387_v23 = vcombine.high %v2985_v18, %v2989_v17  ;;  %v12522_v3 = vcombine.low %v3121_v45, %v3125_v4  ;;  %v12386_v1 = vcombine.low %v2985_v18, %v2989_v17 }
 0x611   :  { %6185 = vmatpush1.bf16.msra.mxu1 %v12442_v55  ;;  %v2977_v55 = vld [vmem:[#allocation16 + $0xb50] sm:$0xff]  ;;  %v12515_v36 = vcombine.high %v3113_v9, %v3117_v59  ;;  %v12514_v63 = vcombine.low %v3113_v9, %v3117_v59 }
 0x612   :  { %6186 = vmatprep.subr.bf16.mxu1 %v12435_v31  ;;  %v2981_v52 = vld [vmem:[#allocation16 + $0xb70] sm:$0xff] }
 0x613   :  { %6146 = vmatpush1.bf16.msra.mxu0 %v12306_v25  ;;  %v3105_v31 = vld [vmem:[#allocation16 + $0xf50] sm:$0xff]  ;;  %v12379_v54 = vcombine.high %v2977_v55, %v2981_v52  ;;  %v12378_v32 = vcombine.low %v2977_v55, %v2981_v52 }
 0x614   :  { %6147 = vmatprep.subr.bf16.mxu0 %v12299_v24  ;;  %v3109_v25 = vld [vmem:[#allocation16 + $0xf70] sm:$0xff] }
 0x615   :  { %6187 = vmatpush1.bf16.msra.mxu1 %v12434_v12  ;;  %v2969_v24 = vld [vmem:[#allocation16 + $0xb10] sm:$0xff]  ;;  %v12507_v35 = vcombine.high %v3105_v31, %v3109_v25  ;;  %v12506_v34 = vcombine.low %v3105_v31, %v3109_v25  ;;  %v2806_v31 = vld [vmem:[#allocation16 + $0x5f8] sm:$0xff] }
 0x616   :  { %6188 = vmatprep.subr.bf16.mxu1 %v12427_v15  ;;  %v2973_v12 = vld [vmem:[#allocation16 + $0xb30] sm:$0xff] }
 0x617   :  { %6148 = vmatpush1.bf16.msra.mxu0 %v12298_v27  ;;  %v3097_v15 = vld [vmem:[#allocation16 + $0xf10] sm:$0xff]  ;;  %v12371_v13 = vcombine.high %v2969_v24, %v2973_v12  ;;  %v12370_v58 = vcombine.low %v2969_v24, %v2973_v12  ;;  %v2666_v24 = vld [vmem:[#allocation16 + $0x198] sm:$0xff] }
 0x618   :  { %6149 = vmatprep.subr.bf16.mxu0 %v12291_v21  ;;  %v3101_v27 = vld [vmem:[#allocation16 + $0xf30] sm:$0xff]  ;;  %v2670_v12 = vld [vmem:[#allocation16 + $0x1b8] sm:$0xff] }
 0x619   :  { %6189 = vmatpush1.bf16.msra.mxu1 %v12426_v37  ;;  %v2961_v21 = vld [vmem:[#allocation16 + $0xad0] sm:$0xff]  ;;  %v12499_v62 = vcombine.high %v3097_v15, %v3101_v27  ;;  %v12498_v38 = vcombine.low %v3097_v15, %v3101_v27  ;;  %v2794_v27 = vld [vmem:[#allocation16 + $0x598] sm:$0xff] }
 0x61a   :  { %6190 = vmatprep.subr.bf16.mxu1 %v12419_v44  ;;  %v2965_v37 = vld [vmem:[#allocation16 + $0xaf0] sm:$0xff] }
 0x61b   :  { %6150 = vmatpush1.bf16.msra.mxu0 %v12290_v0  ;;  %v3089_v44 = vld [vmem:[#allocation16 + $0xed0] sm:$0xff]  ;;  %v12363_v10 = vcombine.high %v2961_v21, %v2965_v37  ;;  %v12362_v11 = vcombine.low %v2961_v21, %v2965_v37 }
 0x61c   :  { %6151 = vmatprep.subr.bf16.mxu0 %v12283_v19  ;;  %v3093_v0 = vld [vmem:[#allocation16 + $0xef0] sm:$0xff] }
 0x61d   :  { %6191 = vmatpush1.bf16.msra.mxu1 %v12418_v22  ;;  %v2953_v19 = vld [vmem:[#allocation16 + $0xa90] sm:$0xff]  ;;  %v12491_v53 = vcombine.high %v3089_v44, %v3093_v0  ;;  %v12490_v20 = vcombine.low %v3089_v44, %v3093_v0 }
 0x61e   :  { %6192 = vmatprep.subr.bf16.mxu1 %v12411_v29  ;;  %v2957_v22 = vld [vmem:[#allocation16 + $0xab0] sm:$0xff] }
 0x61f   :  { %6152 = vmatpush1.bf16.msra.mxu0 %v12282_v33  ;;  %v3081_v29 = vld [vmem:[#allocation16 + $0xe90] sm:$0xff]  ;;  %v12355_v42 = vcombine.high %v2953_v19, %v2957_v22  ;;  %v12354_v49 = vcombine.low %v2953_v19, %v2957_v22  ;;  %v2786_v19 = vld [vmem:[#allocation16 + $0x558] sm:$0xff] }
 0x620   :  { %6153 = vmatprep.subr.bf16.mxu0 %v12275_v6  ;;  %v3085_v33 = vld [vmem:[#allocation16 + $0xeb0] sm:$0xff]  ;;  %v2790_v22 = vld [vmem:[#allocation16 + $0x578] sm:$0xff] }
 0x621   :  { %6193 = vmatpush1.bf16.msra.mxu1 %v12410_v43  ;;  %v2945_v6 = vld [vmem:[#allocation16 + $0xa50] sm:$0xff]  ;;  %v12483_v56 = vcombine.high %v3081_v29, %v3085_v33  ;;  %v12482_v4 = vcombine.low %v3081_v29, %v3085_v33 }
 0x622   :  { %6194 = vmatprep.subr.bf16.mxu1 %v12403_v50  ;;  %v2949_v43 = vld [vmem:[#allocation16 + $0xa70] sm:$0xff] }
 0x623   :  { %6154 = vmatpush1.bf16.msra.mxu0 %v12274_v48  ;;  %v3073_v50 = vld [vmem:[#allocation16 + $0xe50] sm:$0xff]  ;;  %v12347_v45 = vcombine.high %v2945_v6, %v2949_v43  ;;  %v12346_v17 = vcombine.low %v2945_v6, %v2949_v43  ;;  %v2654_v6 = vld [vmem:[#allocation16 + $0x138] sm:$0xff] }
 0x624   :  { %6155 = vmatprep.subr.bf16.mxu0 %v12395_v14  ;;  %v3077_v48 = vld [vmem:[#allocation16 + $0xe70] sm:$0xff] }
 0x625   :  { %6195 = vmatpush1.bf16.msra.mxu1 %v12402_v51  ;;  %v2937_v14 = vld [vmem:[#allocation16 + $0xa10] sm:$0xff]  ;;  %v12475_v18 = vcombine.high %v3073_v50, %v3077_v48  ;;  %v12474_v59 = vcombine.low %v3073_v50, %v3077_v48  ;;  %v2778_v48 = vld [vmem:[#allocation16 + $0x518] sm:$0xff] }
 0x626   :  { %6196 = vmatprep.subr.bf16.mxu1 %v12523_v16  ;;  %v2941_v51 = vld [vmem:[#allocation16 + $0xa30] sm:$0xff] }
 0x627   :  { %6156 = vmatpush2.bf16.msra.mxu0 %v12394_v40  ;;  %v3065_v16 = vld [vmem:[#allocation16 + $0xe10] sm:$0xff]  ;;  %v12339_v9 = vcombine.high %v2937_v14, %v2941_v51  ;;  %v12338_v52 = vcombine.low %v2937_v14, %v2941_v51 }
 0x628   :  { %6157 = vmatprep.subr.bf16.mxu0 %v12387_v23  ;;  %v3069_v40 = vld [vmem:[#allocation16 + $0xe30] sm:$0xff]  ;;  %v2674_v23 = vld [vmem:[#allocation16 + $0x1d8] sm:$0xff] }
 0x629   :  { %6197 = vmatpush2.bf16.msra.mxu1 %v12522_v3  ;;  %v2678_v3 = vld [vmem:[#allocation16 + $0x1f8] sm:$0xff]  ;;  %v12467_v55 = vcombine.high %v3065_v16, %v3069_v40 }
 0x62a   :  { %6198 = vmatprep.subr.bf16.mxu1 %v12515_v36  ;;  %v3139_v36 = vsub.s32 2, %v15865_v47  ;;  %v12077_v25 = vcombine.high %v2674_v23, %v2678_v3  ;;  %v12076_v15 = vcombine.low %v2674_v23, %v2678_v3  ;;  %v2774_v23 = vld [vmem:[#allocation16 + $0x4f8] sm:$0xff] }
 0x62b   :  { %6158 = vmatpush2.bf16.msra.mxu0 %v12386_v1  ;;  %v2802_v1 = vld [vmem:[#allocation16 + $0x5d8] sm:$0xff] }
 0x62c   :  { %6159 = vmatprep.subr.bf16.mxu0 %v12379_v54  ;;  %v12466_v54 = vcombine.low %v3065_v16, %v3069_v40  ;;  %v12204_v37 = vcombine.low %v2802_v1, %v2806_v31 }
 0x62d   :  { %6199 = vmatpush2.bf16.msra.mxu1 %v12514_v63  ;;  %v3143_v63 = vsub.s32 3, %v15865_v47 }
 0x62e   :  { %6200 = vmatprep.subr.bf16.mxu1 %v12507_v35  ;;  %v12205_v35 = vcombine.high %v2802_v1, %v2806_v31  ;;  %v2638_v1 = vld [vmem:[#allocation16 + $0xb8] sm:$0xff] }
 0x62f   :  { %6160 = vmatpush2.bf16.msra.mxu0 %v12378_v32  ;;  %v3140_v32 = vrot.slane %v14728_v60, %v3139_v36  ;;  %v3144_v21 = vrot.slane %v14728_v60, %v3143_v63 }
 0x630   :  { %6161 = vmatprep.subr.bf16.mxu0 %v12371_v13  ;;  %v2798_v13 = vld [vmem:[#allocation16 + $0x5b8] sm:$0xff] }
 0x631   :  { %6201 = vmatpush2.bf16.msra.mxu1 %v12506_v34  ;;  %v12069_v34 = vcombine.high %v2666_v24, %v2670_v12  ;;  %v12197_v0 = vcombine.high %v2794_v27, %v2798_v13 }
 0x632   :  { %6202 = vmatprep.subr.bf16.mxu1 %v12499_v62  ;;  %v2658_v62 = vld [vmem:[#allocation16 + $0x158] sm:$0xff] }
 0x633   :  { %6162 = vmatpush2.bf16.msra.mxu0 %v12370_v58  ;;  %v2662_v58 = vld [vmem:[#allocation16 + $0x178] sm:$0xff] }
 0x634   :  { %6163 = vmatprep.subr.bf16.mxu0 %v12363_v10  ;;  %v12061_v60 = vcombine.high %v2658_v62, %v2662_v58  ;;  %v12060_v50 = vcombine.low %v2658_v62, %v2662_v58  ;;  %v2618_v58 = vld [vmem:[#allocation16 + $0x18] sm:$0xff] }
 0x635   :  { %6203 = vmatpush2.bf16.msra.mxu1 %v12498_v38  ;;  %v12068_v38 = vcombine.low %v2666_v24, %v2670_v12  ;;  %v2766_v24 = vld [vmem:[#allocation16 + $0x4b8] sm:$0xff] }
 0x636   :  { %6204 = vmatprep.subr.bf16.mxu1 %v12491_v53 }
 0x637   :  { %6164 = vmatpush2.bf16.msra.mxu0 %v12362_v11 }
 0x638   :  { %6165 = vmatprep.subr.bf16.mxu0 %v12355_v42  ;;  %v12196_v42 = vcombine.low %v2794_v27, %v2798_v13 }
 0x639   :  { %6205 = vmatpush2.bf16.msra.mxu1 %v12490_v20  ;;  %v2650_v20 = vld [vmem:[#allocation16 + $0x118] sm:$0xff] }
 0x63a   :  { %6206 = vmatprep.subr.bf16.mxu1 %v12483_v56  ;;  %v12189_v56 = vcombine.high %v2786_v19, %v2790_v22  ;;  %v12053_v51 = vcombine.high %v2650_v20, %v2654_v6 }
 0x63b   :  { %6166 = vmatpush2.bf16.msra.mxu0 %v12354_v49 }
 0x63c   :  { %6167 = vmatprep.subr.bf16.mxu0 %v12347_v45  ;;  %v2782_v45 = vld [vmem:[#allocation16 + $0x538] sm:$0xff] }
 0x63d   :  { %6207 = vmatpush2.bf16.msra.mxu1 %v12482_v4  ;;  %v12181_v40 = vcombine.high %v2778_v48, %v2782_v45 }
 0x63e   :  { %6208 = vmatprep.subr.bf16.mxu1 %v12475_v18  ;;  %v12188_v18 = vcombine.low %v2786_v19, %v2790_v22  ;;  %v2750_v19 = vld [vmem:[#allocation16 + $0x438] sm:$0xff] }
 0x63f   :  { %6168 = vmatpush2.bf16.msra.mxu0 %v12346_v17  ;;  %v2646_v17 = vld [vmem:[#allocation16 + $0xf8] sm:$0xff] }
 0x640   :  { %6169 = vmatprep.subr.bf16.mxu0 %v12339_v9  ;;  %v12052_v9 = vcombine.low %v2650_v20, %v2654_v6  ;;  %v2866_v20 = vld [vmem:[#allocation16 + $0x7d8] sm:$0xff] }
 0x641   :  { %6209 = vmatpush2.bf16.msra.mxu1 %v12474_v59  ;;  %v2770_v59 = vld [vmem:[#allocation16 + $0x4d8] sm:$0xff] }
 0x642   :  { %6210 = vmatprep.subr.bf16.mxu1 %v12467_v55  ;;  %v12180_v55 = vcombine.low %v2778_v48, %v2782_v45  ;;  %v12173_v31 = vcombine.high %v2770_v59, %v2774_v23  ;;  %v2870_v6 = vld [vmem:[#allocation16 + $0x7f8] sm:$0xff] }
 0x643   :  { %6170 = vmatpush2.bf16.msra.mxu0 %v12338_v52  ;;  %v2634_v52 = vld [vmem:[#allocation16 + $0x98] sm:$0xff]  ;;  %v12269_v48 = vcombine.high %v2866_v20, %v2870_v6 }
 0x644   :  { %6221 = vmatprep.subr.bf16.mxu0 %v12077_v25  ;;  %v12037_v12 = vcombine.high %v2634_v52, %v2638_v1  ;;  %v12036_v13 = vcombine.low %v2634_v52, %v2638_v1  ;;  %v2718_v52 = vld [vmem:[#allocation16 + $0x338] sm:$0xff] }
 0x645   :  { %6211 = vmatpush2.bf16.msra.mxu1 %v12466_v54  ;;  %v2762_v54 = vld [vmem:[#allocation16 + $0x498] sm:$0xff] }
 0x646   :  { %v5927_v44 = vpop.f32.mrf.mxu0  ;;  %6172 = vmatmul.mubr.bf16.vlgmr.msra.gmra.mxu0 %v14712_v57  ;;  %6262 = vmatprep.subr.bf16.mxu1 %v12205_v35  ;;  %v12172_v35 = vcombine.low %v2770_v59, %v2774_v23  ;;  %v12165_v27 = vcombine.high %v2762_v54, %v2766_v24  ;;  %v12164_v62 = vcombine.low %v2762_v54, %v2766_v24  ;;  %v2854_v59 = vld [vmem:[#allocation16 + $0x778] sm:$0xff] }
 0x647   :  { %v5928_v10 = vadd.f32 %v5927_v44, %v3140_v32  ;;  %6222 = vmatpush1.bf16.msra.mxu0 %v12076_v15  ;;  %6253 = vmatprep.mubr.bf16.mxu0 %v14670_v39  ;;  %v2626_v32 = vld [vmem:[#allocation16 + $0x58] sm:$0xff] }
 0x648   :  { %v5929_v53 = vpop.f32.mrf.mxu0  ;;  %v5968_v11 = vpop.f32.mrf.mxu1  ;;  %6213 = vmatmul.mubr.bf16.vlgmr.msra.gmra.mxu1 %v14718_v8  ;;  %6223 = vmatprep.subr.bf16.mxu0 %v12069_v34  ;;  %v2630_v15 = vld [vmem:[#allocation16 + $0x78] sm:$0xff] }
 0x649   :  { %v5930_v29 = vadd.f32 %v5929_v53, %v3144_v21  ;;  %v14763_v33 = vadd.f32 %v5968_v11, %v5928_v10  ;;  %6263 = vmatpush1.bf16.msra.mxu1 %v12204_v37  ;;  %6294 = vmatprep.mubr.bf16.mxu1 %v14675_v7  ;;  %v2642_v7 = vld [vmem:[#allocation16 + $0xd8] sm:$0xff]  ;;  %v12029_v37 = vcombine.high %v2626_v32, %v2630_v15 }
 0x64a   :  { %v5931_v43 = vpop.f32.mrf.mxu0  ;;  %v5970_v39 = vpop.f32.mrf.mxu1  ;;  %6264 = vmatprep.subr.bf16.mxu1 %v12197_v0  ;;  %v12045_v3 = vcombine.high %v2642_v7, %v2646_v17  ;;  %v12044_v25 = vcombine.low %v2642_v7, %v2646_v17  ;;  %v2754_v34 = vld [vmem:[#allocation16 + $0x458] sm:$0xff]  ;;  %v12028_v10 = vcombine.low %v2626_v32, %v2630_v15 }
 0x64b   :  { %v14766_v49 = vadd.f32 %v5970_v39, %v5930_v29  ;;  %6224 = vmatpush1.bf16.msra.mxu0 %v12068_v38  ;;  %v2758_v21 = vld [vmem:[#allocation16 + $0x478] sm:$0xff] }
 0x64c   :  { %v5932_v4 = vpop.f32.mrf.mxu0  ;;  %v5972_v14 = vpop.f32.mrf.mxu1  ;;  %6225 = vmatprep.subr.bf16.mxu0 %v12061_v60  ;;  %v2622_v44 = vld [vmem:[#allocation16 + $0x38] sm:$0xff]  ;;  %v12157_v0 = vcombine.high %v2754_v34, %v2758_v21  ;;  %v12156_v53 = vcombine.low %v2754_v34, %v2758_v21 }
 0x64d   :  { %6265 = vmatpush1.bf16.msra.mxu1 %v12196_v42  ;;  %v2746_v38 = vld [vmem:[#allocation16 + $0x418] sm:$0xff]  ;;  %v12021_v22 = vcombine.high %v2618_v58, %v2622_v44  ;;  %v12020_v42 = vcombine.low %v2618_v58, %v2622_v44 }
 0x64e   :  { %v5973_v16 = vpop.f32.mrf.mxu1  ;;  %6266 = vmatprep.subr.bf16.mxu1 %v12189_v56  ;;  %v2738_v11 = vld [vmem:[#allocation16 + $0x3d8] sm:$0xff]  ;;  %v12149_v29 = vcombine.high %v2746_v38, %v2750_v19  ;;  %v12148_v39 = vcombine.low %v2746_v38, %v2750_v19 }
 0x64f   :  { %6226 = vmatpush1.bf16.msra.mxu0 %v12060_v50  ;;  %v2742_v60 = vld [vmem:[#allocation16 + $0x3f8] sm:$0xff] }
 0x650   :  { %6227 = vmatprep.subr.bf16.mxu0 %v12053_v51  ;;  %v12141_v43 = vcombine.high %v2738_v11, %v2742_v60  ;;  %v2730_v56 = vld [vmem:[#allocation16 + $0x398] sm:$0xff]  ;;  %v12140_v45 = vcombine.low %v2738_v11, %v2742_v60 }
 0x651   :  { %6267 = vmatpush1.bf16.msra.mxu1 %v12188_v18  ;;  %v2734_v50 = vld [vmem:[#allocation16 + $0x3b8] sm:$0xff]  ;;  %v12268_v18 = vcombine.low %v2866_v20, %v2870_v6 }
 0x652   :  { %6268 = vmatprep.subr.bf16.mxu1 %v12181_v40  ;;  %v2858_v4 = vld [vmem:[#allocation16 + $0x798] sm:$0xff]  ;;  %v12133_v51 = vcombine.high %v2730_v56, %v2734_v50  ;;  %v12132_v40 = vcombine.low %v2730_v56, %v2734_v50 }
 0x653   :  { %6228 = vmatpush1.bf16.msra.mxu0 %v12052_v9  ;;  %v2862_v14 = vld [vmem:[#allocation16 + $0x7b8] sm:$0xff] }
 0x654   :  { %6229 = vmatprep.subr.bf16.mxu0 %v12045_v3  ;;  %v2722_v7 = vld [vmem:[#allocation16 + $0x358] sm:$0xff]  ;;  %v12261_v16 = vcombine.high %v2858_v4, %v2862_v14  ;;  %v12260_v3 = vcombine.low %v2858_v4, %v2862_v14 }
 0x655   :  { %6269 = vmatpush1.bf16.msra.mxu1 %v12180_v55  ;;  %v2726_v17 = vld [vmem:[#allocation16 + $0x378] sm:$0xff] }
 0x656   :  { %6270 = vmatprep.subr.bf16.mxu1 %v12173_v31  ;;  %v2850_v9 = vld [vmem:[#allocation16 + $0x758] sm:$0xff]  ;;  %v12125_v23 = vcombine.high %v2722_v7, %v2726_v17  ;;  %v12124_v31 = vcombine.low %v2722_v7, %v2726_v17 }
 0x657   :  { %6230 = vmatpush1.bf16.msra.mxu0 %v12044_v25  ;;  %v2714_v55 = vld [vmem:[#allocation16 + $0x318] sm:$0xff]  ;;  %v12253_v1 = vcombine.high %v2850_v9, %v2854_v59 }
 0x658   :  { %6231 = vmatprep.subr.bf16.mxu0 %v12037_v12  ;;  %v2842_v25 = vld [vmem:[#allocation16 + $0x718] sm:$0xff]  ;;  %v12117_v24 = vcombine.high %v2714_v55, %v2718_v52  ;;  %v12252_v12 = vcombine.low %v2850_v9, %v2854_v59 }
 0x659   :  { %6271 = vmatpush1.bf16.msra.mxu1 %v12172_v35  ;;  %v2846_v54 = vld [vmem:[#allocation16 + $0x738] sm:$0xff] }
 0x65a   :  { %6272 = vmatprep.subr.bf16.mxu1 %v12165_v27  ;;  %v2706_v35 = vld [vmem:[#allocation16 + $0x2d8] sm:$0xff]  ;;  %v12245_v15 = vcombine.high %v2842_v25, %v2846_v54  ;;  %v12116_v27 = vcombine.low %v2714_v55, %v2718_v52 }
 0x65b   :  { %6232 = vmatpush1.bf16.msra.mxu0 %v12036_v13  ;;  %v2710_v32 = vld [vmem:[#allocation16 + $0x2f8] sm:$0xff] }
 0x65c   :  { %6233 = vmatprep.subr.bf16.mxu0 %v12029_v37  ;;  %v2834_v13 = vld [vmem:[#allocation16 + $0x6d8] sm:$0xff]  ;;  %v12109_v21 = vcombine.high %v2706_v35, %v2710_v32  ;;  %v12244_v37 = vcombine.low %v2842_v25, %v2846_v54 }
 0x65d   :  { %6273 = vmatpush1.bf16.msra.mxu1 %v12164_v62  ;;  %v2838_v34 = vld [vmem:[#allocation16 + $0x6f8] sm:$0xff] }
 0x65e   :  { %6274 = vmatprep.subr.bf16.mxu1 %v12157_v0  ;;  %v2698_v62 = vld [vmem:[#allocation16 + $0x298] sm:$0xff]  ;;  %v12237_v44 = vcombine.high %v2834_v13, %v2838_v34  ;;  %v12108_v0 = vcombine.low %v2706_v35, %v2710_v32 }
 0x65f   :  { %6234 = vmatpush1.bf16.msra.mxu0 %v12028_v10  ;;  %v2702_v58 = vld [vmem:[#allocation16 + $0x2b8] sm:$0xff] }
 0x660   :  { %6235 = vmatprep.subr.bf16.mxu0 %v12021_v22  ;;  %v2826_v10 = vld [vmem:[#allocation16 + $0x698] sm:$0xff]  ;;  %v12101_v19 = vcombine.high %v2698_v62, %v2702_v58  ;;  %v12236_v22 = vcombine.low %v2834_v13, %v2838_v34 }
 0x661   :  { %6275 = vmatpush1.bf16.msra.mxu1 %v12156_v53  ;;  %v2830_v38 = vld [vmem:[#allocation16 + $0x6b8] sm:$0xff] }
 0x662   :  { %6276 = vmatprep.subr.bf16.mxu1 %v12149_v29  ;;  %v2690_v53 = vld [vmem:[#allocation16 + $0x258] sm:$0xff]  ;;  %v12229_v60 = vcombine.high %v2826_v10, %v2830_v38  ;;  %v12100_v29 = vcombine.low %v2698_v62, %v2702_v58 }
 0x663   :  { %6236 = vmatpush1.bf16.msra.mxu0 %v12020_v42  ;;  %v2694_v11 = vld [vmem:[#allocation16 + $0x278] sm:$0xff] }
 0x664   :  { %6237 = vmatprep.subr.bf16.mxu0 %v12141_v43  ;;  %v2818_v42 = vld [vmem:[#allocation16 + $0x658] sm:$0xff]  ;;  %v12093_v6 = vcombine.high %v2690_v53, %v2694_v11  ;;  %v12228_v43 = vcombine.low %v2826_v10, %v2830_v38 }
 0x665   :  { %6277 = vmatpush1.bf16.msra.mxu1 %v12148_v39  ;;  %v2822_v20 = vld [vmem:[#allocation16 + $0x678] sm:$0xff] }
 0x666   :  { %6278 = vmatprep.subr.bf16.mxu1 %v12269_v48  ;;  %v2682_v39 = vld [vmem:[#allocation16 + $0x218] sm:$0xff]  ;;  %v12221_v50 = vcombine.high %v2818_v42, %v2822_v20  ;;  %v12092_v48 = vcombine.low %v2690_v53, %v2694_v11 }
 0x667   :  { %6238 = vmatpush2.bf16.msra.mxu0 %v12140_v45  ;;  %v2686_v56 = vld [vmem:[#allocation16 + $0x238] sm:$0xff] }
 0x668   :  { %6239 = vmatprep.subr.bf16.mxu0 %v12133_v51  ;;  %v2810_v45 = vld [vmem:[#allocation16 + $0x618] sm:$0xff]  ;;  %v12085_v14 = vcombine.high %v2682_v39, %v2686_v56  ;;  %v12220_v51 = vcombine.low %v2818_v42, %v2822_v20 }
 0x669   :  { %6279 = vmatpush2.bf16.msra.mxu1 %v12268_v18  ;;  %v2814_v4 = vld [vmem:[#allocation16 + $0x638] sm:$0xff] }
 0x66a   :  { %6280 = vmatprep.subr.bf16.mxu1 %v12261_v16  ;;  %v2930_v18 = vld [vmem:[#allocation16 + $0x9d8] sm:$0xff]  ;;  %v12213_v17 = vcombine.high %v2810_v45, %v2814_v4  ;;  %v12084_v16 = vcombine.low %v2682_v39, %v2686_v56 }
 0x66b   :  { %6240 = vmatpush2.bf16.msra.mxu0 %v12132_v40  ;;  %v2934_v7 = vld [vmem:[#allocation16 + $0x9f8] sm:$0xff] }
 0x66c   :  { %6241 = vmatprep.subr.bf16.mxu0 %v12125_v23  ;;  %v3058_v40 = vld [vmem:[#allocation16 + $0xdd8] sm:$0xff]  ;;  %v12333_v59 = vcombine.high %v2930_v18, %v2934_v7  ;;  %v12212_v23 = vcombine.low %v2810_v45, %v2814_v4 }
 0x66d   :  { %6281 = vmatpush2.bf16.msra.mxu1 %v12260_v3  ;;  %v3062_v9 = vld [vmem:[#allocation16 + $0xdf8] sm:$0xff] }
 0x66e   :  { %6282 = vmatprep.subr.bf16.mxu1 %v12253_v1  ;;  %v2922_v3 = vld [vmem:[#allocation16 + $0x998] sm:$0xff]  ;;  %v12461_v52 = vcombine.high %v3058_v40, %v3062_v9  ;;  %v12332_v1 = vcombine.low %v2930_v18, %v2934_v7 }
 0x66f   :  { %6242 = vmatpush2.bf16.msra.mxu0 %v12124_v31  ;;  %v2926_v55 = vld [vmem:[#allocation16 + $0x9b8] sm:$0xff] }
 0x670   :  { %6243 = vmatprep.subr.bf16.mxu0 %v12117_v24  ;;  %v3050_v31 = vld [vmem:[#allocation16 + $0xd98] sm:$0xff]  ;;  %v12325_v54 = vcombine.high %v2922_v3, %v2926_v55  ;;  %v12460_v24 = vcombine.low %v3058_v40, %v3062_v9  ;;  %v12324_v13 = vcombine.low %v2922_v3, %v2926_v55 }
 0x671   :  { %6283 = vmatpush2.bf16.msra.mxu1 %v12252_v12  ;;  %v3054_v25 = vld [vmem:[#allocation16 + $0xdb8] sm:$0xff] }
 0x672   :  { %6284 = vmatprep.subr.bf16.mxu1 %v12245_v15  ;;  %v2914_v12 = vld [vmem:[#allocation16 + $0x958] sm:$0xff]  ;;  %v12453_v15 = vcombine.high %v3050_v31, %v3054_v25 }
 0x673   :  { %6244 = vmatpush2.bf16.msra.mxu0 %v12116_v27  ;;  %v2918_v35 = vld [vmem:[#allocation16 + $0x978] sm:$0xff] }
 0x674   :  { %6245 = vmatprep.subr.bf16.mxu0 %v12109_v21  ;;  %v3042_v34 = vld [vmem:[#allocation16 + $0xd58] sm:$0xff]  ;;  %v12317_v58 = vcombine.high %v2914_v12, %v2918_v35 }
 0x675   :  { %6285 = vmatpush2.bf16.msra.mxu1 %v12244_v37  ;;  %v3046_v21 = vld [vmem:[#allocation16 + $0xd78] sm:$0xff] }
 0x676   :  { %6286 = vmatprep.subr.bf16.mxu1 %v12237_v44  ;;  %v12445_v38 = vcombine.high %v3042_v34, %v3046_v21  ;;  %v3038_v53 = vld [vmem:[#allocation16 + $0xd38] sm:$0xff] }
 0x677   :  { %6246 = vmatpush2.bf16.msra.mxu0 %v12108_v0  ;;  %v2910_v0 = vld [vmem:[#allocation16 + $0x938] sm:$0xff] }
 0x678   :  { %6247 = vmatprep.subr.bf16.mxu0 %v12101_v19  ;;  %v12316_v19 = vcombine.low %v2914_v12, %v2918_v35  ;;  %v2898_v42 = vld [vmem:[#allocation16 + $0x8d8] sm:$0xff] }
 0x679   :  { %6287 = vmatpush2.bf16.msra.mxu1 %v12236_v22  ;;  %v3034_v22 = vld [vmem:[#allocation16 + $0xd18] sm:$0xff] }
 0x67a   :  { %6288 = vmatprep.subr.bf16.mxu1 %v12229_v60  ;;  %v3026_v39 = vld [vmem:[#allocation16 + $0xcd8] sm:$0xff] }
 0x67b   :  { %6248 = vmatpush2.bf16.msra.mxu0 %v12100_v29  ;;  %v12444_v29 = vcombine.low %v3042_v34, %v3046_v21  ;;  %v3030_v56 = vld [vmem:[#allocation16 + $0xcf8] sm:$0xff] }
 0x67c   :  { %6249 = vmatprep.subr.bf16.mxu0 %v12093_v6  ;;  %v12437_v6 = vcombine.high %v3034_v22, %v3038_v53  ;;  %v2890_v45 = vld [vmem:[#allocation16 + $0x898] sm:$0xff] }
 0x67d   :  { %6289 = vmatpush2.bf16.msra.mxu1 %v12228_v43  ;;  %v2894_v4 = vld [vmem:[#allocation16 + $0x8b8] sm:$0xff] }
 0x67e   :  { %6290 = vmatprep.subr.bf16.mxu1 %v12221_v50  ;;  %v3018_v18 = vld [vmem:[#allocation16 + $0xc98] sm:$0xff] }
 0x67f   :  { %6250 = vmatpush2.bf16.msra.mxu0 %v12092_v48  ;;  %v12436_v48 = vcombine.low %v3034_v22, %v3038_v53  ;;  %v3022_v7 = vld [vmem:[#allocation16 + $0xcb8] sm:$0xff] }
 0x680   :  { %6251 = vmatprep.subr.bf16.mxu0 %v12085_v14  ;;  %v12429_v14 = vcombine.high %v3026_v39, %v3030_v56  ;;  %v2882_v40 = vld [vmem:[#allocation16 + $0x858] sm:$0xff] }
 0x681   :  { %6291 = vmatpush2.bf16.msra.mxu1 %v12220_v51  ;;  %v2886_v9 = vld [vmem:[#allocation16 + $0x878] sm:$0xff] }
 0x682   :  { %6292 = vmatprep.subr.bf16.mxu1 %v12213_v17  ;;  %v12293_v17 = vcombine.high %v2890_v45, %v2894_v4  ;;  %v3010_v3 = vld [vmem:[#allocation16 + $0xc58] sm:$0xff] }
 0x683   :  { %6252 = vmatpush2.bf16.msra.mxu0 %v12084_v16  ;;  %v12428_v16 = vcombine.low %v3026_v39, %v3030_v56  ;;  %v3014_v55 = vld [vmem:[#allocation16 + $0xc78] sm:$0xff] }
 0x684   :  { %6303 = vmatprep.subr.bf16.mxu0 %v12333_v59  ;;  %v12421_v59 = vcombine.high %v3018_v18, %v3022_v7  ;;  %v3002_v12 = vld [vmem:[#allocation16 + $0xc18] sm:$0xff] }
 0x685   :  { %6293 = vmatpush2.bf16.msra.mxu1 %v12212_v23  ;;  %v12292_v23 = vcombine.low %v2890_v45, %v2894_v4  ;;  %v3006_v35 = vld [vmem:[#allocation16 + $0xc38] sm:$0xff] }
 0x686   :  { %v6009_v32 = vpop.f32.mrf.mxu0  ;;  %6254 = vmatmul.mubr.bf16.vlgmr.msra.gmra.mxu0 %v14672_v5  ;;  %6344 = vmatprep.subr.bf16.mxu1 %v12461_v52  ;;  %v12452_v5 = vcombine.low %v3050_v31, %v3054_v25  ;;  %v12285_v52 = vcombine.high %v2882_v40, %v2886_v9  ;;  %v2874_v31 = vld [vmem:[#allocation16 + $0x818] sm:$0xff]  ;;  %v12405_v34 = vcombine.high %v3002_v12, %v3006_v35 }
 0x687   :  { %v6010_v27 = vadd.f32 %v6009_v32, %v14763_v33  ;;  %6304 = vmatpush1.bf16.msra.mxu0 %v12332_v1  ;;  %6335 = vmatprep.mubr.bf16.mxu0 %v14710_v26  ;;  %v2906_v33 = vld [vmem:[#allocation16 + $0x918] sm:$0xff]  ;;  %v12420_v1 = vcombine.low %v3018_v18, %v3022_v7 }
 0x688   :  { %v14771_v37 = vpop.f32.mrf.mxu0  ;;  %v6050_v62 = vpop.f32.mrf.mxu1  ;;  %6295 = vmatmul.mubr.bf16.vlgmr.msra.gmra.mxu1 %v14678_v46  ;;  %6305 = vmatprep.subr.bf16.mxu0 %v12325_v54  ;;  %v12309_v60 = vcombine.high %v2906_v33, %v2910_v0  ;;  %v12308_v43 = vcombine.low %v2906_v33, %v2910_v0  ;;  %v2878_v25 = vld [vmem:[#allocation16 + $0x838] sm:$0xff]  ;;  %v12413_v54 = vcombine.high %v3010_v3, %v3014_v55 }
 0x689   :  { %v14774_v44 = vadd.f32 %v6050_v62, %v6010_v27  ;;  %6345 = vmatpush1.bf16.msra.mxu1 %v12460_v24  ;;  %6376 = vmatprep.mubr.bf16.mxu1 %v14715_v30  ;;  %v2902_v30 = vld [vmem:[#allocation16 + $0x8f8] sm:$0xff]  ;;  %v12284_v24 = vcombine.low %v2882_v40, %v2886_v9  ;;  %v12277_v32 = vcombine.high %v2874_v31, %v2878_v25 }
 0x68a   :  { %v6013_v10 = vpop.f32.mrf.mxu0  ;;  %v14777_v26 = vpop.f32.mrf.mxu1  ;;  %6346 = vmatprep.subr.bf16.mxu1 %v12453_v15  ;;  %v12301_v50 = vcombine.high %v2898_v42, %v2902_v30  ;;  %v12300_v51 = vcombine.low %v2898_v42, %v2902_v30  ;;  %v12412_v15 = vcombine.low %v3010_v3, %v3014_v55  ;;  %v2994_v27 = vld [vmem:[#allocation16 + $0xbd8] sm:$0xff]  ;;  %v12276_v21 = vcombine.low %v2874_v31, %v2878_v25 }
 0x68b   :  { %6306 = vmatpush1.bf16.msra.mxu0 %v12324_v13  ;;  %v2998_v13 = vld [vmem:[#allocation16 + $0xbf8] sm:$0xff]  ;;  %v12404_v33 = vcombine.low %v3002_v12, %v3006_v35 }
 0x68c   :  { %v6014_v46 = vpop.f32.mrf.mxu0  ;;  %v6054_v11 = vpop.f32.mrf.mxu1  ;;  %6307 = vmatprep.subr.bf16.mxu0 %v12317_v58  ;;  %v3122_v62 = vld [vmem:[#allocation16 + $0xfd8] sm:$0xff] }
 0x68d   :  { %6347 = vmatpush1.bf16.msra.mxu1 %v12452_v5  ;;  %v3126_v58 = vld [vmem:[#allocation16 + $0xff8] sm:$0xff]  ;;  %v12397_v5 = vcombine.high %v2994_v27, %v2998_v13 }
 0x68e   :  { %v6055_v20 = vpop.f32.mrf.mxu1  ;;  %6348 = vmatprep.subr.bf16.mxu1 %v12445_v38  ;;  %v2986_v0 = vld [vmem:[#allocation16 + $0xb98] sm:$0xff]  ;;  %v12525_v38 = vcombine.high %v3122_v62, %v3126_v58  ;;  %v12524_v11 = vcombine.low %v3122_v62, %v3126_v58 }
 0x68f   :  { %6308 = vmatpush1.bf16.msra.mxu0 %v12316_v19  ;;  %v2990_v10 = vld [vmem:[#allocation16 + $0xbb8] sm:$0xff]  ;;  %v12396_v19 = vcombine.low %v2994_v27, %v2998_v13 }
 0x690   :  { %6309 = vmatprep.subr.bf16.mxu0 %v12309_v60  ;;  %v3114_v22 = vld [vmem:[#allocation16 + $0xf98] sm:$0xff]  ;;  %v12389_v46 = vcombine.high %v2986_v0, %v2990_v10  ;;  %v12388_v30 = vcombine.low %v2986_v0, %v2990_v10 }
 0x691   :  { %6349 = vmatpush1.bf16.msra.mxu1 %v12444_v29  ;;  %v3118_v53 = vld [vmem:[#allocation16 + $0xfb8] sm:$0xff] }
 0x692   :  { %6350 = vmatprep.subr.bf16.mxu1 %v12437_v6  ;;  %v2978_v60 = vld [vmem:[#allocation16 + $0xb58] sm:$0xff]  ;;  %v12517_v42 = vcombine.high %v3114_v22, %v3118_v53  ;;  %v12516_v39 = vcombine.low %v3114_v22, %v3118_v53  ;;  %v6449_v53 = vld [vmem:[#allocation19 + $0x1c0] sm:$0xff] }
 0x693   :  { %6310 = vmatpush1.bf16.msra.mxu0 %v12308_v43  ;;  %v2982_v29 = vld [vmem:[#allocation16 + $0xb78] sm:$0xff] }
 0x694   :  { %6311 = vmatprep.subr.bf16.mxu0 %v12301_v50  ;;  %v3106_v20 = vld [vmem:[#allocation16 + $0xf58] sm:$0xff]  ;;  %v12381_v43 = vcombine.high %v2978_v60, %v2982_v29  ;;  %v12380_v45 = vcombine.low %v2978_v60, %v2982_v29  ;;  %v6012_v60 = vadd.f32 %v14771_v37, %v14766_v49 }
 0x695   :  { %6351 = vmatpush1.bf16.msra.mxu1 %v12436_v48  ;;  %v3110_v6 = vld [vmem:[#allocation16 + $0xf78] sm:$0xff] }
 0x696   :  { %6352 = vmatprep.subr.bf16.mxu1 %v12429_v14  ;;  %v2970_v56 = vld [vmem:[#allocation16 + $0xb18] sm:$0xff]  ;;  %v12509_v48 = vcombine.high %v3106_v20, %v3110_v6  ;;  %v12508_v18 = vcombine.low %v3106_v20, %v3110_v6  ;;  %v6581_v20 = vld [vmem:[#allocation19 + $0x5e0] sm:$0xff] }
 0x697   :  { %6312 = vmatpush1.bf16.msra.mxu0 %v12300_v51  ;;  %v2974_v50 = vld [vmem:[#allocation16 + $0xb38] sm:$0xff] }
 0x698   :  { %6313 = vmatprep.subr.bf16.mxu0 %v12293_v17  ;;  %v3098_v4 = vld [vmem:[#allocation16 + $0xf18] sm:$0xff]  ;;  %v12373_v51 = vcombine.high %v2970_v56, %v2974_v50  ;;  %v12372_v40 = vcombine.low %v2970_v56, %v2974_v50  ;;  %v6445_v56 = vld [vmem:[#allocation19 + $0x1a0] sm:$0xff] }
 0x699   :  { %6353 = vmatpush1.bf16.msra.mxu1 %v12428_v16  ;;  %v3102_v14 = vld [vmem:[#allocation16 + $0xf38] sm:$0xff] }
 0x69a   :  { %6354 = vmatprep.subr.bf16.mxu1 %v12421_v59  ;;  %v2962_v7 = vld [vmem:[#allocation16 + $0xad8] sm:$0xff]  ;;  %v12501_v16 = vcombine.high %v3098_v4, %v3102_v14  ;;  %v12500_v3 = vcombine.low %v3098_v4, %v3102_v14  ;;  %v6569_v4 = vld [vmem:[#allocation19 + $0x580] sm:$0xff] }
 0x69b   :  { %6314 = vmatpush1.bf16.msra.mxu0 %v12292_v23  ;;  %v2966_v17 = vld [vmem:[#allocation16 + $0xaf8] sm:$0xff]  ;;  %v6573_v14 = vld [vmem:[#allocation19 + $0x5a0] sm:$0xff] }
 0x69c   :  { %6315 = vmatprep.subr.bf16.mxu0 %v12285_v52  ;;  %v3090_v9 = vld [vmem:[#allocation16 + $0xed8] sm:$0xff]  ;;  %v12365_v23 = vcombine.high %v2962_v7, %v2966_v17  ;;  %v12364_v31 = vcombine.low %v2962_v7, %v2966_v17  ;;  %v6433_v17 = vld [vmem:[#allocation19 + $0x140] sm:$0xff] }
 0x69d   :  { %6355 = vmatpush1.bf16.msra.mxu1 %v12420_v1  ;;  %v3094_v59 = vld [vmem:[#allocation16 + $0xef8] sm:$0xff] }
 0x69e   :  { %6356 = vmatprep.subr.bf16.mxu1 %v12413_v54  ;;  %v2954_v55 = vld [vmem:[#allocation16 + $0xa98] sm:$0xff]  ;;  %v12493_v1 = vcombine.high %v3090_v9, %v3094_v59  ;;  %v12492_v12 = vcombine.low %v3090_v9, %v3094_v59 }
 0x69f   :  { %6316 = vmatpush1.bf16.msra.mxu0 %v12284_v24  ;;  %v2958_v52 = vld [vmem:[#allocation16 + $0xab8] sm:$0xff] }
 0x6a0   :  { %6317 = vmatprep.subr.bf16.mxu0 %v12277_v32  ;;  %v3082_v25 = vld [vmem:[#allocation16 + $0xe98] sm:$0xff]  ;;  %v12357_v24 = vcombine.high %v2954_v55, %v2958_v52  ;;  %v12356_v27 = vcombine.low %v2954_v55, %v2958_v52  ;;  %v6565_v55 = vld [vmem:[#allocation19 + $0x560] sm:$0xff] }
 0x6a1   :  { %6357 = vmatpush1.bf16.msra.mxu1 %v12412_v15  ;;  %v3086_v54 = vld [vmem:[#allocation16 + $0xeb8] sm:$0xff] }
 0x6a2   :  { %6358 = vmatprep.subr.bf16.mxu1 %v12405_v34  ;;  %v2946_v35 = vld [vmem:[#allocation16 + $0xa58] sm:$0xff]  ;;  %v12485_v15 = vcombine.high %v3082_v25, %v3086_v54  ;;  %v12484_v62 = vcombine.low %v3082_v25, %v3086_v54  ;;  %v6425_v25 = vld [vmem:[#allocation19 + $0x100] sm:$0xff] }
 0x6a3   :  { %6318 = vmatpush1.bf16.msra.mxu0 %v12276_v21  ;;  %v2950_v32 = vld [vmem:[#allocation16 + $0xa78] sm:$0xff]  ;;  %v6429_v54 = vld [vmem:[#allocation19 + $0x120] sm:$0xff] }
 0x6a4   :  { %6319 = vmatprep.subr.bf16.mxu0 %v12397_v5  ;;  %v3074_v13 = vld [vmem:[#allocation16 + $0xe58] sm:$0xff]  ;;  %v12349_v21 = vcombine.high %v2946_v35, %v2950_v32  ;;  %v12348_v0 = vcombine.low %v2946_v35, %v2950_v32 }
 0x6a5   :  { %6359 = vmatpush1.bf16.msra.mxu1 %v12404_v33  ;;  %v3078_v34 = vld [vmem:[#allocation16 + $0xe78] sm:$0xff] }
 0x6a6   :  { %6360 = vmatprep.subr.bf16.mxu1 %v12525_v38  ;;  %v2938_v58 = vld [vmem:[#allocation16 + $0xa18] sm:$0xff]  ;;  %v12477_v33 = vcombine.high %v3074_v13, %v3078_v34  ;;  %v12476_v22 = vcombine.low %v3074_v13, %v3078_v34  ;;  %v12559_v34 = vcombine.high %v6425_v25, %v6429_v54 }
 0x6a7   :  { %6320 = vmatpush2.bf16.msra.mxu0 %v12396_v19  ;;  %v2942_v5 = vld [vmem:[#allocation16 + $0xa38] sm:$0xff] }
 0x6a8   :  { %6321 = vmatprep.subr.bf16.mxu0 %v12389_v46  ;;  %v3066_v10 = vld [vmem:[#allocation16 + $0xe18] sm:$0xff]  ;;  %v12341_v19 = vcombine.high %v2938_v58, %v2942_v5  ;;  %v6453_v46 = vld [vmem:[#allocation19 + $0x1e0] sm:$0xff]  ;;  %v12340_v29 = vcombine.low %v2938_v58, %v2942_v5 }
 0x6a9   :  { %6361 = vmatpush2.bf16.msra.mxu1 %v12524_v11  ;;  %v3070_v38 = vld [vmem:[#allocation16 + $0xe38] sm:$0xff]  ;;  %v12583_v6 = vcombine.high %v6449_v53, %v6453_v46  ;;  %v12582_v37 = vcombine.low %v6449_v53, %v6453_v46  ;;  %v6421_v58 = vld [vmem:[#allocation19 + $0xe0] sm:$0xff] }
 0x6aa   :  { %6362 = vmatprep.subr.bf16.mxu1 %v12517_v42  ;;  %v12469_v11 = vcombine.high %v3066_v10, %v3070_v38  ;;  %v3147_v42 = vsub.s32 4, %v15865_v47  ;;  %v6409_v53 = vld [vmem:[#allocation19 + $0x80] sm:$0xff] }
 0x6ab   :  { %6322 = vmatpush2.bf16.msra.mxu0 %v12388_v30  ;;  %v6577_v30 = vld [vmem:[#allocation19 + $0x5c0] sm:$0xff] }
 0x6ac   :  { %6323 = vmatprep.subr.bf16.mxu0 %v12381_v43  ;;  %v12468_v43 = vcombine.low %v3066_v10, %v3070_v38  ;;  %v12711_v50 = vcombine.high %v6577_v30, %v6581_v20  ;;  %v12710_v7 = vcombine.low %v6577_v30, %v6581_v20  ;;  %v6545_v10 = vld [vmem:[#allocation19 + $0x4c0] sm:$0xff] }
 0x6ad   :  { %6363 = vmatpush2.bf16.msra.mxu1 %v12516_v39  ;;  %v6441_v39 = vld [vmem:[#allocation19 + $0x180] sm:$0xff] }
 0x6ae   :  { %6364 = vmatprep.subr.bf16.mxu1 %v12509_v48  ;;  %v6053_v48 = vadd.f32 %v14777_v26, %v6012_v60  ;;  %v6437_v26 = vld [vmem:[#allocation19 + $0x160] sm:$0xff] }
 0x6af   :  { %6324 = vmatpush2.bf16.msra.mxu0 %v12380_v45  ;;  %v14783_v45 = vld [vmem:[#allocation18] sm:$0xff]  ;;  %v12566_v32 = vcombine.low %v6433_v17, %v6437_v26  ;;  %v6549_v38 = vld [vmem:[#allocation19 + $0x4e0] sm:$0xff] }
 0x6b0   :  { %6325 = vmatprep.subr.bf16.mxu0 %v12373_v51  ;;  %v3148_v49 = vrot.slane %v14783_v45, %v3147_v42  ;;  %v12575_v51 = vcombine.high %v6441_v39, %v6445_v56  ;;  %v14793_v9 = vpack.c.bf16 %v6053_v48, %v6053_v48  ;;  %v6413_v46 = vld [vmem:[#allocation19 + $0xa0] sm:$0xff] }
 0x6b1   :  { %6365 = vmatpush2.bf16.msra.mxu1 %v12508_v18  ;;  %v14790_v18 = vpack.c.bf16 %v14750_v2, %v14750_v2  ;;  %v6541_v30 = vld [vmem:[#allocation19 + $0x4a0] sm:$0xff]  ;;  %v12543_v20 = vcombine.high %v6409_v53, %v6413_v46 }
 0x6b2   :  { %6366 = vmatprep.subr.bf16.mxu1 %v12501_v16  ;;  %v6529_v48 = vld [vmem:[#allocation19 + $0x440] sm:$0xff] }
 0x6b3   :  { %6326 = vmatpush2.bf16.msra.mxu0 %v12372_v40  ;;  %v12703_v40 = vcombine.high %v6569_v4, %v6573_v14 }
 0x6b4   :  { %6327 = vmatprep.subr.bf16.mxu0 %v12365_v23  ;;  %v12574_v23 = vcombine.low %v6441_v39, %v6445_v56  ;;  %v6405_v39 = vld [vmem:[#allocation19 + $0x60] sm:$0xff] }
 0x6b5   :  { %6367 = vmatpush2.bf16.msra.mxu1 %v12500_v3  ;;  %v6561_v3 = vld [vmem:[#allocation19 + $0x540] sm:$0xff] }
 0x6b6   :  { %6368 = vmatprep.subr.bf16.mxu1 %v12493_v1  ;;  %v12567_v1 = vcombine.high %v6433_v17, %v6437_v26  ;;  %v12695_v35 = vcombine.high %v6561_v3, %v6565_v55  ;;  %v6521_v26 = vld [vmem:[#allocation19 + $0x400] sm:$0xff] }
 0x6b7   :  { %6328 = vmatpush2.bf16.msra.mxu0 %v12364_v31 }
 0x6b8   :  { %6329 = vmatprep.subr.bf16.mxu0 %v12357_v24 }
 0x6b9   :  { %6369 = vmatpush2.bf16.msra.mxu1 %v12492_v12 }
 0x6ba   :  { %6370 = vmatprep.subr.bf16.mxu1 %v12485_v15  ;;  %v6553_v15 = vld [vmem:[#allocation19 + $0x500] sm:$0xff] }
 0x6bb   :  { %6330 = vmatpush2.bf16.msra.mxu0 %v12356_v27  ;;  %v6557_v27 = vld [vmem:[#allocation19 + $0x520] sm:$0xff] }
 0x6bc   :  { %6331 = vmatprep.subr.bf16.mxu0 %v12349_v21  ;;  %v12694_v21 = vcombine.low %v6561_v3, %v6565_v55  ;;  %v6517_v3 = vld [vmem:[#allocation19 + $0x3e0] sm:$0xff] }
 0x6bd   :  { %6371 = vmatpush2.bf16.msra.mxu1 %v12484_v62  ;;  %v6417_v62 = vld [vmem:[#allocation19 + $0xc0] sm:$0xff] }
 0x6be   :  { %6372 = vmatprep.subr.bf16.mxu1 %v12477_v33  ;;  %v12687_v33 = vcombine.high %v6553_v15, %v6557_v27  ;;  %v12550_v60 = vcombine.low %v6417_v62, %v6421_v58 }
 0x6bf   :  { %6332 = vmatpush2.bf16.msra.mxu0 %v12348_v0  ;;  %v12558_v0 = vcombine.low %v6425_v25, %v6429_v54 }
 0x6c0   :  { %6333 = vmatprep.subr.bf16.mxu0 %v12341_v19  ;;  %v12551_v19 = vcombine.high %v6417_v62, %v6421_v58  ;;  %v6501_v62 = vld [vmem:[#allocation19 + $0x360] sm:$0xff] }
 0x6c1   :  { %6373 = vmatpush2.bf16.msra.mxu1 %v12476_v22  ;;  %v12686_v22 = vcombine.low %v6553_v15, %v6557_v27  ;;  %v6633_v27 = vld [vmem:[#allocation19 + $0x780] sm:$0xff] }
 0x6c2   :  { %6374 = vmatprep.subr.bf16.mxu1 %v12469_v11  ;;  %v12679_v11 = vcombine.high %v6545_v10, %v6549_v38 }
 0x6c3   :  { %6334 = vmatpush2.bf16.msra.mxu0 %v12340_v29  ;;  %v6537_v29 = vld [vmem:[#allocation19 + $0x480] sm:$0xff] }
 0x6c4   :  { %9507 = vmatprep.subr.bf16.mxu0 %v12583_v6  ;;  %v12678_v6 = vcombine.low %v6545_v10, %v6549_v38  ;;  %v12671_v56 = vcombine.high %v6537_v29, %v6541_v30 }
 0x6c5   :  { %6375 = vmatpush2.bf16.msra.mxu1 %v12468_v43  ;;  %v6401_v43 = vld [vmem:[#allocation19 + $0x40] sm:$0xff] }
 0x6c6   :  { %v6091_v16 = vpop.f32.mrf.mxu0  ;;  %6336 = vmatmul.mubr.bf16.vlgmr.msra.gmra.mxu0 %v14712_v57  ;;  %9548 = vmatprep.subr.bf16.mxu1 %v12711_v50  ;;  %v12702_v57 = vcombine.low %v6569_v4, %v6573_v14  ;;  %v12542_v50 = vcombine.low %v6409_v53, %v6413_v46  ;;  %v12670_v4 = vcombine.low %v6537_v29, %v6541_v30  ;;  %v6393_v14 = vld [vmem:[#allocation19] sm:$0xff] }
 0x6c7   :  { %v6092_v59 = vadd.f32 %v6091_v16, %v3148_v49  ;;  %9508 = vmatpush1.bf16.msra.mxu0 %v12582_v37  ;;  %9539 = vmatprep.mubr.bf16.mxu0 %v14790_v18  ;;  %v6533_v49 = vld [vmem:[#allocation19 + $0x460] sm:$0xff]  ;;  %v12535_v37 = vcombine.high %v6401_v43, %v6405_v39  ;;  %v12534_v17 = vcombine.low %v6401_v43, %v6405_v39 }
 0x6c8   :  { %v14796_v2 = vpop.f32.mrf.mxu0  ;;  %v6132_v52 = vpop.f32.mrf.mxu1  ;;  %6377 = vmatmul.mubr.bf16.vlgmr.msra.gmra.mxu1 %v14718_v8  ;;  %9509 = vmatprep.subr.bf16.mxu0 %v12575_v51  ;;  %v6397_v51 = vld [vmem:[#allocation19 + $0x20] sm:$0xff] }
 0x6c9   :  { %v14799_v31 = vadd.f32 %v6132_v52, %v6092_v59  ;;  %9549 = vmatpush1.bf16.msra.mxu1 %v12710_v7  ;;  %9580 = vmatprep.mubr.bf16.mxu1 %v14793_v9  ;;  %v12663_v7 = vcombine.high %v6529_v48, %v6533_v49  ;;  %v6525_v16 = vld [vmem:[#allocation19 + $0x420] sm:$0xff]  ;;  %v12662_v59 = vcombine.low %v6529_v48, %v6533_v49 }
 0x6ca   :  { %v6095_v24 = vpop.f32.mrf.mxu0  ;;  %v14802_v12 = vpop.f32.mrf.mxu1  ;;  %9550 = vmatprep.subr.bf16.mxu1 %v12703_v40  ;;  %v12527_v40 = vcombine.high %v6393_v14, %v6397_v51  ;;  %v12655_v55 = vcombine.high %v6521_v26, %v6525_v16  ;;  %v12526_v52 = vcombine.low %v6393_v14, %v6397_v51  ;;  %v12654_v54 = vcombine.low %v6521_v26, %v6525_v16 }
 0x6cb   :  { %9510 = vmatpush1.bf16.msra.mxu0 %v12574_v23  ;;  %v6513_v23 = vld [vmem:[#allocation19 + $0x3c0] sm:$0xff] }
 0x6cc   :  { %v6096_v8 = vpop.f32.mrf.mxu0  ;;  %v6136_v13 = vpop.f32.mrf.mxu1  ;;  %9511 = vmatprep.subr.bf16.mxu0 %v12567_v1  ;;  %v6641_v1 = vld [vmem:[#allocation19 + $0x7c0] sm:$0xff]  ;;  %v12647_v25 = vcombine.high %v6513_v23, %v6517_v3  ;;  %v12646_v15 = vcombine.low %v6513_v23, %v6517_v3 }
 0x6cd   :  { %9551 = vmatpush1.bf16.msra.mxu1 %v12702_v57  ;;  %v6645_v57 = vld [vmem:[#allocation19 + $0x7e0] sm:$0xff] }
 0x6ce   :  { %v6137_v5 = vpop.f32.mrf.mxu1  ;;  %9552 = vmatprep.subr.bf16.mxu1 %v12695_v35  ;;  %v6505_v24 = vld [vmem:[#allocation19 + $0x380] sm:$0xff] }
 0x6cf   :  { %9512 = vmatpush1.bf16.msra.mxu0 %v12566_v32  ;;  %v6509_v35 = vld [vmem:[#allocation19 + $0x3a0] sm:$0xff]  ;;  %v12775_v32 = vcombine.high %v6641_v1, %v6645_v57 }
 0x6d0   :  { %9513 = vmatprep.subr.bf16.mxu0 %v12559_v34  ;;  %v6637_v8 = vld [vmem:[#allocation19 + $0x7a0] sm:$0xff]  ;;  %v12639_v13 = vcombine.high %v6505_v24, %v6509_v35  ;;  %v12774_v34 = vcombine.low %v6641_v1, %v6645_v57  ;;  %v12638_v5 = vcombine.low %v6505_v24, %v6509_v35  ;;  %v3151_v35 = vsub.s32 5, %v15865_v47 }
 0x6d1   :  { %9553 = vmatpush1.bf16.msra.mxu1 %v12694_v21  ;;  %v6497_v21 = vld [vmem:[#allocation19 + $0x340] sm:$0xff]  ;;  %v12767_v58 = vcombine.high %v6633_v27, %v6637_v8  ;;  %v12766_v38 = vcombine.low %v6633_v27, %v6637_v8 }
 0x6d2   :  { %9554 = vmatprep.subr.bf16.mxu1 %v12687_v33  ;;  %v6625_v33 = vld [vmem:[#allocation19 + $0x740] sm:$0xff]  ;;  %v12631_v10 = vcombine.high %v6497_v21, %v6501_v62  ;;  %v12630_v46 = vcombine.low %v6497_v21, %v6501_v62 }
 0x6d3   :  { %9514 = vmatpush1.bf16.msra.mxu0 %v12558_v0  ;;  %v6629_v0 = vld [vmem:[#allocation19 + $0x760] sm:$0xff] }
 0x6d4   :  { %9515 = vmatprep.subr.bf16.mxu0 %v12551_v19  ;;  %v6489_v19 = vld [vmem:[#allocation19 + $0x300] sm:$0xff]  ;;  %v12759_v53 = vcombine.high %v6625_v33, %v6629_v0  ;;  %v12758_v30 = vcombine.low %v6625_v33, %v6629_v0 }
 0x6d5   :  { %9555 = vmatpush1.bf16.msra.mxu1 %v12686_v22  ;;  %v6493_v22 = vld [vmem:[#allocation19 + $0x320] sm:$0xff] }
 0x6d6   :  { %9556 = vmatprep.subr.bf16.mxu1 %v12679_v11  ;;  %v6617_v11 = vld [vmem:[#allocation19 + $0x700] sm:$0xff]  ;;  %v12623_v29 = vcombine.high %v6489_v19, %v6493_v22  ;;  %v12622_v39 = vcombine.low %v6489_v19, %v6493_v22 }
 0x6d7   :  { %9516 = vmatpush1.bf16.msra.mxu0 %v12550_v60  ;;  %v6621_v60 = vld [vmem:[#allocation19 + $0x720] sm:$0xff] }
 0x6d8   :  { %9517 = vmatprep.subr.bf16.mxu0 %v12543_v20  ;;  %v6481_v20 = vld [vmem:[#allocation19 + $0x2c0] sm:$0xff]  ;;  %v12751_v43 = vcombine.high %v6617_v11, %v6621_v60  ;;  %v12750_v49 = vcombine.low %v6617_v11, %v6621_v60 }
 0x6d9   :  { %9557 = vmatpush1.bf16.msra.mxu1 %v12678_v6  ;;  %v6485_v6 = vld [vmem:[#allocation19 + $0x2e0] sm:$0xff] }
 0x6da   :  { %9558 = vmatprep.subr.bf16.mxu1 %v12671_v56  ;;  %v6609_v56 = vld [vmem:[#allocation19 + $0x6c0] sm:$0xff]  ;;  %v12615_v48 = vcombine.high %v6481_v20, %v6485_v6  ;;  %v12614_v51 = vcombine.low %v6481_v20, %v6485_v6 }
 0x6db   :  { %9518 = vmatpush1.bf16.msra.mxu0 %v12542_v50  ;;  %v6613_v50 = vld [vmem:[#allocation19 + $0x6e0] sm:$0xff] }
 0x6dc   :  { %9519 = vmatprep.subr.bf16.mxu0 %v12535_v37  ;;  %v6473_v37 = vld [vmem:[#allocation19 + $0x280] sm:$0xff]  ;;  %v12743_v14 = vcombine.high %v6609_v56, %v6613_v50  ;;  %v12742_v16 = vcombine.low %v6609_v56, %v6613_v50 }
 0x6dd   :  { %9559 = vmatpush1.bf16.msra.mxu1 %v12670_v4  ;;  %v6477_v4 = vld [vmem:[#allocation19 + $0x2a0] sm:$0xff] }
 0x6de   :  { %9560 = vmatprep.subr.bf16.mxu1 %v12663_v7  ;;  %v6601_v7 = vld [vmem:[#allocation19 + $0x680] sm:$0xff]  ;;  %v12607_v26 = vcombine.high %v6473_v37, %v6477_v4  ;;  %v12606_v3 = vcombine.low %v6473_v37, %v6477_v4 }
 0x6df   :  { %9520 = vmatpush1.bf16.msra.mxu0 %v12534_v17  ;;  %v6605_v17 = vld [vmem:[#allocation19 + $0x6a0] sm:$0xff] }
 0x6e0   :  { %9521 = vmatprep.subr.bf16.mxu0 %v12527_v40  ;;  %v6465_v40 = vld [vmem:[#allocation19 + $0x240] sm:$0xff]  ;;  %v12735_v23 = vcombine.high %v6601_v7, %v6605_v17  ;;  %v12734_v57 = vcombine.low %v6601_v7, %v6605_v17 }
 0x6e1   :  { %9561 = vmatpush1.bf16.msra.mxu1 %v12662_v59  ;;  %v6469_v59 = vld [vmem:[#allocation19 + $0x260] sm:$0xff] }
 0x6e2   :  { %9562 = vmatprep.subr.bf16.mxu1 %v12655_v55  ;;  %v6593_v55 = vld [vmem:[#allocation19 + $0x640] sm:$0xff]  ;;  %v12599_v1 = vcombine.high %v6465_v40, %v6469_v59 }
 0x6e3   :  { %9522 = vmatpush1.bf16.msra.mxu0 %v12526_v52  ;;  %v6597_v52 = vld [vmem:[#allocation19 + $0x660] sm:$0xff] }
 0x6e4   :  { %9523 = vmatprep.subr.bf16.mxu0 %v12647_v25  ;;  %v6457_v25 = vld [vmem:[#allocation19 + $0x200] sm:$0xff]  ;;  %v12727_v24 = vcombine.high %v6593_v55, %v6597_v52 }
 0x6e5   :  { %9563 = vmatpush1.bf16.msra.mxu1 %v12654_v54  ;;  %v6461_v54 = vld [vmem:[#allocation19 + $0x220] sm:$0xff] }
 0x6e6   :  { %9564 = vmatprep.subr.bf16.mxu1 %v12775_v32  ;;  %v12598_v32 = vcombine.low %v6465_v40, %v6469_v59  ;;  %v6589_v27 = vld [vmem:[#allocation19 + $0x620] sm:$0xff]  ;;  %v12591_v8 = vcombine.high %v6457_v25, %v6461_v54 }
 0x6e7   :  { %9524 = vmatpush2.bf16.msra.mxu0 %v12646_v15  ;;  %v6585_v15 = vld [vmem:[#allocation19 + $0x600] sm:$0xff] }
 0x6e8   :  { %9525 = vmatprep.subr.bf16.mxu0 %v12639_v13  ;;  %v12726_v13 = vcombine.low %v6593_v55, %v6597_v52  ;;  %v6709_v21 = vld [vmem:[#allocation19 + $0x9e0] sm:$0xff]  ;;  %v12719_v62 = vcombine.high %v6585_v15, %v6589_v27 }
 0x6e9   :  { %9565 = vmatpush2.bf16.msra.mxu1 %v12774_v34  ;;  %v6705_v34 = vld [vmem:[#allocation19 + $0x9c0] sm:$0xff] }
 0x6ea   :  { %9566 = vmatprep.subr.bf16.mxu1 %v12767_v58  ;;  %v3152_v58 = vrot.slane %v14783_v45, %v3151_v35  ;;  %v6833_v33 = vld [vmem:[#allocation19 + $0xdc0] sm:$0xff]  ;;  %v12838_v11 = vcombine.low %v6705_v34, %v6709_v21  ;;  %v14811_v45 = vpack.c.bf16 %v14747_v41, %v14747_v41 }
 0x6eb   :  { %9526 = vmatpush2.bf16.msra.mxu0 %v12638_v5  ;;  %v12590_v5 = vcombine.low %v6457_v25, %v6461_v54  ;;  %v6837_v0 = vld [vmem:[#allocation19 + $0xde0] sm:$0xff] }
 0x6ec   :  { %9527 = vmatprep.subr.bf16.mxu0 %v12631_v10  ;;  %v12839_v10 = vcombine.high %v6705_v34, %v6709_v21  ;;  %v6697_v19 = vld [vmem:[#allocation19 + $0x980] sm:$0xff]  ;;  %v14827_v34 = vld [vmem:[#allocation19 + $0x5c8] sm:$0xff] }
 0x6ed   :  { %9567 = vmatpush2.bf16.msra.mxu1 %v12766_v38  ;;  %v12718_v38 = vcombine.low %v6585_v15, %v6589_v27  ;;  %v6701_v22 = vld [vmem:[#allocation19 + $0x9a0] sm:$0xff]  ;;  %v14829_v21 = vld [vmem:[#allocation19 + $0x5e8] sm:$0xff] }
 0x6ee   :  { %9568 = vmatprep.subr.bf16.mxu1 %v12759_v53  ;;  %v12967_v53 = vcombine.high %v6833_v33, %v6837_v0  ;;  %v6825_v60 = vld [vmem:[#allocation19 + $0xd80] sm:$0xff]  ;;  %v12830_v41 = vcombine.low %v6697_v19, %v6701_v22 }
 0x6ef   :  { %9528 = vmatpush2.bf16.msra.mxu0 %v12630_v46  ;;  %v6094_v46 = vadd.f32 %v14796_v2, %v3152_v58  ;;  %v6689_v20 = vld [vmem:[#allocation19 + $0x940] sm:$0xff]  ;;  %v12712_v58 = vcombine.low %v14827_v34, %v14829_v21 }
 0x6f0   :  { %9529 = vmatprep.subr.bf16.mxu0 %v12623_v29  ;;  %v6829_v29 = vld [vmem:[#allocation19 + $0xda0] sm:$0xff] }
 0x6f1   :  { %9569 = vmatpush2.bf16.msra.mxu1 %v12758_v30  ;;  %v12831_v30 = vcombine.high %v6697_v19, %v6701_v22  ;;  %v6693_v6 = vld [vmem:[#allocation19 + $0x960] sm:$0xff]  ;;  %v12959_v2 = vcombine.high %v6825_v60, %v6829_v29  ;;  %v6135_v50 = vadd.f32 %v14802_v12, %v6094_v46  ;;  %v12958_v17 = vcombine.low %v6825_v60, %v6829_v29 }
 0x6f2   :  { %9570 = vmatprep.subr.bf16.mxu1 %v12751_v43  ;;  %v12966_v43 = vcombine.low %v6833_v33, %v6837_v0  ;;  %v6685_v7 = vld [vmem:[#allocation19 + $0x920] sm:$0xff]  ;;  %v12822_v59 = vcombine.low %v6689_v20, %v6693_v6 }
 0x6f3   :  { %9530 = vmatpush2.bf16.msra.mxu0 %v12622_v39  ;;  %v14815_v39 = vpack.c.bf16 %v14774_v44, %v14774_v44  ;;  %v12823_v44 = vcombine.high %v6689_v20, %v6693_v6  ;;  %v6673_v25 = vld [vmem:[#allocation19 + $0x8c0] sm:$0xff] }
 0x6f4   :  { %9531 = vmatprep.subr.bf16.mxu0 %v12615_v48  ;;  %v6817_v48 = vld [vmem:[#allocation19 + $0xd40] sm:$0xff] }
 0x6f5   :  { %9571 = vmatpush2.bf16.msra.mxu1 %v12750_v49  ;;  %v6821_v49 = vld [vmem:[#allocation19 + $0xd60] sm:$0xff] }
 0x6f6   :  { %9572 = vmatprep.subr.bf16.mxu1 %v12743_v14  ;;  %v12951_v12 = vcombine.high %v6817_v48, %v6821_v49  ;;  %v6677_v54 = vld [vmem:[#allocation19 + $0x8e0] sm:$0xff] }
 0x6f7   :  { %9532 = vmatpush2.bf16.msra.mxu0 %v12614_v51  ;;  %v6681_v51 = vld [vmem:[#allocation19 + $0x900] sm:$0xff] }
 0x6f8   :  { %9533 = vmatprep.subr.bf16.mxu0 %v12607_v26  ;;  %v6801_v27 = vld [vmem:[#allocation19 + $0xcc0] sm:$0xff] }
 0x6f9   :  { %9573 = vmatpush2.bf16.msra.mxu1 %v12742_v16  ;;  %v6669_v33 = vld [vmem:[#allocation19 + $0x8a0] sm:$0xff] }
 0x6fa   :  { %9574 = vmatprep.subr.bf16.mxu1 %v12735_v23  ;;  %v6809_v23 = vld [vmem:[#allocation19 + $0xd00] sm:$0xff] }
 0x6fb   :  { %9534 = vmatpush2.bf16.msra.mxu0 %v12606_v3  ;;  %v6813_v3 = vld [vmem:[#allocation19 + $0xd20] sm:$0xff] }
 0x6fc   :  { %9535 = vmatprep.subr.bf16.mxu0 %v12599_v1  ;;  %v12815_v1 = vcombine.high %v6681_v51, %v6685_v7  ;;  %v12943_v15 = vcombine.high %v6809_v23, %v6813_v3  ;;  %v12942_v0 = vcombine.low %v6809_v23, %v6813_v3  ;;  %v6793_v19 = vld [vmem:[#allocation19 + $0xc80] sm:$0xff] }
 0x6fd   :  { %9575 = vmatpush2.bf16.msra.mxu1 %v12734_v57  ;;  %v6797_v22 = vld [vmem:[#allocation19 + $0xca0] sm:$0xff] }
 0x6fe   :  { %9576 = vmatprep.subr.bf16.mxu1 %v12727_v24  ;;  %v12950_v24 = vcombine.low %v6817_v48, %v6821_v49  ;;  %v6657_v46 = vld [vmem:[#allocation19 + $0x840] sm:$0xff]  ;;  %v12927_v29 = vcombine.high %v6793_v19, %v6797_v22 }
 0x6ff   :  { %9536 = vmatpush2.bf16.msra.mxu0 %v12598_v32  ;;  %v6785_v20 = vld [vmem:[#allocation19 + $0xc40] sm:$0xff] }
 0x700   :  { %9537 = vmatprep.subr.bf16.mxu0 %v12591_v8  ;;  %v12814_v8 = vcombine.low %v6681_v51, %v6685_v7  ;;  %v6789_v6 = vld [vmem:[#allocation19 + $0xc60] sm:$0xff] }
 0x701   :  { %9577 = vmatpush2.bf16.msra.mxu1 %v12726_v13  ;;  %v6805_v13 = vld [vmem:[#allocation19 + $0xce0] sm:$0xff]  ;;  %v12919_v48 = vcombine.high %v6785_v20, %v6789_v6 }
 0x702   :  { %9578 = vmatprep.subr.bf16.mxu1 %v12719_v62  ;;  %v12807_v62 = vcombine.high %v6673_v25, %v6677_v54  ;;  %v12934_v60 = vcombine.low %v6801_v27, %v6805_v13  ;;  %v6769_v51 = vld [vmem:[#allocation19 + $0xbc0] sm:$0xff] }
 0x703   :  { %9538 = vmatpush2.bf16.msra.mxu0 %v12590_v5  ;;  %v6665_v5 = vld [vmem:[#allocation19 + $0x880] sm:$0xff] }
 0x704   :  { %9589 = vmatprep.subr.bf16.mxu0 %v12839_v10  ;;  %v12935_v10 = vcombine.high %v6801_v27, %v6805_v13  ;;  %v6773_v7 = vld [vmem:[#allocation19 + $0xbe0] sm:$0xff] }
 0x705   :  { %9579 = vmatpush2.bf16.msra.mxu1 %v12718_v38  ;;  %v12806_v38 = vcombine.low %v6673_v25, %v6677_v54  ;;  %v6761_v23 = vld [vmem:[#allocation19 + $0xb80] sm:$0xff] }
 0x706   :  { %v14817_v56 = vpop.f32.mrf.mxu0  ;;  %9540 = vmatmul.mubr.bf16.vlgmr.msra.gmra.mxu0 %v14811_v45  ;;  %9630 = vmatprep.subr.bf16.mxu1 %v12967_v53  ;;  %v12799_v53 = vcombine.high %v6665_v5, %v6669_v33  ;;  %v6765_v3 = vld [vmem:[#allocation19 + $0xba0] sm:$0xff] }
 0x707   :  { %9590 = vmatpush1.bf16.msra.mxu0 %v12838_v11  ;;  %v6661_v11 = vld [vmem:[#allocation19 + $0x860] sm:$0xff]  ;;  %v12894_v13 = vcombine.low %v6761_v23, %v6765_v3 }
 0x708   :  { %v6175_v37 = vpop.f32.mrf.mxu0  ;;  %v14821_v4 = vpop.f32.mrf.mxu1  ;;  %9581 = vmatmul.mubr.bf16.vlgmr.msra.gmra.mxu1 %v14815_v39  ;;  %9591 = vmatprep.subr.bf16.mxu0 %v12831_v30  ;;  %v12798_v30 = vcombine.low %v6665_v5, %v6669_v33  ;;  %v12790_v49 = vcombine.low %v6657_v46, %v6661_v11  ;;  %v6889_v25 = vld [vmem:[#allocation19 + $0xf80] sm:$0xff] }
 0x709   :  { %v6176_v14 = vadd.f32 %v6175_v37, %v6135_v50  ;;  %9631 = vmatpush1.bf16.msra.mxu1 %v12966_v43  ;;  %v12791_v43 = vcombine.high %v6657_v46, %v6661_v11  ;;  %v6653_v50 = vld [vmem:[#allocation19 + $0x820] sm:$0xff] }
 0x70a   :  { %v6177_v26 = vpop.f32.mrf.mxu0  ;;  %v6216_v16 = vpop.f32.mrf.mxu1  ;;  %9632 = vmatprep.subr.bf16.mxu1 %v12959_v2  ;;  %v6649_v2 = vld [vmem:[#allocation19 + $0x800] sm:$0xff] }
 0x70b   :  { %v6217_v40 = vadd.f32 %v6216_v16, %v6176_v14  ;;  %9592 = vmatpush1.bf16.msra.mxu0 %v12830_v41  ;;  %v12926_v41 = vcombine.low %v6793_v19, %v6797_v22  ;;  %v6777_v37 = vld [vmem:[#allocation19 + $0xc00] sm:$0xff]  ;;  %v12783_v14 = vcombine.high %v6649_v2, %v6653_v50  ;;  %v12782_v16 = vcombine.low %v6649_v2, %v6653_v50 }
 0x70c   :  { %v6178_v55 = vpop.f32.mrf.mxu0  ;;  %v6218_v52 = vpop.f32.mrf.mxu1  ;;  %9593 = vmatprep.subr.bf16.mxu0 %v12823_v44  ;;  %v6781_v44 = vld [vmem:[#allocation19 + $0xc20] sm:$0xff] }
 0x70d   :  { %v14824_v57 = vpack.c.bf16 %v6217_v40, %v6217_v40  ;;  %9633 = vmatpush1.bf16.msra.mxu1 %v12958_v17  ;;  %v12918_v17 = vcombine.low %v6785_v20, %v6789_v6  ;;  %v12911_v26 = vcombine.high %v6777_v37, %v6781_v44  ;;  %v6901_v40 = vld [vmem:[#allocation19 + $0xfe0] sm:$0xff]  ;;  %v12910_v55 = vcombine.low %v6777_v37, %v6781_v44 }
 0x70e   :  { %v6219_v32 = vpop.f32.mrf.mxu1  ;;  %9634 = vmatprep.subr.bf16.mxu1 %v12951_v12  ;;  %v6897_v12 = vld [vmem:[#allocation19 + $0xfc0] sm:$0xff] }
 0x70f   :  { %9594 = vmatpush1.bf16.msra.mxu0 %v12822_v59  ;;  %9621 = vmatprep.mubr.bf16.mxu0 %v14824_v57  ;;  %v12903_v59 = vcombine.high %v6769_v51, %v6773_v7  ;;  %v13031_v52 = vcombine.high %v6897_v12, %v6901_v40  ;;  %v6893_v54 = vld [vmem:[#allocation19 + $0xfa0] sm:$0xff]  ;;  %v13030_v27 = vcombine.low %v6897_v12, %v6901_v40 }
 0x710   :  { %9595 = vmatprep.subr.bf16.mxu0 %v12815_v1  ;;  %v12902_v1 = vcombine.low %v6769_v51, %v6773_v7  ;;  %v6753_v32 = vld [vmem:[#allocation19 + $0xb40] sm:$0xff] }
 0x711   :  { %9635 = vmatpush1.bf16.msra.mxu1 %v12950_v24  ;;  %v12895_v24 = vcombine.high %v6761_v23, %v6765_v3  ;;  %v6885_v5 = vld [vmem:[#allocation19 + $0xf60] sm:$0xff] }
 0x712   :  { %9636 = vmatprep.subr.bf16.mxu1 %v12943_v15  ;;  %v6757_v15 = vld [vmem:[#allocation19 + $0xb60] sm:$0xff] }
 0x713   :  { %9596 = vmatpush1.bf16.msra.mxu0 %v12814_v8  ;;  %v13023_v8 = vcombine.high %v6889_v25, %v6893_v54  ;;  %v12887_v33 = vcombine.high %v6753_v32, %v6757_v15  ;;  %v12886_v22 = vcombine.low %v6753_v32, %v6757_v15  ;;  %v6877_v46 = vld [vmem:[#allocation19 + $0xf20] sm:$0xff]  ;;  %v6174_v15 = vadd.f32 %v14817_v56, %v14799_v31 }
 0x714   :  { %9597 = vmatprep.subr.bf16.mxu0 %v12807_v62  ;;  %v6881_v62 = vld [vmem:[#allocation19 + $0xf40] sm:$0xff]  ;;  %v12713_v31 = vcombine.high %v14827_v34, %v14829_v21 }
 0x715   :  { %9637 = vmatpush1.bf16.msra.mxu1 %v12942_v0  ;;  %v6745_v0 = vld [vmem:[#allocation19 + $0xb00] sm:$0xff]  ;;  %v13015_v19 = vcombine.high %v6881_v62, %v6885_v5 }
 0x716   :  { %9638 = vmatprep.subr.bf16.mxu1 %v12935_v10  ;;  %v6749_v10 = vld [vmem:[#allocation19 + $0xb20] sm:$0xff] }
 0x717   :  { %9598 = vmatpush1.bf16.msra.mxu0 %v12806_v38  ;;  %v13022_v38 = vcombine.low %v6889_v25, %v6893_v54  ;;  %v12879_v11 = vcombine.high %v6745_v0, %v6749_v10  ;;  %v12878_v6 = vcombine.low %v6745_v0, %v6749_v10  ;;  %v6869_v2 = vld [vmem:[#allocation19 + $0xee0] sm:$0xff]  ;;  %v6215_v0 = vadd.f32 %v14821_v4, %v6174_v15  ;;  %v6518_v15 = vld [vmem:[#allocation19 + $0x3e8] sm:$0xff] }
 0x718   :  { %9599 = vmatprep.subr.bf16.mxu0 %v12799_v53  ;;  %v6873_v53 = vld [vmem:[#allocation19 + $0xf00] sm:$0xff] }
 0x719   :  { %9639 = vmatpush1.bf16.msra.mxu1 %v12934_v60  ;;  %v6737_v60 = vld [vmem:[#allocation19 + $0xac0] sm:$0xff]  ;;  %v13007_v20 = vcombine.high %v6873_v53, %v6877_v46 }
 0x71a   :  { %9640 = vmatprep.subr.bf16.mxu1 %v12927_v29  ;;  %v6741_v29 = vld [vmem:[#allocation19 + $0xae0] sm:$0xff] }
 0x71b   :  { %9600 = vmatpush1.bf16.msra.mxu0 %v12798_v30  ;;  %v13014_v30 = vcombine.low %v6881_v62, %v6885_v5  ;;  %v12871_v50 = vcombine.high %v6737_v60, %v6741_v29  ;;  %v12870_v44 = vcombine.low %v6737_v60, %v6741_v29  ;;  %v6861_v51 = vld [vmem:[#allocation19 + $0xea0] sm:$0xff]  ;;  %v6438_v60 = vld [vmem:[#allocation19 + $0x168] sm:$0xff] }
 0x71c   :  { %9601 = vmatprep.subr.bf16.mxu0 %v12791_v43  ;;  %v6865_v43 = vld [vmem:[#allocation19 + $0xec0] sm:$0xff] }
 0x71d   :  { %9641 = vmatpush1.bf16.msra.mxu1 %v12926_v41  ;;  %v6729_v41 = vld [vmem:[#allocation19 + $0xa80] sm:$0xff]  ;;  %v12999_v37 = vcombine.high %v6865_v43, %v6869_v2 }
 0x71e   :  { %9642 = vmatprep.subr.bf16.mxu1 %v12919_v48  ;;  %v6733_v48 = vld [vmem:[#allocation19 + $0xaa0] sm:$0xff] }
 0x71f   :  { %9602 = vmatpush1.bf16.msra.mxu0 %v12790_v49  ;;  %v13006_v49 = vcombine.low %v6873_v53, %v6877_v46  ;;  %v12863_v7 = vcombine.high %v6729_v41, %v6733_v48  ;;  %v12862_v40 = vcombine.low %v6729_v41, %v6733_v48  ;;  %v6853_v23 = vld [vmem:[#allocation19 + $0xe60] sm:$0xff]  ;;  %v14838_v53 = vpack.c.bf16 %v6215_v0, %v6215_v0  ;;  %v6498_v0 = vld [vmem:[#allocation19 + $0x348] sm:$0xff] }
 0x720   :  { %9603 = vmatprep.subr.bf16.mxu0 %v12783_v14  ;;  %v6857_v14 = vld [vmem:[#allocation19 + $0xe80] sm:$0xff] }
 0x721   :  { %9643 = vmatpush1.bf16.msra.mxu1 %v12918_v17  ;;  %v6721_v17 = vld [vmem:[#allocation19 + $0xa40] sm:$0xff]  ;;  %v12991_v12 = vcombine.high %v6857_v14, %v6861_v51 }
 0x722   :  { %9644 = vmatprep.subr.bf16.mxu1 %v12911_v26  ;;  %v6725_v26 = vld [vmem:[#allocation19 + $0xa60] sm:$0xff] }
 0x723   :  { %9604 = vmatpush1.bf16.msra.mxu0 %v12782_v16  ;;  %v12998_v16 = vcombine.low %v6865_v43, %v6869_v2  ;;  %v12855_v3 = vcombine.high %v6721_v17, %v6725_v26  ;;  %v12854_v54 = vcombine.low %v6721_v17, %v6725_v26  ;;  %v6845_v32 = vld [vmem:[#allocation19 + $0xe20] sm:$0xff]  ;;  %v6426_v43 = vld [vmem:[#allocation19 + $0x108] sm:$0xff] }
 0x724   :  { %9605 = vmatprep.subr.bf16.mxu0 %v12903_v59  ;;  %v6849_v59 = vld [vmem:[#allocation19 + $0xe40] sm:$0xff]  ;;  %v6430_v2 = vld [vmem:[#allocation19 + $0x128] sm:$0xff] }
 0x725   :  { %9645 = vmatpush1.bf16.msra.mxu1 %v12910_v55  ;;  %v6713_v55 = vld [vmem:[#allocation19 + $0xa00] sm:$0xff]  ;;  %v12983_v25 = vcombine.high %v6849_v59, %v6853_v23  ;;  %v12982_v62 = vcombine.low %v6849_v59, %v6853_v23  ;;  %v12560_v17 = vcombine.low %v6426_v43, %v6430_v2  ;;  %v6402_v23 = vld [vmem:[#allocation19 + $0x48] sm:$0xff] }
 0x726   :  { %9646 = vmatprep.subr.bf16.mxu1 %v13031_v52  ;;  %v6717_v52 = vld [vmem:[#allocation19 + $0xa20] sm:$0xff] }
 0x727   :  { %9606 = vmatpush2.bf16.msra.mxu0 %v12902_v1  ;;  %v12990_v1 = vcombine.low %v6857_v14, %v6861_v51  ;;  %v6418_v14 = vld [vmem:[#allocation19 + $0xc8] sm:$0xff] }
 0x728   :  { %9607 = vmatprep.subr.bf16.mxu0 %v12895_v24  ;;  %v6841_v24 = vld [vmem:[#allocation19 + $0xe00] sm:$0xff]  ;;  %v6422_v51 = vld [vmem:[#allocation19 + $0xe8] sm:$0xff] }
 0x729   :  { %9647 = vmatpush2.bf16.msra.mxu1 %v13030_v27  ;;  %v12847_v27 = vcombine.high %v6713_v55, %v6717_v52  ;;  %v12975_v5 = vcombine.high %v6841_v24, %v6845_v32  ;;  %v12553_v26 = vcombine.high %v6418_v14, %v6422_v51 }
 0x72a   :  { %9648 = vmatprep.subr.bf16.mxu1 %v13023_v8  ;;  %v6450_v8 = vld [vmem:[#allocation19 + $0x1c8] sm:$0xff] }
 0x72b   :  { %9608 = vmatpush2.bf16.msra.mxu0 %v12894_v13  ;;  %v6454_v13 = vld [vmem:[#allocation19 + $0x1e8] sm:$0xff] }
 0x72c   :  { %9609 = vmatprep.subr.bf16.mxu0 %v12887_v33  ;;  %v12846_v33 = vcombine.low %v6713_v55, %v6717_v52  ;;  %v12585_v10 = vcombine.high %v6450_v8, %v6454_v13  ;;  %v12584_v56 = vcombine.low %v6450_v8, %v6454_v13  ;;  %v6506_v13 = vld [vmem:[#allocation19 + $0x388] sm:$0xff] }
 0x72d   :  { %9649 = vmatpush2.bf16.msra.mxu1 %v13022_v38  ;;  %v6442_v38 = vld [vmem:[#allocation19 + $0x188] sm:$0xff] }
 0x72e   :  { %9650 = vmatprep.subr.bf16.mxu1 %v13015_v19  ;;  %v6446_v19 = vld [vmem:[#allocation19 + $0x1a8] sm:$0xff] }
 0x72f   :  { %9610 = vmatpush2.bf16.msra.mxu0 %v12886_v22  ;;  %v12974_v22 = vcombine.low %v6841_v24, %v6845_v32  ;;  %v12577_v46 = vcombine.high %v6442_v38, %v6446_v19  ;;  %v12576_v29 = vcombine.low %v6442_v38, %v6446_v19  ;;  %v6514_v32 = vld [vmem:[#allocation19 + $0x3c8] sm:$0xff] }
 0x730   :  { %9611 = vmatprep.subr.bf16.mxu0 %v12879_v11  ;;  %v6434_v11 = vld [vmem:[#allocation19 + $0x148] sm:$0xff]  ;;  %v12649_v8 = vcombine.high %v6514_v32, %v6518_v15 }
 0x731   :  { %9651 = vmatpush2.bf16.msra.mxu1 %v13014_v30  ;;  %v12568_v48 = vcombine.low %v6434_v11, %v6438_v60 }
 0x732   :  { %9652 = vmatprep.subr.bf16.mxu1 %v13007_v20 }
 0x733   :  { %9612 = vmatpush2.bf16.msra.mxu0 %v12878_v6  ;;  %v12569_v6 = vcombine.high %v6434_v11, %v6438_v60  ;;  %v6482_v11 = vld [vmem:[#allocation19 + $0x2c8] sm:$0xff] }
 0x734   :  { %9613 = vmatprep.subr.bf16.mxu0 %v12871_v50  ;;  %v6486_v60 = vld [vmem:[#allocation19 + $0x2e8] sm:$0xff] }
 0x735   :  { %9653 = vmatpush2.bf16.msra.mxu1 %v13006_v49 }
 0x736   :  { %9654 = vmatprep.subr.bf16.mxu1 %v12999_v37 }
 0x737   :  { %9614 = vmatpush2.bf16.msra.mxu0 %v12870_v44  ;;  %v12561_v44 = vcombine.high %v6426_v43, %v6430_v2  ;;  %v6474_v43 = vld [vmem:[#allocation19 + $0x288] sm:$0xff] }
 0x738   :  { %9615 = vmatprep.subr.bf16.mxu0 %v12863_v7  ;;  %v6478_v2 = vld [vmem:[#allocation19 + $0x2a8] sm:$0xff] }
 0x739   :  { %9655 = vmatpush2.bf16.msra.mxu1 %v12998_v16  ;;  %v6410_v16 = vld [vmem:[#allocation19 + $0x88] sm:$0xff] }
 0x73a   :  { %9656 = vmatprep.subr.bf16.mxu1 %v12991_v12  ;;  %v6414_v12 = vld [vmem:[#allocation19 + $0xa8] sm:$0xff] }
 0x73b   :  { %9616 = vmatpush2.bf16.msra.mxu0 %v12862_v40  ;;  %v12552_v40 = vcombine.low %v6418_v14, %v6422_v51  ;;  %v12545_v59 = vcombine.high %v6410_v16, %v6414_v12  ;;  %v12544_v55 = vcombine.low %v6410_v16, %v6414_v12  ;;  %v3155_v51 = vsub.s32 6, %v15865_v47 }
 0x73c   :  { %9617 = vmatprep.subr.bf16.mxu0 %v12855_v3  ;;  %v6406_v3 = vld [vmem:[#allocation19 + $0x68] sm:$0xff] }
 0x73d   :  { %9657 = vmatpush2.bf16.msra.mxu1 %v12990_v1  ;;  %v12537_v52 = vcombine.high %v6402_v23, %v6406_v3  ;;  %v6394_v1 = vld [vmem:[#allocation19 + $0x8] sm:$0xff] }
 0x73e   :  { %9658 = vmatprep.subr.bf16.mxu1 %v12983_v25  ;;  %v6398_v25 = vld [vmem:[#allocation19 + $0x28] sm:$0xff] }
 0x73f   :  { %9618 = vmatpush2.bf16.msra.mxu0 %v12854_v54  ;;  %v12536_v54 = vcombine.low %v6402_v23, %v6406_v3  ;;  %v12529_v24 = vcombine.high %v6394_v1, %v6398_v25  ;;  %v6706_v23 = vld [vmem:[#allocation19 + $0x9c8] sm:$0xff] }
 0x740   :  { %9619 = vmatprep.subr.bf16.mxu0 %v12847_v27  ;;  %v12528_v27 = vcombine.low %v6394_v1, %v6398_v25  ;;  %v6710_v3 = vld [vmem:[#allocation19 + $0x9e8] sm:$0xff] }
 0x741   :  { %9659 = vmatpush2.bf16.msra.mxu1 %v12982_v62  ;;  %v6510_v62 = vld [vmem:[#allocation19 + $0x3a8] sm:$0xff]  ;;  %v12841_v1 = vcombine.high %v6706_v23, %v6710_v3 }
 0x742   :  { %9660 = vmatprep.subr.bf16.mxu1 %v12975_v5  ;;  %v12648_v5 = vcombine.low %v6514_v32, %v6518_v15  ;;  %v12640_v38 = vcombine.low %v6506_v13, %v6510_v62  ;;  %v12840_v15 = vcombine.low %v6706_v23, %v6710_v3  ;;  %v6670_v23 = vld [vmem:[#allocation19 + $0x8a8] sm:$0xff] }
 0x743   :  { %9620 = vmatpush2.bf16.msra.mxu0 %v12846_v33  ;;  %v12641_v33 = vcombine.high %v6506_v13, %v6510_v62  ;;  %v6690_v13 = vld [vmem:[#allocation19 + $0x948] sm:$0xff] }
 0x744   :  { %9671 = vmatprep.subr.bf16.mxu0 %v12585_v10  ;;  %v6502_v10 = vld [vmem:[#allocation19 + $0x368] sm:$0xff] }
 0x745   :  { %9661 = vmatpush2.bf16.msra.mxu1 %v12974_v22  ;;  %v12633_v19 = vcombine.high %v6498_v0, %v6502_v10  ;;  %v6490_v22 = vld [vmem:[#allocation19 + $0x308] sm:$0xff] }
 0x746   :  { %v14840_v4 = vpop.f32.mrf.mxu0  ;;  %9622 = vmatmul.mubr.bf16.vlgmr.msra.gmra.mxu0 %v14838_v53  ;;  %9712 = vmatprep.subr.bf16.mxu1 %v12713_v31  ;;  %v6494_v31 = vld [vmem:[#allocation19 + $0x328] sm:$0xff] }
 0x747   :  { %9672 = vmatpush1.bf16.msra.mxu0 %v12584_v56  ;;  %9703 = vmatprep.mubr.bf16.mxu0 %v14790_v18  ;;  %v12632_v56 = vcombine.low %v6498_v0, %v6502_v10  ;;  %v6694_v62 = vld [vmem:[#allocation19 + $0x968] sm:$0xff] }
 0x748   :  { %v14844_v30 = vpop.f32.mrf.mxu0  ;;  %v14846_v20 = vpop.f32.mrf.mxu1  ;;  %9673 = vmatprep.subr.bf16.mxu0 %v12577_v46  ;;  %v12625_v46 = vcombine.high %v6490_v22, %v6494_v31 }
 0x74a   :  { %v6259_v50 = vpop.f32.mrf.mxu0  ;;  %v14848_v41 = vpop.f32.mrf.mxu1 }
 0x74b   :  { %9674 = vmatpush1.bf16.msra.mxu0 %v12576_v29  ;;  %v12624_v29 = vcombine.low %v6490_v22, %v6494_v31  ;;  %v12616_v50 = vcombine.low %v6482_v11, %v6486_v60  ;;  %v6682_v22 = vld [vmem:[#allocation19 + $0x908] sm:$0xff] }
 0x74c   :  { %v6260_v49 = vpop.f32.mrf.mxu0  ;;  %v6300_v37 = vpop.f32.mrf.mxu1  ;;  %9675 = vmatprep.subr.bf16.mxu0 %v12569_v6  ;;  %v12617_v6 = vcombine.high %v6482_v11, %v6486_v60  ;;  %v6686_v31 = vld [vmem:[#allocation19 + $0x928] sm:$0xff]  ;;  %v12824_v60 = vcombine.low %v6690_v13, %v6694_v62 }
 0x74d   :  { %v6466_v49 = vld [vmem:[#allocation19 + $0x248] sm:$0xff] }
 0x74e   :  { %v6301_v7 = vpop.f32.mrf.mxu1  ;;  %v6470_v37 = vld [vmem:[#allocation19 + $0x268] sm:$0xff] }
 0x74f   :  { %9676 = vmatpush1.bf16.msra.mxu0 %v12568_v48  ;;  %v12609_v48 = vcombine.high %v6474_v43, %v6478_v2  ;;  %v12601_v14 = vcombine.high %v6466_v49, %v6470_v37  ;;  %v6458_v7 = vld [vmem:[#allocation19 + $0x208] sm:$0xff]  ;;  %v12600_v16 = vcombine.low %v6466_v49, %v6470_v37 }
 0x750   :  { %9677 = vmatprep.subr.bf16.mxu0 %v12561_v44  ;;  %v12608_v44 = vcombine.low %v6474_v43, %v6478_v2  ;;  %v12817_v2 = vcombine.high %v6682_v22, %v6686_v31  ;;  %v6678_v49 = vld [vmem:[#allocation19 + $0x8e8] sm:$0xff] }
 0x753   :  { %9678 = vmatpush1.bf16.msra.mxu0 %v12560_v17  ;;  %v6462_v17 = vld [vmem:[#allocation19 + $0x228] sm:$0xff] }
 0x754   :  { %9679 = vmatprep.subr.bf16.mxu0 %v12553_v26  ;;  %v3159_v26 = vsub.s32 7, %v15865_v47  ;;  %v12593_v12 = vcombine.high %v6458_v7, %v6462_v17 }
 0x757   :  { %9680 = vmatpush1.bf16.msra.mxu0 %v12552_v40  ;;  %v13221_v40 = vld [vmem:[#allocation18] sm:$0xff] }
 0x758   :  { %9681 = vmatprep.subr.bf16.mxu0 %v12545_v59  ;;  %v3156_v59 = vrot.slane %v13221_v40, %v3155_v51 }
 0x75a   :  { %v6256_v25 = vadd.f32 %v14840_v4, %v3156_v59  ;;  %v6666_v59 = vld [vmem:[#allocation19 + $0x888] sm:$0xff] }
 0x75b   :  { %9682 = vmatpush1.bf16.msra.mxu0 %v12544_v55  ;;  %v3160_v55 = vrot.slane %v13221_v40, %v3159_v26  ;;  %v12800_v21 = vcombine.low %v6666_v59, %v6670_v23 }
 0x75c   :  { %9683 = vmatprep.subr.bf16.mxu0 %v12537_v52  ;;  %v12592_v52 = vcombine.low %v6458_v7, %v6462_v17  ;;  %v12816_v7 = vcombine.low %v6682_v22, %v6686_v31  ;;  %v6562_v17 = vld [vmem:[#allocation19 + $0x548] sm:$0xff] }
 0x75d   :  { %v6258_v32 = vadd.f32 %v14844_v30, %v3160_v55 }
 0x75f   :  { %9684 = vmatpush1.bf16.msra.mxu0 %v12536_v54  ;;  %v6698_v54 = vld [vmem:[#allocation19 + $0x988] sm:$0xff] }
 0x760   :  { %9685 = vmatprep.subr.bf16.mxu0 %v12529_v24  ;;  %v6702_v24 = vld [vmem:[#allocation19 + $0x9a8] sm:$0xff] }
 0x761   :  { %v12832_v4 = vcombine.low %v6698_v54, %v6702_v24 }
 0x763   :  { %9686 = vmatpush1.bf16.msra.mxu0 %v12528_v27  ;;  %v12833_v27 = vcombine.high %v6698_v54, %v6702_v24  ;;  %v6658_v24 = vld [vmem:[#allocation19 + $0x848] sm:$0xff] }
 0x764   :  { %9687 = vmatprep.subr.bf16.mxu0 %v12649_v8  ;;  %v6297_v8 = vadd.f32 %v14846_v20, %v6256_v25  ;;  %v12801_v25 = vcombine.high %v6666_v59, %v6670_v23  ;;  %v6746_v23 = vld [vmem:[#allocation19 + $0xb08] sm:$0xff] }
 0x767   :  { %9688 = vmatpush2.bf16.msra.mxu0 %v12648_v5 }
 0x768   :  { %9689 = vmatprep.subr.bf16.mxu0 %v12641_v33  ;;  %v6299_v33 = vadd.f32 %v14848_v41, %v6258_v32  ;;  %v6574_v41 = vld [vmem:[#allocation19 + $0x5a8] sm:$0xff] }
 0x769   :  { %v6662_v32 = vld [vmem:[#allocation19 + $0x868] sm:$0xff] }
 0x76b   :  { %9690 = vmatpush2.bf16.msra.mxu0 %v12640_v38  ;;  %v12825_v38 = vcombine.high %v6690_v13, %v6694_v62  ;;  %v6650_v13 = vld [vmem:[#allocation19 + $0x808] sm:$0xff] }
 0x76c   :  { %9691 = vmatprep.subr.bf16.mxu0 %v12633_v19  ;;  %v6654_v62 = vld [vmem:[#allocation19 + $0x828] sm:$0xff] }
 0x76d   :  { %v12784_v31 = vcombine.low %v6650_v13, %v6654_v62 }
 0x76f   :  { %9692 = vmatpush2.bf16.msra.mxu0 %v12632_v56 }
 0x770   :  { %9693 = vmatprep.subr.bf16.mxu0 %v12625_v46 }
 0x773   :  { %9694 = vmatpush2.bf16.msra.mxu0 %v12624_v29  ;;  %v6570_v29 = vld [vmem:[#allocation19 + $0x588] sm:$0xff] }
 0x774   :  { %9695 = vmatprep.subr.bf16.mxu0 %v12617_v6  ;;  %v12704_v40 = vcombine.low %v6570_v29, %v6574_v41 }
 0x777   :  { %9696 = vmatpush2.bf16.msra.mxu0 %v12616_v50 }
 0x778   :  { %9697 = vmatprep.subr.bf16.mxu0 %v12609_v48  ;;  %v6674_v48 = vld [vmem:[#allocation19 + $0x8c8] sm:$0xff] }
 0x779   :  { %v12808_v55 = vcombine.low %v6674_v48, %v6678_v49 }
 0x77b   :  { %9698 = vmatpush2.bf16.msra.mxu0 %v12608_v44 }
 0x77c   :  { %9699 = vmatprep.subr.bf16.mxu0 %v12601_v14  ;;  %v12705_v14 = vcombine.high %v6570_v29, %v6574_v41  ;;  %v6766_v29 = vld [vmem:[#allocation19 + $0xba8] sm:$0xff] }
 0x77f   :  { %9700 = vmatpush2.bf16.msra.mxu0 %v12600_v16  ;;  %v6566_v16 = vld [vmem:[#allocation19 + $0x568] sm:$0xff] }
 0x780   :  { %9701 = vmatprep.subr.bf16.mxu0 %v12593_v12  ;;  %v12809_v12 = vcombine.high %v6674_v48, %v6678_v49  ;;  %v12697_v3 = vcombine.high %v6562_v17, %v6566_v16  ;;  %v12696_v54 = vcombine.low %v6562_v17, %v6566_v16  ;;  %v6642_v16 = vld [vmem:[#allocation19 + $0x7c8] sm:$0xff] }
 0x783   :  { %9702 = vmatpush2.bf16.msra.mxu0 %v12592_v52  ;;  %v6554_v52 = vld [vmem:[#allocation19 + $0x508] sm:$0xff] }
 0x784   :  { %9753 = vmatprep.subr.bf16.mxu0 %v12841_v1  ;;  %v6558_v1 = vld [vmem:[#allocation19 + $0x528] sm:$0xff] }
 0x785   :  { %v12689_v34 = vcombine.high %v6554_v52, %v6558_v1 }
 0x786   :  { %v6337_v5 = vpop.f32.mrf.mxu0  ;;  %9704 = vmatmul.mubr.bf16.vlgmr.msra.gmra.mxu0 %v14811_v45 }
 0x787   :  { %v6338_v0 = vadd.f32 %v6337_v5, %v6297_v8  ;;  %9754 = vmatpush1.bf16.msra.mxu0 %v12840_v15  ;;  %9785 = vmatprep.mubr.bf16.mxu0 %v14824_v57  ;;  %v6550_v15 = vld [vmem:[#allocation19 + $0x4e8] sm:$0xff]  ;;  %v12688_v8 = vcombine.low %v6554_v52, %v6558_v1 }
 0x788   :  { %v6339_v10 = vpop.f32.mrf.mxu0  ;;  %v6378_v30 = vpop.f32.mrf.mxu1  ;;  %9755 = vmatprep.subr.bf16.mxu0 %v12833_v27  ;;  %v12793_v27 = vcombine.high %v6658_v24, %v6662_v32  ;;  %v6634_v1 = vld [vmem:[#allocation19 + $0x788] sm:$0xff] }
 0x789   :  { %v6340_v19 = vadd.f32 %v6339_v10, %v6299_v33  ;;  %v6379_v20 = vadd.f32 %v6378_v30, %v6338_v0  ;;  %v12792_v33 = vcombine.low %v6658_v24, %v6662_v32  ;;  %v6538_v0 = vld [vmem:[#allocation19 + $0x488] sm:$0xff]  ;;  %v12785_v10 = vcombine.high %v6650_v13, %v6654_v62 }
 0x78a   :  { %v6341_v56 = vpop.f32.mrf.mxu0  ;;  %v6380_v46 = vpop.f32.mrf.mxu1  ;;  %v6738_v32 = vld [vmem:[#allocation19 + $0xac8] sm:$0xff] }
 0x78b   :  { %v6381_v11 = vadd.f32 %v6380_v46, %v6340_v19  ;;  %9756 = vmatpush1.bf16.msra.mxu0 %v12832_v4  ;;  %v14864_v37 = vpack.c.bf16 %v6379_v20, %v6379_v20  ;;  %v6542_v4 = vld [vmem:[#allocation19 + $0x4a8] sm:$0xff] }
 0x78c   :  { %v6342_v6 = vpop.f32.mrf.mxu0  ;;  %v6382_v43 = vpop.f32.mrf.mxu1  ;;  %9757 = vmatprep.subr.bf16.mxu0 %v12825_v38  ;;  %v6770_v38 = vld [vmem:[#allocation19 + $0xbc8] sm:$0xff]  ;;  %v12673_v22 = vcombine.high %v6538_v0, %v6542_v4 }
 0x78d   :  { %v14862_v50 = vpack.c.bf16 %v6381_v11, %v6381_v11  ;;  %v6774_v19 = vld [vmem:[#allocation19 + $0xbe8] sm:$0xff]  ;;  %v12672_v11 = vcombine.low %v6538_v0, %v6542_v4 }
 0x78e   :  { %v6383_v44 = vpop.f32.mrf.mxu1  ;;  %v6530_v20 = vld [vmem:[#allocation19 + $0x448] sm:$0xff]  ;;  %v12905_v46 = vcombine.high %v6770_v38, %v6774_v19  ;;  %v12904_v6 = vcombine.low %v6770_v38, %v6774_v19 }
 0x78f   :  { %9662 = vmatprep.mubr.bf16.mxu1 %v14862_v50  ;;  %9758 = vmatpush1.bf16.msra.mxu0 %v12824_v60  ;;  %v6534_v56 = vld [vmem:[#allocation19 + $0x468] sm:$0xff] }
 0x790   :  { %9663 = vmatmul.mubr.bf16.vlgmr.msra.gmra.mxu1 %v14864_v37  ;;  %9759 = vmatprep.subr.bf16.mxu0 %v12817_v2  ;;  %v6762_v60 = vld [vmem:[#allocation19 + $0xb88] sm:$0xff]  ;;  %v12665_v41 = vcombine.high %v6530_v20, %v6534_v56  ;;  %v12664_v49 = vcombine.low %v6530_v20, %v6534_v56 }
 0x791   :  { %9713 = vmatpush1.bf16.msra.mxu1 %v12712_v58  ;;  %9744 = vmatprep.mubr.bf16.mxu1 %v14793_v9  ;;  %v6546_v58 = vld [vmem:[#allocation19 + $0x4c8] sm:$0xff]  ;;  %v12897_v48 = vcombine.high %v6762_v60, %v6766_v29  ;;  %v12896_v17 = vcombine.low %v6762_v60, %v6766_v29 }
 0x792   :  { %9714 = vmatprep.subr.bf16.mxu1 %v12705_v14  ;;  %v12681_v5 = vcombine.high %v6546_v58, %v6550_v15  ;;  %v12680_v30 = vcombine.low %v6546_v58, %v6550_v15  ;;  %v6522_v43 = vld [vmem:[#allocation19 + $0x408] sm:$0xff] }
 0x793   :  { %9760 = vmatpush1.bf16.msra.mxu0 %v12816_v7  ;;  %v6526_v2 = vld [vmem:[#allocation19 + $0x428] sm:$0xff] }
 0x794   :  { %9761 = vmatprep.subr.bf16.mxu0 %v12809_v12  ;;  %v6754_v44 = vld [vmem:[#allocation19 + $0xb48] sm:$0xff]  ;;  %v12657_v7 = vcombine.high %v6522_v43, %v6526_v2  ;;  %v12656_v59 = vcombine.low %v6522_v43, %v6526_v2 }
 0x795   :  { %9715 = vmatpush1.bf16.msra.mxu1 %v12704_v40  ;;  %v6758_v14 = vld [vmem:[#allocation19 + $0xb68] sm:$0xff] }
 0x796   :  { %9716 = vmatprep.subr.bf16.mxu1 %v12697_v3  ;;  %v6646_v12 = vld [vmem:[#allocation19 + $0x7e8] sm:$0xff]  ;;  %v12889_v40 = vcombine.high %v6754_v44, %v6758_v14  ;;  %v12888_v52 = vcombine.low %v6754_v44, %v6758_v14  ;;  %v6451_v14 = vld [vmem:[#allocation19 + $0x1d0] sm:$0xff] }
 0x797   :  { %9762 = vmatpush1.bf16.msra.mxu0 %v12808_v55  ;;  %v6750_v3 = vld [vmem:[#allocation19 + $0xb28] sm:$0xff]  ;;  %v12777_v55 = vcombine.high %v6642_v16, %v6646_v12  ;;  %v12776_v24 = vcombine.low %v6642_v16, %v6646_v12 }
 0x798   :  { %9763 = vmatprep.subr.bf16.mxu0 %v12801_v25  ;;  %v6638_v25 = vld [vmem:[#allocation19 + $0x7a8] sm:$0xff]  ;;  %v12880_v58 = vcombine.low %v6746_v23, %v6750_v3 }
 0x799   :  { %9717 = vmatpush1.bf16.msra.mxu1 %v12696_v54  ;;  %v12881_v54 = vcombine.high %v6746_v23, %v6750_v3  ;;  %v6626_v15 = vld [vmem:[#allocation19 + $0x748] sm:$0xff]  ;;  %v12768_v13 = vcombine.low %v6634_v1, %v6638_v25 }
 0x79a   :  { %9718 = vmatprep.subr.bf16.mxu1 %v12689_v34  ;;  %v6742_v34 = vld [vmem:[#allocation19 + $0xae8] sm:$0xff] }
 0x79b   :  { %9764 = vmatpush1.bf16.msra.mxu0 %v12800_v21  ;;  %v12769_v21 = vcombine.high %v6634_v1, %v6638_v25  ;;  %v6730_v62 = vld [vmem:[#allocation19 + $0xa88] sm:$0xff]  ;;  %v12872_v0 = vcombine.low %v6738_v32, %v6742_v34 }
 0x79c   :  { %9765 = vmatprep.subr.bf16.mxu0 %v12793_v27  ;;  %v6630_v27 = vld [vmem:[#allocation19 + $0x768] sm:$0xff] }
 0x79d   :  { %9719 = vmatpush1.bf16.msra.mxu1 %v12688_v8  ;;  %v12873_v8 = vcombine.high %v6738_v32, %v6742_v34  ;;  %v6618_v4 = vld [vmem:[#allocation19 + $0x708] sm:$0xff]  ;;  %v12760_v38 = vcombine.low %v6626_v15, %v6630_v27 }
 0x79e   :  { %9720 = vmatprep.subr.bf16.mxu1 %v12681_v5  ;;  %v6734_v5 = vld [vmem:[#allocation19 + $0xaa8] sm:$0xff] }
 0x79f   :  { %9766 = vmatpush1.bf16.msra.mxu0 %v12792_v33  ;;  %v12761_v33 = vcombine.high %v6626_v15, %v6630_v27  ;;  %v6722_v19 = vld [vmem:[#allocation19 + $0xa48] sm:$0xff]  ;;  %v12864_v20 = vcombine.low %v6730_v62, %v6734_v5  ;;  %v6435_v15 = vld [vmem:[#allocation19 + $0x150] sm:$0xff] }
 0x7a0   :  { %9767 = vmatprep.subr.bf16.mxu0 %v12785_v10  ;;  %v6622_v10 = vld [vmem:[#allocation19 + $0x728] sm:$0xff]  ;;  %v6439_v27 = vld [vmem:[#allocation19 + $0x170] sm:$0xff] }
 0x7a1   :  { %9721 = vmatpush1.bf16.msra.mxu1 %v12680_v30  ;;  %v12865_v30 = vcombine.high %v6730_v62, %v6734_v5  ;;  %v6610_v56 = vld [vmem:[#allocation19 + $0x6c8] sm:$0xff]  ;;  %v12752_v60 = vcombine.low %v6618_v4, %v6622_v10 }
 0x7a2   :  { %9722 = vmatprep.subr.bf16.mxu1 %v12673_v22  ;;  %v6726_v22 = vld [vmem:[#allocation19 + $0xa68] sm:$0xff] }
 0x7a3   :  { %9768 = vmatpush1.bf16.msra.mxu0 %v12784_v31  ;;  %v12753_v31 = vcombine.high %v6618_v4, %v6622_v10  ;;  %v6714_v29 = vld [vmem:[#allocation19 + $0xa08] sm:$0xff]  ;;  %v12856_v43 = vcombine.low %v6722_v19, %v6726_v22 }
 0x7a4   :  { %9769 = vmatprep.subr.bf16.mxu0 %v12905_v46  ;;  %v6614_v46 = vld [vmem:[#allocation19 + $0x6e8] sm:$0xff] }
 0x7a5   :  { %9723 = vmatpush1.bf16.msra.mxu1 %v12672_v11  ;;  %v12857_v11 = vcombine.high %v6722_v19, %v6726_v22  ;;  %v6602_v2 = vld [vmem:[#allocation19 + $0x688] sm:$0xff]  ;;  %v12744_v44 = vcombine.low %v6610_v56, %v6614_v46 }
 0x7a6   :  { %9724 = vmatprep.subr.bf16.mxu1 %v12665_v41  ;;  %v6718_v41 = vld [vmem:[#allocation19 + $0xa28] sm:$0xff] }
 0x7a7   :  { %9770 = vmatpush2.bf16.msra.mxu0 %v12904_v6  ;;  %v12745_v6 = vcombine.high %v6610_v56, %v6614_v46  ;;  %v12848_v16 = vcombine.low %v6714_v29, %v6718_v41  ;;  %v6594_v12 = vld [vmem:[#allocation19 + $0x648] sm:$0xff] }
 0x7a8   :  { %9771 = vmatprep.subr.bf16.mxu0 %v12897_v48  ;;  %v6606_v48 = vld [vmem:[#allocation19 + $0x6a8] sm:$0xff] }
 0x7a9   :  { %9725 = vmatpush1.bf16.msra.mxu1 %v12664_v49  ;;  %v12849_v49 = vcombine.high %v6714_v29, %v6718_v41  ;;  %v12736_v3 = vcombine.low %v6602_v2, %v6606_v48  ;;  %v6590_v32 = vld [vmem:[#allocation19 + $0x628] sm:$0xff]  ;;  %v12570_v29 = vcombine.low %v6435_v15, %v6439_v27 }
 0x7aa   :  { %9726 = vmatprep.subr.bf16.mxu1 %v12657_v7  ;;  %v6455_v7 = vld [vmem:[#allocation19 + $0x1f0] sm:$0xff]  ;;  %v6826_v41 = vld [vmem:[#allocation19 + $0xd88] sm:$0xff] }
 0x7ab   :  { %9772 = vmatpush2.bf16.msra.mxu0 %v12896_v17  ;;  %v12737_v17 = vcombine.high %v6602_v2, %v6606_v48  ;;  %v12587_v23 = vcombine.high %v6451_v14, %v6455_v7 }
 0x7ac   :  { %9773 = vmatprep.subr.bf16.mxu0 %v12889_v40  ;;  %v6598_v40 = vld [vmem:[#allocation19 + $0x668] sm:$0xff] }
 0x7ad   :  { %9727 = vmatpush1.bf16.msra.mxu1 %v12656_v59  ;;  %v6905_v59 = vld [vmem:[#allocation21] sm:$0xff]  ;;  %v12729_v1 = vcombine.high %v6594_v12, %v6598_v40 }
 0x7ae   :  { %9728 = vmatprep.subr.bf16.mxu1 %v12777_v55  ;;  %v6443_v55 = vld [vmem:[#allocation19 + $0x190] sm:$0xff]  ;;  %v6910_v25 = vrot.slane %v6905_v59, %v15866_v61 }
 0x7af   :  { %9774 = vmatpush2.bf16.msra.mxu0 %v12888_v52  ;;  %v6447_v52 = vld [vmem:[#allocation19 + $0x1b0] sm:$0xff] }
 0x7b0   :  { %9775 = vmatprep.subr.bf16.mxu0 %v12881_v54  ;;  %v12586_v54 = vcombine.low %v6451_v14, %v6455_v7  ;;  %v12579_v34 = vcombine.high %v6443_v55, %v6447_v52  ;;  %v12578_v5 = vcombine.low %v6443_v55, %v6447_v52  ;;  %v6423_v14 = vld [vmem:[#allocation19 + $0xf0] sm:$0xff] }
 0x7b1   :  { %9729 = vmatpush2.bf16.msra.mxu1 %v12776_v24  ;;  %v6586_v24 = vld [vmem:[#allocation19 + $0x608] sm:$0xff]  ;;  %v6415_v55 = vld [vmem:[#allocation19 + $0xb0] sm:$0xff] }
 0x7b2   :  { %9730 = vmatprep.subr.bf16.mxu1 %v12769_v21  ;;  %v12728_v21 = vcombine.low %v6594_v12, %v6598_v40  ;;  %v12720_v22 = vcombine.low %v6586_v24, %v6590_v32  ;;  %v6818_v12 = vld [vmem:[#allocation19 + $0xd48] sm:$0xff] }
 0x7b3   :  { %9776 = vmatpush2.bf16.msra.mxu0 %v12880_v58  ;;  %v6914_v58 = vrot.slane %v6905_v59, %v15867_v28  ;;  %v6822_v40 = vld [vmem:[#allocation19 + $0xd68] sm:$0xff] }
 0x7b4   :  { %9777 = vmatprep.subr.bf16.mxu0 %v12873_v8  ;;  %v12953_v52 = vcombine.high %v6818_v12, %v6822_v40 }
 0x7b5   :  { %9731 = vmatpush2.bf16.msra.mxu1 %v12768_v13  ;;  %v12721_v13 = vcombine.high %v6586_v24, %v6590_v32  ;;  %v12952_v32 = vcombine.low %v6818_v12, %v6822_v40  ;;  %v6503_v12 = vld [vmem:[#allocation19 + $0x370] sm:$0xff] }
 0x7b6   :  { %9732 = vmatprep.subr.bf16.mxu1 %v12761_v33  ;;  %v6834_v33 = vld [vmem:[#allocation19 + $0xdc8] sm:$0xff] }
 0x7b7   :  { %9778 = vmatpush2.bf16.msra.mxu0 %v12872_v0  ;;  %v6838_v0 = vld [vmem:[#allocation19 + $0xde8] sm:$0xff] }
 0x7b8   :  { %9779 = vmatprep.subr.bf16.mxu0 %v12865_v30  ;;  %v12571_v30 = vcombine.high %v6435_v15, %v6439_v27  ;;  %v6802_v27 = vld [vmem:[#allocation19 + $0xcc8] sm:$0xff] }
 0x7b9   :  { %9733 = vmatpush2.bf16.msra.mxu1 %v12760_v38 }
 0x7ba   :  { %9734 = vmatprep.subr.bf16.mxu1 %v12753_v31  ;;  %v6427_v31 = vld [vmem:[#allocation19 + $0x110] sm:$0xff] }
 0x7bb   :  { %9780 = vmatpush2.bf16.msra.mxu0 %v12864_v20  ;;  %v6431_v20 = vld [vmem:[#allocation19 + $0x130] sm:$0xff] }
 0x7bc   :  { %9781 = vmatprep.subr.bf16.mxu0 %v12857_v11  ;;  %v12969_v11 = vcombine.high %v6834_v33, %v6838_v0  ;;  %v12563_v48 = vcombine.high %v6427_v31, %v6431_v20 }
 0x7bd   :  { %9735 = vmatpush2.bf16.msra.mxu1 %v12752_v60 }
 0x7be   :  { %9736 = vmatprep.subr.bf16.mxu1 %v12745_v6  ;;  %v6830_v6 = vld [vmem:[#allocation19 + $0xda8] sm:$0xff] }
 0x7bf   :  { %9782 = vmatpush2.bf16.msra.mxu0 %v12856_v43 }
 0x7c0   :  { %9783 = vmatprep.subr.bf16.mxu0 %v12849_v49  ;;  %v12968_v49 = vcombine.low %v6834_v33, %v6838_v0  ;;  %v6399_v33 = vld [vmem:[#allocation19 + $0x30] sm:$0xff] }
 0x7c1   :  { %9737 = vmatpush2.bf16.msra.mxu1 %v12744_v44  ;;  %v6419_v44 = vld [vmem:[#allocation19 + $0xd0] sm:$0xff] }
 0x7c2   :  { %9738 = vmatprep.subr.bf16.mxu1 %v12737_v17  ;;  %v12961_v17 = vcombine.high %v6826_v41, %v6830_v6  ;;  %v12555_v59 = vcombine.high %v6419_v44, %v6423_v14 }
 0x7c3   :  { %9784 = vmatpush2.bf16.msra.mxu0 %v12848_v16  ;;  %v12562_v16 = vcombine.low %v6427_v31, %v6431_v20  ;;  %v6515_v31 = vld [vmem:[#allocation19 + $0x3d0] sm:$0xff] }
 0x7c4   :  { %9835 = vmatprep.subr.bf16.mxu0 %v12587_v23  ;;  %v12960_v23 = vcombine.low %v6826_v41, %v6830_v6  ;;  %v6519_v20 = vld [vmem:[#allocation19 + $0x3f0] sm:$0xff] }
 0x7c5   :  { %9739 = vmatpush2.bf16.msra.mxu1 %v12736_v3  ;;  %v6411_v3 = vld [vmem:[#allocation19 + $0x90] sm:$0xff]  ;;  %v12651_v41 = vcombine.high %v6515_v31, %v6519_v20 }
 0x7c6   :  { %v9541_v8 = vpop.f32.mrf.mxu0  ;;  %9786 = vmatmul.mubr.bf16.vlgmr.msra.gmra.mxu0 %v14838_v53  ;;  %9740 = vmatprep.subr.bf16.mxu1 %v12729_v1  ;;  %v12554_v1 = vcombine.low %v6419_v44, %v6423_v14  ;;  %v12547_v24 = vcombine.high %v6411_v3, %v6415_v55  ;;  %v12546_v15 = vcombine.low %v6411_v3, %v6415_v55  ;;  %v6778_v44 = vld [vmem:[#allocation19 + $0xc08] sm:$0xff] }
 0x7c7   :  { %v9542_v62 = vadd.f32 %v9541_v8, %v6910_v25  ;;  %9836 = vmatpush1.bf16.msra.mxu0 %v12586_v54  ;;  %9867 = vmatprep.mubr.bf16.mxu0 %v14790_v18  ;;  %v6810_v25 = vld [vmem:[#allocation19 + $0xd08] sm:$0xff] }
 0x7c8   :  { %v9543_v4 = vpop.f32.mrf.mxu0  ;;  %v9582_v10 = vpop.f32.mrf.mxu1  ;;  %9837 = vmatprep.subr.bf16.mxu0 %v12579_v34  ;;  %v6814_v54 = vld [vmem:[#allocation19 + $0xd28] sm:$0xff]  ;;  %v6403_v34 = vld [vmem:[#allocation19 + $0x50] sm:$0xff] }
 0x7c9   :  { %v9544_v38 = vadd.f32 %v9543_v4, %v6914_v58  ;;  %v14876_v19 = vadd.f32 %v9582_v10, %v9542_v62  ;;  %9741 = vmatpush2.bf16.msra.mxu1 %v12728_v21  ;;  %v6407_v21 = vld [vmem:[#allocation19 + $0x70] sm:$0xff]  ;;  %v12945_v58 = vcombine.high %v6810_v25, %v6814_v54  ;;  %v6806_v8 = vld [vmem:[#allocation19 + $0xce8] sm:$0xff]  ;;  %v12944_v62 = vcombine.low %v6810_v25, %v6814_v54 }
 0x7ca   :  { %v9545_v56 = vpop.f32.mrf.mxu0  ;;  %v9584_v46 = vpop.f32.mrf.mxu1  ;;  %9742 = vmatprep.subr.bf16.mxu1 %v12721_v13  ;;  %v12539_v13 = vcombine.high %v6403_v34, %v6407_v21  ;;  %v12937_v0 = vcombine.high %v6802_v27, %v6806_v8  ;;  %v12538_v4 = vcombine.low %v6403_v34, %v6407_v21  ;;  %v6794_v10 = vld [vmem:[#allocation19 + $0xc88] sm:$0xff]  ;;  %v6495_v25 = vld [vmem:[#allocation19 + $0x330] sm:$0xff] }
 0x7cb   :  { %v14878_v60 = vadd.f32 %v9584_v46, %v9544_v38  ;;  %9838 = vmatpush1.bf16.msra.mxu0 %v12578_v5  ;;  %v6395_v5 = vld [vmem:[#allocation19 + $0x10] sm:$0xff]  ;;  %v6782_v14 = vld [vmem:[#allocation19 + $0xc28] sm:$0xff] }
 0x7cc   :  { %v9546_v43 = vpop.f32.mrf.mxu0  ;;  %v9586_v2 = vpop.f32.mrf.mxu1  ;;  %9839 = vmatprep.subr.bf16.mxu0 %v12571_v30  ;;  %v6798_v30 = vld [vmem:[#allocation19 + $0xca8] sm:$0xff]  ;;  %v12531_v38 = vcombine.high %v6395_v5, %v6399_v33  ;;  %v12530_v46 = vcombine.low %v6395_v5, %v6399_v33  ;;  %v12913_v40 = vcombine.high %v6778_v44, %v6782_v14 }
 0x7cd   :  { %9743 = vmatpush2.bf16.msra.mxu1 %v12720_v22  ;;  %v12936_v22 = vcombine.low %v6802_v27, %v6806_v8  ;;  %v12929_v56 = vcombine.high %v6794_v10, %v6798_v30  ;;  %v12928_v6 = vcombine.low %v6794_v10, %v6798_v30  ;;  %v6507_v43 = vld [vmem:[#allocation19 + $0x390] sm:$0xff]  ;;  %v6902_v3 = vld [vmem:[#allocation19 + $0xfe8] sm:$0xff] }
 0x7ce   :  { %v9587_v7 = vpop.f32.mrf.mxu1  ;;  %9794 = vmatprep.subr.bf16.mxu1 %v12969_v11  ;;  %v6786_v11 = vld [vmem:[#allocation19 + $0xc48] sm:$0xff]  ;;  %v6511_v2 = vld [vmem:[#allocation19 + $0x3b0] sm:$0xff] }
 0x7cf   :  { %9840 = vmatpush1.bf16.msra.mxu0 %v12570_v29  ;;  %v6790_v29 = vld [vmem:[#allocation19 + $0xc68] sm:$0xff]  ;;  %v12643_v7 = vcombine.high %v6507_v43, %v6511_v2  ;;  %v6487_v27 = vld [vmem:[#allocation19 + $0x2f0] sm:$0xff] }
 0x7d0   :  { %9745 = vmatmul.mubr.bf16.vlgmr.msra.gmra.mxu1 %v14815_v39  ;;  %9841 = vmatprep.subr.bf16.mxu0 %v12563_v48  ;;  %v12921_v48 = vcombine.high %v6786_v11, %v6790_v29  ;;  %v6894_v34 = vld [vmem:[#allocation19 + $0xfa8] sm:$0xff]  ;;  %v6479_v10 = vld [vmem:[#allocation19 + $0x2b0] sm:$0xff] }
 0x7d1   :  { %9795 = vmatpush1.bf16.msra.mxu1 %v12968_v49  ;;  %9826 = vmatprep.mubr.bf16.mxu1 %v14862_v50  ;;  %v12650_v49 = vcombine.low %v6515_v31, %v6519_v20  ;;  %v6886_v5 = vld [vmem:[#allocation19 + $0xf68] sm:$0xff] }
 0x7d2   :  { %9796 = vmatprep.subr.bf16.mxu1 %v12961_v17  ;;  %v12920_v17 = vcombine.low %v6786_v11, %v6790_v29  ;;  %v6878_v31 = vld [vmem:[#allocation19 + $0xf28] sm:$0xff]  ;;  %v6471_v11 = vld [vmem:[#allocation19 + $0x270] sm:$0xff] }
 0x7d3   :  { %9842 = vmatpush1.bf16.msra.mxu0 %v12562_v16  ;;  %v6499_v16 = vld [vmem:[#allocation19 + $0x350] sm:$0xff] }
 0x7d4   :  { %9843 = vmatprep.subr.bf16.mxu0 %v12555_v59  ;;  %v12642_v59 = vcombine.low %v6507_v43, %v6511_v2  ;;  %v12635_v55 = vcombine.high %v6499_v16, %v6503_v12  ;;  %v6870_v43 = vld [vmem:[#allocation19 + $0xee8] sm:$0xff] }
 0x7d5   :  { %9797 = vmatpush1.bf16.msra.mxu1 %v12960_v23  ;;  %v6898_v23 = vld [vmem:[#allocation19 + $0xfc8] sm:$0xff] }
 0x7d6   :  { %9798 = vmatprep.subr.bf16.mxu1 %v12953_v52  ;;  %v12912_v52 = vcombine.low %v6778_v44, %v6782_v14  ;;  %v13033_v54 = vcombine.high %v6898_v23, %v6902_v3  ;;  %v6463_v44 = vld [vmem:[#allocation19 + $0x230] sm:$0xff] }
 0x7d7   :  { %9844 = vmatpush1.bf16.msra.mxu0 %v12554_v1  ;;  %v6491_v1 = vld [vmem:[#allocation19 + $0x310] sm:$0xff] }
 0x7d8   :  { %9845 = vmatprep.subr.bf16.mxu0 %v12547_v24  ;;  %v12634_v24 = vcombine.low %v6499_v16, %v6503_v12  ;;  %v12627_v21 = vcombine.high %v6491_v1, %v6495_v25  ;;  %v6862_v16 = vld [vmem:[#allocation19 + $0xea8] sm:$0xff] }
 0x7d9   :  { %9799 = vmatpush1.bf16.msra.mxu1 %v12952_v32  ;;  %v6890_v32 = vld [vmem:[#allocation19 + $0xf88] sm:$0xff] }
 0x7da   :  { %9800 = vmatprep.subr.bf16.mxu1 %v12945_v58  ;;  %v13032_v58 = vcombine.low %v6898_v23, %v6902_v3  ;;  %v13025_v8 = vcombine.high %v6890_v32, %v6894_v34  ;;  %v6711_v23 = vld [vmem:[#allocation19 + $0x9f0] sm:$0xff] }
 0x7db   :  { %9846 = vmatpush1.bf16.msra.mxu0 %v12546_v15  ;;  %v6483_v15 = vld [vmem:[#allocation19 + $0x2d0] sm:$0xff] }
 0x7dc   :  { %9847 = vmatprep.subr.bf16.mxu0 %v12539_v13  ;;  %v12626_v13 = vcombine.low %v6491_v1, %v6495_v25  ;;  %v12619_v33 = vcombine.high %v6483_v15, %v6487_v27  ;;  %v6854_v1 = vld [vmem:[#allocation19 + $0xe68] sm:$0xff] }
 0x7dd   :  { %9801 = vmatpush1.bf16.msra.mxu1 %v12944_v62  ;;  %v6882_v62 = vld [vmem:[#allocation19 + $0xf48] sm:$0xff] }
 0x7de   :  { %9802 = vmatprep.subr.bf16.mxu1 %v12937_v0  ;;  %v13024_v0 = vcombine.low %v6890_v32, %v6894_v34  ;;  %v13017_v30 = vcombine.high %v6882_v62, %v6886_v5  ;;  %v6703_v32 = vld [vmem:[#allocation19 + $0x9b0] sm:$0xff] }
 0x7df   :  { %9848 = vmatpush1.bf16.msra.mxu0 %v12538_v4  ;;  %v6475_v4 = vld [vmem:[#allocation19 + $0x290] sm:$0xff] }
 0x7e0   :  { %9849 = vmatprep.subr.bf16.mxu0 %v12531_v38  ;;  %v12618_v38 = vcombine.low %v6483_v15, %v6487_v27  ;;  %v12611_v20 = vcombine.high %v6475_v4, %v6479_v10  ;;  %v6846_v15 = vld [vmem:[#allocation19 + $0xe28] sm:$0xff] }
 0x7e1   :  { %9803 = vmatpush1.bf16.msra.mxu1 %v12936_v22  ;;  %v6874_v22 = vld [vmem:[#allocation19 + $0xf08] sm:$0xff] }
 0x7e2   :  { %9804 = vmatprep.subr.bf16.mxu1 %v12929_v56  ;;  %v13016_v56 = vcombine.low %v6882_v62, %v6886_v5  ;;  %v13009_v29 = vcombine.high %v6874_v22, %v6878_v31  ;;  %v6695_v62 = vld [vmem:[#allocation19 + $0x970] sm:$0xff] }
 0x7e3   :  { %9850 = vmatpush1.bf16.msra.mxu0 %v12530_v46  ;;  %v6467_v46 = vld [vmem:[#allocation19 + $0x250] sm:$0xff] }
 0x7e4   :  { %9851 = vmatprep.subr.bf16.mxu0 %v12651_v41  ;;  %v12610_v41 = vcombine.low %v6475_v4, %v6479_v10  ;;  %v12603_v2 = vcombine.high %v6467_v46, %v6471_v11  ;;  %v6579_v10 = vld [vmem:[#allocation19 + $0x5d0] sm:$0xff] }
 0x7e5   :  { %9805 = vmatpush1.bf16.msra.mxu1 %v12928_v6  ;;  %v6866_v6 = vld [vmem:[#allocation19 + $0xec8] sm:$0xff] }
 0x7e6   :  { %9806 = vmatprep.subr.bf16.mxu1 %v12921_v48  ;;  %v13008_v48 = vcombine.low %v6874_v22, %v6878_v31  ;;  %v13001_v14 = vcombine.high %v6866_v6, %v6870_v43 }
 0x7e7   :  { %9852 = vmatpush2.bf16.msra.mxu0 %v12650_v49  ;;  %v6459_v49 = vld [vmem:[#allocation19 + $0x210] sm:$0xff] }
 0x7e8   :  { %9853 = vmatprep.subr.bf16.mxu0 %v12643_v7  ;;  %v12602_v7 = vcombine.low %v6467_v46, %v6471_v11  ;;  %v12595_v12 = vcombine.high %v6459_v49, %v6463_v44  ;;  %v6687_v46 = vld [vmem:[#allocation19 + $0x930] sm:$0xff] }
 0x7e9   :  { %9807 = vmatpush1.bf16.msra.mxu1 %v12920_v17  ;;  %v6858_v17 = vld [vmem:[#allocation19 + $0xe88] sm:$0xff] }
 0x7ea   :  { %9808 = vmatprep.subr.bf16.mxu1 %v12913_v40  ;;  %v13000_v40 = vcombine.low %v6866_v6, %v6870_v43  ;;  %v12993_v3 = vcombine.high %v6858_v17, %v6862_v16  ;;  %v6575_v6 = vld [vmem:[#allocation19 + $0x5b0] sm:$0xff] }
 0x7eb   :  { %9854 = vmatpush2.bf16.msra.mxu0 %v12642_v59  ;;  %v6707_v59 = vld [vmem:[#allocation19 + $0x9d0] sm:$0xff] }
 0x7ec   :  { %9855 = vmatprep.subr.bf16.mxu0 %v12635_v55  ;;  %v12594_v55 = vcombine.low %v6459_v49, %v6463_v44  ;;  %v12843_v25 = vcombine.high %v6707_v59, %v6711_v23  ;;  %v6675_v49 = vld [vmem:[#allocation19 + $0x8d0] sm:$0xff] }
 0x7ed   :  { %9809 = vmatpush1.bf16.msra.mxu1 %v12912_v52  ;;  %v6850_v52 = vld [vmem:[#allocation19 + $0xe48] sm:$0xff]  ;;  %v6679_v44 = vld [vmem:[#allocation19 + $0x8f0] sm:$0xff] }
 0x7ee   :  { %9810 = vmatprep.subr.bf16.mxu1 %v13033_v54  ;;  %v12992_v54 = vcombine.low %v6858_v17, %v6862_v16  ;;  %v12985_v34 = vcombine.high %v6850_v52, %v6854_v1  ;;  %v6567_v17 = vld [vmem:[#allocation19 + $0x570] sm:$0xff]  ;;  %v12811_v16 = vcombine.high %v6675_v49, %v6679_v44 }
 0x7ef   :  { %9856 = vmatpush2.bf16.msra.mxu0 %v12634_v24  ;;  %v6699_v24 = vld [vmem:[#allocation19 + $0x990] sm:$0xff] }
 0x7f0   :  { %9857 = vmatprep.subr.bf16.mxu0 %v12627_v21  ;;  %v12842_v21 = vcombine.low %v6707_v59, %v6711_v23  ;;  %v12835_v27 = vcombine.high %v6699_v24, %v6703_v32  ;;  %v12834_v4 = vcombine.low %v6699_v24, %v6703_v32  ;;  %v6671_v59 = vld [vmem:[#allocation19 + $0x8b0] sm:$0xff] }
 0x7f1   :  { %9811 = vmatpush2.bf16.msra.mxu1 %v13032_v58  ;;  %v6842_v58 = vld [vmem:[#allocation19 + $0xe08] sm:$0xff]  ;;  %v6663_v24 = vld [vmem:[#allocation19 + $0x870] sm:$0xff] }
 0x7f2   :  { %9812 = vmatprep.subr.bf16.mxu1 %v13025_v8  ;;  %v12984_v8 = vcombine.low %v6850_v52, %v6854_v1  ;;  %v6559_v52 = vld [vmem:[#allocation19 + $0x530] sm:$0xff] }
 0x7f3   :  { %9858 = vmatpush2.bf16.msra.mxu0 %v12626_v13  ;;  %v6691_v13 = vld [vmem:[#allocation19 + $0x950] sm:$0xff] }
 0x7f4   :  { %9859 = vmatprep.subr.bf16.mxu0 %v12619_v33  ;;  %v12977_v33 = vcombine.high %v6842_v58, %v6846_v15  ;;  %v12827_v22 = vcombine.high %v6691_v13, %v6695_v62 }
 0x7f5   :  { %9813 = vmatpush2.bf16.msra.mxu1 %v13024_v0 }
 0x7f6   :  { %9814 = vmatprep.subr.bf16.mxu1 %v13017_v30  ;;  %v6583_v30 = vld [vmem:[#allocation19 + $0x5f0] sm:$0xff] }
 0x7f7   :  { %9860 = vmatpush2.bf16.msra.mxu0 %v12618_v38 }
 0x7f8   :  { %9861 = vmatprep.subr.bf16.mxu0 %v12611_v20  ;;  %v12976_v20 = vcombine.low %v6842_v58, %v6846_v15  ;;  %v6551_v58 = vld [vmem:[#allocation19 + $0x4f0] sm:$0xff] }
 0x7f9   :  { %9815 = vmatpush2.bf16.msra.mxu1 %v13016_v56  ;;  %v6683_v56 = vld [vmem:[#allocation19 + $0x910] sm:$0xff] }
 0x7fa   :  { %9816 = vmatprep.subr.bf16.mxu1 %v13009_v29  ;;  %v12826_v29 = vcombine.low %v6691_v13, %v6695_v62  ;;  %v6655_v13 = vld [vmem:[#allocation19 + $0x830] sm:$0xff] }
 0x7fb   :  { %9862 = vmatpush2.bf16.msra.mxu0 %v12610_v41  ;;  %v6571_v41 = vld [vmem:[#allocation19 + $0x590] sm:$0xff] }
 0x7fc   :  { %9863 = vmatprep.subr.bf16.mxu0 %v12603_v2  ;;  %v12819_v2 = vcombine.high %v6683_v56, %v6687_v46 }
 0x7fd   :  { %9817 = vmatpush2.bf16.msra.mxu1 %v13008_v48  ;;  %v12714_v48 = vcombine.low %v6579_v10, %v6583_v30 }
 0x7fe   :  { %9818 = vmatprep.subr.bf16.mxu1 %v13001_v14  ;;  %v12818_v14 = vcombine.low %v6683_v56, %v6687_v46  ;;  %v6531_v46 = vld [vmem:[#allocation19 + $0x450] sm:$0xff] }
 0x7ff   :  { %9864 = vmatpush2.bf16.msra.mxu0 %v12602_v7  ;;  %v6563_v7 = vld [vmem:[#allocation19 + $0x550] sm:$0xff] }
 0x800   :  { %9865 = vmatprep.subr.bf16.mxu0 %v12595_v12  ;;  %v12706_v12 = vcombine.low %v6571_v41, %v6575_v6  ;;  %v12699_v23 = vcombine.high %v6563_v7, %v6567_v17 }
 0x801   :  { %9819 = vmatpush2.bf16.msra.mxu1 %v13000_v40  ;;  %v6667_v40 = vld [vmem:[#allocation19 + $0x890] sm:$0xff] }
 0x802   :  { %9820 = vmatprep.subr.bf16.mxu1 %v12993_v3  ;;  %v12810_v3 = vcombine.low %v6675_v49, %v6679_v44  ;;  %v12803_v1 = vcombine.high %v6667_v40, %v6671_v59  ;;  %v6527_v49 = vld [vmem:[#allocation19 + $0x430] sm:$0xff] }
 0x803   :  { %9866 = vmatpush2.bf16.msra.mxu0 %v12594_v55  ;;  %v6555_v55 = vld [vmem:[#allocation19 + $0x510] sm:$0xff] }
 0x804   :  { %9917 = vmatprep.subr.bf16.mxu0 %v12843_v25  ;;  %v12698_v25 = vcombine.low %v6563_v7, %v6567_v17  ;;  %v12691_v32 = vcombine.high %v6555_v55, %v6559_v52  ;;  %v6759_v7 = vld [vmem:[#allocation19 + $0xb70] sm:$0xff] }
 0x805   :  { %9821 = vmatpush2.bf16.msra.mxu1 %v12992_v54  ;;  %v6659_v54 = vld [vmem:[#allocation19 + $0x850] sm:$0xff] }
 0x806   :  { %v9623_v5 = vpop.f32.mrf.mxu0  ;;  %9868 = vmatmul.mubr.bf16.vlgmr.msra.gmra.mxu0 %v14811_v45  ;;  %9822 = vmatprep.subr.bf16.mxu1 %v12985_v34  ;;  %v12802_v34 = vcombine.low %v6667_v40, %v6671_v59  ;;  %v12795_v15 = vcombine.high %v6659_v54, %v6663_v24  ;;  %v6647_v40 = vld [vmem:[#allocation19 + $0x7f0] sm:$0xff] }
 0x807   :  { %v14884_v0 = vadd.f32 %v9623_v5, %v14876_v19  ;;  %9918 = vmatpush1.bf16.msra.mxu0 %v12842_v21  ;;  %9949 = vmatprep.mubr.bf16.mxu0 %v14824_v57  ;;  %v12715_v19 = vcombine.high %v6579_v10, %v6583_v30  ;;  %v6547_v21 = vld [vmem:[#allocation19 + $0x4d0] sm:$0xff]  ;;  %v12794_v5 = vcombine.low %v6659_v54, %v6663_v24 }
 0x808   :  { %v9625_v38 = vpop.f32.mrf.mxu0  ;;  %9919 = vmatprep.subr.bf16.mxu0 %v12835_v27  ;;  %v12690_v27 = vcombine.low %v6555_v55, %v6559_v52  ;;  %v12683_v62 = vcombine.high %v6547_v21, %v6551_v58  ;;  %v12682_v30 = vcombine.low %v6547_v21, %v6551_v58  ;;  %v6751_v55 = vld [vmem:[#allocation19 + $0xb30] sm:$0xff] }
 0x809   :  { %v14888_v31 = vadd.f32 %v9625_v38, %v14878_v60  ;;  %9823 = vmatpush2.bf16.msra.mxu1 %v12984_v8  ;;  %v12707_v60 = vcombine.high %v6571_v41, %v6575_v6  ;;  %v6651_v8 = vld [vmem:[#allocation19 + $0x810] sm:$0xff] }
 0x80a   :  { %v9627_v11 = vpop.f32.mrf.mxu0  ;;  %9824 = vmatprep.subr.bf16.mxu1 %v12977_v33  ;;  %v6539_v33 = vld [vmem:[#allocation19 + $0x490] sm:$0xff]  ;;  %v12787_v10 = vcombine.high %v6651_v8, %v6655_v13  ;;  %v12786_v56 = vcombine.low %v6651_v8, %v6655_v13 }
 0x80b   :  { %9920 = vmatpush1.bf16.msra.mxu0 %v12834_v4  ;;  %v6543_v4 = vld [vmem:[#allocation19 + $0x4b0] sm:$0xff] }
 0x80c   :  { %v9628_v43 = vpop.f32.mrf.mxu0  ;;  %9921 = vmatprep.subr.bf16.mxu0 %v12827_v22  ;;  %v6771_v38 = vld [vmem:[#allocation19 + $0xbd0] sm:$0xff] }
 0x80d   :  { %9825 = vmatpush2.bf16.msra.mxu1 %v12976_v20  ;;  %v6775_v22 = vld [vmem:[#allocation19 + $0xbf0] sm:$0xff]  ;;  %v12675_v20 = vcombine.high %v6539_v33, %v6543_v4 }
 0x80e   :  { %9876 = vmatprep.subr.bf16.mxu1 %v12715_v19  ;;  %v6535_v11 = vld [vmem:[#allocation19 + $0x470] sm:$0xff]  ;;  %v12907_v19 = vcombine.high %v6771_v38, %v6775_v22 }
 0x80f   :  { %9922 = vmatpush1.bf16.msra.mxu0 %v12826_v29  ;;  %v12674_v29 = vcombine.low %v6539_v33, %v6543_v4  ;;  %v6763_v41 = vld [vmem:[#allocation19 + $0xb90] sm:$0xff]  ;;  %v12667_v43 = vcombine.high %v6531_v46, %v6535_v11 }
 0x810   :  { %9827 = vmatmul.mubr.bf16.vlgmr.msra.gmra.mxu1 %v14864_v37  ;;  %9923 = vmatprep.subr.bf16.mxu0 %v12819_v2  ;;  %v6767_v6 = vld [vmem:[#allocation19 + $0xbb0] sm:$0xff]  ;;  %v12906_v2 = vcombine.low %v6771_v38, %v6775_v22 }
 0x811   :  { %9877 = vmatpush1.bf16.msra.mxu1 %v12714_v48  ;;  %9908 = vmatprep.mubr.bf16.mxu1 %v14793_v9  ;;  %v6523_v48 = vld [vmem:[#allocation19 + $0x410] sm:$0xff]  ;;  %v12899_v44 = vcombine.high %v6763_v41, %v6767_v6 }
 0x812   :  { %9878 = vmatprep.subr.bf16.mxu1 %v12707_v60  ;;  %v12666_v60 = vcombine.low %v6531_v46, %v6535_v11  ;;  %v12659_v17 = vcombine.high %v6523_v48, %v6527_v49  ;;  %v6639_v54 = vld [vmem:[#allocation19 + $0x7b0] sm:$0xff] }
 0x813   :  { %9924 = vmatpush1.bf16.msra.mxu0 %v12818_v14  ;;  %v6755_v14 = vld [vmem:[#allocation19 + $0xb50] sm:$0xff] }
 0x814   :  { %9925 = vmatprep.subr.bf16.mxu0 %v12811_v16  ;;  %v12898_v16 = vcombine.low %v6763_v41, %v6767_v6  ;;  %v12891_v59 = vcombine.high %v6755_v14, %v6759_v7  ;;  %v6743_v21 = vld [vmem:[#allocation19 + $0xaf0] sm:$0xff] }
 0x815   :  { %9879 = vmatpush1.bf16.msra.mxu1 %v12706_v12  ;;  %v6643_v12 = vld [vmem:[#allocation19 + $0x7d0] sm:$0xff] }
 0x816   :  { %9880 = vmatprep.subr.bf16.mxu1 %v12699_v23  ;;  %v12658_v23 = vcombine.low %v6523_v48, %v6527_v49  ;;  %v12779_v52 = vcombine.high %v6643_v12, %v6647_v40  ;;  %v6631_v8 = vld [vmem:[#allocation19 + $0x770] sm:$0xff] }
 0x817   :  { %9926 = vmatpush1.bf16.msra.mxu0 %v12810_v3  ;;  %v6747_v3 = vld [vmem:[#allocation19 + $0xb10] sm:$0xff] }
 0x818   :  { %9927 = vmatprep.subr.bf16.mxu0 %v12803_v1  ;;  %v12890_v1 = vcombine.low %v6755_v14, %v6759_v7  ;;  %v12883_v24 = vcombine.high %v6747_v3, %v6751_v55  ;;  %v6735_v33 = vld [vmem:[#allocation19 + $0xab0] sm:$0xff] }
 0x819   :  { %9881 = vmatpush1.bf16.msra.mxu1 %v12698_v25  ;;  %v6635_v25 = vld [vmem:[#allocation19 + $0x790] sm:$0xff] }
 0x81a   :  { %9882 = vmatprep.subr.bf16.mxu1 %v12691_v32  ;;  %v12778_v32 = vcombine.low %v6643_v12, %v6647_v40  ;;  %v12771_v58 = vcombine.high %v6635_v25, %v6639_v54  ;;  %v6623_v38 = vld [vmem:[#allocation19 + $0x730] sm:$0xff]  ;;  %v6456_v12 = vld [vmem:[#allocation19 + $0x1f8] sm:$0xff] }
 0x81b   :  { %9928 = vmatpush1.bf16.msra.mxu0 %v12802_v34  ;;  %v6739_v34 = vld [vmem:[#allocation19 + $0xad0] sm:$0xff] }
 0x81c   :  { %9929 = vmatprep.subr.bf16.mxu0 %v12795_v15  ;;  %v12882_v15 = vcombine.low %v6747_v3, %v6751_v55  ;;  %v12875_v13 = vcombine.high %v6739_v34, %v6743_v21  ;;  %v6727_v46 = vld [vmem:[#allocation19 + $0xa70] sm:$0xff] }
 0x81d   :  { %9883 = vmatpush1.bf16.msra.mxu1 %v12690_v27  ;;  %v6627_v27 = vld [vmem:[#allocation19 + $0x750] sm:$0xff] }
 0x81e   :  { %9884 = vmatprep.subr.bf16.mxu1 %v12683_v62  ;;  %v12770_v62 = vcombine.low %v6635_v25, %v6639_v54  ;;  %v12763_v4 = vcombine.high %v6627_v27, %v6631_v8  ;;  %v6615_v41 = vld [vmem:[#allocation19 + $0x6f0] sm:$0xff]  ;;  %v6448_v25 = vld [vmem:[#allocation19 + $0x1b8] sm:$0xff] }
 0x81f   :  { %9930 = vmatpush1.bf16.msra.mxu0 %v12794_v5  ;;  %v6731_v5 = vld [vmem:[#allocation19 + $0xa90] sm:$0xff] }
 0x820   :  { %9931 = vmatprep.subr.bf16.mxu0 %v12787_v10  ;;  %v12874_v10 = vcombine.low %v6739_v34, %v6743_v21  ;;  %v12867_v22 = vcombine.high %v6731_v5, %v6735_v33  ;;  %v6719_v48 = vld [vmem:[#allocation19 + $0xa30] sm:$0xff] }
 0x821   :  { %9885 = vmatpush1.bf16.msra.mxu1 %v12682_v30  ;;  %v6619_v30 = vld [vmem:[#allocation19 + $0x710] sm:$0xff] }
 0x822   :  { %9886 = vmatprep.subr.bf16.mxu1 %v12675_v20  ;;  %v12762_v20 = vcombine.low %v6627_v27, %v6631_v8  ;;  %v12755_v11 = vcombine.high %v6619_v30, %v6623_v38  ;;  %v6607_v14 = vld [vmem:[#allocation19 + $0x6b0] sm:$0xff]  ;;  %v6440_v27 = vld [vmem:[#allocation19 + $0x178] sm:$0xff] }
 0x823   :  { %9932 = vmatpush1.bf16.msra.mxu0 %v12786_v56  ;;  %v6723_v56 = vld [vmem:[#allocation19 + $0xa50] sm:$0xff] }
 0x824   :  { %9933 = vmatprep.subr.bf16.mxu0 %v12907_v19  ;;  %v12866_v19 = vcombine.low %v6731_v5, %v6735_v33  ;;  %v12859_v6 = vcombine.high %v6723_v56, %v6727_v46  ;;  %v6599_v3 = vld [vmem:[#allocation19 + $0x670] sm:$0xff] }
 0x825   :  { %9887 = vmatpush1.bf16.msra.mxu1 %v12674_v29  ;;  %v6611_v29 = vld [vmem:[#allocation19 + $0x6d0] sm:$0xff] }
 0x826   :  { %9888 = vmatprep.subr.bf16.mxu1 %v12667_v43  ;;  %v12754_v43 = vcombine.low %v6619_v30, %v6623_v38  ;;  %v12747_v49 = vcombine.high %v6611_v29, %v6615_v41  ;;  %v6591_v34 = vld [vmem:[#allocation19 + $0x630] sm:$0xff]  ;;  %v6428_v38 = vld [vmem:[#allocation19 + $0x118] sm:$0xff] }
 0x827   :  { %9934 = vmatpush2.bf16.msra.mxu0 %v12906_v2  ;;  %v6715_v2 = vld [vmem:[#allocation19 + $0xa10] sm:$0xff] }
 0x828   :  { %9935 = vmatprep.subr.bf16.mxu0 %v12899_v44  ;;  %v12858_v44 = vcombine.low %v6723_v56, %v6727_v46  ;;  %v12851_v7 = vcombine.high %v6715_v2, %v6719_v48  ;;  %v6835_v5 = vld [vmem:[#allocation19 + $0xdd0] sm:$0xff] }
 0x829   :  { %9889 = vmatpush1.bf16.msra.mxu1 %v12666_v60  ;;  %v6603_v60 = vld [vmem:[#allocation19 + $0x690] sm:$0xff] }
 0x82a   :  { %9890 = vmatprep.subr.bf16.mxu1 %v12659_v17  ;;  %v12746_v17 = vcombine.low %v6611_v29, %v6615_v41  ;;  %v12739_v40 = vcombine.high %v6603_v60, %v6607_v14  ;;  %v6839_v33 = vld [vmem:[#allocation19 + $0xdf0] sm:$0xff] }
 0x82b   :  { %9936 = vmatpush2.bf16.msra.mxu0 %v12898_v16  ;;  %v6452_v16 = vld [vmem:[#allocation19 + $0x1d8] sm:$0xff]  ;;  %v12971_v56 = vcombine.high %v6835_v5, %v6839_v33  ;;  %v12970_v41 = vcombine.low %v6835_v5, %v6839_v33 }
 0x82c   :  { %9937 = vmatprep.subr.bf16.mxu0 %v12891_v59  ;;  %v12850_v59 = vcombine.low %v6715_v2, %v6719_v48  ;;  %v12589_v55 = vcombine.high %v6452_v16, %v6456_v12 }
 0x82d   :  { %9891 = vmatpush1.bf16.msra.mxu1 %v12658_v23  ;;  %v6595_v23 = vld [vmem:[#allocation19 + $0x650] sm:$0xff] }
 0x82e   :  { %9892 = vmatprep.subr.bf16.mxu1 %v12779_v52  ;;  %v12738_v52 = vcombine.low %v6603_v60, %v6607_v14  ;;  %v12731_v54 = vcombine.high %v6595_v23, %v6599_v3 }
 0x82f   :  { %9938 = vmatpush2.bf16.msra.mxu0 %v12890_v1  ;;  %v6444_v1 = vld [vmem:[#allocation19 + $0x198] sm:$0xff] }
 0x830   :  { %9939 = vmatprep.subr.bf16.mxu0 %v12883_v24  ;;  %v12588_v24 = vcombine.low %v6452_v16, %v6456_v12  ;;  %v12581_v21 = vcombine.high %v6444_v1, %v6448_v25  ;;  %v6412_v16 = vld [vmem:[#allocation19 + $0x98] sm:$0xff] }
 0x831   :  { %9893 = vmatpush2.bf16.msra.mxu1 %v12778_v32  ;;  %v6587_v32 = vld [vmem:[#allocation19 + $0x610] sm:$0xff]  ;;  %v6416_v12 = vld [vmem:[#allocation19 + $0xb8] sm:$0xff] }
 0x832   :  { %9894 = vmatprep.subr.bf16.mxu1 %v12771_v58  ;;  %v12730_v58 = vcombine.low %v6595_v23, %v6599_v3  ;;  %v12722_v30 = vcombine.low %v6587_v32, %v6591_v34 }
 0x833   :  { %9940 = vmatpush2.bf16.msra.mxu0 %v12882_v15  ;;  %v6436_v15 = vld [vmem:[#allocation19 + $0x158] sm:$0xff] }
 0x834   :  { %9941 = vmatprep.subr.bf16.mxu0 %v12875_v13  ;;  %v12723_v13 = vcombine.high %v6587_v32, %v6591_v34  ;;  %v12572_v46 = vcombine.low %v6436_v15, %v6440_v27 }
 0x835   :  { %9895 = vmatpush2.bf16.msra.mxu1 %v12770_v62  ;;  %v12580_v62 = vcombine.low %v6444_v1, %v6448_v25 }
 0x836   :  { %9896 = vmatprep.subr.bf16.mxu1 %v12763_v4 }
 0x837   :  { %9942 = vmatpush2.bf16.msra.mxu0 %v12874_v10  ;;  %v12573_v10 = vcombine.high %v6436_v15, %v6440_v27  ;;  %v6807_v15 = vld [vmem:[#allocation19 + $0xcf0] sm:$0xff] }
 0x838   :  { %9943 = vmatprep.subr.bf16.mxu0 %v12867_v22  ;;  %v6432_v22 = vld [vmem:[#allocation19 + $0x138] sm:$0xff] }
 0x839   :  { %9897 = vmatpush2.bf16.msra.mxu1 %v12762_v20  ;;  %v12564_v48 = vcombine.low %v6428_v38, %v6432_v22 }
 0x83a   :  { %9898 = vmatprep.subr.bf16.mxu1 %v12755_v11  ;;  %v6827_v11 = vld [vmem:[#allocation19 + $0xd90] sm:$0xff] }
 0x83b   :  { %9944 = vmatpush2.bf16.msra.mxu0 %v12866_v19  ;;  %v6831_v19 = vld [vmem:[#allocation19 + $0xdb0] sm:$0xff] }
 0x83c   :  { %9945 = vmatprep.subr.bf16.mxu0 %v12859_v6  ;;  %v6420_v6 = vld [vmem:[#allocation19 + $0xd8] sm:$0xff]  ;;  %v12963_v2 = vcombine.high %v6827_v11, %v6831_v19 }
 0x83d   :  { %9899 = vmatpush2.bf16.msra.mxu1 %v12754_v43  ;;  %v6424_v43 = vld [vmem:[#allocation19 + $0xf8] sm:$0xff] }
 0x83e   :  { %9900 = vmatprep.subr.bf16.mxu1 %v12747_v49  ;;  %v6819_v49 = vld [vmem:[#allocation19 + $0xd50] sm:$0xff]  ;;  %v12557_v14 = vcombine.high %v6420_v6, %v6424_v43  ;;  %v12556_v3 = vcombine.low %v6420_v6, %v6424_v43  ;;  %v6508_v6 = vld [vmem:[#allocation19 + $0x398] sm:$0xff] }
 0x83f   :  { %9946 = vmatpush2.bf16.msra.mxu0 %v12858_v44  ;;  %v6823_v44 = vld [vmem:[#allocation19 + $0xd70] sm:$0xff]  ;;  %v6512_v43 = vld [vmem:[#allocation19 + $0x3b8] sm:$0xff] }
 0x840   :  { %9947 = vmatprep.subr.bf16.mxu0 %v12851_v7  ;;  %v12954_v25 = vcombine.low %v6819_v49, %v6823_v44 }
 0x841   :  { %9901 = vmatpush2.bf16.msra.mxu1 %v12746_v17  ;;  %v12962_v17 = vcombine.low %v6827_v11, %v6831_v19  ;;  %v6787_v19 = vld [vmem:[#allocation19 + $0xc50] sm:$0xff] }
 0x842   :  { %9902 = vmatprep.subr.bf16.mxu1 %v12739_v40 }
 0x843   :  { %9948 = vmatpush2.bf16.msra.mxu0 %v12850_v59  ;;  %v12955_v59 = vcombine.high %v6819_v49, %v6823_v44  ;;  %v6779_v49 = vld [vmem:[#allocation19 + $0xc10] sm:$0xff] }
 0x844   :  { %9999 = vmatprep.subr.bf16.mxu0 %v12589_v55  ;;  %v6811_v55 = vld [vmem:[#allocation19 + $0xd10] sm:$0xff] }
 0x845   :  { %9903 = vmatpush2.bf16.msra.mxu1 %v12738_v52  ;;  %v6815_v52 = vld [vmem:[#allocation19 + $0xd30] sm:$0xff] }
 0x846   :  { %v14892_v8 = vpop.f32.mrf.mxu0  ;;  %9950 = vmatmul.mubr.bf16.vlgmr.msra.gmra.mxu0 %v14838_v53  ;;  %9904 = vmatprep.subr.bf16.mxu1 %v12731_v54  ;;  %v6404_v54 = vld [vmem:[#allocation19 + $0x58] sm:$0xff]  ;;  %v12947_v34 = vcombine.high %v6811_v55, %v6815_v52  ;;  %v12946_v27 = vcombine.low %v6811_v55, %v6815_v52  ;;  %v6783_v44 = vld [vmem:[#allocation19 + $0xc30] sm:$0xff] }
 0x847   :  { %10000 = vmatpush1.bf16.msra.mxu0 %v12588_v24  ;;  %10031 = vmatprep.mubr.bf16.mxu0 %v14790_v18  ;;  %v12565_v18 = vcombine.high %v6428_v38, %v6432_v22  ;;  %v6408_v24 = vld [vmem:[#allocation19 + $0x78] sm:$0xff]  ;;  %v12914_v52 = vcombine.low %v6779_v49, %v6783_v44 }
 0x848   :  { %v14896_v4 = vpop.f32.mrf.mxu0  ;;  %10001 = vmatprep.subr.bf16.mxu0 %v12581_v21  ;;  %v12548_v21 = vcombine.low %v6412_v16, %v6416_v12  ;;  %v12540_v33 = vcombine.low %v6404_v54, %v6408_v24 }
 0x849   :  { %9905 = vmatpush2.bf16.msra.mxu1 %v12730_v58  ;;  %v6803_v58 = vld [vmem:[#allocation19 + $0xcd0] sm:$0xff] }
 0x84a   :  { %v9709_v20 = vpop.f32.mrf.mxu0  ;;  %9906 = vmatprep.subr.bf16.mxu1 %v12723_v13  ;;  %v6396_v13 = vld [vmem:[#allocation19 + $0x18] sm:$0xff]  ;;  %v12939_v5 = vcombine.high %v6803_v58, %v6807_v15  ;;  %v12938_v22 = vcombine.low %v6803_v58, %v6807_v15 }
 0x84b   :  { %10002 = vmatpush1.bf16.msra.mxu0 %v12580_v62  ;;  %v6400_v62 = vld [vmem:[#allocation19 + $0x38] sm:$0xff] }
 0x84c   :  { %v9710_v29 = vpop.f32.mrf.mxu0  ;;  %10003 = vmatprep.subr.bf16.mxu0 %v12573_v10  ;;  %v6795_v10 = vld [vmem:[#allocation19 + $0xc90] sm:$0xff]  ;;  %v12533_v38 = vcombine.high %v6396_v13, %v6400_v62  ;;  %v6516_v20 = vld [vmem:[#allocation19 + $0x3d8] sm:$0xff]  ;;  %v12532_v11 = vcombine.low %v6396_v13, %v6400_v62 }
 0x84d   :  { %9907 = vmatpush2.bf16.msra.mxu1 %v12722_v30  ;;  %v6799_v30 = vld [vmem:[#allocation19 + $0xcb0] sm:$0xff]  ;;  %v6484_v58 = vld [vmem:[#allocation19 + $0x2d8] sm:$0xff] }
 0x84e   :  { %9958 = vmatprep.subr.bf16.mxu1 %v12971_v56  ;;  %v6520_v56 = vld [vmem:[#allocation19 + $0x3f8] sm:$0xff]  ;;  %v6791_v29 = vld [vmem:[#allocation19 + $0xc70] sm:$0xff] }
 0x84f   :  { %10004 = vmatpush1.bf16.msra.mxu0 %v12572_v46  ;;  %v12931_v46 = vcombine.high %v6795_v10, %v6799_v30  ;;  %v6488_v15 = vld [vmem:[#allocation19 + $0x2f8] sm:$0xff]  ;;  %v6883_v13 = vld [vmem:[#allocation19 + $0xf50] sm:$0xff] }
 0x850   :  { %9909 = vmatmul.mubr.bf16.vlgmr.msra.gmra.mxu1 %v14815_v39  ;;  %v9664_v60 = vpop.f32.mrf.mxu1  ;;  %10005 = vmatprep.subr.bf16.mxu0 %v12565_v18  ;;  %v12653_v18 = vcombine.high %v6516_v20, %v6520_v56  ;;  %v6887_v62 = vld [vmem:[#allocation19 + $0xf70] sm:$0xff] }
 0x851   :  { %v14900_v7 = vadd.f32 %v9664_v60, %v14884_v0  ;;  %9959 = vmatpush1.bf16.msra.mxu1 %v12970_v41  ;;  %9990 = vmatprep.mubr.bf16.mxu1 %v14862_v50  ;;  %v12549_v0 = vcombine.high %v6412_v16, %v6416_v12  ;;  %v12930_v41 = vcombine.low %v6795_v10, %v6799_v30  ;;  %v6504_v16 = vld [vmem:[#allocation19 + $0x378] sm:$0xff] }
 0x852   :  { %v9666_v40 = vpop.f32.mrf.mxu1  ;;  %9960 = vmatprep.subr.bf16.mxu1 %v12963_v2  ;;  %v12923_v2 = vcombine.high %v6787_v19, %v6791_v29  ;;  %v12645_v60 = vcombine.high %v6508_v6, %v6512_v43  ;;  %v12915_v12 = vcombine.high %v6779_v49, %v6783_v44  ;;  %v6476_v10 = vld [vmem:[#allocation19 + $0x298] sm:$0xff] }
 0x853   :  { %v14904_v23 = vadd.f32 %v9666_v40, %v14888_v31  ;;  %10006 = vmatpush1.bf16.msra.mxu0 %v12564_v48  ;;  %v12541_v31 = vcombine.high %v6404_v54, %v6408_v24  ;;  %v12652_v48 = vcombine.low %v6516_v20, %v6520_v56  ;;  %v12644_v40 = vcombine.low %v6508_v6, %v6512_v43  ;;  %v6891_v24 = vld [vmem:[#allocation19 + $0xf90] sm:$0xff]  ;;  %v6480_v30 = vld [vmem:[#allocation19 + $0x2b8] sm:$0xff] }
 0x854   :  { %v9668_v1 = vpop.f32.mrf.mxu1  ;;  %10007 = vmatprep.subr.bf16.mxu0 %v12557_v14  ;;  %v12922_v14 = vcombine.low %v6787_v19, %v6791_v29  ;;  %v6875_v20 = vld [vmem:[#allocation19 + $0xf10] sm:$0xff]  ;;  %v6468_v19 = vld [vmem:[#allocation19 + $0x258] sm:$0xff] }
 0x855   :  { %9961 = vmatpush1.bf16.msra.mxu1 %v12962_v17  ;;  %v6500_v17 = vld [vmem:[#allocation19 + $0x358] sm:$0xff]  ;;  %v6879_v56 = vld [vmem:[#allocation19 + $0xf30] sm:$0xff] }
 0x856   :  { %v9669_v32 = vpop.f32.mrf.mxu1  ;;  %9962 = vmatprep.subr.bf16.mxu1 %v12955_v59  ;;  %v6899_v59 = vld [vmem:[#allocation19 + $0xfd0] sm:$0xff]  ;;  %v12637_v55 = vcombine.high %v6500_v17, %v6504_v16  ;;  %v6492_v1 = vld [vmem:[#allocation19 + $0x318] sm:$0xff]  ;;  %v12636_v54 = vcombine.low %v6500_v17, %v6504_v16 }
 0x857   :  { %10008 = vmatpush1.bf16.msra.mxu0 %v12556_v3  ;;  %v6903_v3 = vld [vmem:[#allocation19 + $0xff0] sm:$0xff]  ;;  %v6472_v29 = vld [vmem:[#allocation19 + $0x278] sm:$0xff] }
 0x858   :  { %10009 = vmatprep.subr.bf16.mxu0 %v12549_v0  ;;  %v6496_v0 = vld [vmem:[#allocation19 + $0x338] sm:$0xff]  ;;  %v6895_v32 = vld [vmem:[#allocation19 + $0xfb0] sm:$0xff] }
 0x859   :  { %9963 = vmatpush1.bf16.msra.mxu1 %v12954_v25  ;;  %v13035_v25 = vcombine.high %v6899_v59, %v6903_v3  ;;  %v6867_v6 = vld [vmem:[#allocation19 + $0xed0] sm:$0xff]  ;;  %v6460_v49 = vld [vmem:[#allocation19 + $0x218] sm:$0xff] }
 0x85a   :  { %9964 = vmatprep.subr.bf16.mxu1 %v12947_v34  ;;  %v12629_v34 = vcombine.high %v6492_v1, %v6496_v0  ;;  %v6871_v43 = vld [vmem:[#allocation19 + $0xef0] sm:$0xff]  ;;  %v6464_v44 = vld [vmem:[#allocation19 + $0x238] sm:$0xff] }
 0x85b   :  { %10010 = vmatpush1.bf16.msra.mxu0 %v12548_v21  ;;  %v13034_v21 = vcombine.low %v6899_v59, %v6903_v3  ;;  %v6859_v17 = vld [vmem:[#allocation19 + $0xe90] sm:$0xff]  ;;  %v6708_v59 = vld [vmem:[#allocation19 + $0x9d8] sm:$0xff] }
 0x85c   :  { %10011 = vmatprep.subr.bf16.mxu0 %v12541_v31  ;;  %v13027_v31 = vcombine.high %v6891_v24, %v6895_v32  ;;  %v6863_v16 = vld [vmem:[#allocation19 + $0xeb0] sm:$0xff]  ;;  %v6712_v3 = vld [vmem:[#allocation19 + $0x9f8] sm:$0xff] }
 0x85d   :  { %9965 = vmatpush1.bf16.msra.mxu1 %v12946_v27  ;;  %v12628_v27 = vcombine.low %v6492_v1, %v6496_v0  ;;  %v6851_v1 = vld [vmem:[#allocation19 + $0xe50] sm:$0xff] }
 0x85e   :  { %9966 = vmatprep.subr.bf16.mxu1 %v12939_v5  ;;  %v12621_v5 = vcombine.high %v6484_v58, %v6488_v15  ;;  %v6855_v0 = vld [vmem:[#allocation19 + $0xe70] sm:$0xff] }
 0x85f   :  { %10012 = vmatpush1.bf16.msra.mxu0 %v12540_v33  ;;  %v13026_v33 = vcombine.low %v6891_v24, %v6895_v32  ;;  %v6700_v24 = vld [vmem:[#allocation19 + $0x998] sm:$0xff] }
 0x860   :  { %10013 = vmatprep.subr.bf16.mxu0 %v12533_v38  ;;  %v13019_v38 = vcombine.high %v6883_v13, %v6887_v62  ;;  %v6704_v32 = vld [vmem:[#allocation19 + $0x9b8] sm:$0xff] }
 0x861   :  { %9967 = vmatpush1.bf16.msra.mxu1 %v12938_v22  ;;  %v12620_v22 = vcombine.low %v6484_v58, %v6488_v15  ;;  %v6843_v58 = vld [vmem:[#allocation19 + $0xe10] sm:$0xff] }
 0x862   :  { %9968 = vmatprep.subr.bf16.mxu1 %v12931_v46  ;;  %v12613_v46 = vcombine.high %v6476_v10, %v6480_v30  ;;  %v6847_v15 = vld [vmem:[#allocation19 + $0xe30] sm:$0xff] }
 0x863   :  { %10014 = vmatpush1.bf16.msra.mxu0 %v12532_v11  ;;  %v13018_v11 = vcombine.low %v6883_v13, %v6887_v62  ;;  %v6692_v13 = vld [vmem:[#allocation19 + $0x958] sm:$0xff] }
 0x864   :  { %10015 = vmatprep.subr.bf16.mxu0 %v12653_v18  ;;  %v13011_v18 = vcombine.high %v6875_v20, %v6879_v56  ;;  %v6696_v62 = vld [vmem:[#allocation19 + $0x978] sm:$0xff] }
 0x865   :  { %9969 = vmatpush1.bf16.msra.mxu1 %v12930_v41  ;;  %v12612_v41 = vcombine.low %v6476_v10, %v6480_v30  ;;  %v12836_v10 = vcombine.low %v6700_v24, %v6704_v32  ;;  %v6580_v30 = vld [vmem:[#allocation19 + $0x5d8] sm:$0xff] }
 0x866   :  { %9970 = vmatprep.subr.bf16.mxu1 %v12923_v2  ;;  %v12605_v2 = vcombine.high %v6468_v19, %v6472_v29 }
 0x867   :  { %10016 = vmatpush2.bf16.msra.mxu0 %v12652_v48  ;;  %v13010_v48 = vcombine.low %v6875_v20, %v6879_v56  ;;  %v12829_v20 = vcombine.high %v6692_v13, %v6696_v62  ;;  %v12978_v56 = vcombine.low %v6843_v58, %v6847_v15 }
 0x868   :  { %10017 = vmatprep.subr.bf16.mxu0 %v12645_v60  ;;  %v13003_v60 = vcombine.high %v6867_v6, %v6871_v43 }
 0x869   :  { %9971 = vmatpush1.bf16.msra.mxu1 %v12922_v14  ;;  %v12604_v14 = vcombine.low %v6468_v19, %v6472_v29 }
 0x86a   :  { %9972 = vmatprep.subr.bf16.mxu1 %v12915_v12  ;;  %v12597_v12 = vcombine.high %v6460_v49, %v6464_v44 }
 0x86b   :  { %10018 = vmatpush2.bf16.msra.mxu0 %v12644_v40  ;;  %v13002_v40 = vcombine.low %v6867_v6, %v6871_v43  ;;  %v6576_v6 = vld [vmem:[#allocation19 + $0x5b8] sm:$0xff] }
 0x86c   :  { %10019 = vmatprep.subr.bf16.mxu0 %v12637_v55  ;;  %v12995_v55 = vcombine.high %v6859_v17, %v6863_v16 }
 0x86d   :  { %9973 = vmatpush1.bf16.msra.mxu1 %v12914_v52  ;;  %v12596_v52 = vcombine.low %v6460_v49, %v6464_v44  ;;  %v6676_v44 = vld [vmem:[#allocation19 + $0x8d8] sm:$0xff] }
 0x86e   :  { %9974 = vmatprep.subr.bf16.mxu1 %v13035_v25  ;;  %v12845_v25 = vcombine.high %v6708_v59, %v6712_v3 }
 0x86f   :  { %10020 = vmatpush2.bf16.msra.mxu0 %v12636_v54  ;;  %v12994_v54 = vcombine.low %v6859_v17, %v6863_v16  ;;  %v6564_v16 = vld [vmem:[#allocation19 + $0x558] sm:$0xff] }
 0x870   :  { %10021 = vmatprep.subr.bf16.mxu0 %v12629_v34  ;;  %v12987_v34 = vcombine.high %v6851_v1, %v6855_v0 }
 0x871   :  { %9975 = vmatpush2.bf16.msra.mxu1 %v13034_v21  ;;  %v12844_v21 = vcombine.low %v6708_v59, %v6712_v3 }
 0x872   :  { %9976 = vmatprep.subr.bf16.mxu1 %v13027_v31  ;;  %v12837_v31 = vcombine.high %v6700_v24, %v6704_v32  ;;  %v6556_v24 = vld [vmem:[#allocation19 + $0x518] sm:$0xff] }
 0x873   :  { %10022 = vmatpush2.bf16.msra.mxu0 %v12628_v27  ;;  %v12986_v27 = vcombine.low %v6851_v1, %v6855_v0  ;;  %v6672_v1 = vld [vmem:[#allocation19 + $0x8b8] sm:$0xff] }
 0x874   :  { %10023 = vmatprep.subr.bf16.mxu0 %v12621_v5  ;;  %v6560_v32 = vld [vmem:[#allocation19 + $0x538] sm:$0xff] }
 0x875   :  { %9977 = vmatpush2.bf16.msra.mxu1 %v13026_v33  ;;  %v12979_v33 = vcombine.high %v6843_v58, %v6847_v15  ;;  %v6660_v15 = vld [vmem:[#allocation19 + $0x858] sm:$0xff] }
 0x876   :  { %9978 = vmatprep.subr.bf16.mxu1 %v13019_v38  ;;  %v6584_v38 = vld [vmem:[#allocation19 + $0x5f8] sm:$0xff] }
 0x877   :  { %10024 = vmatpush2.bf16.msra.mxu0 %v12620_v22  ;;  %v12717_v29 = vcombine.high %v6580_v30, %v6584_v38  ;;  %v12716_v49 = vcombine.low %v6580_v30, %v6584_v38  ;;  %v6652_v38 = vld [vmem:[#allocation19 + $0x818] sm:$0xff] }
 0x878   :  { %10025 = vmatprep.subr.bf16.mxu0 %v12613_v46  ;;  %v6684_v46 = vld [vmem:[#allocation19 + $0x918] sm:$0xff] }
 0x879   :  { %9979 = vmatpush2.bf16.msra.mxu1 %v13018_v11  ;;  %v6688_v11 = vld [vmem:[#allocation19 + $0x938] sm:$0xff] }
 0x87a   :  { %9980 = vmatprep.subr.bf16.mxu1 %v13011_v18  ;;  %v14908_v18 = vld [vmem:[#allocation21] sm:$0xff] }
 0x87b   :  { %10026 = vmatpush2.bf16.msra.mxu0 %v12612_v41  ;;  %v6572_v41 = vld [vmem:[#allocation19 + $0x598] sm:$0xff] }
 0x87c   :  { %10027 = vmatprep.subr.bf16.mxu0 %v12605_v2  ;;  %v12821_v2 = vcombine.high %v6684_v46, %v6688_v11 }
 0x87d   :  { %9981 = vmatpush2.bf16.msra.mxu1 %v13010_v48  ;;  %v6922_v48 = vrot.slane %v14908_v18, %v3143_v63 }
 0x87e   :  { %9982 = vmatprep.subr.bf16.mxu1 %v13003_v60  ;;  %v6680_v60 = vld [vmem:[#allocation19 + $0x8f8] sm:$0xff] }
 0x87f   :  { %10028 = vmatpush2.bf16.msra.mxu0 %v12604_v14  ;;  %v12709_v14 = vcombine.high %v6572_v41, %v6576_v6  ;;  %v12813_v59 = vcombine.high %v6676_v44, %v6680_v60  ;;  %v9708_v3 = vadd.f32 %v14896_v4, %v6922_v48 }
 0x880   :  { %10029 = vmatprep.subr.bf16.mxu0 %v12597_v12  ;;  %v6568_v12 = vld [vmem:[#allocation19 + $0x578] sm:$0xff] }
 0x881   :  { %9983 = vmatpush2.bf16.msra.mxu1 %v13002_v40  ;;  %v12700_v58 = vcombine.low %v6564_v16, %v6568_v12 }
 0x882   :  { %9984 = vmatprep.subr.bf16.mxu1 %v12995_v55  ;;  %v12708_v55 = vcombine.low %v6572_v41, %v6576_v6 }
 0x883   :  { %10030 = vmatpush2.bf16.msra.mxu0 %v12596_v52  ;;  %v6668_v52 = vld [vmem:[#allocation19 + $0x898] sm:$0xff] }
 0x884   :  { %10081 = vmatprep.subr.bf16.mxu0 %v12845_v25  ;;  %v12805_v4 = vcombine.high %v6668_v52, %v6672_v1 }
 0x885   :  { %9985 = vmatpush2.bf16.msra.mxu1 %v12994_v54  ;;  %v12812_v54 = vcombine.low %v6676_v44, %v6680_v60  ;;  %v6764_v44 = vld [vmem:[#allocation19 + $0xb98] sm:$0xff] }
 0x886   :  { %v9787_v5 = vpop.f32.mrf.mxu0  ;;  %10032 = vmatmul.mubr.bf16.vlgmr.msra.gmra.mxu0 %v14811_v45  ;;  %9986 = vmatprep.subr.bf16.mxu1 %v12987_v34  ;;  %v6918_v45 = vrot.slane %v14908_v18, %v3139_v36  ;;  %v12820_v36 = vcombine.low %v6684_v46, %v6688_v11  ;;  %v6540_v11 = vld [vmem:[#allocation19 + $0x498] sm:$0xff] }
 0x887   :  { %10082 = vmatpush1.bf16.msra.mxu0 %v12844_v21  ;;  %10113 = vmatprep.mubr.bf16.mxu0 %v14824_v57  ;;  %v12828_v57 = vcombine.low %v6692_v13, %v6696_v62  ;;  %v12693_v13 = vcombine.high %v6556_v24, %v6560_v32  ;;  %v12804_v62 = vcombine.low %v6668_v52, %v6672_v1  ;;  %v6768_v60 = vld [vmem:[#allocation19 + $0xbb8] sm:$0xff] }
 0x888   :  { %v9789_v22 = vpop.f32.mrf.mxu0  ;;  %10083 = vmatprep.subr.bf16.mxu0 %v12837_v31  ;;  %v9706_v17 = vadd.f32 %v14892_v8, %v6918_v45  ;;  %v12701_v8 = vcombine.high %v6564_v16, %v6568_v12  ;;  %v6772_v45 = vld [vmem:[#allocation19 + $0xbd8] sm:$0xff]  ;;  %v12901_v12 = vcombine.high %v6764_v44, %v6768_v60 }
 0x889   :  { %9987 = vmatpush2.bf16.msra.mxu1 %v12986_v27  ;;  %v6528_v16 = vld [vmem:[#allocation19 + $0x438] sm:$0xff] }
 0x88a   :  { %v9791_v19 = vpop.f32.mrf.mxu0  ;;  %9988 = vmatprep.subr.bf16.mxu1 %v12979_v33  ;;  %v6548_v33 = vld [vmem:[#allocation19 + $0x4d8] sm:$0xff] }
 0x88b   :  { %10084 = vmatpush1.bf16.msra.mxu0 %v12836_v10  ;;  %v6552_v10 = vld [vmem:[#allocation19 + $0x4f8] sm:$0xff] }
 0x88c   :  { %v9792_v43 = vpop.f32.mrf.mxu0  ;;  %10085 = vmatprep.subr.bf16.mxu0 %v12829_v20  ;;  %v6656_v20 = vld [vmem:[#allocation19 + $0x838] sm:$0xff] }
 0x88d   :  { %9989 = vmatpush2.bf16.msra.mxu1 %v12978_v56  ;;  %v12685_v56 = vcombine.high %v6548_v33, %v6552_v10  ;;  %v12789_v19 = vcombine.high %v6652_v38, %v6656_v20  ;;  %v12788_v6 = vcombine.low %v6652_v38, %v6656_v20  ;;  %v6532_v43 = vld [vmem:[#allocation19 + $0x458] sm:$0xff] }
 0x88e   :  { %10040 = vmatprep.subr.bf16.mxu1 %v12717_v29  ;;  %v12684_v29 = vcombine.low %v6548_v33, %v6552_v10  ;;  %v6644_v52 = vld [vmem:[#allocation19 + $0x7d8] sm:$0xff] }
 0x88f   :  { %10086 = vmatpush1.bf16.msra.mxu0 %v12828_v57  ;;  %v6776_v57 = vld [vmem:[#allocation19 + $0xbf8] sm:$0xff] }
 0x890   :  { %v9746_v40 = vpop.f32.mrf.mxu1  ;;  %9991 = vmatmul.mubr.bf16.vlgmr.msra.gmra.mxu1 %v14864_v37  ;;  %10087 = vmatprep.subr.bf16.mxu0 %v12821_v2  ;;  %v6536_v2 = vld [vmem:[#allocation19 + $0x478] sm:$0xff]  ;;  %v12909_v48 = vcombine.high %v6772_v45, %v6776_v57 }
 0x891   :  { %v9747_v63 = vadd.f32 %v9746_v40, %v9706_v17  ;;  %10041 = vmatpush1.bf16.msra.mxu1 %v12716_v49  ;;  %10072 = vmatprep.mubr.bf16.mxu1 %v14793_v9  ;;  %v6664_v9 = vld [vmem:[#allocation19 + $0x878] sm:$0xff]  ;;  %v12908_v17 = vcombine.low %v6772_v45, %v6776_v57  ;;  %v12668_v40 = vcombine.low %v6532_v43, %v6536_v2 }
 0x892   :  { %v9748_v0 = vpop.f32.mrf.mxu1  ;;  %10042 = vmatprep.subr.bf16.mxu1 %v12709_v14  ;;  %v12797_v30 = vcombine.high %v6660_v15, %v6664_v9  ;;  %v12796_v46 = vcombine.low %v6660_v15, %v6664_v9  ;;  %v12669_v14 = vcombine.high %v6532_v43, %v6536_v2  ;;  %v6648_v1 = vld [vmem:[#allocation19 + $0x7f8] sm:$0xff] }
 0x893   :  { %v9749_v25 = vadd.f32 %v9748_v0, %v9708_v3  ;;  %10088 = vmatpush1.bf16.msra.mxu0 %v12820_v36  ;;  %v14920_v34 = vadd.f32 %v9787_v5, %v9747_v63  ;;  %v12692_v5 = vcombine.low %v6556_v24, %v6560_v32  ;;  %v6524_v36 = vld [vmem:[#allocation19 + $0x418] sm:$0xff]  ;;  %v12781_v24 = vcombine.high %v6644_v52, %v6648_v1 }
 0x894   :  { %v9750_v21 = vpop.f32.mrf.mxu1  ;;  %10089 = vmatprep.subr.bf16.mxu0 %v12813_v59  ;;  %v6756_v59 = vld [vmem:[#allocation19 + $0xb58] sm:$0xff]  ;;  %v12661_v63 = vcombine.high %v6524_v36, %v6528_v16  ;;  %v12780_v15 = vcombine.low %v6644_v52, %v6648_v1  ;;  %v14924_v1 = vld [vmem:[#allocation22 + $0xf8] sm:$0xff] }
 0x895   :  { %10043 = vmatpush1.bf16.msra.mxu1 %v12708_v55  ;;  %v14922_v31 = vadd.f32 %v9789_v22, %v9749_v25  ;;  %v6544_v22 = vld [vmem:[#allocation19 + $0x4b8] sm:$0xff]  ;;  %v12900_v55 = vcombine.low %v6764_v44, %v6768_v60 }
 0x896   :  { %v9751_v27 = vpop.f32.mrf.mxu1  ;;  %10044 = vmatprep.subr.bf16.mxu1 %v12701_v8  ;;  %v12677_v41 = vcombine.high %v6540_v11, %v6544_v22  ;;  %v12676_v49 = vcombine.low %v6540_v11, %v6544_v22  ;;  %v6760_v3 = vld [vmem:[#allocation19 + $0xb78] sm:$0xff]  ;;  %v12660_v8 = vcombine.low %v6524_v36, %v6528_v16 }
 0x897   :  { %10090 = vmatpush1.bf16.msra.mxu0 %v12812_v54  ;;  %v12893_v0 = vcombine.high %v6756_v59, %v6760_v3  ;;  %v6748_v25 = vld [vmem:[#allocation19 + $0xb18] sm:$0xff]  ;;  %v12892_v32 = vcombine.low %v6756_v59, %v6760_v3 }
 0x898   :  { %10091 = vmatprep.subr.bf16.mxu0 %v12805_v4  ;;  %v6752_v54 = vld [vmem:[#allocation19 + $0xb38] sm:$0xff] }
 0x899   :  { %10045 = vmatpush1.bf16.msra.mxu1 %v12700_v58  ;;  %v6636_v21 = vld [vmem:[#allocation19 + $0x798] sm:$0xff]  ;;  %v12885_v58 = vcombine.high %v6748_v25, %v6752_v54 }
 0x89a   :  { %10046 = vmatprep.subr.bf16.mxu1 %v12693_v13  ;;  %v6640_v4 = vld [vmem:[#allocation19 + $0x7b8] sm:$0xff] }
 0x89b   :  { %10092 = vmatpush1.bf16.msra.mxu0 %v12804_v62  ;;  %v6740_v9 = vld [vmem:[#allocation19 + $0xad8] sm:$0xff]  ;;  %v12773_v13 = vcombine.high %v6636_v21, %v6640_v4  ;;  %v12884_v62 = vcombine.low %v6748_v25, %v6752_v54 }
 0x89c   :  { %10093 = vmatprep.subr.bf16.mxu0 %v12797_v30  ;;  %v6744_v27 = vld [vmem:[#allocation19 + $0xaf8] sm:$0xff] }
 0x89d   :  { %10047 = vmatpush1.bf16.msra.mxu1 %v12692_v5  ;;  %v6628_v33 = vld [vmem:[#allocation19 + $0x758] sm:$0xff]  ;;  %v12877_v30 = vcombine.high %v6740_v9, %v6744_v27  ;;  %v12772_v5 = vcombine.low %v6636_v21, %v6640_v4  ;;  %v14934_v4 = vld [vmem:[#allocation22 + $0xe0] sm:$0xff] }
 0x89e   :  { %10048 = vmatprep.subr.bf16.mxu1 %v12685_v56  ;;  %v6632_v10 = vld [vmem:[#allocation19 + $0x778] sm:$0xff] }
 0x89f   :  { %10094 = vmatpush1.bf16.msra.mxu0 %v12796_v46  ;;  %v6732_v38 = vld [vmem:[#allocation19 + $0xa98] sm:$0xff]  ;;  %v12765_v56 = vcombine.high %v6628_v33, %v6632_v10  ;;  %v12876_v46 = vcombine.low %v6740_v9, %v6744_v27 }
 0x8a0   :  { %10095 = vmatprep.subr.bf16.mxu0 %v12789_v19  ;;  %v6736_v20 = vld [vmem:[#allocation19 + $0xab8] sm:$0xff] }
 0x8a1   :  { %10049 = vmatpush1.bf16.msra.mxu1 %v12684_v29  ;;  %v6620_v11 = vld [vmem:[#allocation19 + $0x718] sm:$0xff]  ;;  %v12869_v19 = vcombine.high %v6732_v38, %v6736_v20  ;;  %v12764_v29 = vcombine.low %v6628_v33, %v6632_v10  ;;  %v14948_v10 = vld [vmem:[#allocation22 + $0xc8] sm:$0xff] }
 0x8a2   :  { %10050 = vmatprep.subr.bf16.mxu1 %v12677_v41  ;;  %v6624_v22 = vld [vmem:[#allocation19 + $0x738] sm:$0xff] }
 0x8a3   :  { %10096 = vmatpush1.bf16.msra.mxu0 %v12788_v6  ;;  %v6724_v45 = vld [vmem:[#allocation19 + $0xa58] sm:$0xff]  ;;  %v12757_v41 = vcombine.high %v6620_v11, %v6624_v22  ;;  %v12868_v6 = vcombine.low %v6732_v38, %v6736_v20  ;;  %v14954_v20 = vld [vmem:[#allocation22 + $0xb8] sm:$0xff] }
 0x8a4   :  { %10097 = vmatprep.subr.bf16.mxu0 %v12909_v48  ;;  %v6728_v57 = vld [vmem:[#allocation19 + $0xa78] sm:$0xff] }
 0x8a5   :  { %10051 = vmatpush1.bf16.msra.mxu1 %v12676_v49  ;;  %v6612_v43 = vld [vmem:[#allocation19 + $0x6d8] sm:$0xff]  ;;  %v12861_v48 = vcombine.high %v6724_v45, %v6728_v57  ;;  %v12756_v49 = vcombine.low %v6620_v11, %v6624_v22 }
 0x8a6   :  { %10052 = vmatprep.subr.bf16.mxu1 %v12669_v14  ;;  %v6616_v2 = vld [vmem:[#allocation19 + $0x6f8] sm:$0xff] }
 0x8a7   :  { %10098 = vmatpush2.bf16.msra.mxu0 %v12908_v17  ;;  %v6716_v44 = vld [vmem:[#allocation19 + $0xa18] sm:$0xff]  ;;  %v12749_v14 = vcombine.high %v6612_v43, %v6616_v2  ;;  %v12860_v17 = vcombine.low %v6724_v45, %v6728_v57  ;;  %v14964_v57 = vld [vmem:[#allocation22 + $0xa0] sm:$0xff] }
 0x8a8   :  { %10099 = vmatprep.subr.bf16.mxu0 %v12901_v12  ;;  %v6720_v60 = vld [vmem:[#allocation19 + $0xa38] sm:$0xff] }
 0x8a9   :  { %10053 = vmatpush1.bf16.msra.mxu1 %v12668_v40  ;;  %v6604_v36 = vld [vmem:[#allocation19 + $0x698] sm:$0xff]  ;;  %v12853_v12 = vcombine.high %v6716_v44, %v6720_v60  ;;  %v12748_v40 = vcombine.low %v6612_v43, %v6616_v2  ;;  %v12852_v3 = vcombine.low %v6716_v44, %v6720_v60  ;;  %v14970_v2 = vld [vmem:[#allocation22 + $0x98] sm:$0xff]  ;;  %v14976_v60 = vld [vmem:[#allocation22 + $0x88] sm:$0xff] }
 0x8aa   :  { %10054 = vmatprep.subr.bf16.mxu1 %v12661_v63  ;;  %v6608_v16 = vld [vmem:[#allocation19 + $0x6b8] sm:$0xff] }
 0x8ab   :  { %10100 = vmatpush2.bf16.msra.mxu0 %v12900_v55  ;;  %v12741_v59 = vcombine.high %v6604_v36, %v6608_v16  ;;  %v6596_v63 = vld [vmem:[#allocation19 + $0x658] sm:$0xff]  ;;  %v12740_v52 = vcombine.low %v6604_v36, %v6608_v16 }
 0x8ac   :  { %10101 = vmatprep.subr.bf16.mxu0 %v12893_v0  ;;  %v6600_v55 = vld [vmem:[#allocation19 + $0x678] sm:$0xff] }
 0x8ad   :  { %10055 = vmatpush1.bf16.msra.mxu1 %v12660_v8  ;;  %v12733_v0 = vcombine.high %v6596_v63, %v6600_v55  ;;  %v6588_v8 = vld [vmem:[#allocation19 + $0x618] sm:$0xff] }
 0x8ae   :  { %10056 = vmatprep.subr.bf16.mxu1 %v12781_v24  ;;  %v6592_v25 = vld [vmem:[#allocation19 + $0x638] sm:$0xff]  ;;  %v12732_v24 = vcombine.low %v6596_v63, %v6600_v55  ;;  %v14994_v55 = vld [vmem:[#allocation22 + $0x60] sm:$0xff] }
 0x8af   :  { %10102 = vmatpush2.bf16.msra.mxu0 %v12892_v32  ;;  %v14927_v54 = vld [vmem:[#allocation22 + $0xf0] sm:$0xff]  ;;  %v14929_v32 = vld [vmem:[#allocation22 + $0xe8] sm:$0xff] }
 0x8b0   :  { %10103 = vmatprep.subr.bf16.mxu0 %v12885_v58  ;;  %v12725_v58 = vcombine.high %v6588_v8, %v6592_v25  ;;  %v6836_v9 = vld [vmem:[#allocation19 + $0xdd8] sm:$0xff] }
 0x8b1   :  { %10057 = vmatpush2.bf16.msra.mxu1 %v12780_v15  ;;  %v14937_v15 = vld [vmem:[#allocation22 + $0xd8] sm:$0xff]  ;;  %v6840_v27 = vld [vmem:[#allocation19 + $0xdf8] sm:$0xff] }
 0x8b2   :  { %10058 = vmatprep.subr.bf16.mxu1 %v12773_v13  ;;  %v14939_v13 = vld [vmem:[#allocation5] sm:$0xff]  ;;  %v12973_v38 = vcombine.high %v6836_v9, %v6840_v27 }
 0x8b3   :  { %10104 = vmatpush2.bf16.msra.mxu0 %v12884_v62  ;;  %v14945_v33 = vld [vmem:[#allocation22 + $0xd0] sm:$0xff] }
 0x8b4   :  { %10105 = vmatprep.subr.bf16.mxu0 %v12877_v30  ;;  %v14957_v22 = vld [vmem:[#allocation22 + $0xb0] sm:$0xff] }
 0x8b5   :  { %10059 = vmatpush2.bf16.msra.mxu1 %v12772_v5  ;;  %v14951_v5 = vld [vmem:[#allocation22 + $0xc0] sm:$0xff]  ;;  %v6812_v36 = vld [vmem:[#allocation19 + $0xd18] sm:$0xff] }
 0x8b6   :  { %10060 = vmatprep.subr.bf16.mxu1 %v12765_v56  ;;  %v6828_v56 = vld [vmem:[#allocation19 + $0xd98] sm:$0xff] }
 0x8b7   :  { %10106 = vmatpush2.bf16.msra.mxu0 %v12876_v46  ;;  %v6832_v46 = vld [vmem:[#allocation19 + $0xdb8] sm:$0xff] }
 0x8b8   :  { %10107 = vmatprep.subr.bf16.mxu0 %v12869_v19  ;;  %v12972_v19 = vcombine.low %v6836_v9, %v6840_v27  ;;  %v12965_v45 = vcombine.high %v6828_v56, %v6832_v46  ;;  %v6816_v16 = vld [vmem:[#allocation19 + $0xd38] sm:$0xff]  ;;  %v15006_v27 = vld [vmem:[#allocation22 + $0x40] sm:$0xff] }
 0x8b9   :  { %10061 = vmatpush2.bf16.msra.mxu1 %v12764_v29  ;;  %v14960_v29 = vld [vmem:[#allocation22 + $0xa8] sm:$0xff]  ;;  %v12949_v63 = vcombine.high %v6812_v36, %v6816_v16 }
 0x8ba   :  { %10062 = vmatprep.subr.bf16.mxu1 %v12757_v41  ;;  %v6820_v41 = vld [vmem:[#allocation19 + $0xd58] sm:$0xff] }
 0x8bb   :  { %10108 = vmatpush2.bf16.msra.mxu0 %v12868_v6  ;;  %v6824_v6 = vld [vmem:[#allocation19 + $0xd78] sm:$0xff] }
 0x8bc   :  { %10109 = vmatprep.subr.bf16.mxu0 %v12861_v48  ;;  %v12964_v48 = vcombine.low %v6828_v56, %v6832_v46  ;;  %v15012_v46 = vld [vmem:[#allocation22 + $0x30] sm:$0xff] }
 0x8bd   :  { %10063 = vmatpush2.bf16.msra.mxu1 %v12756_v49  ;;  %v14973_v49 = vld [vmem:[#allocation22 + $0x90] sm:$0xff] }
 0x8be   :  { %10064 = vmatprep.subr.bf16.mxu1 %v12749_v14  ;;  %v12957_v14 = vcombine.high %v6820_v41, %v6824_v6 }
 0x8bf   :  { %10110 = vmatpush2.bf16.msra.mxu0 %v12860_v17 }
 0x8c0   :  { %10111 = vmatprep.subr.bf16.mxu0 %v12853_v12  ;;  %v14985_v12 = vld [vmem:[#allocation22 + $0x78] sm:$0xff] }
 0x8c1   :  { %10065 = vmatpush2.bf16.msra.mxu1 %v12748_v40  ;;  %v12956_v40 = vcombine.low %v6820_v41, %v6824_v6  ;;  %v6788_v41 = vld [vmem:[#allocation19 + $0xc58] sm:$0xff] }
 0x8c2   :  { %10066 = vmatprep.subr.bf16.mxu1 %v12741_v59  ;;  %v14988_v59 = vld [vmem:[#allocation22 + $0x70] sm:$0xff] }
 0x8c3   :  { %10112 = vmatpush2.bf16.msra.mxu0 %v12852_v3  ;;  %v6792_v6 = vld [vmem:[#allocation19 + $0xc78] sm:$0xff] }
 0x8c4   :  { %10227 = vmatprep.subr.mxu0 %v14924_v1 }
 0x8c5   :  { %10067 = vmatpush2.bf16.msra.mxu1 %v12740_v52  ;;  %v6804_v52 = vld [vmem:[#allocation19 + $0xcd8] sm:$0xff] }
 0x8c6   :  { %v14931_v21 = vpop.f32.mrf.mxu0  ;;  %10114 = vmatmul.mubr.bf16.vlgmr.msra.gmra.mxu0 %v14838_v53  ;;  %10068 = vmatprep.subr.bf16.mxu1 %v12733_v0  ;;  %v12724_v53 = vcombine.low %v6588_v8, %v6592_v25  ;;  %v6808_v0 = vld [vmem:[#allocation19 + $0xcf8] sm:$0xff]  ;;  %v14997_v8 = vld [vmem:[#allocation22 + $0x58] sm:$0xff]  ;;  %v12948_v25 = vcombine.low %v6812_v36, %v6816_v16  ;;  %v15027_v36 = vld [vmem:[#allocation22 + $0x8] sm:$0xff]  ;;  %v12925_v16 = vcombine.high %v6788_v41, %v6792_v6 }
 0x8c7   :  { %10228 = vmatpush1.msra.mxu0 %v14927_v54  ;;  %10291 = vmatprep.mubr.f32.mxu0 %v14939_v13  ;;  %v12941_v9 = vcombine.high %v6804_v52, %v6808_v0  ;;  %v12940_v56 = vcombine.low %v6804_v52, %v6808_v0  ;;  %v12924_v52 = vcombine.low %v6788_v41, %v6792_v6  ;;  %v6884_v6 = vld [vmem:[#allocation19 + $0xf58] sm:$0xff] }
 0x8c8   :  { %v14942_v62 = vpop.f32.mrf.mxu0  ;;  %10229 = vmatprep.subr.mxu0 %v14929_v32 }
 0x8c9   :  { %10069 = vmatpush2.bf16.msra.mxu1 %v12732_v24  ;;  %10230 = vmatpush1.msra.mxu0 %v14934_v4  ;;  %v15000_v24 = vld [vmem:[#allocation22 + $0x50] sm:$0xff] }
 0x8ca   :  { %v9873_v30 = vpop.f32.mrf.mxu0  ;;  %10231 = vmatprep.subr.mxu0 %v14937_v15  ;;  %10070 = vmatprep.subr.bf16.mxu1 %v12725_v58  ;;  %v15003_v58 = vld [vmem:[#allocation22 + $0x48] sm:$0xff] }
 0x8cb   :  { %10232 = vmatpush1.msra.mxu0 %v14945_v33  ;;  %v6800_v30 = vld [vmem:[#allocation19 + $0xcb8] sm:$0xff] }
 0x8cc   :  { %v9874_v11 = vpop.f32.mrf.mxu0  ;;  %10233 = vmatprep.subr.mxu0 %v14948_v10 }
 0x8cd   :  { %10071 = vmatpush2.bf16.msra.mxu1 %v12724_v53  ;;  %10234 = vmatpush1.msra.mxu0 %v14951_v5  ;;  %v6796_v53 = vld [vmem:[#allocation19 + $0xc98] sm:$0xff]  ;;  %v15015_v11 = vld [vmem:[#allocation22 + $0x28] sm:$0xff] }
 0x8ce   :  { %10235 = vmatprep.subr.mxu0 %v14954_v20  ;;  %10122 = vmatprep.subr.bf16.mxu1 %v12973_v38  ;;  %v15009_v38 = vld [vmem:[#allocation22 + $0x38] sm:$0xff] }
 0x8cf   :  { %10236 = vmatpush1.msra.mxu0 %v14957_v22 }
 0x8d0   :  { %v14966_v43 = vpop.f32.mrf.mxu1  ;;  %10073 = vmatmul.mubr.bf16.vlgmr.msra.gmra.mxu1 %v14815_v39  ;;  %10237 = vmatprep.subr.mxu0 %v14960_v29  ;;  %v14982_v39 = vld [vmem:[#allocation22 + $0x80] sm:$0xff] }
 0x8d1   :  { %10123 = vmatpush1.bf16.msra.mxu1 %v12972_v19  ;;  %10154 = vmatprep.mubr.bf16.mxu1 %v14862_v50  ;;  %v12933_v19 = vcombine.high %v6796_v53, %v6800_v30 }
 0x8d2   :  { %v9830_v44 = vpop.f32.mrf.mxu1  ;;  %10238 = vmatpush1.msra.mxu0 %v14964_v57  ;;  %10124 = vmatprep.subr.bf16.mxu1 %v12965_v45  ;;  %v15018_v45 = vld [vmem:[#allocation22 + $0x20] sm:$0xff] }
 0x8d3   :  { %v14979_v17 = vadd.f32 %v9830_v44, %v14922_v31  ;;  %10239 = vmatprep.subr.mxu0 %v14970_v2  ;;  %v14991_v31 = vld [vmem:[#allocation22 + $0x68] sm:$0xff]  ;;  %v12932_v44 = vcombine.low %v6796_v53, %v6800_v30  ;;  %v6892_v30 = vld [vmem:[#allocation19 + $0xf98] sm:$0xff] }
 0x8d4   :  { %v9832_v50 = vpop.f32.mrf.mxu1  ;;  %10240 = vmatpush1.msra.mxu0 %v14973_v49 }
 0x8d5   :  { %10125 = vmatpush1.bf16.msra.mxu1 %v12964_v48  ;;  %10241 = vmatprep.subr.mxu0 %v14976_v60  ;;  %v15021_v48 = vld [vmem:[#allocation22 + $0x18] sm:$0xff]  ;;  %v15030_v50 = vld [vmem:[#allocation22] sm:$0xff] }
 0x8d6   :  { %v9833_v3 = vpop.f32.mrf.mxu1  ;;  %10242 = vmatpush1.msra.mxu0 %v14982_v39  ;;  %10126 = vmatprep.subr.bf16.mxu1 %v12957_v14  ;;  %v15024_v14 = vld [vmem:[#allocation22 + $0x10] sm:$0xff] }
 0x8d7   :  { %10243 = vmatprep.subr.mxu0 %v14985_v12  ;;  %v6784_v3 = vld [vmem:[#allocation19 + $0xc38] sm:$0xff] }
 0x8d8   :  { %10244 = vmatpush1.msra.mxu0 %v14988_v59 }
 0x8d9   :  { %10127 = vmatpush1.bf16.msra.mxu1 %v12956_v40  ;;  %10245 = vmatprep.subr.mxu0 %v14991_v31  ;;  %v6780_v40 = vld [vmem:[#allocation19 + $0xc18] sm:$0xff] }
 0x8da   :  { %10246 = vmatpush1.msra.mxu0 %v14994_v55  ;;  %10128 = vmatprep.subr.bf16.mxu1 %v12949_v63  ;;  %v10163_v63 = vmax.f32 %v14900_v7, 0.0  ;;  %v12917_v0 = vcombine.high %v6780_v40, %v6784_v3  ;;  %v12916_v7 = vcombine.low %v6780_v40, %v6784_v3  ;;  %v6876_v3 = vld [vmem:[#allocation19 + $0xf18] sm:$0xff] }
 0x8db   :  { %10247 = vmatprep.subr.mxu0 %v14997_v8 }
 0x8dc   :  { %10248 = vmatpush1.msra.mxu0 %v15000_v24 }
 0x8dd   :  { %10129 = vmatpush1.bf16.msra.mxu1 %v12948_v25  ;;  %10249 = vmatprep.subr.mxu0 %v15003_v58  ;;  %v6900_v25 = vld [vmem:[#allocation19 + $0xfd8] sm:$0xff] }
 0x8de   :  { %10250 = vmatpush1.msra.mxu0 %v15006_v27  ;;  %10130 = vmatprep.subr.bf16.mxu1 %v12941_v9  ;;  %v6904_v9 = vld [vmem:[#allocation19 + $0xff8] sm:$0xff] }
 0x8df   :  { %10251 = vmatprep.subr.mxu0 %v15009_v38  ;;  %v13037_v53 = vcombine.high %v6900_v25, %v6904_v9 }
 0x8e0   :  { %10252 = vmatpush1.msra.mxu0 %v15012_v46 }
 0x8e1   :  { %10131 = vmatpush1.bf16.msra.mxu1 %v12940_v56  ;;  %10253 = vmatprep.subr.mxu0 %v15015_v11  ;;  %v6896_v56 = vld [vmem:[#allocation19 + $0xfb8] sm:$0xff] }
 0x8e2   :  { %10254 = vmatpush1.msra.mxu0 %v15018_v45  ;;  %10132 = vmatprep.subr.bf16.mxu1 %v12933_v19  ;;  %v13036_v19 = vcombine.low %v6900_v25, %v6904_v9  ;;  %v13029_v41 = vcombine.high %v6892_v30, %v6896_v56  ;;  %v6868_v25 = vld [vmem:[#allocation19 + $0xed8] sm:$0xff] }
 0x8e3   :  { %10255 = vmatprep.subr.mxu0 %v15021_v48  ;;  %v6872_v9 = vld [vmem:[#allocation19 + $0xef8] sm:$0xff] }
 0x8e4   :  { %10256 = vmatpush1.msra.mxu0 %v15024_v14 }
 0x8e5   :  { %10133 = vmatpush1.bf16.msra.mxu1 %v12932_v44  ;;  %10257 = vmatprep.subr.mxu0 %v15027_v36  ;;  %v6888_v44 = vld [vmem:[#allocation19 + $0xf78] sm:$0xff] }
 0x8e6   :  { %10258 = vmatpush1.msra.mxu0 %v15030_v50  ;;  %10134 = vmatprep.subr.bf16.mxu1 %v12925_v16  ;;  %v13028_v16 = vcombine.low %v6892_v30, %v6896_v56  ;;  %v13021_v40 = vcombine.high %v6884_v6, %v6888_v44  ;;  %v6860_v30 = vld [vmem:[#allocation19 + $0xe98] sm:$0xff] }
 0x8e7   :  { %10292 = vmatmul.mubr.f32.vlgmr.msra.gmra.mxu0 %v10163_v63  ;;  %10537 = vmatprep.subr.mxu0 %v14924_v1  ;;  %v6880_v63 = vld [vmem:[#allocation19 + $0xf38] sm:$0xff] }
 0x8e8   :  { %10538 = vmatpush1.msra.mxu0 %v14927_v54  ;;  %10601 = vmatprep.mubr.f32.mxu0 %v14939_v13  ;;  %v6864_v56 = vld [vmem:[#allocation19 + $0xeb8] sm:$0xff] }
 0x8e9   :  { %10135 = vmatpush1.bf16.msra.mxu1 %v12924_v52  ;;  %10539 = vmatprep.subr.mxu0 %v14929_v32  ;;  %v13020_v52 = vcombine.low %v6884_v6, %v6888_v44  ;;  %v6852_v6 = vld [vmem:[#allocation19 + $0xe58] sm:$0xff] }
 0x8ea   :  { %10540 = vmatpush1.msra.mxu0 %v14934_v4  ;;  %10136 = vmatprep.subr.bf16.mxu1 %v12917_v0  ;;  %v13013_v0 = vcombine.high %v6876_v3, %v6880_v63  ;;  %v6856_v44 = vld [vmem:[#allocation19 + $0xe78] sm:$0xff] }
 0x8eb   :  { %10541 = vmatprep.subr.mxu0 %v14937_v15 }
 0x8ec   :  { %10542 = vmatpush1.msra.mxu0 %v14945_v33 }
 0x8ed   :  { %10137 = vmatpush1.bf16.msra.mxu1 %v12916_v7  ;;  %10543 = vmatprep.subr.mxu0 %v14948_v10  ;;  %v13012_v7 = vcombine.low %v6876_v3, %v6880_v63  ;;  %v12989_v3 = vcombine.high %v6852_v6, %v6856_v44  ;;  %v6844_v63 = vld [vmem:[#allocation19 + $0xe18] sm:$0xff] }
 0x8ee   :  { %10544 = vmatpush1.msra.mxu0 %v14951_v5  ;;  %10138 = vmatprep.subr.bf16.mxu1 %v13037_v53  ;;  %v13005_v53 = vcombine.high %v6868_v25, %v6872_v9 }
 0x8ef   :  { %10545 = vmatprep.subr.mxu0 %v14954_v20 }
 0x8f0   :  { %10546 = vmatpush1.msra.mxu0 %v14957_v22 }
 0x8f1   :  { %10139 = vmatpush2.bf16.msra.mxu1 %v13036_v19  ;;  %10547 = vmatprep.subr.mxu0 %v14960_v29  ;;  %v13004_v19 = vcombine.low %v6868_v25, %v6872_v9  ;;  %v12988_v25 = vcombine.low %v6852_v6, %v6856_v44 }
 0x8f2   :  { %10548 = vmatpush1.msra.mxu0 %v14964_v57  ;;  %10140 = vmatprep.subr.bf16.mxu1 %v13029_v41  ;;  %v12997_v41 = vcombine.high %v6860_v30, %v6864_v56 }
 0x8f3   :  { %10549 = vmatprep.subr.mxu0 %v14970_v2 }
 0x8f4   :  { %10550 = vmatpush1.msra.mxu0 %v14973_v49 }
 0x8f5   :  { %10141 = vmatpush2.bf16.msra.mxu1 %v13028_v16  ;;  %10551 = vmatprep.subr.mxu0 %v14976_v60  ;;  %v9829_v16 = vadd.f32 %v14966_v43, %v14920_v34 }
 0x8f6   :  { %10552 = vmatpush1.msra.mxu0 %v14982_v39  ;;  %10142 = vmatprep.subr.bf16.mxu1 %v13021_v40  ;;  %v12996_v40 = vcombine.low %v6860_v30, %v6864_v56  ;;  %v6926_v30 = vrot.slane %v14908_v18, %v3147_v42 }
 0x8f7   :  { %10553 = vmatprep.subr.mxu0 %v14985_v12 }
 0x8f8   :  { %10554 = vmatpush1.msra.mxu0 %v14988_v59 }
 0x8f9   :  { %10143 = vmatpush2.bf16.msra.mxu1 %v13020_v52  ;;  %10555 = vmatprep.subr.mxu0 %v14991_v31  ;;  %v6848_v52 = vld [vmem:[#allocation19 + $0xe38] sm:$0xff] }
 0x8fa   :  { %10556 = vmatpush1.msra.mxu0 %v14994_v55  ;;  %10144 = vmatprep.subr.bf16.mxu1 %v13013_v0  ;;  %v10165_v0 = vmax.f32 %v9829_v16, 0.0  ;;  %v12981_v43 = vcombine.high %v6844_v63, %v6848_v52 }
 0x8fb   :  { %10557 = vmatprep.subr.mxu0 %v14997_v8 }
 0x8fc   :  { %10558 = vmatpush1.msra.mxu0 %v15000_v24 }
 0x8fd   :  { %10145 = vmatpush2.bf16.msra.mxu1 %v13012_v7  ;;  %10559 = vmatprep.subr.mxu0 %v15003_v58  ;;  %v12980_v7 = vcombine.low %v6844_v63, %v6848_v52 }
 0x8fe   :  { %10560 = vmatpush1.msra.mxu0 %v15006_v27  ;;  %10146 = vmatprep.subr.bf16.mxu1 %v13005_v53 }
 0x8ff   :  { %10561 = vmatprep.subr.mxu0 %v15009_v38 }
 0x900   :  { %10562 = vmatpush1.msra.mxu0 %v15012_v46 }
 0x901   :  { %10147 = vmatpush2.bf16.msra.mxu1 %v13004_v19  ;;  %10563 = vmatprep.subr.mxu0 %v15015_v11  ;;  %v6930_v19 = vrot.slane %v14908_v18, %v3151_v35 }
 0x902   :  { %10564 = vmatpush1.msra.mxu0 %v15018_v45  ;;  %10148 = vmatprep.subr.bf16.mxu1 %v12997_v41  ;;  %v9870_v41 = vadd.f32 %v14931_v21, %v6926_v30 }
 0x903   :  { %10565 = vmatprep.subr.mxu0 %v15021_v48  ;;  %v9872_v6 = vadd.f32 %v14942_v62, %v6930_v19 }
 0x904   :  { %10566 = vmatpush1.msra.mxu0 %v15024_v14 }
 0x905   :  { %10149 = vmatpush2.bf16.msra.mxu1 %v12996_v40  ;;  %10567 = vmatprep.subr.mxu0 %v15027_v36  ;;  %v10164_v40 = vmax.f32 %v14904_v23, 0.0 }
 0x906   :  { %10568 = vmatpush1.msra.mxu0 %v15030_v50  ;;  %v9951_v34 = vpop.f32.mrf.mxu0  ;;  %10150 = vmatprep.subr.bf16.mxu1 %v12989_v3 }
 0x907   :  { %10602 = vmatmul.mubr.f32.vlgmr.msra.gmra.mxu0 %v10165_v0  ;;  %10847 = vmatprep.subr.mxu0 %v14924_v1  ;;  %v10166_v0 = vmax.f32 %v14979_v17, 0.0 }
 0x908   :  { %v9953_v9 = vpop.f32.mrf.mxu0  ;;  %10848 = vmatpush1.msra.mxu0 %v14927_v54  ;;  %10911 = vmatprep.mubr.f32.mxu0 %v14939_v13 }
 0x909   :  { %10151 = vmatpush2.bf16.msra.mxu1 %v12988_v25  ;;  %10849 = vmatprep.subr.mxu0 %v14929_v32 }
 0x90a   :  { %v9955_v53 = vpop.f32.mrf.mxu0  ;;  %10152 = vmatprep.subr.bf16.mxu1 %v12981_v43  ;;  %10850 = vmatpush1.msra.mxu0 %v14934_v4 }
 0x90b   :  { %10851 = vmatprep.subr.mxu0 %v14937_v15 }
 0x90c   :  { %v9956_v56 = vpop.f32.mrf.mxu0  ;;  %10852 = vmatpush1.msra.mxu0 %v14945_v33 }
 0x90d   :  { %10153 = vmatpush2.bf16.msra.mxu1 %v12980_v7  ;;  %10853 = vmatprep.subr.mxu0 %v14948_v10 }
 0x90e   :  { %10382 = vmatprep.subr.mxu1 %v14924_v1  ;;  %10854 = vmatpush1.msra.mxu0 %v14951_v5 }
 0x90f   :  { %10855 = vmatprep.subr.mxu0 %v14954_v20 }
 0x910   :  { %v9910_v42 = vpop.f32.mrf.mxu1  ;;  %10155 = vmatmul.mubr.bf16.vlgmr.msra.gmra.mxu1 %v14864_v37  ;;  %10856 = vmatpush1.msra.mxu0 %v14957_v22 }
 0x911   :  { %v9911_v44 = vadd.f32 %v9910_v42, %v9870_v41  ;;  %10383 = vmatpush1.msra.mxu1 %v14927_v54  ;;  %10446 = vmatprep.mubr.f32.mxu1 %v14939_v13 }
 0x912   :  { %v9912_v35 = vpop.f32.mrf.mxu1  ;;  %10384 = vmatprep.subr.mxu1 %v14929_v32  ;;  %10857 = vmatprep.subr.mxu0 %v14960_v29 }
 0x913   :  { %v9913_v18 = vadd.f32 %v9912_v35, %v9872_v6  ;;  %10385 = vmatpush1.msra.mxu1 %v14934_v4  ;;  %10858 = vmatpush1.msra.mxu0 %v14964_v57  ;;  %v15098_v37 = vadd.f32 %v9951_v34, %v9911_v44 }
 0x914   :  { %v9914_v21 = vpop.f32.mrf.mxu1  ;;  %10386 = vmatprep.subr.mxu1 %v14937_v15  ;;  %10859 = vmatprep.subr.mxu0 %v14970_v2 }
 0x915   :  { %10387 = vmatpush1.msra.mxu1 %v14945_v33  ;;  %10860 = vmatpush1.msra.mxu0 %v14973_v49  ;;  %v15104_v62 = vadd.f32 %v9953_v9, %v9913_v18 }
 0x916   :  { %v9915_v16 = vpop.f32.mrf.mxu1  ;;  %10388 = vmatprep.subr.mxu1 %v14948_v10  ;;  %10861 = vmatprep.subr.mxu0 %v14976_v60 }
 0x917   :  { %10389 = vmatpush1.msra.mxu1 %v14951_v5  ;;  %10862 = vmatpush1.msra.mxu0 %v14982_v39 }
 0x918   :  { %10390 = vmatprep.subr.mxu1 %v14954_v20  ;;  %10863 = vmatprep.subr.mxu0 %v14985_v12 }
 0x919   :  { %10391 = vmatpush1.msra.mxu1 %v14957_v22  ;;  %10864 = vmatpush1.msra.mxu0 %v14988_v59 }
 0x91a   :  { %10392 = vmatprep.subr.mxu1 %v14960_v29  ;;  %10865 = vmatprep.subr.mxu0 %v14991_v31 }
 0x91b   :  { %10393 = vmatpush1.msra.mxu1 %v14964_v57  ;;  %10866 = vmatpush1.msra.mxu0 %v14994_v55 }
 0x91c   :  { %10394 = vmatprep.subr.mxu1 %v14970_v2  ;;  %10867 = vmatprep.subr.mxu0 %v14997_v8 }
 0x91d   :  { %10395 = vmatpush1.msra.mxu1 %v14973_v49  ;;  %10868 = vmatpush1.msra.mxu0 %v15000_v24 }
 0x91e   :  { %10396 = vmatprep.subr.mxu1 %v14976_v60  ;;  %10869 = vmatprep.subr.mxu0 %v15003_v58 }
 0x91f   :  { %10397 = vmatpush1.msra.mxu1 %v14982_v39  ;;  %10870 = vmatpush1.msra.mxu0 %v15006_v27 }
 0x920   :  { %10398 = vmatprep.subr.mxu1 %v14985_v12  ;;  %10871 = vmatprep.subr.mxu0 %v15009_v38 }
 0x921   :  { %10399 = vmatpush1.msra.mxu1 %v14988_v59  ;;  %10872 = vmatpush1.msra.mxu0 %v15012_v46 }
 0x922   :  { %10400 = vmatprep.subr.mxu1 %v14991_v31  ;;  %10873 = vmatprep.subr.mxu0 %v15015_v11 }
 0x923   :  { %10401 = vmatpush1.msra.mxu1 %v14994_v55  ;;  %10874 = vmatpush1.msra.mxu0 %v15018_v45 }
 0x924   :  { %10402 = vmatprep.subr.mxu1 %v14997_v8  ;;  %10875 = vmatprep.subr.mxu0 %v15021_v48 }
 0x925   :  { %10403 = vmatpush1.msra.mxu1 %v15000_v24  ;;  %10876 = vmatpush1.msra.mxu0 %v15024_v14 }
 0x926   :  { %10404 = vmatprep.subr.mxu1 %v15003_v58  ;;  %10877 = vmatprep.subr.mxu0 %v15027_v36 }
 0x927   :  { %10405 = vmatpush1.msra.mxu1 %v15006_v27  ;;  %10878 = vmatpush1.msra.mxu0 %v15030_v50 }
 0x928   :  { %10406 = vmatprep.subr.mxu1 %v15009_v38  ;;  %11157 = vmatprep.subr.mxu0 %v14924_v1 }
 0x929   :  { %10407 = vmatpush1.msra.mxu1 %v15012_v46 }
 0x92a   :  { %10408 = vmatprep.subr.mxu1 %v15015_v11 }
 0x92b   :  { %10409 = vmatpush1.msra.mxu1 %v15018_v45 }
 0x92c   :  { %10410 = vmatprep.subr.mxu1 %v15021_v48 }
 0x92d   :  { %10411 = vmatpush1.msra.mxu1 %v15024_v14 }
 0x92e   :  { %10412 = vmatprep.subr.mxu1 %v15027_v36 }
 0x92f   :  { %10413 = vmatpush1.msra.mxu1 %v15030_v50 }
 0x930   :  { %10447 = vmatmul.mubr.f32.vlgmr.msra.gmra.mxu1 %v10164_v40  ;;  %10692 = vmatprep.subr.mxu1 %v14924_v1 }
 0x931   :  { %10693 = vmatpush1.msra.mxu1 %v14927_v54  ;;  %10756 = vmatprep.mubr.f32.mxu1 %v14939_v13 }
 0x932   :  { %10694 = vmatprep.subr.mxu1 %v14929_v32 }
 0x933   :  { %10695 = vmatpush1.msra.mxu1 %v14934_v4 }
 0x934   :  { %10696 = vmatprep.subr.mxu1 %v14937_v15 }
 0x935   :  { %10697 = vmatpush1.msra.mxu1 %v14945_v33 }
 0x936   :  { %10698 = vmatprep.subr.mxu1 %v14948_v10 }
 0x937   :  { %10699 = vmatpush1.msra.mxu1 %v14951_v5 }
 0x938   :  { %10700 = vmatprep.subr.mxu1 %v14954_v20 }
 0x939   :  { %10701 = vmatpush1.msra.mxu1 %v14957_v22 }
 0x93a   :  { %10702 = vmatprep.subr.mxu1 %v14960_v29 }
 0x93b   :  { %10703 = vmatpush1.msra.mxu1 %v14964_v57 }
 0x93c   :  { %10704 = vmatprep.subr.mxu1 %v14970_v2 }
 0x93d   :  { %10705 = vmatpush1.msra.mxu1 %v14973_v49 }
 0x93e   :  { %10706 = vmatprep.subr.mxu1 %v14976_v60 }
 0x93f   :  { %10707 = vmatpush1.msra.mxu1 %v14982_v39 }
 0x940   :  { %10708 = vmatprep.subr.mxu1 %v14985_v12 }
 0x941   :  { %10709 = vmatpush1.msra.mxu1 %v14988_v59 }
 0x942   :  { %10710 = vmatprep.subr.mxu1 %v14991_v31 }
 0x943   :  { %10711 = vmatpush1.msra.mxu1 %v14994_v55 }
 0x944   :  { %10712 = vmatprep.subr.mxu1 %v14997_v8 }
 0x945   :  { %10713 = vmatpush1.msra.mxu1 %v15000_v24 }
 0x946   :  { %10714 = vmatprep.subr.mxu1 %v15003_v58  ;;  %v15176_v23 = vpop.f32.mrf.mxu0 }
 0x947   :  { %10715 = vmatpush1.msra.mxu1 %v15006_v27 }
 0x948   :  { %10716 = vmatprep.subr.mxu1 %v15009_v38  ;;  %v15180_v3 = vpop.f32.mrf.mxu0 }
 0x949   :  { %10717 = vmatpush1.msra.mxu1 %v15012_v46 }
 0x94a   :  { %10718 = vmatprep.subr.mxu1 %v15015_v11  ;;  %v10037_v63 = vpop.f32.mrf.mxu0 }
 0x94b   :  { %10719 = vmatpush1.msra.mxu1 %v15018_v45 }
 0x94c   :  { %10720 = vmatprep.subr.mxu1 %v15021_v48  ;;  %v10038_v52 = vpop.f32.mrf.mxu0 }
 0x94d   :  { %10721 = vmatpush1.msra.mxu1 %v15024_v14 }
 0x94e   :  { %10722 = vmatprep.subr.mxu1 %v15027_v36 }
 0x94f   :  { %10723 = vmatpush1.msra.mxu1 %v15030_v50 }
 0x950   :  { %v9992_v25 = vpop.f32.mrf.mxu1  ;;  %10757 = vmatmul.mubr.f32.vlgmr.msra.gmra.mxu1 %v10166_v0  ;;  %11002 = vmatprep.subr.mxu1 %v14924_v1 }
 0x951   :  { %v9993_v34 = vadd.f32 %v9992_v25, %v15098_v37  ;;  %11003 = vmatpush1.msra.mxu1 %v14927_v54  ;;  %11066 = vmatprep.mubr.f32.mxu1 %v14939_v13 }
 0x952   :  { %v9994_v43 = vpop.f32.mrf.mxu1  ;;  %11004 = vmatprep.subr.mxu1 %v14929_v32 }
 0x953   :  { %v10167_v9 = vmax.f32 %v9993_v34, 0.0  ;;  %11005 = vmatpush1.msra.mxu1 %v14934_v4  ;;  %v9995_v53 = vadd.f32 %v9994_v43, %v15104_v62 }
 0x954   :  { %v9996_v17 = vpop.f32.mrf.mxu1  ;;  %11006 = vmatprep.subr.mxu1 %v14937_v15 }
 0x955   :  { %10912 = vmatmul.mubr.f32.vlgmr.msra.gmra.mxu0 %v10167_v9  ;;  %11007 = vmatpush1.msra.mxu1 %v14945_v33  ;;  %v10168_v30 = vmax.f32 %v9995_v53, 0.0 }
 0x956   :  { %v9997_v7 = vpop.f32.mrf.mxu1  ;;  %11008 = vmatprep.subr.mxu1 %v14948_v10  ;;  %11158 = vmatpush1.msra.mxu0 %v14927_v54 }
 0x957   :  { %11009 = vmatpush1.msra.mxu1 %v14951_v5  ;;  %11159 = vmatprep.subr.mxu0 %v14929_v32 }
 0x958   :  { %11010 = vmatprep.subr.mxu1 %v14954_v20  ;;  %11160 = vmatpush1.msra.mxu0 %v14934_v4 }
 0x959   :  { %11011 = vmatpush1.msra.mxu1 %v14957_v22  ;;  %11161 = vmatprep.subr.mxu0 %v14937_v15 }
 0x95a   :  { %11012 = vmatprep.subr.mxu1 %v14960_v29  ;;  %11162 = vmatpush1.msra.mxu0 %v14945_v33 }
 0x95b   :  { %11013 = vmatpush1.msra.mxu1 %v14964_v57  ;;  %11163 = vmatprep.subr.mxu0 %v14948_v10 }
 0x95c   :  { %11014 = vmatprep.subr.mxu1 %v14970_v2  ;;  %11164 = vmatpush1.msra.mxu0 %v14951_v5 }
 0x95d   :  { %11015 = vmatpush1.msra.mxu1 %v14973_v49  ;;  %11165 = vmatprep.subr.mxu0 %v14954_v20 }
 0x95e   :  { %11016 = vmatprep.subr.mxu1 %v14976_v60  ;;  %11166 = vmatpush1.msra.mxu0 %v14957_v22 }
 0x95f   :  { %11017 = vmatpush1.msra.mxu1 %v14982_v39  ;;  %11167 = vmatprep.subr.mxu0 %v14960_v29 }
 0x960   :  { %11018 = vmatprep.subr.mxu1 %v14985_v12  ;;  %11168 = vmatpush1.msra.mxu0 %v14964_v57 }
 0x961   :  { %11019 = vmatpush1.msra.mxu1 %v14988_v59  ;;  %11169 = vmatprep.subr.mxu0 %v14970_v2 }
 0x962   :  { %11020 = vmatprep.subr.mxu1 %v14991_v31  ;;  %11170 = vmatpush1.msra.mxu0 %v14973_v49 }
 0x963   :  { %11021 = vmatpush1.msra.mxu1 %v14994_v55  ;;  %11171 = vmatprep.subr.mxu0 %v14976_v60 }
 0x964   :  { %11022 = vmatprep.subr.mxu1 %v14997_v8  ;;  %11172 = vmatpush1.msra.mxu0 %v14982_v39 }
 0x965   :  { %11023 = vmatpush1.msra.mxu1 %v15000_v24  ;;  %11173 = vmatprep.subr.mxu0 %v14985_v12 }
 0x966   :  { %11024 = vmatprep.subr.mxu1 %v15003_v58  ;;  %11174 = vmatpush1.msra.mxu0 %v14988_v59 }
 0x967   :  { %11025 = vmatpush1.msra.mxu1 %v15006_v27  ;;  %11175 = vmatprep.subr.mxu0 %v14991_v31 }
 0x968   :  { %11026 = vmatprep.subr.mxu1 %v15009_v38  ;;  %11176 = vmatpush1.msra.mxu0 %v14994_v55 }
 0x969   :  { %11027 = vmatpush1.msra.mxu1 %v15012_v46  ;;  %11177 = vmatprep.subr.mxu0 %v14997_v8 }
 0x96a   :  { %11028 = vmatprep.subr.mxu1 %v15015_v11  ;;  %11178 = vmatpush1.msra.mxu0 %v15000_v24 }
 0x96b   :  { %11029 = vmatpush1.msra.mxu1 %v15018_v45  ;;  %11179 = vmatprep.subr.mxu0 %v15003_v58 }
 0x96c   :  { %11030 = vmatprep.subr.mxu1 %v15021_v48  ;;  %11180 = vmatpush1.msra.mxu0 %v15006_v27 }
 0x96d   :  { %11031 = vmatpush1.msra.mxu1 %v15024_v14  ;;  %11181 = vmatprep.subr.mxu0 %v15009_v38 }
 0x96e   :  { %11032 = vmatprep.subr.mxu1 %v15027_v36  ;;  %11182 = vmatpush1.msra.mxu0 %v15012_v46 }
 0x96f   :  { %11033 = vmatpush1.msra.mxu1 %v15030_v50  ;;  %11183 = vmatprep.subr.mxu0 %v15015_v11 }
 0x970   :  { %11067 = vmatmul.mubr.f32.vlgmr.msra.gmra.mxu1 %v10168_v30  ;;  %11312 = vmatprep.subr.mxu1 %v14924_v1 }
 0x971   :  { %11313 = vmatpush1.msra.mxu1 %v14927_v54  ;;  %11184 = vmatpush1.msra.mxu0 %v15018_v45 }
 0x972   :  { %11314 = vmatprep.subr.mxu1 %v14929_v32  ;;  %11185 = vmatprep.subr.mxu0 %v15021_v48 }
 0x973   :  { %11315 = vmatpush1.msra.mxu1 %v14934_v4  ;;  %11186 = vmatpush1.msra.mxu0 %v15024_v14  ;;  %v13224_v4 = vld [vmem:[#allocation21] sm:$0xff] }
 0x974   :  { %11316 = vmatprep.subr.mxu1 %v14937_v15  ;;  %11187 = vmatprep.subr.mxu0 %v15027_v36  ;;  %v6934_v15 = vrot.slane %v13224_v4, %v3155_v51 }
 0x975   :  { %11317 = vmatpush1.msra.mxu1 %v14945_v33  ;;  %11188 = vmatpush1.msra.mxu0 %v15030_v50 }
 0x976   :  { %11318 = vmatprep.subr.mxu1 %v14948_v10  ;;  %11221 = vmatprep.mubr.f32.mxu0 %v14939_v13  ;;  %v6938_v10 = vrot.slane %v13224_v4, %v3159_v26 }
 0x977   :  { %11319 = vmatpush1.msra.mxu1 %v14951_v5  ;;  %11376 = vmatprep.mubr.f32.mxu1 %v14939_v13  ;;  %v10034_v5 = vadd.f32 %v15176_v23, %v6934_v15 }
 0x978   :  { %11320 = vmatprep.subr.mxu1 %v14954_v20  ;;  %11512 = vmatprep.subr.mxu0 %v14939_v13  ;;  %v10036_v51 = vadd.f32 %v15180_v3, %v6938_v10 }
 0x979   :  { %11321 = vmatpush1.msra.mxu1 %v14957_v22 }
 0x97a   :  { %11322 = vmatprep.subr.mxu1 %v14960_v29 }
 0x97b   :  { %11323 = vmatpush1.msra.mxu1 %v14964_v57 }
 0x97c   :  { %11324 = vmatprep.subr.mxu1 %v14970_v2 }
 0x97d   :  { %11325 = vmatpush1.msra.mxu1 %v14973_v49 }
 0x97e   :  { %11326 = vmatprep.subr.mxu1 %v14976_v60 }
 0x97f   :  { %11327 = vmatpush1.msra.mxu1 %v14982_v39  ;;  %v13531_v39 = vmov 1966171168  }
 0x980   :  { %11328 = vmatprep.subr.mxu1 %v14985_v12  ;;  %v10302_v12 = vunpack.c.l.s4 %v13531_v39 }
 0x981   :  { %11329 = vmatpush1.msra.mxu1 %v14988_v59  ;;  %v10215_v59 = vld [vmem:[#allocation24] sm:$0x3] }
 0x982   :  { %11330 = vmatprep.subr.mxu1 %v14991_v31  ;;  %v15299_v31 = vrot.slane %v10215_v59, %v15866_v61 }
 0x983   :  { %11331 = vmatpush1.msra.mxu1 %v14994_v55  ;;  %v10303_v55 = vunpack.c.0.s8 %v10302_v12 }
 0x984   :  { %11332 = vmatprep.subr.mxu1 %v14997_v8  ;;  %v15302_v8 = vrot.slane %v10215_v59, %v15867_v28  ;;  %v11487_v59 = vld [vmem:[%s15790_s11 + $0x60] sm:$0xff] }
 0x985   :  { %11333 = vmatpush1.msra.mxu1 %v15000_v24 }
 0x986   :  { %v10115_v1 = vpop.f32.mrf.mxu0  ;;  %11334 = vmatprep.subr.mxu1 %v15003_v58  ;;  %v15306_v58 = vsub.s32 %v10303_v55, %v15865_v47 }
 0x987   :  { %11335 = vmatpush1.msra.mxu1 %v15006_v27 }
 0x988   :  { %v10117_v54 = vpop.f32.mrf.mxu0  ;;  %11336 = vmatprep.subr.mxu1 %v15009_v38 }
 0x989   :  { %11337 = vmatpush1.msra.mxu1 %v15012_v46 }
 0x98a   :  { %v10119_v32 = vpop.f32.mrf.mxu0  ;;  %11338 = vmatprep.subr.mxu1 %v15015_v11 }
 0x98b   :  { %11339 = vmatpush1.msra.mxu1 %v15018_v45 }
 0x98c   :  { %v10120_v33 = vpop.f32.mrf.mxu0  ;;  %11340 = vmatprep.subr.mxu1 %v15021_v48 }
 0x98d   :  { %11341 = vmatpush1.msra.mxu1 %v15024_v14 }
 0x98e   :  { %11342 = vmatprep.subr.mxu1 %v15027_v36 }
 0x98f   :  { %11343 = vmatpush1.msra.mxu1 %v15030_v50 }
 0x990   :  { %v10074_v20 = vpop.f32.mrf.mxu1  ;;  %11672 = vmatprep.subr.mxu1 %v14939_v13 }
 0x991   :  { %v10075_v22 = vadd.f32 %v10074_v20, %v10034_v5 }
 0x992   :  { %v10076_v29 = vpop.f32.mrf.mxu1 }
 0x993   :  { %v10077_v57 = vadd.f32 %v10076_v29, %v10036_v51  ;;  %v10116_v2 = vadd.f32 %v10115_v1, %v10075_v22  ;;  %v11490_v22 = vld [vmem:[%s15790_s11 + $0x78] sm:$0xff]  ;;  %v11489_v29 = vld [vmem:[%s15790_s11 + $0x70] sm:$0xff] }
 0x994   :  { %v10078_v49 = vpop.f32.mrf.mxu1 }
 0x995   :  { %v10118_v60 = vadd.f32 %v10117_v54, %v10077_v57  ;;  %v15348_v49 = vld [vmem:[#allocation5] sm:$0xff] }
 0x996   :  { %v10079_v26 = vpop.f32.mrf.mxu1 }
 0x9a7   :  { %v10293_v13 = vpop.f32.mrf.mxu0 }
 0x9a8   :  { %v10294_v24 = vadd.f32 %v10293_v13, %v15299_v31 }
 0x9a9   :  { %v10295_v27 = vpop.f32.mrf.mxu0 }
 0x9aa   :  { %v10298_v38 = vmax.f32 %v10294_v24, 0.0  ;;  %v10296_v46 = vadd.f32 %v10295_v27, %v15302_v8  ;;  %v11486_v27 = vld [vmem:[%s15790_s11 + $0x58] sm:$0xff] }
 0x9ac   :  { %v10307_v11 = vrot.slane %v10298_v38, %v15306_v58  ;;  %v10299_v45 = vmax.f32 %v10296_v46, 0.0 }
 0x9ae   :  { %v10308_v48 = vcombine.high %v10307_v11, %v10307_v11  ;;  %v10315_v14 = vrot.slane %v10307_v11, %v15306_v58  ;;  %v10348_v36 = vrot.slane %v10299_v45, %v15306_v58  ;;  %v11485_v45 = vld [vmem:[%s15790_s11 + $0x50] sm:$0xff] }
 0x9b0   :  { %v10349_v28 = vcombine.high %v10348_v36, %v10348_v36  ;;  %v10356_v50 = vrot.slane %v10348_v36, %v15306_v58  ;;  %v10326_v56 = vrot.slane %v10315_v14, %v15866_v61  ;;  %v10322_v41 = vrot.slane %v10308_v48, %v15306_v58  ;;  %v11484_v14 = vld [vmem:[%s15790_s11 + $0x48] sm:$0xff] }
 0x9b2   :  { %10331 = vrot.lane.b32.xlu0 %v10326_v56, %s13505_s14  ;;  %v10367_v47 = vrot.slane %v10356_v50, %v15866_v61  ;;  %v10363_v19 = vrot.slane %v10349_v28, %v15306_v58  ;;  %v10330_v6 = vrot.slane %v10322_v41, %v15866_v61  ;;  %v11483_v28 = vld [vmem:[%s15790_s11 + $0x40] sm:$0xff]  ;;  %v11482_v50 = vld [vmem:[%s15790_s11 + $0x38] sm:$0xff]  ;;  %v11481_v56 = vld [vmem:[%s15790_s11 + $0x30] sm:$0xff] }
 0x9b3   :  { %v11478_v41 = vld [vmem:[%s15790_s11 + $0x18] sm:$0xff] }
 0x9b4   :  { %10372 = vrot.lane.b32.xlu1 %v10367_v47, %s13505_s14  ;;  %v10371_v42 = vrot.slane %v10363_v19, %v15866_v61  ;;  %v11480_v47 = vld [vmem:[%s15790_s11 + $0x28] sm:$0xff]  ;;  %v11479_v19 = vld [vmem:[%s15790_s11 + $0x20] sm:$0xff] }
 0x9b6   :  { %10374 = vrot.lane.b32.xlu0 %v10371_v42, %s13505_s14  ;;  %v11477_v42 = vld [vmem:[%s15790_s11 + $0x10] sm:$0xff] }
 0x9b8   :  { %10333 = vrot.lane.b32.xlu1 %v10330_v6, %s13505_s14 }
 0x9c7   :  { %v10603_v44 = vpop.f32.mrf.mxu0 }
 0x9c8   :  { %v10604_v35 = vadd.f32 %v10603_v44, %v15299_v31  ;;  %v11476_v44 = vld [vmem:[%s15790_s11 + $0x8] sm:$0xff] }
 0x9c9   :  { %v10605_v18 = vpop.f32.mrf.mxu0 }
 0x9ca   :  { %v10608_v37 = vmax.f32 %v10604_v35, 0.0  ;;  %v10606_v21 = vadd.f32 %v10605_v18, %v15302_v8 }
 0x9cc   :  { %v10617_v62 = vrot.slane %v10608_v37, %v15306_v58  ;;  %v10609_v16 = vmax.f32 %v10606_v21, 0.0  ;;  %v11475_v37 = vld [vmem:[%s15790_s11] sm:$0xff] }
 0x9ce   :  { %v10618_v40 = vcombine.high %v10617_v62, %v10617_v62  ;;  %v10625_v23 = vrot.slane %v10617_v62, %v15306_v58  ;;  %v10658_v3 = vrot.slane %v10609_v16, %v15306_v58  ;;  %v11492_v16 = vld [vmem:[%s15790_s11 + $0x88] sm:$0xff] }
 0x9d0   :  { %v10659_v63 = vcombine.high %v10658_v3, %v10658_v3  ;;  %v10666_v52 = vrot.slane %v10658_v3, %v15306_v58  ;;  %v10156_v0 = vpop.f32.mrf.mxu1  ;;  %v10636_v25 = vrot.slane %v10625_v23, %v15866_v61  ;;  %v10632_v7 = vrot.slane %v10618_v40, %v15306_v58 }
 0x9d1   :  { %v10157_v34 = vadd.f32 %v10156_v0, %v10116_v2 }
 0x9d2   :  { %v10158_v43 = vpop.f32.mrf.mxu1  ;;  %10641 = vrot.lane.b32.xlu0 %v10636_v25, %s13505_s14  ;;  %v10677_v9 = vrot.slane %v10666_v52, %v15866_v61  ;;  %v10673_v17 = vrot.slane %v10659_v63, %v15306_v58  ;;  %v10640_v15 = vrot.slane %v10632_v7, %v15866_v61 }
 0x9d3   :  { %v10169_v53 = vmax.f32 %v10157_v34, 0.0  ;;  %v10159_v30 = vadd.f32 %v10158_v43, %v10118_v60  ;;  %v11488_v60 = vld [vmem:[%s15790_s11 + $0x68] sm:$0xff] }
 0x9d4   :  { %v10160_v1 = vpop.f32.mrf.mxu1  ;;  %10682 = vrot.lane.b32.xlu1 %v10677_v9, %s13505_s14  ;;  %v10681_v54 = vrot.slane %v10673_v17, %v15866_v61 }
 0x9d5   :  { %v10170_v32 = vmax.f32 %v10159_v30, 0.0  ;;  %11222 = vmatmul.mubr.f32.vlgmr.msra.gmra.mxu0 %v10169_v53 }
 0x9d6   :  { %v10161_v4 = vpop.f32.mrf.mxu1  ;;  %10684 = vrot.lane.b32.xlu0 %v10681_v54, %s13505_s14  ;;  %11513 = vmatpush1.msra.mxu0 %v11490_v22 }
 0x9d7   :  { %11377 = vmatmul.mubr.f32.vlgmr.msra.gmra.mxu1 %v10170_v32  ;;  %11514 = vmatprep.subr.mxu0 %v15348_v49 }
 0x9d8   :  { %10643 = vrot.lane.b32.xlu1 %v10640_v15, %s13505_s14  ;;  %11515 = vmatpush1.msra.mxu0 %v11489_v29 }
 0x9d9   :  { %11516 = vmatprep.subr.mxu0 %v15348_v49 }
 0x9da   :  { %11517 = vmatpush1.msra.mxu0 %v11488_v60 }
 0x9db   :  { %11518 = vmatprep.subr.mxu0 %v15348_v49 }
 0x9dc   :  { %11519 = vmatpush1.msra.mxu0 %v11487_v59 }
 0x9dd   :  { %11520 = vmatprep.subr.mxu0 %v15348_v49 }
 0x9de   :  { %11521 = vmatpush1.msra.mxu0 %v11486_v27 }
 0x9df   :  { %11522 = vmatprep.subr.mxu0 %v15348_v49 }
 0x9e0   :  { %11523 = vmatpush1.msra.mxu0 %v11485_v45 }
 0x9e1   :  { %11524 = vmatprep.subr.mxu0 %v15348_v49 }
 0x9e2   :  { %11525 = vmatpush1.msra.mxu0 %v11484_v14  ;;  %v13057_v14 = vld [vmem:[%s15790_s11 + $0x100] sm:$0xff] }
 0x9e3   :  { %11526 = vmatprep.subr.mxu0 %v15348_v49 }
 0x9e4   :  { %11527 = vmatpush1.msra.mxu0 %v11483_v28 }
 0x9e5   :  { %11528 = vmatprep.subr.mxu0 %v15348_v49 }
 0x9e6   :  { %11529 = vmatpush1.msra.mxu0 %v11482_v50  ;;  %v13056_v50 = vld [vmem:[%s15790_s11 + $0xf8] sm:$0xff] }
 0x9e7   :  { %11530 = vmatprep.subr.mxu0 %v15348_v49 }
 0x9e8   :  { %11531 = vmatpush1.msra.mxu0 %v11481_v56 }
 0x9e9   :  { %11532 = vmatprep.subr.mxu0 %v15348_v49 }
 0x9ea   :  { %11533 = vmatpush1.msra.mxu0 %v11480_v47 }
 0x9eb   :  { %11534 = vmatprep.subr.mxu0 %v15348_v49 }
 0x9ec   :  { %11535 = vmatpush1.msra.mxu0 %v11479_v19 }
 0x9ed   :  { %11536 = vmatprep.subr.mxu0 %v15348_v49 }
 0x9ee   :  { %11537 = vmatpush1.msra.mxu0 %v11478_v41  ;;  %v13055_v41 = vld [vmem:[%s15790_s11 + $0xf0] sm:$0xff] }
 0x9ef   :  { %11538 = vmatprep.subr.mxu0 %v15348_v49 }
 0x9f0   :  { %v10448_v33 = vpop.f32.mrf.mxu1  ;;  %11539 = vmatpush1.msra.mxu0 %v11477_v42 }
 0x9f1   :  { %v10449_v10 = vadd.f32 %v10448_v33, %v15299_v31  ;;  %11540 = vmatprep.subr.mxu0 %v15348_v49  ;;  %v11491_v33 = vld [vmem:[%s15790_s11 + $0x80] sm:$0xff] }
 0x9f2   :  { %v10450_v5 = vpop.f32.mrf.mxu1  ;;  %11541 = vmatpush1.msra.mxu0 %v11476_v44  ;;  %v13054_v44 = vld [vmem:[%s15790_s11 + $0xe8] sm:$0xff] }
 0x9f3   :  { %v10453_v20 = vmax.f32 %v10449_v10, 0.0  ;;  %v10451_v51 = vadd.f32 %v10450_v5, %v15302_v8  ;;  %11542 = vmatprep.subr.mxu0 %v15348_v49 }
 0x9f4   :  { %11543 = vmatpush1.msra.mxu0 %v11475_v37  ;;  %v13053_v37 = vld [vmem:[%s15790_s11 + $0xe0] sm:$0xff] }
 0x9f5   :  { %v10462_v57 = vrot.slane %v10453_v20, %v15306_v58  ;;  %v10454_v2 = vmax.f32 %v10451_v51, 0.0  ;;  %11572 = vmatprep.subr.mxu0 %v15348_v49 }
 0x9f6   :  { %11573 = vmatpush2.msra.mxu0 %v11492_v16  ;;  %v13051_v16 = vld [vmem:[%s15790_s11 + $0xd0] sm:$0xff] }
 0x9f7   :  { %v10463_v26 = vcombine.high %v10462_v57, %v10462_v57  ;;  %v10470_v39 = vrot.slane %v10462_v57, %v15306_v58  ;;  %v10503_v12 = vrot.slane %v10454_v2, %v15306_v58  ;;  %11574 = vmatprep.subr.mxu0 %v15348_v49 }
 0x9f8   :  { %11575 = vmatpush2.msra.mxu0 %v11491_v33  ;;  %v13080_v33 = vld [vmem:[%s15790_s11 + $0x198] sm:$0xff] }
 0x9f9   :  { %v10504_v55 = vcombine.high %v10503_v12, %v10503_v12  ;;  %v10511_v13 = vrot.slane %v10503_v12, %v15306_v58  ;;  %v10481_v24 = vrot.slane %v10470_v39, %v15866_v61  ;;  %v10477_v11 = vrot.slane %v10463_v26, %v15306_v58  ;;  %11828 = vmatprep.subr.mxu0 %v15348_v49 }
 0x9fb   :  { %10486 = vrot.lane.b32.xlu0 %v10481_v24, %s13505_s14  ;;  %v10522_v38 = vrot.slane %v10511_v13, %v15866_v61  ;;  %v10518_v46 = vrot.slane %v10504_v55, %v15306_v58  ;;  %v10485_v36 = vrot.slane %v10477_v11, %v15866_v61 }
 0x9fd   :  { %10527 = vrot.lane.b32.xlu1 %v10522_v38, %s13505_s14  ;;  %v10526_v48 = vrot.slane %v10518_v46, %v15866_v61 }
 0x9ff   :  { %10529 = vrot.lane.b32.xlu0 %v10526_v48, %s13505_s14  ;;  %v13058_v48 = vld [vmem:[%s15790_s11 + $0x108] sm:$0xff] }
 0xa00   :  { %11673 = vmatpush1.msra.mxu1 %v13058_v48 }
 0xa01   :  { %10488 = vrot.lane.b32.xlu1 %v10485_v36, %s13505_s14  ;;  %11674 = vmatprep.subr.mxu1 %v15348_v49 }
 0xa02   :  { %11675 = vmatpush1.msra.mxu1 %v13057_v14  ;;  %v13044_v14 = vld [vmem:[%s15790_s11 + $0x98] sm:$0xff] }
 0xa03   :  { %11676 = vmatprep.subr.mxu1 %v15348_v49 }
 0xa04   :  { %11677 = vmatpush1.msra.mxu1 %v13056_v50 }
 0xa05   :  { %11678 = vmatprep.subr.mxu1 %v15348_v49 }
 0xa06   :  { %11679 = vmatpush1.msra.mxu1 %v13055_v41 }
 0xa07   :  { %11680 = vmatprep.subr.mxu1 %v15348_v49 }
 0xa08   :  { %11681 = vmatpush1.msra.mxu1 %v13054_v44 }
 0xa09   :  { %11682 = vmatprep.subr.mxu1 %v15348_v49 }
 0xa0a   :  { %11683 = vmatpush1.msra.mxu1 %v13053_v37  ;;  %v13043_v37 = vld [vmem:[%s15790_s11 + $0x90] sm:$0xff] }
 0xa0b   :  { %11684 = vmatprep.subr.mxu1 %v15348_v49 }
 0xa10   :  { %v10758_v6 = vpop.f32.mrf.mxu1 }
 0xa11   :  { %v10759_v35 = vadd.f32 %v10758_v6, %v15299_v31 }
 0xa12   :  { %v10760_v18 = vpop.f32.mrf.mxu1 }
 0xa13   :  { %v10763_v21 = vmax.f32 %v10759_v35, 0.0  ;;  %v10761_v62 = vadd.f32 %v10760_v18, %v15302_v8 }
 0xa15   :  { %v10772_v40 = vrot.slane %v10763_v21, %v15306_v58  ;;  %v10764_v23 = vmax.f32 %v10761_v62, 0.0  ;;  %v10913_v3 = vpop.f32.mrf.mxu0  ;;  %v13052_v21 = vld [vmem:[%s15790_s11 + $0xd8] sm:$0xff] }
 0xa16   :  { %v10914_v63 = vadd.f32 %v10913_v3, %v15299_v31  ;;  %11685 = vmatpush1.msra.mxu1 %v13052_v21  ;;  %v13049_v3 = vld [vmem:[%s15790_s11 + $0xc0] sm:$0xff] }
 0xa17   :  { %v10773_v52 = vcombine.high %v10772_v40, %v10772_v40  ;;  %v10780_v0 = vrot.slane %v10772_v40, %v15306_v58  ;;  %v10813_v25 = vrot.slane %v10764_v23, %v15306_v58  ;;  %v10915_v34 = vpop.f32.mrf.mxu0  ;;  %11686 = vmatprep.subr.mxu1 %v15348_v49  ;;  %v13050_v40 = vld [vmem:[%s15790_s11 + $0xc8] sm:$0xff] }
 0xa18   :  { %v10918_v43 = vmax.f32 %v10914_v63, 0.0  ;;  %v10916_v9 = vadd.f32 %v10915_v34, %v15302_v8  ;;  %11687 = vmatpush1.msra.mxu1 %v13051_v16 }
 0xa19   :  { %v10814_v17 = vcombine.high %v10813_v25, %v10813_v25  ;;  %v10821_v7 = vrot.slane %v10813_v25, %v15306_v58  ;;  %v10791_v53 = vrot.slane %v10780_v0, %v15866_v61  ;;  %v10787_v4 = vrot.slane %v10773_v52, %v15306_v58  ;;  %11688 = vmatprep.subr.mxu1 %v15348_v49 }
 0xa1a   :  { %v10927_v30 = vrot.slane %v10918_v43, %v15306_v58  ;;  %v10919_v1 = vmax.f32 %v10916_v9, 0.0  ;;  %11689 = vmatpush1.msra.mxu1 %v13050_v40  ;;  %v13073_v40 = vld [vmem:[%s15790_s11 + $0x160] sm:$0xff] }
 0xa1b   :  { %10796 = vrot.lane.b32.xlu0 %v10791_v53, %s13505_s14  ;;  %v10832_v54 = vrot.slane %v10821_v7, %v15866_v61  ;;  %v10828_v32 = vrot.slane %v10814_v17, %v15306_v58  ;;  %v10795_v29 = vrot.slane %v10787_v4, %v15866_v61  ;;  %11690 = vmatprep.subr.mxu1 %v15348_v49 }
 0xa1c   :  { %v10968_v15 = vrot.slane %v10919_v1, %v15306_v58  ;;  %v10935_v10 = vrot.slane %v10927_v30, %v15306_v58  ;;  %v10928_v51 = vcombine.high %v10927_v30, %v10927_v30  ;;  %11691 = vmatpush1.msra.mxu1 %v13049_v3  ;;  %v13048_v1 = vld [vmem:[%s15790_s11 + $0xb8] sm:$0xff] }
 0xa1d   :  { %10837 = vrot.lane.b32.xlu1 %v10832_v54, %s13505_s14  ;;  %v10836_v5 = vrot.slane %v10828_v32, %v15866_v61  ;;  %11692 = vmatprep.subr.mxu1 %v15348_v49 }
 0xa1e   :  { %v10969_v20 = vcombine.high %v10968_v15, %v10968_v15  ;;  %v10976_v22 = vrot.slane %v10968_v15, %v15306_v58  ;;  %v10946_v57 = vrot.slane %v10935_v10, %v15866_v61  ;;  %v10942_v26 = vrot.slane %v10928_v51, %v15306_v58  ;;  %11693 = vmatpush1.msra.mxu1 %v13048_v1 }
 0xa1f   :  { %10839 = vrot.lane.b32.xlu0 %v10836_v5, %s13505_s14  ;;  %11694 = vmatprep.subr.mxu1 %v15348_v49  ;;  %v13047_v5 = vld [vmem:[%s15790_s11 + $0xb0] sm:$0xff] }
 0xa20   :  { %v10983_v2 = vrot.slane %v10969_v20, %v15306_v58  ;;  %v10987_v60 = vrot.slane %v10976_v22, %v15866_v61  ;;  %v10950_v55 = vrot.slane %v10942_v26, %v15866_v61  ;;  %v13079_v22 = vld [vmem:[%s15790_s11 + $0x190] sm:$0xff]  ;;  %11695 = vmatpush1.msra.mxu1 %v13047_v5  ;;  %v13046_v26 = vld [vmem:[%s15790_s11 + $0xa8] sm:$0xff] }
 0xa21   :  { %10798 = vrot.lane.b32.xlu1 %v10795_v29, %s13505_s14  ;;  %11696 = vmatprep.subr.mxu1 %v15348_v49  ;;  %v13066_v5 = vld [vmem:[%s15790_s11 + $0x128] sm:$0xff] }
 0xa22   :  { %v10991_v12 = vrot.slane %v10983_v2, %v15866_v61  ;;  %11697 = vmatpush1.msra.mxu1 %v13046_v26 }
 0xa23   :  { %10951 = vrot.lane.b32.xlu0 %v10946_v57, %s13505_s14  ;;  %11698 = vmatprep.subr.mxu1 %v15348_v49 }
 0xa24   :  { %v10332_v39 = vpop.permute.xlu0 %10331 }
 0xa25   :  { %10337 = vst.msk [vmem:[#allocation5 + $0x1] sm:$0x1] %vm687_vm13, %v10332_v39  ;;  %10992 = vrot.lane.b32.xlu1 %v10987_v60, %s13505_s14 }
 0xa26   :  { %10338 = vst.msk [vmem:[#allocation5 + $0x9] sm:$0x1] %vm689_vm14, %v10332_v39  ;;  %v10373_v59 = vpop.permute.xlu1 %10372 }
 0xa27   :  { %10378 = vst.msk [vmem:[#allocation5 + $0x2] sm:$0x1] %vm687_vm13, %v10373_v59  ;;  %10994 = vrot.lane.b32.xlu0 %v10991_v12, %s13505_s14 }
 0xa28   :  { %10379 = vst.msk [vmem:[#allocation5 + $0xa] sm:$0x1] %vm689_vm14, %v10373_v59  ;;  %v10375_v13 = vpop.permute.xlu0 %10374  ;;  %v13045_v59 = vld [vmem:[%s15790_s11 + $0xa0] sm:$0xff] }
 0xa29   :  { %10380 = vst.msk [vmem:[#allocation5 + $0x32] sm:$0x1] %vm687_vm13, %v10375_v13  ;;  %10953 = vrot.lane.b32.xlu1 %v10950_v55, %s13505_s14  ;;  %11699 = vmatpush1.msra.mxu1 %v13045_v59 }
 0xa2a   :  { %10381 = vst.msk [vmem:[#allocation5 + $0x3a] sm:$0x1] %vm689_vm14, %v10375_v13  ;;  %v10334_v24 = vpop.permute.xlu1 %10333  ;;  %11700 = vmatprep.subr.mxu1 %v15348_v49 }
 0xa2b   :  { %10339 = vst.msk [vmem:[#allocation5 + $0x31] sm:$0x1] %vm687_vm13, %v10334_v24  ;;  %11701 = vmatpush1.msra.mxu1 %v13044_v14 }
 0xa2c   :  { %10340 = vst.msk [vmem:[#allocation5 + $0x39] sm:$0x1] %vm689_vm14, %v10334_v24  ;;  %11702 = vmatprep.subr.mxu1 %v15348_v49 }
 0xa2d   :  { %11703 = vmatpush1.msra.mxu1 %v13043_v37 }
 0xa2e   :  { %11732 = vmatprep.subr.mxu1 %v15348_v49 }
 0xa30   :  { %v11068_v27 = vpop.f32.mrf.mxu1 }
 0xa31   :  { %v11069_v38 = vadd.f32 %v11068_v27, %v15299_v31 }
 0xa32   :  { %v11070_v46 = vpop.f32.mrf.mxu1 }
 0xa33   :  { %v11073_v11 = vmax.f32 %v11069_v38, 0.0  ;;  %v11071_v45 = vadd.f32 %v11070_v46, %v15302_v8  ;;  %v13077_v38 = vld [vmem:[%s15790_s11 + $0x180] sm:$0xff] }
 0xa35   :  { %v11082_v36 = vrot.slane %v11073_v11, %v15306_v58  ;;  %v11074_v28 = vmax.f32 %v11071_v45, 0.0 }
 0xa37   :  { %v11083_v56 = vcombine.high %v11082_v36, %v11082_v36  ;;  %v11090_v47 = vrot.slane %v11082_v36, %v15306_v58  ;;  %v15484_v19 = vrot.slane %v11074_v28, %v15306_v58  ;;  %v13076_v28 = vld [vmem:[%s15790_s11 + $0x178] sm:$0xff] }
 0xa39   :  { %v11131_v42 = vrot.slane %v15484_v19, %v15306_v58  ;;  %v11101_v6 = vrot.slane %v11090_v47, %v15866_v61  ;;  %v11097_v18 = vrot.slane %v11083_v56, %v15306_v58  ;;  %v11124_v56 = vcombine.high %v15484_v19, %v15484_v19  ;;  %v13074_v19 = vld [vmem:[%s15790_s11 + $0x168] sm:$0xff] }
 0xa3b   :  { %11106 = vrot.lane.b32.xlu0 %v11101_v6, %s13505_s14  ;;  %v11142_v35 = vrot.slane %v11131_v42, %v15866_v61  ;;  %v11105_v62 = vrot.slane %v11097_v18, %v15866_v61  ;;  %v13075_v42 = vld [vmem:[%s15790_s11 + $0x170] sm:$0xff]  ;;  %v11138_v16 = vrot.slane %v11124_v56, %v15306_v58 }
 0xa3d   :  { %11147 = vrot.lane.b32.xlu1 %v11142_v35, %s13505_s14 }
 0xa41   :  { %11108 = vrot.lane.b32.xlu1 %v11105_v62, %s13505_s14 }
 0xa44   :  { %v10642_v23 = vpop.permute.xlu0 %10641 }
 0xa45   :  { %10647 = vst.msk [vmem:[#allocation5 + $0x5] sm:$0x1] %vm687_vm13, %v10642_v23 }
 0xa46   :  { %10648 = vst.msk [vmem:[#allocation5 + $0xd] sm:$0x1] %vm689_vm14, %v10642_v23  ;;  %v10683_v63 = vpop.permute.xlu1 %10682 }
 0xa47   :  { %10688 = vst.msk [vmem:[#allocation5 + $0x6] sm:$0x1] %vm687_vm13, %v10683_v63 }
 0xa48   :  { %10689 = vst.msk [vmem:[#allocation5 + $0xe] sm:$0x1] %vm689_vm14, %v10683_v63  ;;  %v10685_v52 = vpop.permute.xlu0 %10684 }
 0xa49   :  { %10690 = vst.msk [vmem:[#allocation5 + $0x36] sm:$0x1] %vm687_vm13, %v10685_v52 }
 0xa4a   :  { %10691 = vst.msk [vmem:[#allocation5 + $0x3e] sm:$0x1] %vm689_vm14, %v10685_v52  ;;  %v10644_v0 = vpop.permute.xlu1 %10643  ;;  %v13072_v52 = vld [vmem:[%s15790_s11 + $0x158] sm:$0xff] }
 0xa4b   :  { %10649 = vst.msk [vmem:[#allocation5 + $0x35] sm:$0x1] %vm687_vm13, %v10644_v0 }
 0xa4c   :  { %10650 = vst.msk [vmem:[#allocation5 + $0x3d] sm:$0x1] %vm689_vm14, %v10644_v0  ;;  %v13060_v0 = vld [vmem:[%s15790_s11 + $0x118] sm:$0xff] }
 0xa4d   :  { %11733 = vmatpush2.msra.mxu1 %v13060_v0 }
 0xa4e   :  { %11734 = vmatprep.subr.mxu1 %v15348_v49 }
 0xa6d   :  { %v10487_v25 = vpop.permute.xlu0 %10486 }
 0xa6e   :  { %10492 = vst.msk [vmem:[#allocation5 + $0x3] sm:$0x1] %vm687_vm13, %v10487_v25 }
 0xa6f   :  { %10493 = vst.msk [vmem:[#allocation5 + $0xb] sm:$0x1] %vm689_vm14, %v10487_v25  ;;  %v10528_v34 = vpop.permute.xlu1 %10527  ;;  %v11146_v25 = vrot.slane %v11138_v16, %v15866_v61 }
 0xa70   :  { %10533 = vst.msk [vmem:[#allocation5 + $0x4] sm:$0x1] %vm687_vm13, %v10528_v34 }
 0xa71   :  { %10534 = vst.msk [vmem:[#allocation5 + $0xc] sm:$0x1] %vm689_vm14, %v10528_v34  ;;  %v10530_v43 = vpop.permute.xlu0 %10529 }
 0xa72   :  { %10535 = vst.msk [vmem:[#allocation5 + $0x34] sm:$0x1] %vm687_vm13, %v10530_v43 }
 0xa73   :  { %10536 = vst.msk [vmem:[#allocation5 + $0x3c] sm:$0x1] %vm689_vm14, %v10530_v43  ;;  %v10489_v9 = vpop.permute.xlu1 %10488  ;;  %v13071_v43 = vld [vmem:[%s15790_s11 + $0x150] sm:$0xff] }
 0xa74   :  { %10494 = vst.msk [vmem:[#allocation5 + $0x33] sm:$0x1] %vm687_vm13, %v10489_v9 }
 0xa75   :  { %10495 = vst.msk [vmem:[#allocation5 + $0x3b] sm:$0x1] %vm689_vm14, %v10489_v9 }
 0xa8d   :  { %v10797_v17 = vpop.permute.xlu0 %10796 }
 0xa8e   :  { %10802 = vst.msk [vmem:[#allocation5 + $0x7] sm:$0x1] %vm687_vm13, %v10797_v17 }
 0xa8f   :  { %10803 = vst.msk [vmem:[#allocation5 + $0xf] sm:$0x1] %vm689_vm14, %v10797_v17  ;;  %v10838_v7 = vpop.permute.xlu1 %10837 }
 0xa90   :  { %10843 = vst.msk [vmem:[#allocation5 + $0x10] sm:$0x1] %vm687_vm13, %v10838_v7 }
 0xa91   :  { %10844 = vst.msk [vmem:[#allocation5 + $0x18] sm:$0x1] %vm689_vm14, %v10838_v7  ;;  %v10840_v53 = vpop.permute.xlu0 %10839  ;;  %v13070_v7 = vld [vmem:[%s15790_s11 + $0x148] sm:$0xff] }
 0xa92   :  { %10845 = vst.msk [vmem:[#allocation5 + $0x40] sm:$0x1] %vm687_vm13, %v10840_v53 }
 0xa93   :  { %10846 = vst.msk [vmem:[#allocation5 + $0x48] sm:$0x1] %vm689_vm14, %v10840_v53  ;;  %v10799_v30 = vpop.permute.xlu1 %10798  ;;  %v13059_v53 = vld [vmem:[%s15790_s11 + $0x110] sm:$0xff] }
 0xa94   :  { %10804 = vst.msk [vmem:[#allocation5 + $0x37] sm:$0x1] %vm687_vm13, %v10799_v30  ;;  %11735 = vmatpush2.msra.mxu1 %v13059_v53 }
 0xa95   :  { %10805 = vst.msk [vmem:[#allocation5 + $0x3f] sm:$0x1] %vm689_vm14, %v10799_v30  ;;  %v11223_v54 = vpop.f32.mrf.mxu0  ;;  %v10952_v32 = vpop.permute.xlu0 %10951  ;;  %v11467_v15 = vld [vmem:[#allocation5] sm:$0xff] }
 0xa96   :  { %v11468_v4 = vld [vmem:[#allocation5 + $0x8] sm:$0xff]  ;;  %v11224_v10 = vadd.f32 %v11223_v54, %v15299_v31  ;;  %10957 = vst.msk [vmem:[#allocation5 + $0x11] sm:$0x1] %vm687_vm13, %v10952_v32  ;;  %v13069_v54 = vld [vmem:[%s15790_s11 + $0x140] sm:$0xff] }
 0xa97   :  { %10958 = vst.msk [vmem:[#allocation5 + $0x19] sm:$0x1] %vm689_vm14, %v10952_v32  ;;  %13039 = vmatprep.mubr.msk.f32.mxu0 %vm637_vm6, %v11468_v4  ;;  %v11225_v20 = vpop.f32.mrf.mxu0  ;;  %v11378_v51 = vpop.f32.mrf.mxu1 }
 0xa98   :  { %11577 = vmatmul.mubr.f32.vlgmr.msra.gmra.mxu0 %v11467_v15  ;;  %v11228_v29 = vmax.f32 %v11224_v10, 0.0  ;;  %v11226_v57 = vadd.f32 %v11225_v20, %v15302_v8  ;;  %v11379_v2 = vadd.f32 %v11378_v51, %v15299_v31  ;;  %v10993_v60 = vpop.permute.xlu1 %10992  ;;  %v13078_v31 = vld [vmem:[%s15790_s11 + $0x188] sm:$0xff]  ;;  %v13067_v10 = vld [vmem:[%s15790_s11 + $0x130] sm:$0xff]  ;;  %v13065_v20 = vld [vmem:[%s15790_s11 + $0x120] sm:$0xff] }
 0xa99   :  { %11829 = vmatpush1.msra.mxu0 %v13080_v33  ;;  %10998 = vst.msk [vmem:[#allocation5 + $0x12] sm:$0x1] %vm687_vm13, %v10993_v60  ;;  %v11380_v39 = vpop.f32.mrf.mxu1  ;;  %v10995_v12 = vpop.permute.xlu0 %10994  ;;  %v13082_v51 = vld [vmem:[%s15790_s11 + $0x1a8] sm:$0xff] }
 0xa9a   :  { %10999 = vst.msk [vmem:[#allocation5 + $0x1a] sm:$0x1] %vm689_vm14, %v10993_v60  ;;  %11830 = vmatprep.subr.mxu0 %v15348_v49  ;;  %v11237_v55 = vrot.slane %v11228_v29, %v15306_v58  ;;  %v11229_v13 = vmax.f32 %v11226_v57, 0.0  ;;  %v11383_v24 = vmax.f32 %v11379_v2, 0.0  ;;  %v11381_v27 = vadd.f32 %v11380_v39, %v15302_v8  ;;  %11001 = vst.msk [vmem:[#allocation5 + $0x4a] sm:$0x1] %vm689_vm14, %v10995_v12 }
 0xa9b   :  { %11000 = vst.msk [vmem:[#allocation5 + $0x42] sm:$0x1] %vm687_vm13, %v10995_v12  ;;  %11831 = vmatpush1.msra.mxu0 %v13079_v22  ;;  %v13081_v22 = vld [vmem:[%s15790_s11 + $0x1a0] sm:$0xff]  ;;  %v11598_v39 = vld [vmem:[#allocation5 + $0x8] sm:$0xfe] }
 0xa9c   :  { %11832 = vmatprep.subr.mxu0 %v15348_v49  ;;  %v11238_v46 = vcombine.high %v11237_v55, %v11237_v55  ;;  %v11245_v11 = vrot.slane %v11237_v55, %v15306_v58  ;;  %v11278_v45 = vrot.slane %v11229_v13, %v15306_v58  ;;  %v11392_v8 = vrot.slane %v11383_v24, %v15306_v58  ;;  %v10954_v48 = vpop.permute.xlu1 %10953  ;;  %v11597_v12 = vld [vmem:[#allocation5] sm:$0xfe]  ;;  %v11471_v14 = vld [vmem:[#allocation5 + $0x30] sm:$0xff] }
 0xa9d   :  { %11833 = vmatpush1.msra.mxu0 %v13078_v31  ;;  %v11384_v36 = vmax.f32 %v11381_v27, 0.0  ;;  %10959 = vst.msk [vmem:[#allocation5 + $0x41] sm:$0x1] %vm687_vm13, %v10954_v48  ;;  %v11624_v24 = vrot.slane %v11598_v39, 1 }
 0xa9e   :  { %10960 = vst.msk [vmem:[#allocation5 + $0x49] sm:$0x1] %vm689_vm14, %v10954_v48  ;;  %11834 = vmatprep.subr.mxu0 %v15348_v49  ;;  %v11286_v50 = vrot.slane %v11278_v45, %v15306_v58  ;;  %v11400_v47 = vrot.slane %v11392_v8, %v15306_v58  ;;  %v11256_v41 = vrot.slane %v11245_v11, %v15866_v61  ;;  %v11472_v11 = vld [vmem:[#allocation5 + $0x38] sm:$0xff] }
 0xa9f   :  { %11835 = vmatpush1.msra.mxu0 %v13077_v38  ;;  %v11393_v6 = vcombine.high %v11392_v8, %v11392_v8  ;;  %v11433_v44 = vrot.slane %v11384_v36, %v15306_v58  ;;  %v11252_v18 = vrot.slane %v11238_v46, %v15306_v58  ;;  %v11279_v21 = vcombine.high %v11278_v45, %v11278_v45  ;;  %v11762_v36 = vld [vmem:[#allocation5 + $0x8] sm:$0xfc] }
 0xaa0   :  { %11836 = vmatprep.subr.mxu0 %v15348_v49  ;;  %v11297_v35 = vrot.slane %v11286_v50, %v15866_v61  ;;  %11261 = vrot.lane.b32.xlu0 %v11256_v41, %s13505_s14  ;;  %v11411_v62 = vrot.slane %v11400_v47, %v15866_v61  ;;  %v11621_v38 = vrot.slane %v11597_v12, 1  ;;  %v11761_v50 = vld [vmem:[#allocation5] sm:$0xfc] }
 0xaa1   :  { %11837 = vmatpush1.msra.mxu0 %v13076_v28  ;;  %v11434_v23 = vcombine.high %v11433_v44, %v11433_v44  ;;  %v11260_v3 = vrot.slane %v11252_v18, %v15866_v61  ;;  %v11407_v63 = vrot.slane %v11393_v6, %v15306_v58  ;;  %v11293_v34 = vrot.slane %v11279_v21, %v15306_v58  ;;  %v11766_v18 = vld [vmem:[#allocation5 + $0x38] sm:$0xfc] }
 0xaa2   :  { %11838 = vmatprep.subr.mxu0 %v15348_v49  ;;  %11302 = vrot.lane.b32.xlu1 %v11297_v35, %s13505_s14  ;;  %v11441_v30 = vrot.slane %v11433_v44, %v15306_v58  ;;  %v11777_v44 = vrot.slane %v11761_v50, 2  ;;  %v11604_v35 = vld [vmem:[#allocation5 + $0x38] sm:$0xfe] }
 0xaa3   :  { %11839 = vmatpush1.msra.mxu0 %v13075_v42  ;;  %v11415_v9 = vrot.slane %v11407_v63, %v15866_v61  ;;  %v11448_v17 = vrot.slane %v11434_v23, %v15306_v58  ;;  %v11301_v1 = vrot.slane %v11293_v34, %v15866_v61  ;;  %v13068_v58 = vld [vmem:[%s15790_s11 + $0x138] sm:$0xff]  ;;  %v11780_v42 = vrot.slane %v11762_v36, 2  ;;  %s13532_s11 = smov [#allocation27]  }
 0xaa4   :  { %11840 = vmatprep.subr.mxu0 %v15348_v49  ;;  %11416 = vrot.lane.b32.xlu0 %v11411_v62, %s13505_s14  ;;  %v11452_v33 = vrot.slane %v11441_v30, %v15866_v61  ;;  %v11790_v30 = vrot.slane %v11766_v18, 2 }
 0xaa5   :  { %11841 = vmatpush1.msra.mxu0 %v13074_v19  ;;  %v11456_v32 = vrot.slane %v11448_v17, %v15866_v61  ;;  %v11634_v17 = vrot.slane %v11604_v35, 1 }
 0xaa6   :  { %11842 = vmatprep.subr.mxu0 %v15348_v49  ;;  %11263 = vrot.lane.b32.xlu1 %v11260_v3, %s13505_s14 }
 0xaa7   :  { %11843 = vmatpush1.msra.mxu0 %v13073_v40 }
 0xaa8   :  { %11844 = vmatprep.subr.mxu0 %v15348_v49  ;;  %11149 = vrot.lane.b32.xlu0 %v11146_v25, %s13505_s14 }
 0xaa9   :  { %11845 = vmatpush1.msra.mxu0 %v13072_v52 }
 0xaaa   :  { %11846 = vmatprep.subr.mxu0 %v15348_v49  ;;  %11418 = vrot.lane.b32.xlu1 %v11415_v9, %s13505_s14 }
 0xaab   :  { %11847 = vmatpush1.msra.mxu0 %v13071_v43 }
 0xaac   :  { %11848 = vmatprep.subr.mxu0 %v15348_v49  ;;  %11304 = vrot.lane.b32.xlu0 %v11301_v1, %s13505_s14 }
 0xaad   :  { %11849 = vmatpush1.msra.mxu0 %v13070_v7  ;;  %v11107_v4 = vpop.permute.xlu0 %11106  ;;  %v11603_v7 = vld [vmem:[#allocation5 + $0x30] sm:$0xfe] }
 0xaae   :  { %11850 = vmatprep.subr.mxu0 %v15348_v49  ;;  %11112 = vst.msk [vmem:[#allocation5 + $0x13] sm:$0x1] %vm687_vm13, %v11107_v4  ;;  %11459 = vrot.lane.b32.xlu1 %v11456_v32, %s13505_s14 }
 0xaaf   :  { %11113 = vst.msk [vmem:[#allocation5 + $0x1b] sm:$0x1] %vm689_vm14, %v11107_v4  ;;  %11851 = vmatpush1.msra.mxu0 %v13069_v54  ;;  %v11148_v15 = vpop.permute.xlu1 %11147  ;;  %v11765_v54 = vld [vmem:[#allocation5 + $0x30] sm:$0xfc] }
 0xab0   :  { %11852 = vmatprep.subr.mxu0 %v15348_v49  ;;  %11153 = vst.msk [vmem:[#allocation5 + $0x14] sm:$0x1] %vm687_vm13, %v11148_v15  ;;  %11457 = vrot.lane.b32.xlu0 %v11452_v33, %s13505_s14 }
 0xab1   :  { %11154 = vst.msk [vmem:[#allocation5 + $0x1c] sm:$0x1] %vm689_vm14, %v11148_v15  ;;  %11853 = vmatpush1.msra.mxu0 %v13068_v58 }
 0xab2   :  { %11854 = vmatprep.subr.mxu0 %v15348_v49 }
 0xab3   :  { %11855 = vmatpush1.msra.mxu0 %v13067_v10  ;;  %v11109_v61 = vpop.permute.xlu1 %11108 }
 0xab4   :  { %11856 = vmatprep.subr.mxu0 %v15348_v49  ;;  %11114 = vst.msk [vmem:[#allocation5 + $0x43] sm:$0x1] %vm687_vm13, %v11109_v61 }
 0xab5   :  { %11115 = vst.msk [vmem:[#allocation5 + $0x4b] sm:$0x1] %vm689_vm14, %v11109_v61  ;;  %11857 = vmatpush1.msra.mxu0 %v13066_v5  ;;  %v11631_v5 = vrot.slane %v11603_v7, 1 }
 0xab6   :  { %11858 = vmatprep.subr.mxu0 %v15348_v49 }
 0xab7   :  { %11859 = vmatpush1.msra.mxu0 %v13065_v20 }
 0xab8   :  { %11888 = vmatprep.subr.mxu0 %v15348_v49 }
 0xab9   :  { %11889 = vmatpush2.msra.mxu0 %v13082_v51  ;;  %v11787_v51 = vrot.slane %v11765_v54, 2 }
 0xaba   :  { %11890 = vmatprep.subr.mxu0 %v15348_v49 }
 0xabb   :  { %11891 = vmatpush2.msra.mxu0 %v13081_v22 }
 0xb12   :  { %v11262_v29 = vpop.permute.xlu0 %11261 }
 0xb13   :  { %11267 = vst.msk [vmem:[#allocation5 + $0x15] sm:$0x1] %vm687_vm13, %v11262_v29 }
 0xb14   :  { %11268 = vst.msk [vmem:[#allocation5 + $0x1d] sm:$0x1] %vm689_vm14, %v11262_v29  ;;  %v11303_v57 = vpop.permute.xlu1 %11302 }
 0xb15   :  { %11308 = vst.msk [vmem:[#allocation5 + $0x16] sm:$0x1] %vm687_vm13, %v11303_v57 }
 0xb16   :  { %11309 = vst.msk [vmem:[#allocation5 + $0x1e] sm:$0x1] %vm689_vm14, %v11303_v57  ;;  %v11417_v2 = vpop.permute.xlu0 %11416 }
 0xb17   :  { %11422 = vst.msk [vmem:[#allocation5 + $0x17] sm:$0x1] %vm687_vm13, %v11417_v2 }
 0xb18   :  { %11423 = vst.msk [vmem:[#allocation5 + $0x1f] sm:$0x1] %vm689_vm14, %v11417_v2  ;;  %v11264_v60 = vpop.permute.xlu1 %11263 }
 0xb19   :  { %11269 = vst.msk [vmem:[#allocation5 + $0x45] sm:$0x1] %vm687_vm13, %v11264_v60 }
 0xb1a   :  { %11270 = vst.msk [vmem:[#allocation5 + $0x4d] sm:$0x1] %vm689_vm14, %v11264_v60  ;;  %v11150_v49 = vpop.permute.xlu0 %11149 }
 0xb1b   :  { %11155 = vst.msk [vmem:[#allocation5 + $0x44] sm:$0x1] %vm687_vm13, %v11150_v49 }
 0xb1c   :  { %11156 = vst.msk [vmem:[#allocation5 + $0x4c] sm:$0x1] %vm689_vm14, %v11150_v49  ;;  %v11419_v26 = vpop.permute.xlu1 %11418 }
 0xb1d   :  { %11424 = vst.msk [vmem:[#allocation5 + $0x47] sm:$0x1] %vm687_vm13, %v11419_v26 }
 0xb1e   :  { %11425 = vst.msk [vmem:[#allocation5 + $0x4f] sm:$0x1] %vm689_vm14, %v11419_v26  ;;  %v11305_v31 = vpop.permute.xlu0 %11304  ;;  %v15715_v55 = vld [vmem:[#allocation5 + $0x10] sm:$0xff] }
 0xb1f   :  { %v11470_v59 = vld [vmem:[#allocation5 + $0x18] sm:$0xff]  ;;  %11310 = vst.msk [vmem:[#allocation5 + $0x46] sm:$0x1] %vm687_vm13, %v11305_v31  ;;  %v11622_v46 = vrot.slane %v15715_v55, 1  ;;  %v11778_v56 = vrot.slane %v15715_v55, 2 }
 0xb20   :  { %11311 = vst.msk [vmem:[#allocation5 + $0x4e] sm:$0x1] %vm689_vm14, %v11305_v31  ;;  %13040 = vmatprep.mubr.msk.f32.mxu0 %vm637_vm6, %v11470_v59  ;;  %v11460_v13 = vpop.permute.xlu1 %11459  ;;  %v11625_v27 = vrot.slane %v11470_v59, 1  ;;  %v11781_v28 = vrot.slane %v11470_v59, 2 }
 0xb21   :  { %11582 = vmatmul.mubr.f32.gmra.mxu0 %v15715_v55  ;;  %11465 = vst.msk [vmem:[#allocation5 + $0x50] sm:$0x1] %vm687_vm13, %v11460_v13  ;;  %v11623_v8 = vsel %vm878_vm15, %v11621_v38, %v11622_v46  ;;  %v11779_v19 = vsel %vm311_vm2, %v11777_v44, %v11778_v56  ;;  %v13038_v38 = vld [vmem:[#allocation25] ss:$0 sm:$0xff] }
 0xb22   :  { %11466 = vst.msk [vmem:[#allocation5 + $0x58] sm:$0x1] %vm689_vm14, %v11460_v13  ;;  %13041 = vmatprep.mubr.msk.f32.mxu0 %vm637_vm6, %v11472_v11  ;;  %v11626_v45 = vsel %vm878_vm15, %v11624_v24, %v11625_v27  ;;  %v11458_v48 = vpop.permute.xlu0 %11457  ;;  %v11782_v6 = vsel %vm311_vm2, %v11780_v42, %v11781_v28 }
 0xb23   :  { %13061 = vmatprep.mubr.msk.f32.mxu1 %vm637_vm6, %v11626_v45  ;;  %11463 = vst.msk [vmem:[#allocation5 + $0x20] sm:$0x1] %vm687_vm13, %v11458_v48 }
 0xb24   :  { %11464 = vst.msk [vmem:[#allocation5 + $0x28] sm:$0x1] %vm689_vm14, %v11458_v48  ;;  %11737 = vmatmul.mubr.f32.vlgmr.msra.gmra.mxu1 %v11623_v8 }
 0xb25   :  { %11587 = vmatmul.mubr.f32.gmra.mxu0 %v11471_v14 }
 0xb26   :  { %v11473_v41 = vld [vmem:[#allocation5 + $0x40] sm:$0xff] }
 0xb27   :  { %v11474_v47 = vld [vmem:[#allocation5 + $0x48] sm:$0xff]  ;;  %v11632_v1 = vrot.slane %v11473_v41, 1  ;;  %v11788_v15 = vrot.slane %v11473_v41, 2 }
 0xb28   :  { %13042 = vmatprep.mubr.msk.f32.mxu0 %vm637_vm6, %v11474_v47  ;;  %v11635_v3 = vrot.slane %v11474_v47, 1  ;;  %v11791_v0 = vrot.slane %v11474_v47, 2  ;;  %v11607_v33 = vld [vmem:[#allocation5 + $0x50] sm:$0x1] }
 0xb29   :  { %11592 = vmatmul.mubr.f32.gmra.mxu0 %v11473_v41  ;;  %v11608_v25 = vld [vmem:[#allocation5 + $0x58] sm:$0x1]  ;;  %v11767_v20 = vld [vmem:[#allocation5 + $0x50] sm:$0x3]  ;;  %v11633_v22 = vsel %vm878_vm15, %v11631_v5, %v11632_v1  ;;  %v11637_v29 = vrot.slane %v11607_v33, 1  ;;  %v11789_v2 = vsel %vm311_vm2, %v11787_v51, %v11788_v15 }
 0xb2a   :  { %13083 = vmatprep.mubr.msk.f32.mxu0 %vm637_vm6, %v11782_v6  ;;  %v11601_v62 = vld [vmem:[#allocation5 + $0x20] sm:$0x1]  ;;  %v11768_v53 = vld [vmem:[#allocation5 + $0x58] sm:$0x3]  ;;  %v11636_v32 = vsel %vm878_vm15, %v11634_v17, %v11635_v3  ;;  %v11639_v58 = vrot.slane %v11608_v25, 1  ;;  %v11792_v10 = vsel %vm311_vm2, %v11790_v30, %v11791_v0  ;;  %v11793_v60 = vrot.slane %v11767_v20, 2 }
 0xb2b   :  { %v11602_v37 = vld [vmem:[#allocation5 + $0x28] sm:$0x1]  ;;  %v11627_v23 = vrot.slane %v11601_v62, 1  ;;  %v11763_v63 = vld [vmem:[#allocation5 + $0x20] sm:$0x3]  ;;  %v11795_v61 = vrot.slane %v11768_v53, 2  ;;  %v11638_v26 = vsel %vm878_vm15, %v11632_v1, %v11637_v29 }
 0xb2c   :  { %v11764_v21 = vld [vmem:[#allocation5 + $0x28] sm:$0x3]  ;;  %v11629_v16 = vrot.slane %v11602_v37, 1  ;;  %v11783_v52 = vrot.slane %v11763_v63, 2  ;;  %v11640_v57 = vsel %vm878_vm15, %v11635_v3, %v11639_v58  ;;  %v11794_v39 = vsel %vm311_vm2, %v11788_v15, %v11793_v60 }
 0xb2d   :  { %v11785_v40 = vrot.slane %v11764_v21, 2  ;;  %11893 = vmatmul.mubr.f32.vlgmr.msra.gmra.mxu0 %v11779_v19  ;;  %v11628_v9 = vsel %vm878_vm15, %v11622_v46, %v11627_v23  ;;  %v11796_v49 = vsel %vm311_vm2, %v11791_v0, %v11795_v61 }
 0xb2e   :  { %v11630_v34 = vsel %vm878_vm15, %v11625_v27, %v11629_v16  ;;  %v11784_v4 = vsel %vm311_vm2, %v11778_v56, %v11783_v52 }
 0xb2f   :  { %v11786_v43 = vsel %vm311_vm2, %v11781_v28, %v11785_v40  ;;  %13062 = vmatprep.mubr.msk.f32.mxu1 %vm637_vm6, %v11630_v34 }
 0xb30   :  { %13084 = vmatprep.mubr.msk.f32.mxu0 %vm637_vm6, %v11786_v43  ;;  %11742 = vmatmul.mubr.f32.gmra.mxu1 %v11628_v9 }
 0xb31   :  { %13063 = vmatprep.mubr.msk.f32.mxu1 %vm637_vm6, %v11636_v32  ;;  %11898 = vmatmul.mubr.f32.gmra.mxu0 %v11784_v4 }
 0xb32   :  { %13085 = vmatprep.mubr.msk.f32.mxu0 %vm637_vm6, %v11792_v10 }
 0xb34   :  { %11747 = vmatmul.mubr.f32.gmra.mxu1 %v11633_v22 }
 0xb35   :  { %13064 = vmatprep.mubr.msk.f32.mxu1 %vm637_vm6, %v11640_v57  ;;  %11903 = vmatmul.mubr.f32.gmra.mxu0 %v11789_v2 }
 0xb36   :  { %13086 = vmatprep.mubr.msk.f32.mxu0 %vm637_vm6, %v11796_v49 }
 0xb38   :  { %11752 = vmatmul.mubr.f32.gmra.mxu1 %v11638_v26 }
 0xb39   :  { %11908 = vmatmul.mubr.f32.gmra.mxu0 %v11794_v39 }
 0xb58   :  { %v11578_v12 = vpop.f32.mrf.mxu0 }
 0xb59   :  { %v11579_v45 = vadd.f32 %v13038_v38, %v11578_v12 }
 0xb5a   :  { %v11580_v31 = vpop.f32.mrf.mxu0 }
 0xbe1   :  { %v11583_v59 = vpop.f32.mrf.mxu0 }
 0xbe2   :  { %v11584_v28 = vadd.f32 %v13038_v38, %v11583_v59 }
 0xbe3   :  { %v11585_v55 = vpop.f32.mrf.mxu0 }
 0xbe4   :  { %v11738_v13 = vpop.f32.mrf.mxu1 }
 0xbe5   :  { %v11588_v24 = vpop.f32.mrf.mxu0  ;;  %v11757_v48 = vadd.f32 %v11738_v13, %v11579_v45 }
 0xbe6   :  { %v11740_v27 = vpop.f32.mrf.mxu1  ;;  %v11589_v6 = vadd.f32 %v13038_v38, %v11588_v24 }
 0xbe7   :  { %v11590_v46 = vpop.f32.mrf.mxu0 }
 0xbe9   :  { %v11593_v11 = vpop.f32.mrf.mxu0 }
 0xbea   :  { %v11594_v62 = vadd.f32 %v13038_v38, %v11593_v11 }
 0xbeb   :  { %v11595_v8 = vpop.f32.mrf.mxu0 }
 0xbed   :  { %v11894_v14 = vpop.f32.mrf.mxu0 }
 0xbee   :  { %v11913_v36 = vadd.f32 %v11894_v14, %v11757_v48 }
 0xbef   :  { %v11896_v50 = vpop.f32.mrf.mxu0 }
 0xbf0   :  { %13212 = vtanh.f32 %v11913_v36  ;;  %v11743_v56 = vpop.f32.mrf.mxu1 }
 0xbf1   :  { %v11758_v47 = vadd.f32 %v11743_v56, %v11584_v28  ;;  %v11899_v41 = vpop.f32.mrf.mxu0 }
 0xbf2   :  { %v11745_v42 = vpop.f32.mrf.mxu1 }
 0xbf3   :  { %v11914_v44 = vadd.f32 %v11899_v41, %v11758_v47  ;;  %v11901_v35 = vpop.f32.mrf.mxu0 }
 0xbf4   :  { %v11748_v18 = vpop.f32.mrf.mxu1 }
 0xbf5   :  { %13214 = vtanh.f32 %v11914_v44  ;;  %v11759_v19 = vadd.f32 %v11748_v18, %v11589_v6  ;;  %v11904_v37 = vpop.f32.mrf.mxu0 }
 0xbf6   :  { %v11750_v21 = vpop.f32.mrf.mxu1 }
 0xbf7   :  { %v11915_v16 = vadd.f32 %v11904_v37, %v11759_v19  ;;  %v11906_v40 = vpop.f32.mrf.mxu0 }
 0xbf8   :  { %v11753_v23 = vpop.f32.mrf.mxu1 }
 0xbf9   :  { %13216 = vtanh.f32 %v11915_v16  ;;  %v11760_v3 = vadd.f32 %v11753_v23, %v11594_v62  ;;  %v11909_v63 = vpop.f32.mrf.mxu0 }
 0xbfa   :  { %v11755_v52 = vpop.f32.mrf.mxu1 }
 0xbfb   :  { %v11916_v0 = vadd.f32 %v11909_v63, %v11760_v3  ;;  %v11911_v25 = vpop.f32.mrf.mxu0 }
 0xbfd   :  { %v13213_v34 = vpop.eup %13212  ;;  %13218 = vtanh.f32 %v11916_v0 }
 0xbfe   :  { %11921 = vst.msk [vmem:[#allocation27] sm:$0xff] %vm637_vm6, %v13213_v34  ;;  %11929 = vrot.lane.b32.xlu0 %v13213_v34, %s13524_s21 }
 0xc02   :  { %v13215_v43 = vpop.eup %13214  ;;  %11946 = vrot.lane.b32.xlu0 %v13213_v34, %s13525_s0 }
 0xc03   :  { %11922 = vst.msk [vmem:[#allocation27 + $0x8] sm:$0xff] %vm637_vm6, %v13215_v43  ;;  %11931 = vrot.lane.b32.xlu1 %v13215_v43, %s13524_s21 }
 0xc06   :  { %v13217_v9 = vpop.eup %13216 }
 0xc07   :  { %11923 = vst.msk [vmem:[#allocation27 + $0x30] sm:$0xff] %vm637_vm6, %v13217_v9  ;;  %11948 = vrot.lane.b32.xlu1 %v13215_v43, %s13525_s0  ;;  %11933 = vrot.lane.b32.xlu0 %v13217_v9, %s13524_s21 }
 0xc0a   :  { %v13219_v17 = vpop.eup %13218 }
 0xc0b   :  { %11924 = vst.msk [vmem:[#allocation27 + $0x38] sm:$0xff] %vm637_vm6, %v13219_v17  ;;  %11950 = vrot.lane.b32.xlu0 %v13217_v9, %s13525_s0  ;;  %11935 = vrot.lane.b32.xlu1 %v13219_v17, %s13524_s21  ;;  %s11968_s21 = sshll.u32 %s13532_s11, 4  ;;  %s11969_s21 = int_to_ptr.vmem [resolvable:$true] %s11968_s21 }
 0xc0c   :  { %p13471_p5 = scmp.lt.s32.totalorder %s11969_s21, %s11969_s21 }
 0xc0f   :  { %11952 = vrot.lane.b32.xlu1 %v13219_v17, %s13525_s0  ;;  %s13466_s0 = scalar_lea.vmem %s11969_s21, 1536 }
 0xc10   :  { %p13467_p4 = scmp.ne.s32.totalorder %s11969_s21, %s13466_s0  ;;  %p13472_p6 = scmp.lt.s32.totalorder %s13466_s0, %s13466_s0 }
 0xc12   :  { %p13473_p7 = por %p13472_p6, %p13471_p5 }
 0xc14   :  { %p13474_p8 = pnand %p13473_p7, %p13467_p4 }
 0xc70   :  { %v11930_v7 = vpop.permute.xlu0 %11929 }
 0xc71   :  { %11942 = vst.msk [vmem:[#allocation27 + $0x10] sm:$0xff] %vm637_vm6, %v11930_v7 }
 0xc74   :  { %v11947_v53 = vpop.permute.xlu0 %11946 }
 0xc75   :  { %11959 = vst.msk [vmem:[#allocation27 + $0x20] sm:$0xff] %vm637_vm6, %v11947_v53  ;;  %v11932_v30 = vpop.permute.xlu1 %11931 }
 0xc76   :  { %11943 = vst.msk [vmem:[#allocation27 + $0x18] sm:$0xff] %vm637_vm6, %v11932_v30 }
 0xc79   :  { %v11934_v1 = vpop.permute.xlu0 %11933  ;;  %v11949_v54 = vpop.permute.xlu1 %11948 }
 0xc7a   :  { %11944 = vst.msk [vmem:[#allocation27 + $0x40] sm:$0xff] %vm637_vm6, %v11934_v1  ;;  %11960 = vst.msk [vmem:[#allocation27 + $0x28] sm:$0xff] %vm637_vm6, %v11949_v54 }
 0xc7d   :  { %v11951_v32 = vpop.permute.xlu0 %11950  ;;  %v11936_v4 = vpop.permute.xlu1 %11935 }
 0xc7e   :  { %11961 = vst.msk [vmem:[#allocation27 + $0x50] sm:$0xff] %vm637_vm6, %v11951_v32  ;;  %11945 = vst.msk [vmem:[#allocation27 + $0x48] sm:$0xff] %vm637_vm6, %v11936_v4 }
 0xc81   :  { %v11953_v58 = vpop.permute.xlu1 %11952 }
 0xc82   :  { %11962 = vst.msk [vmem:[#allocation27 + $0x58] sm:$0xff] %vm637_vm6, %v11953_v58 }
 0xc83   :  { %13477 = shalt.err (!%p13474_p8)
}
 0xc84   :  { %11974 = dma.vmem_to_hbm [thread:$0]  %s11969_s21, 1536, %s15792_s13, [#allocation9], %s13504_s30, %s13504_s30, %s13505_s14  }
 0xc85   :  { %13500 = dma.done.wait [#allocation9], 1536  }
 0xc86   :  { %13501 = vsyncadd [#allocation9], 4294965760 }
 0xc87   :  { %11978 = vsyncpa [#allocation8], 1 }
 0xc88   :  { %11979 = vsyncpa [#allocation11], 1 }
 0xc89   :  { %11980 = vsyncpa [#allocation14], 1 }
 0xc8a   :  { %11981 = vsyncpa [#allocation17], 1 }
 0xc8b   :  { %11982 = vsyncpa [#allocation20], 1 }
 0xc8c   :  { %11983 = vsyncpa [#allocation23], 1 }
 0xc8d   :  { %11984 = vsyncpa [#allocation26], 1 }
 0xc8e   :  { %11985 = vsyncpa [#allocation9], 1 }

</bundles_post_ra>
